<compile_context>
chip_gen: v7x
topology: tpu7x:2x2x1
jax: 0.10.0
libtpu: 0.0.40
codegen_flags: <defaults>
</compile_context>

<pallas_src>
import math

import jax
import jax.numpy as jnp
from jax.experimental import pallas as pl
from jax.experimental.pallas import tpu as pltpu

# ---- small config consistent with the module structure --------------------
VOCAB = 1000           # input_dim (scaled down)
MODEL_DIM = 32         # model_dim
NUM_HEADS = 4          # num_heads
NUM_LAYERS = 2         # num_layers
DIM_FF = 64            # dim_feedforward (scaled down)
OUTPUT_DIM = 10        # output_dim
MAX_POS = 1000         # positional_encoding length
LN_EPS = 1e-5
PARAMS_PER_LAYER = 12  # wqkv, bqkv, wo, bo, g1, be1, w1, b1, w2, b2, g2, be2


def _layer_norm(h, gamma, beta):
    mu = jnp.mean(h, axis=-1, keepdims=True)
    var = jnp.mean((h - mu) ** 2, axis=-1, keepdims=True)
    return (h - mu) * jax.lax.rsqrt(var + LN_EPS) * gamma + beta


# ---------------------------------------------------------------------------
# One fused kernel: [2 x TransformerEncoderLayer] + mean over T + final Linear
# ---------------------------------------------------------------------------
def make_fused_kernel(T, B, E, H, F):
    Dh = E // H
    scale = 1.0 / math.sqrt(Dh)
    TB = T * B
    P = PARAMS_PER_LAYER

    def kernel(*refs):
        # refs = [x, layer0 params..., layer1 params..., wfc, bfc, out]
        x_ref = refs[0]
        layer_refs = refs[1:1 + NUM_LAYERS * P]
        wfc_ref = refs[1 + NUM_LAYERS * P]
        bfc_ref = refs[2 + NUM_LAYERS * P]
        o_ref = refs[3 + NUM_LAYERS * P]

        x = x_ref[...]                                            # (T*B, E) f32

        for l in range(NUM_LAYERS):
            (wqkv, bqkv, wo, bo, g1, be1,
             w1, b1, w2, b2, g2, be2) = layer_refs[l * P:(l + 1) * P]

            # ---- packed QKV in-projection: one (T*B,E)x(E,3E) bf16 matmul, f32 acc
            qkv = jnp.dot(x.astype(jnp.bfloat16), wqkv[...],
                          preferred_element_type=jnp.float32) + bqkv[...]
            q = qkv[:, 0 * E:1 * E]
            k = qkv[:, 1 * E:2 * E]
            v = qkv[:, 2 * E:3 * E]

            wo_f = wo[...]                                        # (E, E) f32

            # ---- multi-head attention, batched over the T groups.
            # concat_h(ctx_h) @ Wo  ==  sum_h ctx_h @ Wo[h*Dh:(h+1)*Dh, :]
            # (accumulation avoids any lane-axis concatenation / relayout)
            attn = jnp.zeros((TB, E), jnp.float32)
            for h in range(H):
                c0 = h * Dh
                qh = q[:, c0:c0 + Dh].reshape(T, B, Dh)
                kh = k[:, c0:c0 + Dh].reshape(T, B, Dh)
                vh = v[:, c0:c0 + Dh].reshape(T, B, Dh)
                s = jnp.einsum('tbd,tsd->tbs', qh, kh,
                               preferred_element_type=jnp.float32) * scale
                s = s - jnp.max(s, axis=-1, keepdims=True)
                p = jnp.exp(s)
                p = p * pl.reciprocal(jnp.sum(p, axis=-1, keepdims=True),
                                      approx=True)
                ctx_h = jnp.einsum('tbs,tsd->tbd', p, vh,
                                   preferred_element_type=jnp.float32)
                attn = attn + jnp.dot(ctx_h.reshape(TB, Dh),
                                      wo_f[c0:c0 + Dh, :],
                                      preferred_element_type=jnp.float32)
            attn = attn + bo[...]

            # ---- residual + LayerNorm 1 (post-norm, f32 statistics)
            h1 = _layer_norm(x + attn, g1[...], be1[...])

            # ---- feed-forward (Linear -> ReLU -> Linear), bf16 matmuls / f32 acc
            f = jnp.dot(h1.astype(jnp.bfloat16), w1[...],
                        preferred_element_type=jnp.float32) + b1[...]
            f = jnp.maximum(f, 0.0)
            f = jnp.dot(f.astype(jnp.bfloat16), w2[...],
                        preferred_element_type=jnp.float32) + b2[...]

            # ---- residual + LayerNorm 2
            x = _layer_norm(h1 + f, g2[...], be2[...])

        # ---- epilogue: mean over the sequence axis T (rows are T-major) + final fc
        xm = jnp.mean(x.reshape(T, B, E), axis=0)                 # (B, E)
        o_ref[...] = jnp.dot(xm.astype(jnp.bfloat16), wfc_ref[...],
                             preferred_element_type=jnp.float32) + bfc_ref[...]

    return kernel


# ---------------------------------------------------------------------------
# Deterministic parameter init (shapes follow the PyTorch module __init__;
# linear weights are stored pre-transposed to (in, out); big matmul weights in bf16).
# ---------------------------------------------------------------------------
def init_params(key):
    E, F, O = MODEL_DIM, DIM_FF, OUTPUT_DIM
    keys = jax.random.split(key, 2 + NUM_LAYERS)
    emb = jax.random.normal(keys[0], (VOCAB, E), jnp.float32)      # nn.Embedding ~ N(0,1)
    pos = jnp.zeros((1, MAX_POS, E), jnp.float32)                  # nn.Parameter(zeros(1,1000,E))

    std = 0.05
    layers = []
    for l in range(NUM_LAYERS):
        lk = jax.random.split(keys[1 + l], 6)
        wq = jax.random.normal(lk[0], (E, E), jnp.float32) * std
        wk = jax.random.normal(lk[1], (E, E), jnp.float32) * std
        wv = jax.random.normal(lk[2], (E, E), jnp.float32) * std
        wqkv = jnp.concatenate([wq, wk, wv], axis=1).astype(jnp.bfloat16)   # (E, 3E)
        bqkv = jnp.zeros((1, 3 * E), jnp.float32)
        wo = jax.random.normal(lk[3], (E, E), jnp.float32) * std            # f32 (row-sliced per head)
        bo = jnp.zeros((1, E), jnp.float32)
        g1 = jnp.ones((1, E), jnp.float32)
        be1 = jnp.zeros((1, E), jnp.float32)
        w1 = (jax.random.normal(lk[4], (E, F), jnp.float32) * std).astype(jnp.bfloat16)
        b1 = jnp.zeros((1, F), jnp.float32)
        w2 = (jax.random.normal(lk[5], (F, E), jnp.float32) * std).astype(jnp.bfloat16)
        b2 = jnp.zeros((1, E), jnp.float32)
        g2 = jnp.ones((1, E), jnp.float32)
        be2 = jnp.zeros((1, E), jnp.float32)
        layers.append((wqkv, bqkv, wo, bo, g1, be1, w1, b1, w2, b2, g2, be2))

    wfc = (jax.random.normal(keys[-1], (E, O), jnp.float32) * std).astype(jnp.bfloat16)
    bfc = jnp.zeros((1, O), jnp.float32)
    return emb, pos, layers, wfc, bfc


# ---------------------------------------------------------------------------
# Forward pass: embedding gather + positional add are plain-JAX glue; everything
# else (both encoder layers, the T-mean and the final Linear) is ONE pallas_call.
# ---------------------------------------------------------------------------
@jax.jit
def simple_transformer_forward(src, params):
    emb, pos, layers, wfc, bfc = params
    B, T = src.shape
    x = jnp.take(emb, src, axis=0) + pos[:, :T, :]                 # (B, T, E)
    # PyTorch batch_first=False quirk: (B,T,E) is read as (S=B, N=T, E), attention over B
    # per T.  Make T the major axis and flatten to a lane/sublane friendly (T*B, E) slab.
    x = jnp.transpose(x, (1, 0, 2)).reshape(T * B, MODEL_DIM).astype(jnp.float32)

    flat_params = [p for lp in layers for p in lp]
    n_inputs = 1 + len(flat_params) + 2
    kernel = make_fused_kernel(T, B, MODEL_DIM, NUM_HEADS, DIM_FF)

    return pl.pallas_call(
        kernel,
        out_shape=jax.ShapeDtypeStruct((B, OUTPUT_DIM), jnp.float32),
        in_specs=[pl.BlockSpec(memory_space=pltpu.MemorySpace.VMEM)] * n_inputs,
        out_specs=pl.BlockSpec(memory_space=pltpu.MemorySpace.VMEM),
    )(x, *flat_params, wfc, bfc)


if __name__ == "__main__":
    key = jax.random.PRNGKey(0)
    pkey, dkey = jax.random.split(key)
    params = init_params(pkey)

    B, T = 8, 16
    src = jax.random.randint(dkey, (B, T), 0, VOCAB)               # like torch.randint(0, input_dim, (B, T))

    out = simple_transformer_forward(src, params)
    out = jax.block_until_ready(out)
    assert out.shape == (B, OUTPUT_DIM)
    assert bool(jnp.all(jnp.isfinite(out)))
    print("KERNEL_OK")
</pallas_src>

<mosaic_0001>
module attributes {stable_mosaic.version = 11 : i64} {
  func.func @kernel(%arg0: memref<128x32xf32, #tpu.memory_space<vmem>>, %arg1: memref<32x96xbf16, #tpu.memory_space<vmem>>, %arg2: memref<1x96xf32, #tpu.memory_space<vmem>>, %arg3: memref<32x32xf32, #tpu.memory_space<vmem>>, %arg4: memref<1x32xf32, #tpu.memory_space<vmem>>, %arg5: memref<1x32xf32, #tpu.memory_space<vmem>>, %arg6: memref<1x32xf32, #tpu.memory_space<vmem>>, %arg7: memref<32x64xbf16, #tpu.memory_space<vmem>>, %arg8: memref<1x64xf32, #tpu.memory_space<vmem>>, %arg9: memref<64x32xbf16, #tpu.memory_space<vmem>>, %arg10: memref<1x32xf32, #tpu.memory_space<vmem>>, %arg11: memref<1x32xf32, #tpu.memory_space<vmem>>, %arg12: memref<1x32xf32, #tpu.memory_space<vmem>>, %arg13: memref<32x96xbf16, #tpu.memory_space<vmem>>, %arg14: memref<1x96xf32, #tpu.memory_space<vmem>>, %arg15: memref<32x32xf32, #tpu.memory_space<vmem>>, %arg16: memref<1x32xf32, #tpu.memory_space<vmem>>, %arg17: memref<1x32xf32, #tpu.memory_space<vmem>>, %arg18: memref<1x32xf32, #tpu.memory_space<vmem>>, %arg19: memref<32x64xbf16, #tpu.memory_space<vmem>>, %arg20: memref<1x64xf32, #tpu.memory_space<vmem>>, %arg21: memref<64x32xbf16, #tpu.memory_space<vmem>>, %arg22: memref<1x32xf32, #tpu.memory_space<vmem>>, %arg23: memref<1x32xf32, #tpu.memory_space<vmem>>, %arg24: memref<1x32xf32, #tpu.memory_space<vmem>>, %arg25: memref<32x10xbf16, #tpu.memory_space<vmem>>, %arg26: memref<1x10xf32, #tpu.memory_space<vmem>>, %arg27: memref<8x10xf32, #tpu.memory_space<vmem>>) attributes {dimension_semantics = [], scalar_prefetch = 0 : i64, scratch_operands = 0 : i64, tpu.core_type = #tpu.core_type<tc>} {
    %c0 = arith.constant 0 : index
    %c0_0 = arith.constant 0 : index
    %0 = vector.load %arg0[%c0, %c0_0] : memref<128x32xf32, #tpu.memory_space<vmem>>, vector<128x32xf32>
    %1 = arith.truncf %0 : vector<128x32xf32> to vector<128x32xbf16>
    %c0_1 = arith.constant 0 : index
    %c0_2 = arith.constant 0 : index
    %2 = vector.load %arg1[%c0_1, %c0_2] : memref<32x96xbf16, #tpu.memory_space<vmem>>, vector<32x96xbf16>
    %cst = arith.constant dense<0.000000e+00> : vector<128x96xf32>
    %3 = tpu.matmul %1, %2, %cst {dimension_numbers = #tpu.dot_dimension_numbers<[1], [0], [0], [1], [0, 0, 1, 1], [], []>} : vector<128x32xbf16>, vector<32x96xbf16>, vector<128x96xf32> -> vector<128x96xf32>
    %c0_3 = arith.constant 0 : index
    %c0_4 = arith.constant 0 : index
    %4 = vector.load %arg2[%c0_3, %c0_4] : memref<1x96xf32, #tpu.memory_space<vmem>>, vector<1x96xf32>
    %5 = vector.broadcast %4 : vector<1x96xf32> to vector<128x96xf32>
    %6 = arith.addf %3, %5 : vector<128x96xf32>
    %7 = vector.extract_strided_slice %6 {offsets = [0, 0], sizes = [128, 32], strides = [1, 1]} : vector<128x96xf32> to vector<128x32xf32>
    %8 = vector.extract_strided_slice %6 {offsets = [0, 32], sizes = [128, 32], strides = [1, 1]} : vector<128x96xf32> to vector<128x32xf32>
    %9 = vector.extract_strided_slice %6 {offsets = [0, 64], sizes = [128, 32], strides = [1, 1]} : vector<128x96xf32> to vector<128x32xf32>
    %c0_5 = arith.constant 0 : index
    %c0_6 = arith.constant 0 : index
    %10 = vector.load %arg3[%c0_5, %c0_6] : memref<32x32xf32, #tpu.memory_space<vmem>>, vector<32x32xf32>
    %cst_7 = arith.constant 0.000000e+00 : f32
    %11 = vector.broadcast %cst_7 : f32 to vector<128x32xf32>
    %12 = vector.extract_strided_slice %7 {offsets = [0, 0], sizes = [128, 8], strides = [1, 1]} : vector<128x32xf32> to vector<128x8xf32>
    %13 = vector.shape_cast %12 : vector<128x8xf32> to vector<16x8x8xf32>
    %14 = vector.extract_strided_slice %8 {offsets = [0, 0], sizes = [128, 8], strides = [1, 1]} : vector<128x32xf32> to vector<128x8xf32>
    %15 = vector.shape_cast %14 : vector<128x8xf32> to vector<16x8x8xf32>
    %16 = vector.extract_strided_slice %9 {offsets = [0, 0], sizes = [128, 8], strides = [1, 1]} : vector<128x32xf32> to vector<128x8xf32>
    %17 = vector.shape_cast %16 : vector<128x8xf32> to vector<16x8x8xf32>
    "tpu.trace_start"() <{level = 10 : i32, message = "tbd,tsd->tbs"}> : () -> ()
    %cst_8 = arith.constant dense<0.000000e+00> : vector<16x8x8xf32>
    %18 = tpu.matmul %13, %15, %cst_8 {dimension_numbers = #tpu.dot_dimension_numbers<[2], [2], [1], [1], [0, 0, 0, 1, 1, 1], [0], [0]>} : vector<16x8x8xf32>, vector<16x8x8xf32>, vector<16x8x8xf32> -> vector<16x8x8xf32>
    "tpu.trace_stop"() : () -> ()
    %cst_9 = arith.constant 0.353553385 : f32
    %19 = vector.broadcast %cst_9 : f32 to vector<16x8x8xf32>
    %20 = arith.mulf %18, %19 : vector<16x8x8xf32>
    %cst_10 = arith.constant dense<0xFF800000> : vector<16x8xf32>
    %21 = vector.multi_reduction <maximumf>, %20, %cst_10 [2] : vector<16x8x8xf32> to vector<16x8xf32>
    %22 = vector.shape_cast %21 : vector<16x8xf32> to vector<16x8x1xf32>
    %23 = vector.broadcast %22 : vector<16x8x1xf32> to vector<16x8x8xf32>
    %24 = arith.subf %20, %23 : vector<16x8x8xf32>
    %25 = math.exp %24 : vector<16x8x8xf32>
    %cst_11 = arith.constant dense<0.000000e+00> : vector<16x8xf32>
    %26 = vector.multi_reduction <add>, %25, %cst_11 [2] : vector<16x8x8xf32> to vector<16x8xf32>
    %27 = vector.shape_cast %26 : vector<16x8xf32> to vector<16x8x1xf32>
    %28 = tpu.reciprocal %27 {approx = true} : vector<16x8x1xf32> -> vector<16x8x1xf32>
    %29 = vector.broadcast %28 : vector<16x8x1xf32> to vector<16x8x8xf32>
    %30 = arith.mulf %25, %29 : vector<16x8x8xf32>
    "tpu.trace_start"() <{level = 10 : i32, message = "tbs,tsd->tbd"}> : () -> ()
    %cst_12 = arith.constant dense<0.000000e+00> : vector<16x8x8xf32>
    %31 = tpu.matmul %30, %17, %cst_12 {dimension_numbers = #tpu.dot_dimension_numbers<[2], [1], [1], [2], [0, 0, 0, 1, 1, 2], [0], [0]>} : vector<16x8x8xf32>, vector<16x8x8xf32>, vector<16x8x8xf32> -> vector<16x8x8xf32>
    "tpu.trace_stop"() : () -> ()
    %32 = vector.shape_cast %31 : vector<16x8x8xf32> to vector<128x8xf32>
    %33 = vector.extract_strided_slice %10 {offsets = [0, 0], sizes = [8, 32], strides = [1, 1]} : vector<32x32xf32> to vector<8x32xf32>
    %cst_13 = arith.constant dense<0.000000e+00> : vector<128x32xf32>
    %34 = tpu.matmul %32, %33, %cst_13 {dimension_numbers = #tpu.dot_dimension_numbers<[1], [0], [0], [1], [0, 0, 1, 1], [], []>} : vector<128x8xf32>, vector<8x32xf32>, vector<128x32xf32> -> vector<128x32xf32>
    %35 = arith.addf %11, %34 : vector<128x32xf32>
    %36 = vector.extract_strided_slice %7 {offsets = [0, 8], sizes = [128, 8], strides = [1, 1]} : vector<128x32xf32> to vector<128x8xf32>
    %37 = vector.shape_cast %36 : vector<128x8xf32> to vector<16x8x8xf32>
    %38 = vector.extract_strided_slice %8 {offsets = [0, 8], sizes = [128, 8], strides = [1, 1]} : vector<128x32xf32> to vector<128x8xf32>
    %39 = vector.shape_cast %38 : vector<128x8xf32> to vector<16x8x8xf32>
    %40 = vector.extract_strided_slice %9 {offsets = [0, 8], sizes = [128, 8], strides = [1, 1]} : vector<128x32xf32> to vector<128x8xf32>
    %41 = vector.shape_cast %40 : vector<128x8xf32> to vector<16x8x8xf32>
    "tpu.trace_start"() <{level = 10 : i32, message = "tbd,tsd->tbs"}> : () -> ()
    %cst_14 = arith.constant dense<0.000000e+00> : vector<16x8x8xf32>
    %42 = tpu.matmul %37, %39, %cst_14 {dimension_numbers = #tpu.dot_dimension_numbers<[2], [2], [1], [1], [0, 0, 0, 1, 1, 1], [0], [0]>} : vector<16x8x8xf32>, vector<16x8x8xf32>, vector<16x8x8xf32> -> vector<16x8x8xf32>
    "tpu.trace_stop"() : () -> ()
    %cst_15 = arith.constant 0.353553385 : f32
    %43 = vector.broadcast %cst_15 : f32 to vector<16x8x8xf32>
    %44 = arith.mulf %42, %43 : vector<16x8x8xf32>
    %cst_16 = arith.constant dense<0xFF800000> : vector<16x8xf32>
    %45 = vector.multi_reduction <maximumf>, %44, %cst_16 [2] : vector<16x8x8xf32> to vector<16x8xf32>
    %46 = vector.shape_cast %45 : vector<16x8xf32> to vector<16x8x1xf32>
    %47 = vector.broadcast %46 : vector<16x8x1xf32> to vector<16x8x8xf32>
    %48 = arith.subf %44, %47 : vector<16x8x8xf32>
    %49 = math.exp %48 : vector<16x8x8xf32>
    %cst_17 = arith.constant dense<0.000000e+00> : vector<16x8xf32>
    %50 = vector.multi_reduction <add>, %49, %cst_17 [2] : vector<16x8x8xf32> to vector<16x8xf32>
    %51 = vector.shape_cast %50 : vector<16x8xf32> to vector<16x8x1xf32>
    %52 = tpu.reciprocal %51 {approx = true} : vector<16x8x1xf32> -> vector<16x8x1xf32>
    %53 = vector.broadcast %52 : vector<16x8x1xf32> to vector<16x8x8xf32>
    %54 = arith.mulf %49, %53 : vector<16x8x8xf32>
    "tpu.trace_start"() <{level = 10 : i32, message = "tbs,tsd->tbd"}> : () -> ()
    %cst_18 = arith.constant dense<0.000000e+00> : vector<16x8x8xf32>
    %55 = tpu.matmul %54, %41, %cst_18 {dimension_numbers = #tpu.dot_dimension_numbers<[2], [1], [1], [2], [0, 0, 0, 1, 1, 2], [0], [0]>} : vector<16x8x8xf32>, vector<16x8x8xf32>, vector<16x8x8xf32> -> vector<16x8x8xf32>
    "tpu.trace_stop"() : () -> ()
    %56 = vector.shape_cast %55 : vector<16x8x8xf32> to vector<128x8xf32>
    %57 = vector.extract_strided_slice %10 {offsets = [8, 0], sizes = [8, 32], strides = [1, 1]} : vector<32x32xf32> to vector<8x32xf32>
    %cst_19 = arith.constant dense<0.000000e+00> : vector<128x32xf32>
    %58 = tpu.matmul %56, %57, %cst_19 {dimension_numbers = #tpu.dot_dimension_numbers<[1], [0], [0], [1], [0, 0, 1, 1], [], []>} : vector<128x8xf32>, vector<8x32xf32>, vector<128x32xf32> -> vector<128x32xf32>
    %59 = arith.addf %35, %58 : vector<128x32xf32>
    %60 = vector.extract_strided_slice %7 {offsets = [0, 16], sizes = [128, 8], strides = [1, 1]} : vector<128x32xf32> to vector<128x8xf32>
    %61 = vector.shape_cast %60 : vector<128x8xf32> to vector<16x8x8xf32>
    %62 = vector.extract_strided_slice %8 {offsets = [0, 16], sizes = [128, 8], strides = [1, 1]} : vector<128x32xf32> to vector<128x8xf32>
    %63 = vector.shape_cast %62 : vector<128x8xf32> to vector<16x8x8xf32>
    %64 = vector.extract_strided_slice %9 {offsets = [0, 16], sizes = [128, 8], strides = [1, 1]} : vector<128x32xf32> to vector<128x8xf32>
    %65 = vector.shape_cast %64 : vector<128x8xf32> to vector<16x8x8xf32>
    "tpu.trace_start"() <{level = 10 : i32, message = "tbd,tsd->tbs"}> : () -> ()
    %cst_20 = arith.constant dense<0.000000e+00> : vector<16x8x8xf32>
    %66 = tpu.matmul %61, %63, %cst_20 {dimension_numbers = #tpu.dot_dimension_numbers<[2], [2], [1], [1], [0, 0, 0, 1, 1, 1], [0], [0]>} : vector<16x8x8xf32>, vector<16x8x8xf32>, vector<16x8x8xf32> -> vector<16x8x8xf32>
    "tpu.trace_stop"() : () -> ()
    %cst_21 = arith.constant 0.353553385 : f32
    %67 = vector.broadcast %cst_21 : f32 to vector<16x8x8xf32>
    %68 = arith.mulf %66, %67 : vector<16x8x8xf32>
    %cst_22 = arith.constant dense<0xFF800000> : vector<16x8xf32>
    %69 = vector.multi_reduction <maximumf>, %68, %cst_22 [2] : vector<16x8x8xf32> to vector<16x8xf32>
    %70 = vector.shape_cast %69 : vector<16x8xf32> to vector<16x8x1xf32>
    %71 = vector.broadcast %70 : vector<16x8x1xf32> to vector<16x8x8xf32>
    %72 = arith.subf %68, %71 : vector<16x8x8xf32>
    %73 = math.exp %72 : vector<16x8x8xf32>
    %cst_23 = arith.constant dense<0.000000e+00> : vector<16x8xf32>
    %74 = vector.multi_reduction <add>, %73, %cst_23 [2] : vector<16x8x8xf32> to vector<16x8xf32>
    %75 = vector.shape_cast %74 : vector<16x8xf32> to vector<16x8x1xf32>
    %76 = tpu.reciprocal %75 {approx = true} : vector<16x8x1xf32> -> vector<16x8x1xf32>
    %77 = vector.broadcast %76 : vector<16x8x1xf32> to vector<16x8x8xf32>
    %78 = arith.mulf %73, %77 : vector<16x8x8xf32>
    "tpu.trace_start"() <{level = 10 : i32, message = "tbs,tsd->tbd"}> : () -> ()
    %cst_24 = arith.constant dense<0.000000e+00> : vector<16x8x8xf32>
    %79 = tpu.matmul %78, %65, %cst_24 {dimension_numbers = #tpu.dot_dimension_numbers<[2], [1], [1], [2], [0, 0, 0, 1, 1, 2], [0], [0]>} : vector<16x8x8xf32>, vector<16x8x8xf32>, vector<16x8x8xf32> -> vector<16x8x8xf32>
    "tpu.trace_stop"() : () -> ()
    %80 = vector.shape_cast %79 : vector<16x8x8xf32> to vector<128x8xf32>
    %81 = vector.extract_strided_slice %10 {offsets = [16, 0], sizes = [8, 32], strides = [1, 1]} : vector<32x32xf32> to vector<8x32xf32>
    %cst_25 = arith.constant dense<0.000000e+00> : vector<128x32xf32>
    %82 = tpu.matmul %80, %81, %cst_25 {dimension_numbers = #tpu.dot_dimension_numbers<[1], [0], [0], [1], [0, 0, 1, 1], [], []>} : vector<128x8xf32>, vector<8x32xf32>, vector<128x32xf32> -> vector<128x32xf32>
    %83 = arith.addf %59, %82 : vector<128x32xf32>
    %84 = vector.extract_strided_slice %7 {offsets = [0, 24], sizes = [128, 8], strides = [1, 1]} : vector<128x32xf32> to vector<128x8xf32>
    %85 = vector.shape_cast %84 : vector<128x8xf32> to vector<16x8x8xf32>
    %86 = vector.extract_strided_slice %8 {offsets = [0, 24], sizes = [128, 8], strides = [1, 1]} : vector<128x32xf32> to vector<128x8xf32>
    %87 = vector.shape_cast %86 : vector<128x8xf32> to vector<16x8x8xf32>
    %88 = vector.extract_strided_slice %9 {offsets = [0, 24], sizes = [128, 8], strides = [1, 1]} : vector<128x32xf32> to vector<128x8xf32>
    %89 = vector.shape_cast %88 : vector<128x8xf32> to vector<16x8x8xf32>
    "tpu.trace_start"() <{level = 10 : i32, message = "tbd,tsd->tbs"}> : () -> ()
    %cst_26 = arith.constant dense<0.000000e+00> : vector<16x8x8xf32>
    %90 = tpu.matmul %85, %87, %cst_26 {dimension_numbers = #tpu.dot_dimension_numbers<[2], [2], [1], [1], [0, 0, 0, 1, 1, 1], [0], [0]>} : vector<16x8x8xf32>, vector<16x8x8xf32>, vector<16x8x8xf32> -> vector<16x8x8xf32>
    "tpu.trace_stop"() : () -> ()
    %cst_27 = arith.constant 0.353553385 : f32
    %91 = vector.broadcast %cst_27 : f32 to vector<16x8x8xf32>
    %92 = arith.mulf %90, %91 : vector<16x8x8xf32>
    %cst_28 = arith.constant dense<0xFF800000> : vector<16x8xf32>
    %93 = vector.multi_reduction <maximumf>, %92, %cst_28 [2] : vector<16x8x8xf32> to vector<16x8xf32>
    %94 = vector.shape_cast %93 : vector<16x8xf32> to vector<16x8x1xf32>
    %95 = vector.broadcast %94 : vector<16x8x1xf32> to vector<16x8x8xf32>
    %96 = arith.subf %92, %95 : vector<16x8x8xf32>
    %97 = math.exp %96 : vector<16x8x8xf32>
    %cst_29 = arith.constant dense<0.000000e+00> : vector<16x8xf32>
    %98 = vector.multi_reduction <add>, %97, %cst_29 [2] : vector<16x8x8xf32> to vector<16x8xf32>
    %99 = vector.shape_cast %98 : vector<16x8xf32> to vector<16x8x1xf32>
    %100 = tpu.reciprocal %99 {approx = true} : vector<16x8x1xf32> -> vector<16x8x1xf32>
    %101 = vector.broadcast %100 : vector<16x8x1xf32> to vector<16x8x8xf32>
    %102 = arith.mulf %97, %101 : vector<16x8x8xf32>
    "tpu.trace_start"() <{level = 10 : i32, message = "tbs,tsd->tbd"}> : () -> ()
    %cst_30 = arith.constant dense<0.000000e+00> : vector<16x8x8xf32>
    %103 = tpu.matmul %102, %89, %cst_30 {dimension_numbers = #tpu.dot_dimension_numbers<[2], [1], [1], [2], [0, 0, 0, 1, 1, 2], [0], [0]>} : vector<16x8x8xf32>, vector<16x8x8xf32>, vector<16x8x8xf32> -> vector<16x8x8xf32>
    "tpu.trace_stop"() : () -> ()
    %104 = vector.shape_cast %103 : vector<16x8x8xf32> to vector<128x8xf32>
    %105 = vector.extract_strided_slice %10 {offsets = [24, 0], sizes = [8, 32], strides = [1, 1]} : vector<32x32xf32> to vector<8x32xf32>
    %cst_31 = arith.constant dense<0.000000e+00> : vector<128x32xf32>
    %106 = tpu.matmul %104, %105, %cst_31 {dimension_numbers = #tpu.dot_dimension_numbers<[1], [0], [0], [1], [0, 0, 1, 1], [], []>} : vector<128x8xf32>, vector<8x32xf32>, vector<128x32xf32> -> vector<128x32xf32>
    %107 = arith.addf %83, %106 : vector<128x32xf32>
    %c0_32 = arith.constant 0 : index
    %c0_33 = arith.constant 0 : index
    %108 = vector.load %arg4[%c0_32, %c0_33] : memref<1x32xf32, #tpu.memory_space<vmem>>, vector<1x32xf32>
    %109 = vector.broadcast %108 : vector<1x32xf32> to vector<128x32xf32>
    %110 = arith.addf %107, %109 : vector<128x32xf32>
    %111 = arith.addf %0, %110 : vector<128x32xf32>
    %c0_34 = arith.constant 0 : index
    %c0_35 = arith.constant 0 : index
    %112 = vector.load %arg5[%c0_34, %c0_35] : memref<1x32xf32, #tpu.memory_space<vmem>>, vector<1x32xf32>
    %c0_36 = arith.constant 0 : index
    %c0_37 = arith.constant 0 : index
    %113 = vector.load %arg6[%c0_36, %c0_37] : memref<1x32xf32, #tpu.memory_space<vmem>>, vector<1x32xf32>
    %cst_38 = arith.constant dense<0.000000e+00> : vector<128xf32>
    %114 = vector.multi_reduction <add>, %111, %cst_38 [1] : vector<128x32xf32> to vector<128xf32>
    %115 = vector.shape_cast %114 : vector<128xf32> to vector<128x1xf32>
    %cst_39 = arith.constant 3.200000e+01 : f32
    %116 = vector.broadcast %cst_39 : f32 to vector<128x1xf32>
    %117 = arith.divf %115, %116 : vector<128x1xf32>
    %118 = vector.broadcast %117 : vector<128x1xf32> to vector<128x32xf32>
    %119 = arith.subf %111, %118 : vector<128x32xf32>
    %120 = arith.mulf %119, %119 : vector<128x32xf32>
    %cst_40 = arith.constant dense<0.000000e+00> : vector<128xf32>
    %121 = vector.multi_reduction <add>, %120, %cst_40 [1] : vector<128x32xf32> to vector<128xf32>
    %122 = vector.shape_cast %121 : vector<128xf32> to vector<128x1xf32>
    %cst_41 = arith.constant 3.200000e+01 : f32
    %123 = vector.broadcast %cst_41 : f32 to vector<128x1xf32>
    %124 = arith.divf %122, %123 : vector<128x1xf32>
    %125 = vector.broadcast %117 : vector<128x1xf32> to vector<128x32xf32>
    %126 = arith.subf %111, %125 : vector<128x32xf32>
    %cst_42 = arith.constant 9.99999974E-6 : f32
    %127 = vector.broadcast %cst_42 : f32 to vector<128x1xf32>
    %128 = arith.addf %124, %127 : vector<128x1xf32>
    %129 = math.rsqrt %128 : vector<128x1xf32>
    %130 = vector.broadcast %129 : vector<128x1xf32> to vector<128x32xf32>
    %131 = arith.mulf %126, %130 : vector<128x32xf32>
    %132 = vector.broadcast %112 : vector<1x32xf32> to vector<128x32xf32>
    %133 = arith.mulf %131, %132 : vector<128x32xf32>
    %134 = vector.broadcast %113 : vector<1x32xf32> to vector<128x32xf32>
    %135 = arith.addf %133, %134 : vector<128x32xf32>
    %136 = arith.truncf %135 : vector<128x32xf32> to vector<128x32xbf16>
    %c0_43 = arith.constant 0 : index
    %c0_44 = arith.constant 0 : index
    %137 = vector.load %arg7[%c0_43, %c0_44] : memref<32x64xbf16, #tpu.memory_space<vmem>>, vector<32x64xbf16>
    %cst_45 = arith.constant dense<0.000000e+00> : vector<128x64xf32>
    %138 = tpu.matmul %136, %137, %cst_45 {dimension_numbers = #tpu.dot_dimension_numbers<[1], [0], [0], [1], [0, 0, 1, 1], [], []>} : vector<128x32xbf16>, vector<32x64xbf16>, vector<128x64xf32> -> vector<128x64xf32>
    %c0_46 = arith.constant 0 : index
    %c0_47 = arith.constant 0 : index
    %139 = vector.load %arg8[%c0_46, %c0_47] : memref<1x64xf32, #tpu.memory_space<vmem>>, vector<1x64xf32>
    %140 = vector.broadcast %139 : vector<1x64xf32> to vector<128x64xf32>
    %141 = arith.addf %138, %140 : vector<128x64xf32>
    %cst_48 = arith.constant 0.000000e+00 : f32
    %142 = vector.broadcast %cst_48 : f32 to vector<128x64xf32>
    %143 = arith.maximumf %141, %142 : vector<128x64xf32>
    %144 = arith.truncf %143 : vector<128x64xf32> to vector<128x64xbf16>
    %c0_49 = arith.constant 0 : index
    %c0_50 = arith.constant 0 : index
    %145 = vector.load %arg9[%c0_49, %c0_50] : memref<64x32xbf16, #tpu.memory_space<vmem>>, vector<64x32xbf16>
    %cst_51 = arith.constant dense<0.000000e+00> : vector<128x32xf32>
    %146 = tpu.matmul %144, %145, %cst_51 {dimension_numbers = #tpu.dot_dimension_numbers<[1], [0], [0], [1], [0, 0, 1, 1], [], []>} : vector<128x64xbf16>, vector<64x32xbf16>, vector<128x32xf32> -> vector<128x32xf32>
    %c0_52 = arith.constant 0 : index
    %c0_53 = arith.constant 0 : index
    %147 = vector.load %arg10[%c0_52, %c0_53] : memref<1x32xf32, #tpu.memory_space<vmem>>, vector<1x32xf32>
    %148 = vector.broadcast %147 : vector<1x32xf32> to vector<128x32xf32>
    %149 = arith.addf %146, %148 : vector<128x32xf32>
    %150 = arith.addf %135, %149 : vector<128x32xf32>
    %c0_54 = arith.constant 0 : index
    %c0_55 = arith.constant 0 : index
    %151 = vector.load %arg11[%c0_54, %c0_55] : memref<1x32xf32, #tpu.memory_space<vmem>>, vector<1x32xf32>
    %c0_56 = arith.constant 0 : index
    %c0_57 = arith.constant 0 : index
    %152 = vector.load %arg12[%c0_56, %c0_57] : memref<1x32xf32, #tpu.memory_space<vmem>>, vector<1x32xf32>
    %cst_58 = arith.constant dense<0.000000e+00> : vector<128xf32>
    %153 = vector.multi_reduction <add>, %150, %cst_58 [1] : vector<128x32xf32> to vector<128xf32>
    %154 = vector.shape_cast %153 : vector<128xf32> to vector<128x1xf32>
    %cst_59 = arith.constant 3.200000e+01 : f32
    %155 = vector.broadcast %cst_59 : f32 to vector<128x1xf32>
    %156 = arith.divf %154, %155 : vector<128x1xf32>
    %157 = vector.broadcast %156 : vector<128x1xf32> to vector<128x32xf32>
    %158 = arith.subf %150, %157 : vector<128x32xf32>
    %159 = arith.mulf %158, %158 : vector<128x32xf32>
    %cst_60 = arith.constant dense<0.000000e+00> : vector<128xf32>
    %160 = vector.multi_reduction <add>, %159, %cst_60 [1] : vector<128x32xf32> to vector<128xf32>
    %161 = vector.shape_cast %160 : vector<128xf32> to vector<128x1xf32>
    %cst_61 = arith.constant 3.200000e+01 : f32
    %162 = vector.broadcast %cst_61 : f32 to vector<128x1xf32>
    %163 = arith.divf %161, %162 : vector<128x1xf32>
    %164 = vector.broadcast %156 : vector<128x1xf32> to vector<128x32xf32>
    %165 = arith.subf %150, %164 : vector<128x32xf32>
    %cst_62 = arith.constant 9.99999974E-6 : f32
    %166 = vector.broadcast %cst_62 : f32 to vector<128x1xf32>
    %167 = arith.addf %163, %166 : vector<128x1xf32>
    %168 = math.rsqrt %167 : vector<128x1xf32>
    %169 = vector.broadcast %168 : vector<128x1xf32> to vector<128x32xf32>
    %170 = arith.mulf %165, %169 : vector<128x32xf32>
    %171 = vector.broadcast %151 : vector<1x32xf32> to vector<128x32xf32>
    %172 = arith.mulf %170, %171 : vector<128x32xf32>
    %173 = vector.broadcast %152 : vector<1x32xf32> to vector<128x32xf32>
    %174 = arith.addf %172, %173 : vector<128x32xf32>
    %175 = arith.truncf %174 : vector<128x32xf32> to vector<128x32xbf16>
    %c0_63 = arith.constant 0 : index
    %c0_64 = arith.constant 0 : index
    %176 = vector.load %arg13[%c0_63, %c0_64] : memref<32x96xbf16, #tpu.memory_space<vmem>>, vector<32x96xbf16>
    %cst_65 = arith.constant dense<0.000000e+00> : vector<128x96xf32>
    %177 = tpu.matmul %175, %176, %cst_65 {dimension_numbers = #tpu.dot_dimension_numbers<[1], [0], [0], [1], [0, 0, 1, 1], [], []>} : vector<128x32xbf16>, vector<32x96xbf16>, vector<128x96xf32> -> vector<128x96xf32>
    %c0_66 = arith.constant 0 : index
    %c0_67 = arith.constant 0 : index
    %178 = vector.load %arg14[%c0_66, %c0_67] : memref<1x96xf32, #tpu.memory_space<vmem>>, vector<1x96xf32>
    %179 = vector.broadcast %178 : vector<1x96xf32> to vector<128x96xf32>
    %180 = arith.addf %177, %179 : vector<128x96xf32>
    %181 = vector.extract_strided_slice %180 {offsets = [0, 0], sizes = [128, 32], strides = [1, 1]} : vector<128x96xf32> to vector<128x32xf32>
    %182 = vector.extract_strided_slice %180 {offsets = [0, 32], sizes = [128, 32], strides = [1, 1]} : vector<128x96xf32> to vector<128x32xf32>
    %183 = vector.extract_strided_slice %180 {offsets = [0, 64], sizes = [128, 32], strides = [1, 1]} : vector<128x96xf32> to vector<128x32xf32>
    %c0_68 = arith.constant 0 : index
    %c0_69 = arith.constant 0 : index
    %184 = vector.load %arg15[%c0_68, %c0_69] : memref<32x32xf32, #tpu.memory_space<vmem>>, vector<32x32xf32>
    %cst_70 = arith.constant 0.000000e+00 : f32
    %185 = vector.broadcast %cst_70 : f32 to vector<128x32xf32>
    %186 = vector.extract_strided_slice %181 {offsets = [0, 0], sizes = [128, 8], strides = [1, 1]} : vector<128x32xf32> to vector<128x8xf32>
    %187 = vector.shape_cast %186 : vector<128x8xf32> to vector<16x8x8xf32>
    %188 = vector.extract_strided_slice %182 {offsets = [0, 0], sizes = [128, 8], strides = [1, 1]} : vector<128x32xf32> to vector<128x8xf32>
    %189 = vector.shape_cast %188 : vector<128x8xf32> to vector<16x8x8xf32>
    %190 = vector.extract_strided_slice %183 {offsets = [0, 0], sizes = [128, 8], strides = [1, 1]} : vector<128x32xf32> to vector<128x8xf32>
    %191 = vector.shape_cast %190 : vector<128x8xf32> to vector<16x8x8xf32>
    "tpu.trace_start"() <{level = 10 : i32, message = "tbd,tsd->tbs"}> : () -> ()
    %cst_71 = arith.constant dense<0.000000e+00> : vector<16x8x8xf32>
    %192 = tpu.matmul %187, %189, %cst_71 {dimension_numbers = #tpu.dot_dimension_numbers<[2], [2], [1], [1], [0, 0, 0, 1, 1, 1], [0], [0]>} : vector<16x8x8xf32>, vector<16x8x8xf32>, vector<16x8x8xf32> -> vector<16x8x8xf32>
    "tpu.trace_stop"() : () -> ()
    %cst_72 = arith.constant 0.353553385 : f32
    %193 = vector.broadcast %cst_72 : f32 to vector<16x8x8xf32>
    %194 = arith.mulf %192, %193 : vector<16x8x8xf32>
    %cst_73 = arith.constant dense<0xFF800000> : vector<16x8xf32>
    %195 = vector.multi_reduction <maximumf>, %194, %cst_73 [2] : vector<16x8x8xf32> to vector<16x8xf32>
    %196 = vector.shape_cast %195 : vector<16x8xf32> to vector<16x8x1xf32>
    %197 = vector.broadcast %196 : vector<16x8x1xf32> to vector<16x8x8xf32>
    %198 = arith.subf %194, %197 : vector<16x8x8xf32>
    %199 = math.exp %198 : vector<16x8x8xf32>
    %cst_74 = arith.constant dense<0.000000e+00> : vector<16x8xf32>
    %200 = vector.multi_reduction <add>, %199, %cst_74 [2] : vector<16x8x8xf32> to vector<16x8xf32>
    %201 = vector.shape_cast %200 : vector<16x8xf32> to vector<16x8x1xf32>
    %202 = tpu.reciprocal %201 {approx = true} : vector<16x8x1xf32> -> vector<16x8x1xf32>
    %203 = vector.broadcast %202 : vector<16x8x1xf32> to vector<16x8x8xf32>
    %204 = arith.mulf %199, %203 : vector<16x8x8xf32>
    "tpu.trace_start"() <{level = 10 : i32, message = "tbs,tsd->tbd"}> : () -> ()
    %cst_75 = arith.constant dense<0.000000e+00> : vector<16x8x8xf32>
    %205 = tpu.matmul %204, %191, %cst_75 {dimension_numbers = #tpu.dot_dimension_numbers<[2], [1], [1], [2], [0, 0, 0, 1, 1, 2], [0], [0]>} : vector<16x8x8xf32>, vector<16x8x8xf32>, vector<16x8x8xf32> -> vector<16x8x8xf32>
    "tpu.trace_stop"() : () -> ()
    %206 = vector.shape_cast %205 : vector<16x8x8xf32> to vector<128x8xf32>
    %207 = vector.extract_strided_slice %184 {offsets = [0, 0], sizes = [8, 32], strides = [1, 1]} : vector<32x32xf32> to vector<8x32xf32>
    %cst_76 = arith.constant dense<0.000000e+00> : vector<128x32xf32>
    %208 = tpu.matmul %206, %207, %cst_76 {dimension_numbers = #tpu.dot_dimension_numbers<[1], [0], [0], [1], [0, 0, 1, 1], [], []>} : vector<128x8xf32>, vector<8x32xf32>, vector<128x32xf32> -> vector<128x32xf32>
    %209 = arith.addf %185, %208 : vector<128x32xf32>
    %210 = vector.extract_strided_slice %181 {offsets = [0, 8], sizes = [128, 8], strides = [1, 1]} : vector<128x32xf32> to vector<128x8xf32>
    %211 = vector.shape_cast %210 : vector<128x8xf32> to vector<16x8x8xf32>
    %212 = vector.extract_strided_slice %182 {offsets = [0, 8], sizes = [128, 8], strides = [1, 1]} : vector<128x32xf32> to vector<128x8xf32>
    %213 = vector.shape_cast %212 : vector<128x8xf32> to vector<16x8x8xf32>
    %214 = vector.extract_strided_slice %183 {offsets = [0, 8], sizes = [128, 8], strides = [1, 1]} : vector<128x32xf32> to vector<128x8xf32>
    %215 = vector.shape_cast %214 : vector<128x8xf32> to vector<16x8x8xf32>
    "tpu.trace_start"() <{level = 10 : i32, message = "tbd,tsd->tbs"}> : () -> ()
    %cst_77 = arith.constant dense<0.000000e+00> : vector<16x8x8xf32>
    %216 = tpu.matmul %211, %213, %cst_77 {dimension_numbers = #tpu.dot_dimension_numbers<[2], [2], [1], [1], [0, 0, 0, 1, 1, 1], [0], [0]>} : vector<16x8x8xf32>, vector<16x8x8xf32>, vector<16x8x8xf32> -> vector<16x8x8xf32>
    "tpu.trace_stop"() : () -> ()
    %cst_78 = arith.constant 0.353553385 : f32
    %217 = vector.broadcast %cst_78 : f32 to vector<16x8x8xf32>
    %218 = arith.mulf %216, %217 : vector<16x8x8xf32>
    %cst_79 = arith.constant dense<0xFF800000> : vector<16x8xf32>
    %219 = vector.multi_reduction <maximumf>, %218, %cst_79 [2] : vector<16x8x8xf32> to vector<16x8xf32>
    %220 = vector.shape_cast %219 : vector<16x8xf32> to vector<16x8x1xf32>
    %221 = vector.broadcast %220 : vector<16x8x1xf32> to vector<16x8x8xf32>
    %222 = arith.subf %218, %221 : vector<16x8x8xf32>
    %223 = math.exp %222 : vector<16x8x8xf32>
    %cst_80 = arith.constant dense<0.000000e+00> : vector<16x8xf32>
    %224 = vector.multi_reduction <add>, %223, %cst_80 [2] : vector<16x8x8xf32> to vector<16x8xf32>
    %225 = vector.shape_cast %224 : vector<16x8xf32> to vector<16x8x1xf32>
    %226 = tpu.reciprocal %225 {approx = true} : vector<16x8x1xf32> -> vector<16x8x1xf32>
    %227 = vector.broadcast %226 : vector<16x8x1xf32> to vector<16x8x8xf32>
    %228 = arith.mulf %223, %227 : vector<16x8x8xf32>
    "tpu.trace_start"() <{level = 10 : i32, message = "tbs,tsd->tbd"}> : () -> ()
    %cst_81 = arith.constant dense<0.000000e+00> : vector<16x8x8xf32>
    %229 = tpu.matmul %228, %215, %cst_81 {dimension_numbers = #tpu.dot_dimension_numbers<[2], [1], [1], [2], [0, 0, 0, 1, 1, 2], [0], [0]>} : vector<16x8x8xf32>, vector<16x8x8xf32>, vector<16x8x8xf32> -> vector<16x8x8xf32>
    "tpu.trace_stop"() : () -> ()
    %230 = vector.shape_cast %229 : vector<16x8x8xf32> to vector<128x8xf32>
    %231 = vector.extract_strided_slice %184 {offsets = [8, 0], sizes = [8, 32], strides = [1, 1]} : vector<32x32xf32> to vector<8x32xf32>
    %cst_82 = arith.constant dense<0.000000e+00> : vector<128x32xf32>
    %232 = tpu.matmul %230, %231, %cst_82 {dimension_numbers = #tpu.dot_dimension_numbers<[1], [0], [0], [1], [0, 0, 1, 1], [], []>} : vector<128x8xf32>, vector<8x32xf32>, vector<128x32xf32> -> vector<128x32xf32>
    %233 = arith.addf %209, %232 : vector<128x32xf32>
    %234 = vector.extract_strided_slice %181 {offsets = [0, 16], sizes = [128, 8], strides = [1, 1]} : vector<128x32xf32> to vector<128x8xf32>
    %235 = vector.shape_cast %234 : vector<128x8xf32> to vector<16x8x8xf32>
    %236 = vector.extract_strided_slice %182 {offsets = [0, 16], sizes = [128, 8], strides = [1, 1]} : vector<128x32xf32> to vector<128x8xf32>
    %237 = vector.shape_cast %236 : vector<128x8xf32> to vector<16x8x8xf32>
    %238 = vector.extract_strided_slice %183 {offsets = [0, 16], sizes = [128, 8], strides = [1, 1]} : vector<128x32xf32> to vector<128x8xf32>
    %239 = vector.shape_cast %238 : vector<128x8xf32> to vector<16x8x8xf32>
    "tpu.trace_start"() <{level = 10 : i32, message = "tbd,tsd->tbs"}> : () -> ()
    %cst_83 = arith.constant dense<0.000000e+00> : vector<16x8x8xf32>
    %240 = tpu.matmul %235, %237, %cst_83 {dimension_numbers = #tpu.dot_dimension_numbers<[2], [2], [1], [1], [0, 0, 0, 1, 1, 1], [0], [0]>} : vector<16x8x8xf32>, vector<16x8x8xf32>, vector<16x8x8xf32> -> vector<16x8x8xf32>
    "tpu.trace_stop"() : () -> ()
    %cst_84 = arith.constant 0.353553385 : f32
    %241 = vector.broadcast %cst_84 : f32 to vector<16x8x8xf32>
    %242 = arith.mulf %240, %241 : vector<16x8x8xf32>
    %cst_85 = arith.constant dense<0xFF800000> : vector<16x8xf32>
    %243 = vector.multi_reduction <maximumf>, %242, %cst_85 [2] : vector<16x8x8xf32> to vector<16x8xf32>
    %244 = vector.shape_cast %243 : vector<16x8xf32> to vector<16x8x1xf32>
    %245 = vector.broadcast %244 : vector<16x8x1xf32> to vector<16x8x8xf32>
    %246 = arith.subf %242, %245 : vector<16x8x8xf32>
    %247 = math.exp %246 : vector<16x8x8xf32>
    %cst_86 = arith.constant dense<0.000000e+00> : vector<16x8xf32>
    %248 = vector.multi_reduction <add>, %247, %cst_86 [2] : vector<16x8x8xf32> to vector<16x8xf32>
    %249 = vector.shape_cast %248 : vector<16x8xf32> to vector<16x8x1xf32>
    %250 = tpu.reciprocal %249 {approx = true} : vector<16x8x1xf32> -> vector<16x8x1xf32>
    %251 = vector.broadcast %250 : vector<16x8x1xf32> to vector<16x8x8xf32>
    %252 = arith.mulf %247, %251 : vector<16x8x8xf32>
    "tpu.trace_start"() <{level = 10 : i32, message = "tbs,tsd->tbd"}> : () -> ()
    %cst_87 = arith.constant dense<0.000000e+00> : vector<16x8x8xf32>
    %253 = tpu.matmul %252, %239, %cst_87 {dimension_numbers = #tpu.dot_dimension_numbers<[2], [1], [1], [2], [0, 0, 0, 1, 1, 2], [0], [0]>} : vector<16x8x8xf32>, vector<16x8x8xf32>, vector<16x8x8xf32> -> vector<16x8x8xf32>
    "tpu.trace_stop"() : () -> ()
    %254 = vector.shape_cast %253 : vector<16x8x8xf32> to vector<128x8xf32>
    %255 = vector.extract_strided_slice %184 {offsets = [16, 0], sizes = [8, 32], strides = [1, 1]} : vector<32x32xf32> to vector<8x32xf32>
    %cst_88 = arith.constant dense<0.000000e+00> : vector<128x32xf32>
    %256 = tpu.matmul %254, %255, %cst_88 {dimension_numbers = #tpu.dot_dimension_numbers<[1], [0], [0], [1], [0, 0, 1, 1], [], []>} : vector<128x8xf32>, vector<8x32xf32>, vector<128x32xf32> -> vector<128x32xf32>
    %257 = arith.addf %233, %256 : vector<128x32xf32>
    %258 = vector.extract_strided_slice %181 {offsets = [0, 24], sizes = [128, 8], strides = [1, 1]} : vector<128x32xf32> to vector<128x8xf32>
    %259 = vector.shape_cast %258 : vector<128x8xf32> to vector<16x8x8xf32>
    %260 = vector.extract_strided_slice %182 {offsets = [0, 24], sizes = [128, 8], strides = [1, 1]} : vector<128x32xf32> to vector<128x8xf32>
    %261 = vector.shape_cast %260 : vector<128x8xf32> to vector<16x8x8xf32>
    %262 = vector.extract_strided_slice %183 {offsets = [0, 24], sizes = [128, 8], strides = [1, 1]} : vector<128x32xf32> to vector<128x8xf32>
    %263 = vector.shape_cast %262 : vector<128x8xf32> to vector<16x8x8xf32>
    "tpu.trace_start"() <{level = 10 : i32, message = "tbd,tsd->tbs"}> : () -> ()
    %cst_89 = arith.constant dense<0.000000e+00> : vector<16x8x8xf32>
    %264 = tpu.matmul %259, %261, %cst_89 {dimension_numbers = #tpu.dot_dimension_numbers<[2], [2], [1], [1], [0, 0, 0, 1, 1, 1], [0], [0]>} : vector<16x8x8xf32>, vector<16x8x8xf32>, vector<16x8x8xf32> -> vector<16x8x8xf32>
    "tpu.trace_stop"() : () -> ()
    %cst_90 = arith.constant 0.353553385 : f32
    %265 = vector.broadcast %cst_90 : f32 to vector<16x8x8xf32>
    %266 = arith.mulf %264, %265 : vector<16x8x8xf32>
    %cst_91 = arith.constant dense<0xFF800000> : vector<16x8xf32>
    %267 = vector.multi_reduction <maximumf>, %266, %cst_91 [2] : vector<16x8x8xf32> to vector<16x8xf32>
    %268 = vector.shape_cast %267 : vector<16x8xf32> to vector<16x8x1xf32>
    %269 = vector.broadcast %268 : vector<16x8x1xf32> to vector<16x8x8xf32>
    %270 = arith.subf %266, %269 : vector<16x8x8xf32>
    %271 = math.exp %270 : vector<16x8x8xf32>
    %cst_92 = arith.constant dense<0.000000e+00> : vector<16x8xf32>
    %272 = vector.multi_reduction <add>, %271, %cst_92 [2] : vector<16x8x8xf32> to vector<16x8xf32>
    %273 = vector.shape_cast %272 : vector<16x8xf32> to vector<16x8x1xf32>
    %274 = tpu.reciprocal %273 {approx = true} : vector<16x8x1xf32> -> vector<16x8x1xf32>
    %275 = vector.broadcast %274 : vector<16x8x1xf32> to vector<16x8x8xf32>
    %276 = arith.mulf %271, %275 : vector<16x8x8xf32>
    "tpu.trace_start"() <{level = 10 : i32, message = "tbs,tsd->tbd"}> : () -> ()
    %cst_93 = arith.constant dense<0.000000e+00> : vector<16x8x8xf32>
    %277 = tpu.matmul %276, %263, %cst_93 {dimension_numbers = #tpu.dot_dimension_numbers<[2], [1], [1], [2], [0, 0, 0, 1, 1, 2], [0], [0]>} : vector<16x8x8xf32>, vector<16x8x8xf32>, vector<16x8x8xf32> -> vector<16x8x8xf32>
    "tpu.trace_stop"() : () -> ()
    %278 = vector.shape_cast %277 : vector<16x8x8xf32> to vector<128x8xf32>
    %279 = vector.extract_strided_slice %184 {offsets = [24, 0], sizes = [8, 32], strides = [1, 1]} : vector<32x32xf32> to vector<8x32xf32>
    %cst_94 = arith.constant dense<0.000000e+00> : vector<128x32xf32>
    %280 = tpu.matmul %278, %279, %cst_94 {dimension_numbers = #tpu.dot_dimension_numbers<[1], [0], [0], [1], [0, 0, 1, 1], [], []>} : vector<128x8xf32>, vector<8x32xf32>, vector<128x32xf32> -> vector<128x32xf32>
    %281 = arith.addf %257, %280 : vector<128x32xf32>
    %c0_95 = arith.constant 0 : index
    %c0_96 = arith.constant 0 : index
    %282 = vector.load %arg16[%c0_95, %c0_96] : memref<1x32xf32, #tpu.memory_space<vmem>>, vector<1x32xf32>
    %283 = vector.broadcast %282 : vector<1x32xf32> to vector<128x32xf32>
    %284 = arith.addf %281, %283 : vector<128x32xf32>
    %285 = arith.addf %174, %284 : vector<128x32xf32>
    %c0_97 = arith.constant 0 : index
    %c0_98 = arith.constant 0 : index
    %286 = vector.load %arg17[%c0_97, %c0_98] : memref<1x32xf32, #tpu.memory_space<vmem>>, vector<1x32xf32>
    %c0_99 = arith.constant 0 : index
    %c0_100 = arith.constant 0 : index
    %287 = vector.load %arg18[%c0_99, %c0_100] : memref<1x32xf32, #tpu.memory_space<vmem>>, vector<1x32xf32>
    %cst_101 = arith.constant dense<0.000000e+00> : vector<128xf32>
    %288 = vector.multi_reduction <add>, %285, %cst_101 [1] : vector<128x32xf32> to vector<128xf32>
    %289 = vector.shape_cast %288 : vector<128xf32> to vector<128x1xf32>
    %cst_102 = arith.constant 3.200000e+01 : f32
    %290 = vector.broadcast %cst_102 : f32 to vector<128x1xf32>
    %291 = arith.divf %289, %290 : vector<128x1xf32>
    %292 = vector.broadcast %291 : vector<128x1xf32> to vector<128x32xf32>
    %293 = arith.subf %285, %292 : vector<128x32xf32>
    %294 = arith.mulf %293, %293 : vector<128x32xf32>
    %cst_103 = arith.constant dense<0.000000e+00> : vector<128xf32>
    %295 = vector.multi_reduction <add>, %294, %cst_103 [1] : vector<128x32xf32> to vector<128xf32>
    %296 = vector.shape_cast %295 : vector<128xf32> to vector<128x1xf32>
    %cst_104 = arith.constant 3.200000e+01 : f32
    %297 = vector.broadcast %cst_104 : f32 to vector<128x1xf32>
    %298 = arith.divf %296, %297 : vector<128x1xf32>
    %299 = vector.broadcast %291 : vector<128x1xf32> to vector<128x32xf32>
    %300 = arith.subf %285, %299 : vector<128x32xf32>
    %cst_105 = arith.constant 9.99999974E-6 : f32
    %301 = vector.broadcast %cst_105 : f32 to vector<128x1xf32>
    %302 = arith.addf %298, %301 : vector<128x1xf32>
    %303 = math.rsqrt %302 : vector<128x1xf32>
    %304 = vector.broadcast %303 : vector<128x1xf32> to vector<128x32xf32>
    %305 = arith.mulf %300, %304 : vector<128x32xf32>
    %306 = vector.broadcast %286 : vector<1x32xf32> to vector<128x32xf32>
    %307 = arith.mulf %305, %306 : vector<128x32xf32>
    %308 = vector.broadcast %287 : vector<1x32xf32> to vector<128x32xf32>
    %309 = arith.addf %307, %308 : vector<128x32xf32>
    %310 = arith.truncf %309 : vector<128x32xf32> to vector<128x32xbf16>
    %c0_106 = arith.constant 0 : index
    %c0_107 = arith.constant 0 : index
    %311 = vector.load %arg19[%c0_106, %c0_107] : memref<32x64xbf16, #tpu.memory_space<vmem>>, vector<32x64xbf16>
    %cst_108 = arith.constant dense<0.000000e+00> : vector<128x64xf32>
    %312 = tpu.matmul %310, %311, %cst_108 {dimension_numbers = #tpu.dot_dimension_numbers<[1], [0], [0], [1], [0, 0, 1, 1], [], []>} : vector<128x32xbf16>, vector<32x64xbf16>, vector<128x64xf32> -> vector<128x64xf32>
    %c0_109 = arith.constant 0 : index
    %c0_110 = arith.constant 0 : index
    %313 = vector.load %arg20[%c0_109, %c0_110] : memref<1x64xf32, #tpu.memory_space<vmem>>, vector<1x64xf32>
    %314 = vector.broadcast %313 : vector<1x64xf32> to vector<128x64xf32>
    %315 = arith.addf %312, %314 : vector<128x64xf32>
    %cst_111 = arith.constant 0.000000e+00 : f32
    %316 = vector.broadcast %cst_111 : f32 to vector<128x64xf32>
    %317 = arith.maximumf %315, %316 : vector<128x64xf32>
    %318 = arith.truncf %317 : vector<128x64xf32> to vector<128x64xbf16>
    %c0_112 = arith.constant 0 : index
    %c0_113 = arith.constant 0 : index
    %319 = vector.load %arg21[%c0_112, %c0_113] : memref<64x32xbf16, #tpu.memory_space<vmem>>, vector<64x32xbf16>
    %cst_114 = arith.constant dense<0.000000e+00> : vector<128x32xf32>
    %320 = tpu.matmul %318, %319, %cst_114 {dimension_numbers = #tpu.dot_dimension_numbers<[1], [0], [0], [1], [0, 0, 1, 1], [], []>} : vector<128x64xbf16>, vector<64x32xbf16>, vector<128x32xf32> -> vector<128x32xf32>
    %c0_115 = arith.constant 0 : index
    %c0_116 = arith.constant 0 : index
    %321 = vector.load %arg22[%c0_115, %c0_116] : memref<1x32xf32, #tpu.memory_space<vmem>>, vector<1x32xf32>
    %322 = vector.broadcast %321 : vector<1x32xf32> to vector<128x32xf32>
    %323 = arith.addf %320, %322 : vector<128x32xf32>
    %324 = arith.addf %309, %323 : vector<128x32xf32>
    %c0_117 = arith.constant 0 : index
    %c0_118 = arith.constant 0 : index
    %325 = vector.load %arg23[%c0_117, %c0_118] : memref<1x32xf32, #tpu.memory_space<vmem>>, vector<1x32xf32>
    %c0_119 = arith.constant 0 : index
    %c0_120 = arith.constant 0 : index
    %326 = vector.load %arg24[%c0_119, %c0_120] : memref<1x32xf32, #tpu.memory_space<vmem>>, vector<1x32xf32>
    %cst_121 = arith.constant dense<0.000000e+00> : vector<128xf32>
    %327 = vector.multi_reduction <add>, %324, %cst_121 [1] : vector<128x32xf32> to vector<128xf32>
    %328 = vector.shape_cast %327 : vector<128xf32> to vector<128x1xf32>
    %cst_122 = arith.constant 3.200000e+01 : f32
    %329 = vector.broadcast %cst_122 : f32 to vector<128x1xf32>
    %330 = arith.divf %328, %329 : vector<128x1xf32>
    %331 = vector.broadcast %330 : vector<128x1xf32> to vector<128x32xf32>
    %332 = arith.subf %324, %331 : vector<128x32xf32>
    %333 = arith.mulf %332, %332 : vector<128x32xf32>
    %cst_123 = arith.constant dense<0.000000e+00> : vector<128xf32>
    %334 = vector.multi_reduction <add>, %333, %cst_123 [1] : vector<128x32xf32> to vector<128xf32>
    %335 = vector.shape_cast %334 : vector<128xf32> to vector<128x1xf32>
    %cst_124 = arith.constant 3.200000e+01 : f32
    %336 = vector.broadcast %cst_124 : f32 to vector<128x1xf32>
    %337 = arith.divf %335, %336 : vector<128x1xf32>
    %338 = vector.broadcast %330 : vector<128x1xf32> to vector<128x32xf32>
    %339 = arith.subf %324, %338 : vector<128x32xf32>
    %cst_125 = arith.constant 9.99999974E-6 : f32
    %340 = vector.broadcast %cst_125 : f32 to vector<128x1xf32>
    %341 = arith.addf %337, %340 : vector<128x1xf32>
    %342 = math.rsqrt %341 : vector<128x1xf32>
    %343 = vector.broadcast %342 : vector<128x1xf32> to vector<128x32xf32>
    %344 = arith.mulf %339, %343 : vector<128x32xf32>
    %345 = vector.broadcast %325 : vector<1x32xf32> to vector<128x32xf32>
    %346 = arith.mulf %344, %345 : vector<128x32xf32>
    %347 = vector.broadcast %326 : vector<1x32xf32> to vector<128x32xf32>
    %348 = arith.addf %346, %347 : vector<128x32xf32>
    %349 = vector.shape_cast %348 : vector<128x32xf32> to vector<16x8x32xf32>
    %cst_126 = arith.constant dense<0.000000e+00> : vector<8x32xf32>
    %350 = vector.multi_reduction <add>, %349, %cst_126 [0] : vector<16x8x32xf32> to vector<8x32xf32>
    %cst_127 = arith.constant 1.600000e+01 : f32
    %351 = vector.broadcast %cst_127 : f32 to vector<8x32xf32>
    %352 = arith.divf %350, %351 : vector<8x32xf32>
    %353 = arith.truncf %352 : vector<8x32xf32> to vector<8x32xbf16>
    %c0_128 = arith.constant 0 : index
    %c0_129 = arith.constant 0 : index
    %354 = vector.load %arg25[%c0_128, %c0_129] : memref<32x10xbf16, #tpu.memory_space<vmem>>, vector<32x10xbf16>
    %cst_130 = arith.constant dense<0.000000e+00> : vector<8x10xf32>
    %355 = tpu.matmul %353, %354, %cst_130 {dimension_numbers = #tpu.dot_dimension_numbers<[1], [0], [0], [1], [0, 0, 1, 1], [], []>} : vector<8x32xbf16>, vector<32x10xbf16>, vector<8x10xf32> -> vector<8x10xf32>
    %c0_131 = arith.constant 0 : index
    %c0_132 = arith.constant 0 : index
    %356 = vector.load %arg26[%c0_131, %c0_132] : memref<1x10xf32, #tpu.memory_space<vmem>>, vector<1x10xf32>
    %357 = vector.broadcast %356 : vector<1x10xf32> to vector<8x10xf32>
    %358 = arith.addf %355, %357 : vector<8x10xf32>
    %c0_133 = arith.constant 0 : index
    %c0_134 = arith.constant 0 : index
    %359 = vector.load %arg27[%c0_133, %c0_134] : memref<8x10xf32, #tpu.memory_space<vmem>>, vector<8x10xf32>
    tpu.vector_store %arg27[%c0_133, %c0_134], %358 {strides = array<i32>} : memref<8x10xf32, #tpu.memory_space<vmem>>, vector<8x10xf32>,
    return
  }
}

</mosaic_0001>

<bundles_post_ra>
// kernel: simple_transformer_forward.1
= control target key start
LH: loop header
LB: loop body
LE: loop exit
PB: predicated region body
PF: predicated region fallthrough
CT: control target
= control target key end

     0   :  { %s34514_s0 = inlined_call_operand.vmem [shape: f32[128,32], index: 0, kind: input, shape index: {}]   ;;  %s34515_s1 = inlined_call_operand.vmem [shape: bf16[32,96], index: 1, kind: input, shape index: {}]   ;;  %s34516_s2 = inlined_call_operand.vmem [shape: f32[1,96], index: 2, kind: input, shape index: {}]   ;;  %s34517_s3 = inlined_call_operand.vmem [shape: f32[32,32], index: 3, kind: input, shape index: {}]   ;;  %s34518_s4 = inlined_call_operand.vmem [shape: f32[1,32], index: 4, kind: input, shape index: {}]   ;;  %s34519_s5 = inlined_call_operand.vmem [shape: f32[1,32], index: 5, kind: input, shape index: {}]   ;;  %s34520_s6 = inlined_call_operand.vmem [shape: f32[1,32], index: 6, kind: input, shape index: {}]   ;;  %s34521_s7 = inlined_call_operand.vmem [shape: bf16[32,64], index: 7, kind: input, shape index: {}]   ;;  %s34522_s8 = inlined_call_operand.vmem [shape: f32[1,64], index: 8, kind: input, shape index: {}]   ;;  %s34523_s9 = inlined_call_operand.vmem [shape: bf16[64,32], index: 9, kind: input, shape index: {}]   ;;  %s34524_s10 = inlined_call_operand.vmem [shape: f32[1,32], index: 10, kind: input, shape index: {}]   ;;  %s34525_s11 = inlined_call_operand.vmem [shape: f32[1,32], index: 11, kind: input, shape index: {}]   ;;  %s34526_s12 = inlined_call_operand.vmem [shape: f32[1,32], index: 12, kind: input, shape index: {}]   ;;  %s34527_s13 = inlined_call_operand.vmem [shape: bf16[32,96], index: 13, kind: input, shape index: {}]   ;;  %s34528_s14 = inlined_call_operand.vmem [shape: f32[1,96], index: 14, kind: input, shape index: {}]   ;;  %s34529_s15 = inlined_call_operand.vmem [shape: f32[32,32], index: 15, kind: input, shape index: {}]   ;;  %s34530_s16 = inlined_call_operand.vmem [shape: f32[1,32], index: 16, kind: input, shape index: {}]   ;;  %s34531_s17 = inlined_call_operand.vmem [shape: f32[1,32], index: 17, kind: input, shape index: {}]   ;;  %s34532_s18 = inlined_call_operand.vmem [shape: f32[1,32], index: 18, kind: input, shape index: {}]   ;;  %s34533_s19 = inlined_call_operand.vmem [shape: bf16[32,64], index: 19, kind: input, shape index: {}]   ;;  %s34534_s20 = inlined_call_operand.vmem [shape: f32[1,64], index: 20, kind: input, shape index: {}]   ;;  %s34535_s21 = inlined_call_operand.vmem [shape: bf16[64,32], index: 21, kind: input, shape index: {}]   ;;  %s34536_s22 = inlined_call_operand.vmem [shape: f32[1,32], index: 22, kind: input, shape index: {}]   ;;  %s34537_s23 = inlined_call_operand.vmem [shape: f32[1,32], index: 23, kind: input, shape index: {}]   ;;  %s34538_s24 = inlined_call_operand.vmem [shape: f32[1,32], index: 24, kind: input, shape index: {}]   ;;  %s34539_s25 = inlined_call_operand.vmem [shape: bf16[32,10], index: 25, kind: input, shape index: {}]   ;;  %s34540_s26 = inlined_call_operand.vmem [shape: f32[1,10], index: 26, kind: input, shape index: {}]   ;;  %s34541_s27 = inlined_call_operand.hbm [shape: f32[8,10], index: 27, kind: output, shape index: {}]  }
   0x1   :  { %34613 = sst [smem:[#allocation46_spill]] %s34514_s0 }
   0x2   :  { %34614 = sst [smem:[#allocation47_spill]] %s34515_s1 }
   0x3   :  { %34615 = sst [smem:[#allocation48_spill]] %s34516_s2 }
   0x4   :  { %34616 = sst [smem:[#allocation49_spill]] %s34517_s3 }
   0x5   :  { %34617 = sst [smem:[#allocation50_spill]] %s34518_s4 }
   0x6   :  { %34618 = sst [smem:[#allocation51_spill]] %s34519_s5 }
   0x7   :  { %34619 = sst [smem:[#allocation52_spill]] %s34520_s6 }
   0x8   :  { %34620 = sst [smem:[#allocation53_spill]] %s34521_s7 }
   0x9   :  { %34621 = sst [smem:[#allocation54_spill]] %s34522_s8 }
   0xa   :  { %34622 = sst [smem:[#allocation55_spill]] %s34523_s9 }
   0xb   :  { %34623 = sst [smem:[#allocation56_spill]] %s34524_s10 }
   0xc   :  { %34624 = sst [smem:[#allocation57_spill]] %s34525_s11 }
   0xd   :  { %s34625_s8 = sld [smem:[#allocation47_spill]]  ;;  %s34626_s0 = sld [smem:[#allocation46_spill]]  ;;  %vm135_vm0 = vcmask 261120  }
  0x13   :  { %v28205_v0 = vld [vmem:[%s34625_s8] sm:$0xff]   ;;  %v28206_v1 = vld [vmem:[%s34625_s8 + $0x8] sm:$0xff]   ;;  %v90_v5 = vld [vmem:[%s34626_s0 + $0x10] sm:$0xff] }
  0x14   :  { %26469 = vmatprep.subr.bf16.mxu0 %v28205_v0  ;;  %v88_v2 = vld [vmem:[%s34626_s0] sm:$0xff]  ;;  %v89_v3 = vld [vmem:[%s34626_s0 + $0x8] sm:$0xff]  ;;  %v91_v6 = vld [vmem:[%s34626_s0 + $0x18] sm:$0xff] }
  0x15   :  { %26470 = vmatpush3.bf16.msra.mxu0 %v28205_v0  ;;  %v104_v4 = vpack.c.bf16 %v89_v3, %v88_v2  ;;  %v92_v7 = vld [vmem:[%s34626_s0 + $0x20] sm:$0xff]  ;;  %v93_v8 = vld [vmem:[%s34626_s0 + $0x28] sm:$0xff]  ;;  %v105_v9 = vpack.c.bf16 %v91_v6, %v90_v5  ;;  %v94_v11 = vld [vmem:[%s34626_s0 + $0x30] sm:$0xff] }
  0x16   :  { %26471 = vmatprep.subr.bf16.mxu0 %v28206_v1  ;;  %v106_v10 = vpack.c.bf16 %v93_v8, %v92_v7  ;;  %v95_v12 = vld [vmem:[%s34626_s0 + $0x38] sm:$0xff]  ;;  %v96_v13 = vld [vmem:[%s34626_s0 + $0x40] sm:$0xff]  ;;  %v97_v14 = vld [vmem:[%s34626_s0 + $0x48] sm:$0xff] }
  0x17   :  { %26473 = vmatprep.mubr.msk.bf16.mxu0 %vm135_vm0, %v104_v4  ;;  %v107_v15 = vpack.c.bf16 %v95_v12, %v94_v11  ;;  %v108_v16 = vpack.c.bf16 %v97_v14, %v96_v13 }
  0x19   :  { %26472 = vmatpush3.bf16.msra.mxu0 %v28206_v1 }
  0x1c   :  { %26474 = vmatmul.mubr.msk.bf16.vlgmr.msra.gmra.mrb[0].mxu0 %vm135_vm0, %v105_v9 }
  0x1d   :  { %26477 = vmatprep.mubr.msk.bf16.mxu0 %vm135_vm0, %v106_v10 }
  0x24   :  { %26478 = vmatmul.mubr.msk.bf16.gmra.mrb[4].mxu0 %vm135_vm0, %v107_v15 }
  0x25   :  { %32 = vsyncpa [#allocation3], 0  ;;  %26481 = vmatprep.mubr.msk.bf16.mxu0 %vm135_vm0, %v108_v16  ;;  %v98_v17 = vld [vmem:[%s34626_s0 + $0x50] sm:$0xff]  ;;  %v99_v18 = vld [vmem:[%s34626_s0 + $0x58] sm:$0xff]  ;;  %v34547_v26 = vmov 0.0   ;;  %vm28904_vm1 = vmmov 0  }
  0x26   :  { %v100_v19 = vld [vmem:[%s34626_s0 + $0x60] sm:$0xff]  ;;  %v101_v20 = vld [vmem:[%s34626_s0 + $0x68] sm:$0xff]  ;;  %v109_v21 = vpack.c.bf16 %v99_v18, %v98_v17  ;;  %v102_v23 = vld [vmem:[%s34626_s0 + $0x70] sm:$0xff]  ;;  %26489 = vmatprep.subr.mxu1 %v34547_v26  ;;  %26534 = vmatprep.subr.mxu0 %v34547_v26  ;;  %s34627_s11 = sld [smem:[#allocation48_spill]]  ;;  %s28905_s2 = smov 96   ;;  %vm264_vm2 = vcmask 64512  }
  0x27   :  { %v110_v22 = vpack.c.bf16 %v101_v20, %v100_v19  ;;  %v103_v24 = vld [vmem:[%s34626_s0 + $0x78] sm:$0xff]  ;;  %26491 = vmatprep.mubr.msk.f32.mxu1 %vm28904_vm1, %v34547_v26  ;;  %s28906_s3 = smov 64   ;;  %s28907_s7 = smov 88   ;;  %vm12183_vm3 = vcmask 523264   ;;  %vm25142_vm4 = vcmask 80896  }
  0x28   :  { %v111_v25 = vpack.c.bf16 %v103_v24, %v102_v23  ;;  %s28908_s4 = smov 120   ;;  %s28909_s8 = smov 56  }
  0x29   :  { %s28910_s30 = smov 112   ;;  %s28911_s9 = smov 80  }
  0x2a   :  { %s34577_s5 = smov 48   ;;  %s34666_s29 = sld [smem:[#allocation49_spill]] }
  0x2b   :  { %s34573_s28 = smov 104   ;;  %s34571_s10 = smov 40  }
  0x2c   :  { %26482 = vmatmul.mubr.msk.bf16.gmra.mrb[8].mxu0 %vm135_vm0, %v109_v21  ;;  %v25158_v27 = vld [vmem:[%s34627_s11] ss:$0 sm:$0xff]  ;;  %s34575_s11 = smov 72   ;;  %s34688_s6 = sld [smem:[#allocation50_spill]] }
  0x2d   :  { %26485 = vmatprep.mubr.msk.bf16.mxu0 %vm135_vm0, %v110_v22  ;;  %s34693_s1 = sld [smem:[#allocation54_spill]] }
  0x34   :  { %26486 = vmatmul.mubr.msk.bf16.gmra.mrb[12].mxu0 %vm135_vm0, %v111_v25 }
  0x35   :  { %26536 = vmatprep.mubr.msk.f32.mxu0 %vm28904_vm1, %v34547_v26 }
  0xef   :  { %v26475_v28 = vpop.f32.mrb[0].mxu0 }
  0xf0   :  { %v29128_v29 = vadd.f32 %v26475_v28, %v25158_v27  ;;  %v194_v30 = vpop.f32.mrb[1].mxu0 }
  0xf1   :  { %v29130_v31 = vadd.f32 %v25158_v27, %v194_v30  ;;  %v26476_v32 = vpop.f32.mrb[2].mxu0 }
  0xf2   :  { %417 = vrot.lane.b32.xlu1 %v29128_v29, %s28905_s2  ;;  %v197_v33 = vpop.f32.mrb[3].mxu0  ;;  %v29136_v34 = vadd.f32 %v26476_v32, %v25158_v27 }
  0xf3   :  { %34628 = vst [vmem:[#allocation5_spill] sm:$0xff] %v29130_v31  ;;  %262 = vrot.lane.b32.xlu0 %v29130_v31, %s28905_s2  ;;  %v29138_v35 = vadd.f32 %v25158_v27, %v197_v33 }
  0xf4   :  { %34629 = vst [vmem:[#allocation6_spill] sm:$0xff] %v29136_v34 }
  0xf5   :  { %34630 = vst [vmem:[#allocation7_spill] sm:$0xff] %v29138_v35 }
  0xf6   :  { %494 = vrot.lane.b32.xlu1 %v29136_v34, %s28905_s2 }
  0xf7   :  { %v26479_v36 = vpop.f32.mrb[4].mxu0  ;;  %340 = vrot.lane.b32.xlu0 %v29138_v35, %s28905_s2 }
  0xf8   :  { %v210_v37 = vpop.f32.mrb[5].mxu0  ;;  %v29150_v42 = vadd.f32 %v26479_v36, %v25158_v27 }
  0xf9   :  { %v29144_v38 = vadd.f32 %v25158_v27, %v210_v37  ;;  %v26480_v39 = vpop.f32.mrb[6].mxu0 }
  0xfa   :  { %v213_v40 = vpop.f32.mrb[7].mxu0  ;;  %34633 = vst [vmem:[#allocation10_spill] sm:$0xff] %v29150_v42  ;;  %v29154_v43 = vadd.f32 %v26480_v39, %v25158_v27 }
  0xfb   :  { %34631 = vst [vmem:[#allocation8_spill] sm:$0xff] %v29144_v38  ;;  %v29146_v41 = vadd.f32 %v25158_v27, %v213_v40  ;;  %571 = vrot.lane.b32.xlu0 %v29144_v38, %s28905_s2 }
  0xfc   :  { %34634 = vst [vmem:[#allocation11_spill] sm:$0xff] %v29154_v43 }
  0xfd   :  { %34632 = vst [vmem:[#allocation9_spill] sm:$0xff] %v29146_v41  ;;  %648 = vrot.lane.b32.xlu1 %v29146_v41, %s28905_s2 }
  0xff   :  { %v26483_v44 = vpop.f32.mrb[8].mxu0  ;;  %725 = vrot.lane.b32.xlu0 %v29150_v42, %s28905_s2 }
 0x100   :  { %v226_v45 = vpop.f32.mrb[9].mxu0  ;;  %v29176_v56 = vadd.f32 %v26483_v44, %v25158_v27 }
 0x101   :  { %v26484_v46 = vpop.f32.mrb[10].mxu0  ;;  %802 = vrot.lane.b32.xlu1 %v29154_v43, %s28905_s2  ;;  %v29178_v57 = vadd.f32 %v25158_v27, %v226_v45 }
 0x102   :  { %v29160_v47 = vadd.f32 %v26484_v46, %v25158_v27  ;;  %v229_v48 = vpop.f32.mrb[11].mxu0  ;;  %34637 = vst [vmem:[#allocation14_spill] sm:$0xff] %v29176_v56 }
 0x103   :  { %v29162_v49 = vadd.f32 %v25158_v27, %v229_v48  ;;  %34638 = vst [vmem:[#allocation15_spill] sm:$0xff] %v29178_v57 }
 0x104   :  { %34635 = vst [vmem:[#allocation12_spill] sm:$0xff] %v29160_v47 }
 0x105   :  { %34636 = vst [vmem:[#allocation13_spill] sm:$0xff] %v29162_v49  ;;  %1110 = vrot.lane.b32.xlu1 %v29160_v47, %s28905_s2  ;;  %956 = vrot.lane.b32.xlu0 %v29162_v49, %s28905_s2 }
 0x107   :  { %v26487_v50 = vpop.f32.mrb[12].mxu0 }
 0x108   :  { %v242_v51 = vpop.f32.mrb[13].mxu0  ;;  %v29184_v58 = vadd.f32 %v26487_v50, %v25158_v27 }
 0x109   :  { %v26488_v52 = vpop.f32.mrb[14].mxu0  ;;  %v29186_v59 = vadd.f32 %v25158_v27, %v242_v51 }
 0x10a   :  { %v29168_v53 = vadd.f32 %v26488_v52, %v25158_v27  ;;  %v245_v54 = vpop.f32.mrb[15].mxu0 }
 0x10b   :  { %v29170_v55 = vadd.f32 %v25158_v27, %v245_v54 }
 0x10c   :  { %1418 = vrot.lane.b32.xlu1 %v29168_v53, %s28905_s2 }
 0x10d   :  { %1264 = vrot.lane.b32.xlu0 %v29170_v55, %s28905_s2 }
 0x110   :  { %1033 = vrot.lane.b32.xlu1 %v29176_v56, %s28905_s2 }
 0x111   :  { %879 = vrot.lane.b32.xlu0 %v29178_v57, %s28905_s2 }
 0x114   :  { %1341 = vrot.lane.b32.xlu1 %v29184_v58, %s28905_s2 }
 0x115   :  { %1187 = vrot.lane.b32.xlu0 %v29186_v59, %s28905_s2 }
 0x118   :  { %1914 = vrot.lane.b32.xlu1 %v29136_v34, %s28906_s3 }
 0x119   :  { %1762 = vrot.lane.b32.xlu0 %v29138_v35, %s28906_s3 }
 0x11c   :  { %2218 = vrot.lane.b32.xlu1 %v29154_v43, %s28906_s3 }
 0x11d   :  { %2066 = vrot.lane.b32.xlu0 %v29146_v41, %s28906_s3 }
 0x120   :  { %2522 = vrot.lane.b32.xlu1 %v29160_v47, %s28906_s3 }
 0x121   :  { %2370 = vrot.lane.b32.xlu0 %v29162_v49, %s28906_s3 }
 0x124   :  { %2826 = vrot.lane.b32.xlu1 %v29168_v53, %s28906_s3 }
 0x125   :  { %2982 = vrot.lane.b32.xlu0 %v29138_v35, %s28907_s7 }
 0x128   :  { %2980 = vrot.lane.b32.xlu1 %v29138_v35, %s28908_s4 }
 0x129   :  { %3138 = vrot.lane.b32.xlu0 %v29136_v34, %s28907_s7 }
 0x12c   :  { %3136 = vrot.lane.b32.xlu1 %v29136_v34, %s28908_s4 }
 0x12d   :  { %3294 = vrot.lane.b32.xlu0 %v29146_v41, %s28907_s7 }
 0x130   :  { %3292 = vrot.lane.b32.xlu1 %v29146_v41, %s28908_s4 }
 0x131   :  { %3450 = vrot.lane.b32.xlu0 %v29154_v43, %s28907_s7 }
 0x134   :  { %3448 = vrot.lane.b32.xlu1 %v29154_v43, %s28908_s4 }
 0x135   :  { %2674 = vrot.lane.b32.xlu0 %v29170_v55, %s28906_s3 }
 0x164   :  { %v418_v60 = vpop.permute.xlu1 %417 }
 0x165   :  { %v263_v61 = vpop.permute.xlu0 %262 }
 0x166   :  { %26490 = vmatpush3.xpose.msk.msra.mxu1 %vm264_vm2, %v263_v61 }
 0x167   :  { %26494 = vmatprep.subr.mxu1 %v34547_v26 }
 0x168   :  { %v495_v63 = vpop.permute.xlu1 %494 }
 0x169   :  { %26492 = vmatmul.mubr.msk.f32.vlgmr.msra.gmra.mrb[0].mxu1 %vm264_vm2, %v29130_v31  ;;  %v341_v62 = vpop.permute.xlu0 %340 }
 0x16a   :  { %26495 = vmatpush3.xpose.msk.msra.mxu1 %vm264_vm2, %v341_v62  ;;  %26496 = vmatprep.mubr.msk.f32.mxu1 %vm28904_vm1, %v34547_v26 }
 0x16b   :  { %26499 = vmatprep.subr.mxu1 %v34547_v26 }
 0x16d   :  { %26497 = vmatmul.mubr.msk.f32.vlgmr.msra.gmra.mrb[2].mxu1 %vm264_vm2, %v29138_v35  ;;  %v572_v0 = vpop.permute.xlu0 %571 }
 0x16e   :  { %26500 = vmatpush3.xpose.msk.msra.mxu1 %vm264_vm2, %v418_v60  ;;  %26501 = vmatprep.mubr.msk.f32.mxu1 %vm28904_vm1, %v34547_v26 }
 0x16f   :  { %v649_v1 = vpop.permute.xlu1 %648  ;;  %26504 = vmatprep.subr.mxu1 %v34547_v26 }
 0x171   :  { %26502 = vmatmul.mubr.msk.f32.vlgmr.msra.gmra.mrb[4].mxu1 %vm264_vm2, %v29128_v29  ;;  %v726_v2 = vpop.permute.xlu0 %725 }
 0x172   :  { %26505 = vmatpush3.xpose.msk.msra.mxu1 %vm264_vm2, %v495_v63  ;;  %26506 = vmatprep.mubr.msk.f32.mxu1 %vm28904_vm1, %v34547_v26 }
 0x173   :  { %26509 = vmatprep.subr.mxu1 %v34547_v26  ;;  %v803_v3 = vpop.permute.xlu1 %802 }
 0x175   :  { %26507 = vmatmul.mubr.msk.f32.vlgmr.msra.gmra.mrb[6].mxu1 %vm264_vm2, %v29136_v34 }
 0x176   :  { %26510 = vmatpush3.xpose.msk.msra.mxu1 %vm264_vm2, %v572_v0  ;;  %26511 = vmatprep.mubr.msk.f32.mxu1 %vm28904_vm1, %v34547_v26 }
 0x177   :  { %v957_v4 = vpop.permute.xlu0 %956  ;;  %26514 = vmatprep.subr.mxu1 %v34547_v26  ;;  %v1111_v5 = vpop.permute.xlu1 %1110 }
 0x178   :  { %26535 = vmatpush3.xpose.msk.msra.mxu0 %vm264_vm2, %v957_v4 }
 0x179   :  { %26512 = vmatmul.mubr.msk.f32.vlgmr.msra.gmra.mrb[8].mxu1 %vm264_vm2, %v29144_v38  ;;  %26544 = vmatprep.subr.mxu0 %v34547_v26 }
 0x17a   :  { %26515 = vmatpush3.xpose.msk.msra.mxu1 %vm264_vm2, %v649_v1  ;;  %26516 = vmatprep.mubr.msk.f32.mxu1 %vm28904_vm1, %v34547_v26 }
 0x17b   :  { %26537 = vmatmul.mubr.msk.f32.vlgmr.msra.gmra.mrb[16].mxu0 %vm264_vm2, %v29162_v49  ;;  %26519 = vmatprep.subr.mxu1 %v34547_v26 }
 0x17c   :  { %26545 = vmatpush3.xpose.msk.msra.mxu0 %vm264_vm2, %v1111_v5  ;;  %26546 = vmatprep.mubr.msk.f32.mxu0 %vm28904_vm1, %v34547_v26 }
 0x17d   :  { %26517 = vmatmul.mubr.msk.f32.vlgmr.msra.gmra.mrb[10].mxu1 %vm264_vm2, %v29146_v41  ;;  %26554 = vmatprep.subr.mxu0 %v34547_v26 }
 0x17e   :  { %26520 = vmatpush3.xpose.msk.msra.mxu1 %vm264_vm2, %v726_v2  ;;  %26521 = vmatprep.mubr.msk.f32.mxu1 %vm28904_vm1, %v34547_v26  ;;  %v1419_v7 = vpop.permute.xlu1 %1418 }
 0x17f   :  { %26547 = vmatmul.mubr.msk.f32.vlgmr.msra.gmra.mrb[18].mxu0 %vm264_vm2, %v29160_v47  ;;  %v1265_v6 = vpop.permute.xlu0 %1264  ;;  %26524 = vmatprep.subr.mxu1 %v34547_v26 }
 0x180   :  { %26555 = vmatpush3.xpose.msk.msra.mxu0 %vm264_vm2, %v1265_v6  ;;  %26556 = vmatprep.mubr.msk.f32.mxu0 %vm28904_vm1, %v34547_v26 }
 0x181   :  { %26522 = vmatmul.mubr.msk.f32.vlgmr.msra.gmra.mrb[12].mxu1 %vm264_vm2, %v29150_v42  ;;  %26564 = vmatprep.subr.mxu0 %v34547_v26 }
 0x182   :  { %26525 = vmatpush3.xpose.msk.msra.mxu1 %vm264_vm2, %v803_v3  ;;  %26526 = vmatprep.mubr.msk.f32.mxu1 %vm28904_vm1, %v34547_v26  ;;  %v1034_v10 = vpop.permute.xlu1 %1033 }
 0x183   :  { %26557 = vmatmul.mubr.msk.f32.vlgmr.msra.gmra.mrb[20].mxu0 %vm264_vm2, %v29170_v55  ;;  %v880_v8 = vpop.permute.xlu0 %879  ;;  %26529 = vmatprep.subr.mxu1 %v34547_v26 }
 0x184   :  { %26565 = vmatpush3.xpose.msk.msra.mxu0 %vm264_vm2, %v1419_v7  ;;  %26566 = vmatprep.mubr.msk.f32.mxu0 %vm28904_vm1, %v34547_v26 }
 0x185   :  { %26527 = vmatmul.mubr.msk.f32.vlgmr.msra.gmra.mrb[14].mxu1 %vm264_vm2, %v29154_v43  ;;  %26574 = vmatprep.subr.mxu0 %v34547_v26 }
 0x186   :  { %26530 = vmatpush3.xpose.msk.msra.mxu1 %vm264_vm2, %v880_v8  ;;  %26531 = vmatprep.mubr.msk.f32.mxu1 %vm28904_vm1, %v34547_v26  ;;  %v1342_v12 = vpop.permute.xlu1 %1341 }
 0x187   :  { %26567 = vmatmul.mubr.msk.f32.vlgmr.msra.gmra.mrb[22].mxu0 %vm264_vm2, %v29168_v53  ;;  %v1188_v9 = vpop.permute.xlu0 %1187  ;;  %26539 = vmatprep.subr.mxu1 %v34547_v26 }
 0x188   :  { %26576 = vmatprep.mubr.msk.f32.mxu0 %vm28904_vm1, %v34547_v26 }
 0x189   :  { %26532 = vmatmul.mubr.msk.f32.vlgmr.msra.gmra.mrb[16].mxu1 %vm264_vm2, %v29178_v57 }
 0x18a   :  { %26540 = vmatpush3.xpose.msk.msra.mxu1 %vm264_vm2, %v1034_v10  ;;  %26541 = vmatprep.mubr.msk.f32.mxu1 %vm28904_vm1, %v34547_v26 }
 0x18b   :  { %v1763_v11 = vpop.permute.xlu0 %1762  ;;  %26549 = vmatprep.subr.mxu1 %v34547_v26 }
 0x18c   :  { %26575 = vmatpush3.msra.mxu0 %v1763_v11 }
 0x18d   :  { %26542 = vmatmul.mubr.msk.f32.vlgmr.msra.gmra.mrb[18].mxu1 %vm264_vm2, %v29176_v56  ;;  %26584 = vmatprep.subr.mxu0 %v34547_v26 }
 0x18e   :  { %26550 = vmatpush3.xpose.msk.msra.mxu1 %vm264_vm2, %v1188_v9  ;;  %26551 = vmatprep.mubr.msk.f32.mxu1 %vm28904_vm1, %v34547_v26 }
 0x18f   :  { %26559 = vmatprep.subr.mxu1 %v34547_v26 }
 0x191   :  { %26552 = vmatmul.mubr.msk.f32.vlgmr.msra.gmra.mrb[20].mxu1 %vm264_vm2, %v29186_v59 }
 0x192   :  { %26560 = vmatpush3.xpose.msk.msra.mxu1 %vm264_vm2, %v1342_v12  ;;  %26561 = vmatprep.mubr.msk.f32.mxu1 %vm28904_vm1, %v34547_v26 }
 0x193   :  { %26569 = vmatprep.subr.mxu1 %v34547_v26 }
 0x195   :  { %26562 = vmatmul.mubr.msk.f32.vlgmr.msra.gmra.mrb[22].mxu1 %vm264_vm2, %v29184_v58 }
 0x196   :  { %26571 = vmatprep.mubr.msk.f32.mxu1 %vm28904_vm1, %v34547_v26 }
 0x23c   :  { %v29321_v13 = vpop.f32.mrb[0].mxu1 }
 0x23d   :  { %v26493_v14 = vpop.f32.mrb[1].mxu1 }
 0x240   :  { %v412_v15 = vpop.f32.mrb[2].mxu1 }
 0x241   :  { %v26498_v16 = vpop.f32.mrb[3].mxu1  ;;  %v29323_v17 = vmul.f32 0.35355338, %v412_v15  ;;  %v29377_v15 = vpop.permute.xlu0 %2066 }
 0x242   :  { %v29379_v16 = vpop.permute.xlu1 %1914 }
 0x243   :  { %v1513_v18 = vsel %vm264_vm2, %v29323_v17, -inf }
 0x244   :  { %1514 = vmax.xlane.f32.xlu0 %v1513_v18  ;;  %v29327_v19 = vpop.f32.mrb[4].mxu1 }
 0x245   :  { %v26503_v20 = vpop.f32.mrb[5].mxu1  ;;  %v29381_v18 = vpop.permute.xlu0 %2370 }
 0x246   :  { %v29383_v20 = vpop.permute.xlu1 %2218 }
 0x248   :  { %v566_v21 = vpop.f32.mrb[6].mxu1 }
 0x249   :  { %v26508_v22 = vpop.f32.mrb[7].mxu1  ;;  %v29329_v23 = vmul.f32 0.35355338, %v566_v21  ;;  %v29385_v21 = vpop.permute.xlu0 %2982 }
 0x24a   :  { %v29387_v22 = vpop.permute.xlu1 %2522 }
 0x24b   :  { %v1519_v24 = vsel %vm264_vm2, %v29329_v23, -inf }
 0x24c   :  { %1520 = vmax.xlane.f32.xlu1 %v1519_v24  ;;  %v29333_v25 = vpop.f32.mrb[8].mxu1 }
 0x24d   :  { %v26513_v27 = vpop.f32.mrb[9].mxu1  ;;  %v29389_v24 = vpop.permute.xlu0 %3138 }
 0x24e   :  { %v1028_v28 = vpop.f32.mrb[16].mxu0  ;;  %v29391_v27 = vpop.permute.xlu1 %2826 }
 0x24f   :  { %v26538_v30 = vpop.f32.mrb[17].mxu0  ;;  %v29335_v32 = vmul.f32 0.35355338, %v1028_v28 }
 0x250   :  { %v720_v33 = vpop.f32.mrb[10].mxu1 }
 0x251   :  { %v26518_v36 = vpop.f32.mrb[11].mxu1  ;;  %v1537_v37 = vsel %vm264_vm2, %v29335_v32, -inf  ;;  %v29339_v39 = vmul.f32 0.35355338, %v720_v33  ;;  %v29393_v28 = vpop.permute.xlu0 %3294 }
 0x252   :  { %1538 = vmax.xlane.f32.xlu1 %v1537_v37  ;;  %v1182_v40 = vpop.f32.mrb[18].mxu0  ;;  %v29395_v30 = vpop.permute.xlu1 %2980 }
 0x253   :  { %v26548_v44 = vpop.f32.mrb[19].mxu0  ;;  %v1525_v45 = vsel %vm264_vm2, %v29339_v39, -inf  ;;  %v29343_v46 = vmul.f32 0.35355338, %v1182_v40 }
 0x254   :  { %1526 = vmax.xlane.f32.xlu0 %v1525_v45  ;;  %v29345_v48 = vpop.f32.mrb[12].mxu1 }
 0x255   :  { %v26523_v50 = vpop.f32.mrb[13].mxu1  ;;  %v1543_v54 = vsel %vm264_vm2, %v29343_v46, -inf  ;;  %v29397_v33 = vpop.permute.xlu0 %3450 }
 0x256   :  { %v1336_v51 = vpop.f32.mrb[20].mxu0  ;;  %v29399_v36 = vpop.permute.xlu1 %3136 }
 0x257   :  { %v26558_v52 = vpop.f32.mrb[21].mxu0  ;;  %v29349_v60 = vmul.f32 0.35355338, %v1336_v51 }
 0x258   :  { %v874_v61 = vpop.f32.mrb[14].mxu1  ;;  %1544 = vmax.xlane.f32.xlu0 %v1543_v54 }
 0x259   :  { %v26528_v62 = vpop.f32.mrb[15].mxu1  ;;  %v1549_v63 = vsel %vm264_vm2, %v29349_v60, -inf  ;;  %v29353_v0 = vmul.f32 0.35355338, %v874_v61  ;;  %v29401_v37 = vpop.permute.xlu0 %2674 }
 0x25a   :  { %1550 = vmax.xlane.f32.xlu1 %v1549_v63  ;;  %v1490_v1 = vpop.f32.mrb[22].mxu0  ;;  %v29403_v40 = vpop.permute.xlu1 %3292 }
 0x25b   :  { %v26568_v2 = vpop.f32.mrb[23].mxu0  ;;  %v1531_v3 = vsel %vm264_vm2, %v29353_v0, -inf  ;;  %v29371_v12 = vmul.f32 0.35355338, %v1490_v1 }
 0x25c   :  { %1532 = vmax.xlane.f32.xlu0 %v1531_v3  ;;  %v29357_v4 = vpop.f32.mrb[16].mxu1 }
 0x25d   :  { %v26533_v5 = vpop.f32.mrb[17].mxu1  ;;  %v1555_v14 = vsel %vm264_vm2, %v29371_v12, -inf }
 0x25e   :  { %v29406_v51 = vpop.permute.xlu1 %3448 }
 0x260   :  { %v29359_v6 = vpop.f32.mrb[18].mxu1 }
 0x261   :  { %v26543_v7 = vpop.f32.mrb[19].mxu1 }
 0x264   :  { %v29361_v8 = vpop.f32.mrb[20].mxu1 }
 0x265   :  { %v26553_v9 = vpop.f32.mrb[21].mxu1 }
 0x268   :  { %v29363_v10 = vpop.f32.mrb[22].mxu1 }
 0x269   :  { %v26563_v11 = vpop.f32.mrb[23].mxu1 }
 0x26b   :  { %3604 = vrot.lane.b32.xlu1 %v29162_v49, %s28908_s4 }
 0x26f   :  { %3760 = vrot.lane.b32.xlu1 %v29160_v47, %s28908_s4 }
 0x272   :  { %3606 = vrot.lane.b32.xlu0 %v29162_v49, %s28907_s7 }
 0x291   :  { %1556 = vmax.xlane.f32.xlu0 %v1555_v14 }
 0x2a7   :  { %3762 = vrot.lane.b32.xlu0 %v29160_v47, %s28907_s7 }
 0x2d1   :  { %v1515_v44 = vpop.xlane.xlu0 %1514 }
 0x2d2   :  { %v1559_v45 = vsub.f32 %v29323_v17, %v1515_v44 }
 0x2d4   :  { %v1576_v50 = vmul.f32 1.442695, %v1559_v45 }
 0x2d6   :  { %28223 = vpow2.f32 %v1576_v50 }
 0x2d9   :  { %v1521_v52 = vpop.xlane.xlu1 %1520 }
 0x2da   :  { %v1561_v54 = vsub.f32 %v29329_v23, %v1521_v52 }
 0x2dc   :  { %v1580_v61 = vmul.f32 1.442695, %v1561_v54 }
 0x2de   :  { %28225 = vpow2.f32 %v1580_v61 }
 0x2df   :  { %v1539_v62 = vpop.xlane.xlu1 %1538 }
 0x2e0   :  { %v29409_v63 = vpop.eup %28223  ;;  %v1567_v1 = vsub.f32 %v29335_v32, %v1539_v62 }
 0x2e1   :  { %v1527_v2 = vpop.xlane.xlu0 %1526  ;;  %v1609_v3 = vsel %vm264_vm2, %v29409_v63, 0.0 }
 0x2e2   :  { %v1592_v5 = vmul.f32 1.442695, %v1567_v1  ;;  %v1563_v17 = vsub.f32 %v29339_v39, %v1527_v2  ;;  %1610 = vadd.xlane.f32.xlu1 %v1609_v3 }
 0x2e4   :  { %28227 = vpow2.f32 %v1592_v5  ;;  %v1584_v7 = vmul.f32 1.442695, %v1563_v17 }
 0x2e5   :  { %v1545_v9 = vpop.xlane.xlu0 %1544 }
 0x2e6   :  { %28229 = vpow2.f32 %v1584_v7  ;;  %v1569_v23 = vsub.f32 %v29343_v46, %v1545_v9 }
 0x2e7   :  { %v1551_v11 = vpop.xlane.xlu1 %1550 }
 0x2e8   :  { %v29416_v14 = vpop.eup %28225  ;;  %v1596_v44 = vmul.f32 1.442695, %v1569_v23  ;;  %v1571_v32 = vsub.f32 %v29349_v60, %v1551_v11 }
 0x2e9   :  { %v1533_v45 = vpop.xlane.xlu0 %1532  ;;  %v1615_v50 = vsel %vm264_vm2, %v29416_v14, 0.0 }
 0x2ea   :  { %28231 = vpow2.f32 %v1596_v44  ;;  %v1600_v52 = vmul.f32 1.442695, %v1571_v32  ;;  %v1565_v39 = vsub.f32 %v29353_v0, %v1533_v45  ;;  %1616 = vadd.xlane.f32.xlu0 %v1615_v50  ;;  %v29452_v44 = vmul.f32 0.35355338, %v29321_v13 }
 0x2eb   :  { %v29459_v50 = vmul.f32 0.35355338, %v29333_v25 }
 0x2ec   :  { %28233 = vpow2.f32 %v1600_v52  ;;  %v1588_v54 = vmul.f32 1.442695, %v1565_v39  ;;  %v1510_v45 = vsel %vm264_vm2, %v29452_v44, -inf  ;;  %v29466_v39 = vmul.f32 0.35355338, %v29345_v48 }
 0x2ed   :  { %v29448_v7 = vpop.permute.xlu0 %3606  ;;  %v29481_v48 = vmul.f32 0.35355338, %v29363_v10 }
 0x2ee   :  { %v29422_v61 = vpop.eup %28227  ;;  %28235 = vpow2.f32 %v1588_v54  ;;  %v1528_v13 = vsel %vm264_vm2, %v29466_v39, -inf  ;;  %v29471_v54 = vmul.f32 0.35355338, %v29357_v4 }
 0x2ef   :  { %v1633_v46 = vsel %vm264_vm2, %v29422_v61, 0.0  ;;  %v1552_v4 = vsel %vm264_vm2, %v29481_v48, -inf }
 0x2f0   :  { %v29426_v62 = vpop.eup %28229  ;;  %1634 = vadd.xlane.f32.xlu1 %v1633_v46  ;;  %v1534_v25 = vsel %vm264_vm2, %v29471_v54, -inf  ;;  %v29476_v46 = vmul.f32 0.35355338, %v29359_v6  ;;  %v29490_v6 = vpop.permute.xlu1 %3604 }
 0x2f1   :  { %v1621_v60 = vsel %vm264_vm2, %v29426_v62, 0.0 }
 0x2f4   :  { %v29430_v1 = vpop.eup %28231  ;;  %1622 = vadd.xlane.f32.xlu1 %v1621_v60  ;;  %v1540_v60 = vsel %vm264_vm2, %v29476_v46, -inf }
 0x2f5   :  { %v1639_v0 = vsel %vm264_vm2, %v29430_v1, 0.0 }
 0x2f6   :  { %v29434_v2 = vpop.eup %28233  ;;  %1640 = vadd.xlane.f32.xlu0 %v1639_v0  ;;  %v29488_v0 = vmul.f32 0.35355338, %v29327_v19 }
 0x2f7   :  { %v1645_v3 = vsel %vm264_vm2, %v29434_v2, 0.0 }
 0x2f8   :  { %v29438_v5 = vpop.eup %28235  ;;  %1646 = vadd.xlane.f32.xlu1 %v1645_v3  ;;  %v1516_v3 = vsel %vm264_vm2, %v29488_v0, -inf }
 0x2f9   :  { %v1627_v17 = vsel %vm264_vm2, %v29438_v5, 0.0 }
 0x2fa   :  { %1628 = vadd.xlane.f32.xlu0 %v1627_v17  ;;  %v29495_v17 = vmul.f32 0.35355338, %v29361_v8 }
 0x2fc   :  { %v1546_v10 = vsel %vm264_vm2, %v29495_v17, -inf }
 0x309   :  { %3916 = vrot.lane.b32.xlu1 %v29170_v55, %s28908_s4 }
 0x30d   :  { %4074 = vrot.lane.b32.xlu1 %v29168_v53, %s28907_s7 }
 0x310   :  { %3918 = vrot.lane.b32.xlu0 %v29170_v55, %s28907_s7 }
 0x31e   :  { %v1557_v9 = vpop.xlane.xlu0 %1556 }
 0x31f   :  { %v1573_v23 = vsub.f32 %v29371_v12, %v1557_v9  ;;  %v1522_v12 = vsel %vm264_vm2, %v29459_v50, -inf  ;;  %v29499_v9 = vpop.permute.xlu1 %3760 }
 0x321   :  { %v1604_v11 = vmul.f32 1.442695, %v1573_v23 }
 0x323   :  { %28237 = vpow2.f32 %v1604_v11  ;;  %v29501_v11 = vpop.permute.xlu0 %3762 }
 0x32d   :  { %v29454_v32 = vpop.eup %28237 }
 0x32e   :  { %v1651_v52 = vsel %vm264_vm2, %v29454_v32, 0.0 }
 0x32f   :  { %1511 = vmax.xlane.f32.xlu0 %v1510_v45 }
 0x331   :  { %1652 = vadd.xlane.f32.xlu1 %v1651_v52 }
 0x333   :  { %1523 = vmax.xlane.f32.xlu0 %v1522_v12 }
 0x337   :  { %1529 = vmax.xlane.f32.xlu0 %v1528_v13 }
 0x33b   :  { %1535 = vmax.xlane.f32.xlu0 %v1534_v25 }
 0x33f   :  { %1541 = vmax.xlane.f32.xlu0 %v1540_v60 }
 0x342   :  { %4072 = vrot.lane.b32.xlu1 %v29168_v53, %s28908_s4 }
 0x343   :  { %1553 = vmax.xlane.f32.xlu0 %v1552_v4 }
 0x366   :  { %1517 = vmax.xlane.f32.xlu1 %v1516_v3 }
 0x36a   :  { %1547 = vmax.xlane.f32.xlu1 %v1546_v10 }
 0x36f   :  { %v1611_v23 = vpop.xlane.xlu1 %1610 }
 0x370   :  { %28239 = vrcp.f32 %v1611_v23 }
 0x377   :  { %v1617_v19 = vpop.xlane.xlu0 %1616 }
 0x378   :  { %28241 = vrcp.f32 %v1617_v19 }
 0x37a   :  { %v28240_v45 = vpop.eup %28239 }
 0x37b   :  { %v1671_v52 = vmul.f32 %v28240_v45, %v29409_v63 }
 0x37d   :  { %26577 = vmatmul.mubr.msk.f32.vlgmr.msra.gmra.mrb[24].mxu0 %vm264_vm2, %v1671_v52  ;;  %v1635_v8 = vpop.xlane.xlu1 %1634 }
 0x37e   :  { %26585 = vmatpush3.msra.mxu0 %v29379_v16  ;;  %26586 = vmatprep.mubr.msk.f32.mxu0 %vm28904_vm1, %v34547_v26 }
 0x37f   :  { %26594 = vmatprep.subr.mxu0 %v34547_v26 }
 0x381   :  { %v1623_v12 = vpop.xlane.xlu1 %1622 }
 0x382   :  { %v28242_v13 = vpop.eup %28241  ;;  %28243 = vrcp.f32 %v1623_v12 }
 0x383   :  { %v1641_v25 = vpop.xlane.xlu0 %1640  ;;  %v1673_v60 = vmul.f32 %v28242_v13, %v29416_v14 }
 0x385   :  { %26587 = vmatmul.mubr.msk.f32.vlgmr.msra.gmra.mrb[26].mxu0 %vm264_vm2, %v1673_v60  ;;  %v1647_v3 = vpop.xlane.xlu1 %1646 }
 0x386   :  { %26595 = vmatpush3.msra.mxu0 %v29377_v15  ;;  %26596 = vmatprep.mubr.msk.f32.mxu0 %vm28904_vm1, %v34547_v26 }
 0x387   :  { %v1629_v63 = vpop.xlane.xlu0 %1628  ;;  %26604 = vmatprep.subr.mxu0 %v34547_v26 }
 0x388   :  { %28245 = vrcp.f32 %v1629_v63 }
 0x389   :  { %28247 = vrcp.f32 %v1635_v8 }
 0x38a   :  { %28249 = vrcp.f32 %v1641_v25 }
 0x38b   :  { %28251 = vrcp.f32 %v1647_v3 }
 0x38c   :  { %v28244_v16 = vpop.eup %28243 }
 0x38d   :  { %v1675_v4 = vmul.f32 %v28244_v16, %v29426_v62 }
 0x38f   :  { %26597 = vmatmul.mubr.msk.f32.vlgmr.msra.gmra.mrb[28].mxu0 %vm264_vm2, %v1675_v4 }
 0x390   :  { %26605 = vmatpush3.msra.mxu0 %v29383_v20  ;;  %26606 = vmatprep.mubr.msk.f32.mxu0 %vm28904_vm1, %v34547_v26 }
 0x391   :  { %26614 = vmatprep.subr.mxu0 %v34547_v26 }
 0x392   :  { %v28246_v15 = vpop.eup %28245 }
 0x393   :  { %v1677_v14 = vmul.f32 %v28246_v15, %v29438_v5  ;;  %v28248_v10 = vpop.eup %28247 }
 0x394   :  { %v1679_v20 = vmul.f32 %v28248_v10, %v29422_v61  ;;  %v28250_v62 = vpop.eup %28249 }
 0x395   :  { %26607 = vmatmul.mubr.msk.f32.vlgmr.msra.gmra.mrb[30].mxu0 %vm264_vm2, %v1677_v14  ;;  %v1681_v5 = vmul.f32 %v28250_v62, %v29430_v1  ;;  %v3919_v1 = vpop.permute.xlu0 %3918 }
 0x396   :  { %26615 = vmatpush3.msra.mxu0 %v29381_v18  ;;  %26616 = vmatprep.mubr.msk.f32.mxu0 %vm28904_vm1, %v34547_v26  ;;  %v28252_v18 = vpop.eup %28251 }
 0x397   :  { %26624 = vmatprep.subr.mxu0 %v34547_v26  ;;  %v1683_v61 = vmul.f32 %v28252_v18, %v29434_v2 }
 0x399   :  { %26617 = vmatmul.mubr.msk.f32.vlgmr.msra.gmra.mrb[32].mxu0 %vm264_vm2, %v1679_v20 }
 0x39a   :  { %26625 = vmatpush3.msra.mxu0 %v29387_v22  ;;  %26626 = vmatprep.mubr.msk.f32.mxu0 %vm28904_vm1, %v34547_v26  ;;  %v3917_v22 = vpop.permute.xlu1 %3916 }
 0x39b   :  { %26634 = vmatprep.subr.mxu0 %v34547_v26 }
 0x39d   :  { %26627 = vmatmul.mubr.msk.f32.vlgmr.msra.gmra.mrb[34].mxu0 %vm264_vm2, %v1681_v5 }
 0x39e   :  { %26635 = vmatpush3.msra.mxu0 %v29401_v37  ;;  %26636 = vmatprep.mubr.msk.f32.mxu0 %vm28904_vm1, %v34547_v26  ;;  %v4075_v23 = vpop.permute.xlu1 %4074 }
 0x39f   :  { %26644 = vmatprep.subr.mxu0 %v34547_v26 }
 0x3a1   :  { %26637 = vmatmul.mubr.msk.f32.vlgmr.msra.gmra.mrb[36].mxu0 %vm264_vm2, %v1683_v61 }
 0x3a2   :  { %26645 = vmatpush3.msra.mxu0 %v29391_v27  ;;  %26646 = vmatprep.mubr.msk.f32.mxu0 %vm28904_vm1, %v34547_v26 }
 0x3a3   :  { %26654 = vmatprep.subr.mxu0 %v34547_v26 }
 0x3bc   :  { %v1512_v37 = vpop.xlane.xlu0 %1511 }
 0x3bd   :  { %v1558_v19 = vsub.f32 %v29452_v44, %v1512_v37 }
 0x3be   :  { %v1653_v45 = vpop.xlane.xlu1 %1652 }
 0x3bf   :  { %v1574_v52 = vmul.f32 1.442695, %v1558_v19  ;;  %28253 = vrcp.f32 %v1653_v45 }
 0x3c0   :  { %v1524_v8 = vpop.xlane.xlu0 %1523 }
 0x3c1   :  { %28255 = vpow2.f32 %v1574_v52  ;;  %v1562_v2 = vsub.f32 %v29459_v50, %v1524_v8 }
 0x3c3   :  { %v1582_v12 = vmul.f32 1.442695, %v1562_v2 }
 0x3c5   :  { %28257 = vpow2.f32 %v1582_v12 }
 0x3c9   :  { %v28254_v27 = vpop.eup %28253 }
 0x3ca   :  { %v1685_v13 = vmul.f32 %v28254_v27, %v29454_v32 }
 0x3cb   :  { %v29548_v25 = vpop.eup %28255 }
 0x3cc   :  { %26647 = vmatmul.mubr.msk.f32.vlgmr.msra.gmra.mrb[38].mxu0 %vm264_vm2, %v1685_v13  ;;  %v1606_v60 = vsel %vm264_vm2, %v29548_v25, 0.0 }
 0x3cd   :  { %26655 = vmatpush3.xpose.msk.msra.mxu0 %vm264_vm2, %v29385_v21  ;;  %1607 = vadd.xlane.f32.xlu1 %v1606_v60  ;;  %v4073_v21 = vpop.permute.xlu1 %4072 }
 0x3ce   :  { %26656 = vmatprep.mubr.msk.f32.mxu0 %vm28904_vm1, %v34547_v26  ;;  %26664 = vmatprep.subr.mxu0 %v34547_v26 }
 0x3cf   :  { %v29558_v44 = vpop.eup %28257 }
 0x3d0   :  { %26657 = vmatmul.mubr.msk.f32.vlgmr.msra.gmra.mrb[40].mxu0 %vm264_vm2, %v29395_v30  ;;  %v1618_v32 = vsel %vm264_vm2, %v29558_v44, 0.0 }
 0x3d1   :  { %26665 = vmatpush3.xpose.msk.msra.mxu0 %vm264_vm2, %v29389_v24  ;;  %1619 = vadd.xlane.f32.xlu1 %v1618_v32  ;;  %v1530_v24 = vpop.xlane.xlu0 %1529 }
 0x3d2   :  { %26666 = vmatprep.mubr.msk.f32.mxu0 %vm28904_vm1, %v34547_v26  ;;  %26674 = vmatprep.subr.mxu0 %v34547_v26 }
 0x3d4   :  { %26667 = vmatmul.mubr.msk.f32.vlgmr.msra.gmra.mrb[42].mxu0 %vm264_vm2, %v29399_v36 }
 0x3d5   :  { %26675 = vmatpush3.xpose.msk.msra.mxu0 %vm264_vm2, %v29393_v28  ;;  %26676 = vmatprep.mubr.msk.f32.mxu0 %vm28904_vm1, %v34547_v26  ;;  %v1564_v28 = vsub.f32 %v29466_v39, %v1530_v24 }
 0x3d6   :  { %26684 = vmatprep.subr.mxu0 %v34547_v26 }
 0x3d7   :  { %v1586_v36 = vmul.f32 1.442695, %v1564_v28 }
 0x3d8   :  { %26677 = vmatmul.mubr.msk.f32.vlgmr.msra.gmra.mrb[44].mxu0 %vm264_vm2, %v29403_v40 }
 0x3d9   :  { %26685 = vmatpush3.xpose.msk.msra.mxu0 %vm264_vm2, %v29397_v33  ;;  %26686 = vmatprep.mubr.msk.f32.mxu0 %vm28904_vm1, %v34547_v26 }
 0x3da   :  { %26694 = vmatprep.subr.mxu0 %v34547_v26 }
 0x3dc   :  { %26687 = vmatmul.mubr.msk.f32.vlgmr.msra.gmra.mrb[46].mxu0 %vm264_vm2, %v29406_v51 }
 0x3dd   :  { %26695 = vmatpush3.xpose.msk.msra.mxu0 %vm264_vm2, %v29448_v7  ;;  %26696 = vmatprep.mubr.msk.f32.mxu0 %vm28904_vm1, %v34547_v26 }
 0x3de   :  { %26704 = vmatprep.subr.mxu0 %v34547_v26 }
 0x3e0   :  { %26697 = vmatmul.mubr.msk.f32.vlgmr.msra.gmra.mrb[48].mxu0 %vm264_vm2, %v29490_v6 }
 0x3e1   :  { %26705 = vmatpush3.xpose.msk.msra.mxu0 %vm264_vm2, %v29501_v11  ;;  %26706 = vmatprep.mubr.msk.f32.mxu0 %vm28904_vm1, %v34547_v26 }
 0x3e2   :  { %1838 = vrot.lane.b32.xlu1 %v29128_v29, %s28906_s3  ;;  %26714 = vmatprep.subr.mxu0 %v34547_v26 }
 0x3e4   :  { %26707 = vmatmul.mubr.msk.f32.vlgmr.msra.gmra.mrb[50].mxu0 %vm264_vm2, %v29499_v9 }
 0x3e5   :  { %26715 = vmatpush3.xpose.msk.msra.mxu0 %vm264_vm2, %v3919_v1  ;;  %26716 = vmatprep.mubr.msk.f32.mxu0 %vm28904_vm1, %v34547_v26 }
 0x3e6   :  { %2142 = vrot.lane.b32.xlu1 %v29150_v42, %s28906_s3  ;;  %26724 = vmatprep.subr.mxu0 %v34547_v26 }
 0x3e8   :  { %26717 = vmatmul.mubr.msk.f32.vlgmr.msra.gmra.mrb[52].mxu0 %vm264_vm2, %v3917_v22 }
 0x3e9   :  { %26725 = vmatpush3.xpose.msk.msra.mxu0 %vm264_vm2, %v4075_v23  ;;  %26726 = vmatprep.mubr.msk.f32.mxu0 %vm28904_vm1, %v34547_v26 }
 0x3ea   :  { %2446 = vrot.lane.b32.xlu1 %v29176_v56, %s28906_s3  ;;  %26734 = vmatprep.subr.mxu0 %v34547_v26 }
 0x3ec   :  { %26727 = vmatmul.mubr.msk.f32.vlgmr.msra.gmra.mrb[54].mxu0 %vm264_vm2, %v4073_v21 }
 0x3ed   :  { %26736 = vmatprep.mubr.msk.f32.mxu0 %vm28904_vm1, %v34547_v26 }
 0x3ee   :  { %2750 = vrot.lane.b32.xlu1 %v29184_v58, %s28906_s3 }
 0x3f2   :  { %2902 = vrot.lane.b32.xlu1 %v29130_v31, %s28908_s4 }
 0x3f3   :  { %v1518_v30 = vpop.xlane.xlu1 %1517 }
 0x3f4   :  { %v1560_v33 = vsub.f32 %v29488_v0, %v1518_v30  ;;  %v1536_v0 = vpop.xlane.xlu0 %1535 }
 0x3f5   :  { %v1566_v6 = vsub.f32 %v29471_v54, %v1536_v0 }
 0x3f6   :  { %v1578_v40 = vmul.f32 1.442695, %v1560_v33  ;;  %3058 = vrot.lane.b32.xlu1 %v29128_v29, %s28908_s4 }
 0x3f7   :  { %v1548_v9 = vpop.xlane.xlu1 %1547  ;;  %v1590_v11 = vmul.f32 1.442695, %v1566_v6 }
 0x3f8   :  { %28259 = vpow2.f32 %v1578_v40  ;;  %v1570_v63 = vsub.f32 %v29495_v17, %v1548_v9  ;;  %v1542_v15 = vpop.xlane.xlu0 %1541 }
 0x3f9   :  { %28261 = vpow2.f32 %v1586_v36  ;;  %v1568_v20 = vsub.f32 %v29476_v46, %v1542_v15 }
 0x3fa   :  { %3214 = vrot.lane.b32.xlu1 %v29144_v38, %s28908_s4  ;;  %28263 = vpow2.f32 %v1590_v11  ;;  %v1598_v16 = vmul.f32 1.442695, %v1570_v63 }
 0x3fb   :  { %v1594_v61 = vmul.f32 1.442695, %v1568_v20 }
 0x3fc   :  { %28265 = vpow2.f32 %v1598_v16  ;;  %v1554_v14 = vpop.xlane.xlu0 %1553 }
 0x3fd   :  { %v1572_v10 = vsub.f32 %v29481_v48, %v1554_v14 }
 0x3fe   :  { %3370 = vrot.lane.b32.xlu1 %v29150_v42, %s28908_s4 }
 0x3ff   :  { %v1602_v5 = vmul.f32 1.442695, %v1572_v10 }
 0x401   :  { %28267 = vpow2.f32 %v1602_v5 }
 0x402   :  { %v29629_v51 = vpop.eup %28259  ;;  %3526 = vrot.lane.b32.xlu1 %v29178_v57, %s28908_s4  ;;  %28269 = vpow2.f32 %v1594_v61 }
 0x403   :  { %v1612_v7 = vsel %vm264_vm2, %v29629_v51, 0.0  ;;  %v29635_v50 = vpop.eup %28261 }
 0x404   :  { %1613 = vadd.xlane.f32.xlu0 %v1612_v7  ;;  %v1624_v39 = vsel %vm264_vm2, %v29635_v50, 0.0  ;;  %v29647_v4 = vpop.eup %28263 }
 0x405   :  { %v1630_v54 = vsel %vm264_vm2, %v29647_v4, 0.0 }
 0x406   :  { %3682 = vrot.lane.b32.xlu1 %v29176_v56, %s28908_s4  ;;  %v29653_v3 = vpop.eup %28265 }
 0x407   :  { %v1642_v17 = vsel %vm264_vm2, %v29653_v3, 0.0 }
 0x408   :  { %1625 = vadd.xlane.f32.xlu0 %v1624_v39 }
 0x40b   :  { %v29681_v23 = vpop.eup %28267 }
 0x40c   :  { %v29683_v37 = vpop.eup %28269  ;;  %v1648_v48 = vsel %vm264_vm2, %v29681_v23, 0.0 }
 0x40d   :  { %v1636_v45 = vsel %vm264_vm2, %v29683_v37, 0.0 }
 0x41e   :  { %1686 = vrot.lane.b32.xlu0 %v29130_v31, %s28906_s3 }
 0x422   :  { %1990 = vrot.lane.b32.xlu0 %v29144_v38, %s28906_s3 }
 0x426   :  { %2294 = vrot.lane.b32.xlu0 %v29178_v57, %s28906_s3 }
 0x42a   :  { %2598 = vrot.lane.b32.xlu0 %v29186_v59, %s28906_s3  ;;  %1631 = vadd.xlane.f32.xlu1 %v1630_v54 }
 0x42e   :  { %2904 = vrot.lane.b32.xlu0 %v29130_v31, %s28907_s7  ;;  %1643 = vadd.xlane.f32.xlu1 %v1642_v17 }
 0x432   :  { %3060 = vrot.lane.b32.xlu0 %v29128_v29, %s28907_s7 }
 0x436   :  { %3216 = vrot.lane.b32.xlu0 %v29144_v38, %s28907_s7 }
 0x43a   :  { %3372 = vrot.lane.b32.xlu0 %v29150_v42, %s28907_s7 }
 0x43e   :  { %3528 = vrot.lane.b32.xlu0 %v29178_v57, %s28907_s7 }
 0x43f   :  { %3838 = vrot.lane.b32.xlu1 %v29186_v59, %s28908_s4 }
 0x442   :  { %3684 = vrot.lane.b32.xlu0 %v29176_v56, %s28907_s7 }
 0x446   :  { %3840 = vrot.lane.b32.xlu0 %v29186_v59, %s28907_s7 }
 0x450   :  { %v29677_v62 = vpop.f32.mrb[24].mxu0 }
 0x451   :  { %34639 = vst [vmem:[#allocation16_spill] sm:$0xff] %v29677_v62  ;;  %v26578_v18 = vpop.f32.mrb[25].mxu0 }
 0x458   :  { %v29679_v22 = vpop.f32.mrb[26].mxu0 }
 0x459   :  { %34640 = vst [vmem:[#allocation17_spill] sm:$0xff] %v29679_v22  ;;  %v26588_v1 = vpop.f32.mrb[27].mxu0 }
 0x45a   :  { %v1608_v27 = vpop.xlane.xlu1 %1607 }
 0x45b   :  { %28271 = vrcp.f32 %v1608_v27 }
 0x45e   :  { %v1620_v24 = vpop.xlane.xlu1 %1619 }
 0x462   :  { %v29685_v19 = vpop.f32.mrb[28].mxu0  ;;  %v1839_v28 = vpop.permute.xlu1 %1838 }
 0x463   :  { %34641 = vst [vmem:[#allocation18_spill] sm:$0xff] %v29685_v19  ;;  %v26598_v46 = vpop.f32.mrb[29].mxu0  ;;  %1649 = vadd.xlane.f32.xlu1 %v1648_v48 }
 0x465   :  { %1637 = vadd.xlane.f32.xlu0 %v1636_v45  ;;  %v28272_v0 = vpop.eup %28271 }
 0x466   :  { %v2143_v30 = vpop.permute.xlu1 %2142  ;;  %v1670_v9 = vmul.f32 %v28272_v0, %v29548_v25 }
 0x468   :  { %v29691_v52 = vpop.f32.mrb[30].mxu0 }
 0x469   :  { %34642 = vst [vmem:[#allocation19_spill] sm:$0xff] %v29691_v52  ;;  %v26608_v8 = vpop.f32.mrb[31].mxu0 }
 0x46a   :  { %v29717_v33 = vpop.permute.xlu1 %2446 }
 0x46c   :  { %v29693_v2 = vpop.f32.mrb[32].mxu0 }
 0x46d   :  { %34643 = vst [vmem:[#allocation20_spill] sm:$0xff] %v29693_v2  ;;  %v26618_v12 = vpop.f32.mrb[33].mxu0 }
 0x46e   :  { %v29725_v36 = vpop.permute.xlu1 %2750 }
 0x470   :  { %v29695_v13 = vpop.f32.mrb[34].mxu0 }
 0x471   :  { %34644 = vst [vmem:[#allocation21_spill] sm:$0xff] %v29695_v13  ;;  %v26628_v60 = vpop.f32.mrb[35].mxu0 }
 0x472   :  { %v29733_v7 = vpop.permute.xlu1 %2902 }
 0x474   :  { %v29697_v32 = vpop.f32.mrb[36].mxu0  ;;  %3994 = vrot.lane.b32.xlu1 %v29184_v58, %s28908_s4 }
 0x475   :  { %34645 = vst [vmem:[#allocation22_spill] sm:$0xff] %v29697_v32  ;;  %v26638_v21 = vpop.f32.mrb[37].mxu0 }
 0x476   :  { %v29742_v11 = vpop.permute.xlu1 %3058 }
 0x478   :  { %4570 = vrot.lane.b32.xlu1 %v29136_v34, %s28909_s8 }
 0x47a   :  { %v29759_v15 = vpop.permute.xlu1 %3214 }
 0x47b   :  { %3996 = vrot.lane.b32.xlu0 %v29184_v58, %s28907_s7 }
 0x47c   :  { %4874 = vrot.lane.b32.xlu1 %v29154_v43, %s28909_s8 }
 0x47f   :  { %4418 = vrot.lane.b32.xlu0 %v29138_v35, %s28909_s8 }
 0x480   :  { %5178 = vrot.lane.b32.xlu1 %v29160_v47, %s28909_s8 }
 0x483   :  { %4722 = vrot.lane.b32.xlu0 %v29146_v41, %s28909_s8 }
 0x484   :  { %5482 = vrot.lane.b32.xlu1 %v29168_v53, %s28909_s8 }
 0x487   :  { %5026 = vrot.lane.b32.xlu0 %v29162_v49, %s28909_s8 }
 0x488   :  { %5944 = vrot.lane.b32.xlu1 %v29130_v31, %s28910_s30 }
 0x48b   :  { %5330 = vrot.lane.b32.xlu0 %v29170_v55, %s28909_s8 }
 0x48c   :  { %6022 = vrot.lane.b32.xlu1 %v29138_v35, %s28910_s30 }
 0x48f   :  { %5946 = vrot.lane.b32.xlu0 %v29130_v31, %s28911_s9 }
 0x490   :  { %6100 = vrot.lane.b32.xlu1 %v29128_v29, %s28910_s30 }
 0x491   :  { %v1614_v40 = vpop.xlane.xlu0 %1613 }
 0x492   :  { %28273 = vrcp.f32 %v1614_v40 }
 0x493   :  { %6024 = vrot.lane.b32.xlu0 %v29138_v35, %s28911_s9  ;;  %28275 = vrcp.f32 %v1620_v24 }
 0x494   :  { %6178 = vrot.lane.b32.xlu1 %v29136_v34, %s28910_s30 }
 0x495   :  { %v1626_v39 = vpop.xlane.xlu0 %1625 }
 0x496   :  { %28277 = vrcp.f32 %v1626_v39 }
 0x497   :  { %6102 = vrot.lane.b32.xlu0 %v29128_v29, %s28911_s9 }
 0x498   :  { %6256 = vrot.lane.b32.xlu1 %v29144_v38, %s28910_s30 }
 0x499   :  { %v1687_v6 = vpop.permute.xlu0 %1686 }
 0x49a   :  { %26570 = vmatpush3.msra.mxu1 %v1687_v6 }
 0x49b   :  { %6180 = vrot.lane.b32.xlu0 %v29136_v34, %s28911_s9  ;;  %26572 = vmatmul.mubr.msk.f32.vlgmr.msra.gmra.mrb[24].mxu1 %vm264_vm2, %v1670_v9 }
 0x49c   :  { %v28274_v63 = vpop.eup %28273  ;;  %26579 = vmatprep.subr.mxu1 %v34547_v26  ;;  %6334 = vrot.lane.b32.xlu1 %v29146_v41, %s28910_s30 }
 0x49d   :  { %26580 = vmatpush3.msra.mxu1 %v1839_v28  ;;  %v1991_v16 = vpop.permute.xlu0 %1990  ;;  %26581 = vmatprep.mubr.msk.f32.mxu1 %vm28904_vm1, %v34547_v26  ;;  %v1672_v25 = vmul.f32 %v28274_v63, %v29629_v51  ;;  %v28276_v54 = vpop.eup %28275 }
 0x49e   :  { %26589 = vmatprep.subr.mxu1 %v34547_v26  ;;  %v1674_v51 = vmul.f32 %v28276_v54, %v29558_v44  ;;  %v29776_v44 = vpop.permute.xlu1 %3370 }
 0x49f   :  { %v29754_v17 = vpop.f32.mrb[38].mxu0  ;;  %6258 = vrot.lane.b32.xlu0 %v29144_v38, %s28911_s9  ;;  %26582 = vmatmul.mubr.msk.f32.vlgmr.msra.gmra.mrb[26].mxu1 %vm264_vm2, %v1672_v25 }
 0x4a0   :  { %34646 = vst [vmem:[#allocation23_spill] sm:$0xff] %v29754_v17  ;;  %26590 = vmatpush3.msra.mxu1 %v1991_v16  ;;  %v26648_v14 = vpop.f32.mrb[39].mxu0  ;;  %6412 = vrot.lane.b32.xlu1 %v29150_v42, %s28910_s30  ;;  %v28278_v10 = vpop.eup %28277 }
 0x4a1   :  { %26591 = vmatprep.mubr.msk.f32.mxu1 %vm28904_vm1, %v34547_v26  ;;  %26599 = vmatprep.subr.mxu1 %v34547_v26  ;;  %v1676_v18 = vmul.f32 %v28278_v10, %v29635_v50  ;;  %v2295_v61 = vpop.permute.xlu0 %2294 }
 0x4a2   :  { %v29790_v45 = vpop.permute.xlu1 %3526 }
 0x4a3   :  { %v3054_v20 = vpop.f32.mrb[40].mxu0  ;;  %6336 = vrot.lane.b32.xlu0 %v29146_v41, %s28911_s9  ;;  %26592 = vmatmul.mubr.msk.f32.vlgmr.msra.gmra.mrb[28].mxu1 %vm264_vm2, %v1674_v51 }
 0x4a4   :  { %26600 = vmatpush3.msra.mxu1 %v2143_v30  ;;  %v26658_v5 = vpop.f32.mrb[41].mxu0  ;;  %6568 = vrot.lane.b32.xlu1 %v29178_v57, %s28910_s30  ;;  %v29818_v14 = vmul.f32 0.35355338, %v3054_v20 }
 0x4a5   :  { %26601 = vmatprep.mubr.msk.f32.mxu1 %vm28904_vm1, %v34547_v26  ;;  %26609 = vmatprep.subr.mxu1 %v34547_v26  ;;  %v2599_v16 = vpop.permute.xlu0 %2598 }
 0x4a6   :  { %v29796_v27 = vpop.permute.xlu1 %3682  ;;  %v4169_v10 = vsel %vm264_vm2, %v29818_v14, -inf }
 0x4a7   :  { %v29778_v1 = vpop.f32.mrb[42].mxu0  ;;  %6414 = vrot.lane.b32.xlu0 %v29150_v42, %s28911_s9  ;;  %26602 = vmatmul.mubr.msk.f32.vlgmr.msra.gmra.mrb[30].mxu1 %vm264_vm2, %v1676_v18 }
 0x4a8   :  { %26610 = vmatpush3.msra.mxu1 %v2295_v61  ;;  %v26668_v48 = vpop.f32.mrb[43].mxu0  ;;  %26611 = vmatprep.mubr.msk.f32.mxu1 %vm28904_vm1, %v34547_v26 }
 0x4a9   :  { %26619 = vmatprep.subr.mxu1 %v34547_v26  ;;  %v2905_v25 = vpop.permute.xlu0 %2904 }
 0x4ab   :  { %v29786_v46 = vpop.f32.mrb[44].mxu0  ;;  %6492 = vrot.lane.b32.xlu0 %v29154_v43, %s28911_s9 }
 0x4ac   :  { %v26678_v50 = vpop.f32.mrb[45].mxu0 }
 0x4ad   :  { %v3061_v54 = vpop.permute.xlu0 %3060 }
 0x4af   :  { %v29792_v8 = vpop.f32.mrb[46].mxu0  ;;  %6490 = vrot.lane.b32.xlu0 %v29154_v43, %s28910_s30 }
 0x4b0   :  { %v26688_v12 = vpop.f32.mrb[47].mxu0 }
 0x4b1   :  { %v3217_v51 = vpop.permute.xlu0 %3216 }
 0x4b3   :  { %v29798_v60 = vpop.f32.mrb[48].mxu0  ;;  %6570 = vrot.lane.b32.xlu0 %v29178_v57, %s28911_s9 }
 0x4b4   :  { %v26698_v21 = vpop.f32.mrb[49].mxu0 }
 0x4b7   :  { %v29802_v24 = vpop.f32.mrb[50].mxu0  ;;  %v1632_v28 = vpop.xlane.xlu1 %1631  ;;  %6648 = vrot.lane.b32.xlu0 %v29162_v49, %s28911_s9 }
 0x4b8   :  { %28279 = vrcp.f32 %v1632_v28  ;;  %v26708_v30 = vpop.f32.mrb[51].mxu0 }
 0x4bb   :  { %v29806_v40 = vpop.f32.mrb[52].mxu0  ;;  %6646 = vrot.lane.b32.xlu0 %v29162_v49, %s28910_s30  ;;  %v1644_v61 = vpop.xlane.xlu1 %1643 }
 0x4bc   :  { %v26718_v39 = vpop.f32.mrb[53].mxu0 }
 0x4bf   :  { %v29810_v0 = vpop.f32.mrb[54].mxu0 }
 0x4c0   :  { %v26728_v6 = vpop.f32.mrb[55].mxu0  ;;  %v29988_v13 = vmul.f32 0.35355338, %v29810_v0 }
 0x4c2   :  { %v28280_v9 = vpop.eup %28279 }
 0x4c3   :  { %v1678_v63 = vmul.f32 %v28280_v9, %v29647_v4  ;;  %v3373_v4 = vpop.permute.xlu0 %3372 }
 0x4c5   :  { %26612 = vmatmul.mubr.msk.f32.vlgmr.msra.gmra.mrb[32].mxu1 %vm264_vm2, %v1678_v63 }
 0x4c6   :  { %26620 = vmatpush3.msra.mxu1 %v29717_v33  ;;  %26621 = vmatprep.mubr.msk.f32.mxu1 %vm28904_vm1, %v34547_v26  ;;  %v3839_v33 = vpop.permute.xlu1 %3838 }
 0x4c7   :  { %26629 = vmatprep.subr.mxu1 %v34547_v26  ;;  %v3529_v5 = vpop.permute.xlu0 %3528 }
 0x4cb   :  { %v3685_v18 = vpop.permute.xlu0 %3684 }
 0x4cf   :  { %v3841_v48 = vpop.permute.xlu0 %3840 }
 0x4da   :  { %4170 = vmax.xlane.f32.xlu0 %v4169_v10 }
 0x4f0   :  { %v1650_v12 = vpop.xlane.xlu1 %1649 }
 0x4f2   :  { %v1638_v50 = vpop.xlane.xlu0 %1637 }
 0x4f3   :  { %28281 = vrcp.f32 %v1638_v50 }
 0x4f4   :  { %28283 = vrcp.f32 %v1644_v61 }
 0x4f5   :  { %28285 = vrcp.f32 %v1650_v12 }
 0x4f6   :  { %v3997_v21 = vpop.permute.xlu0 %3996 }
 0x4fa   :  { %v4419_v28 = vpop.permute.xlu0 %4418 }
 0x4fb   :  { %26735 = vmatpush3.msra.mxu0 %v4419_v28 }
 0x4fc   :  { %26744 = vmatprep.subr.mxu0 %v34547_v26 }
 0x4fd   :  { %v28282_v20 = vpop.eup %28281 }
 0x4fe   :  { %v1680_v30 = vmul.f32 %v28282_v20, %v29683_v37  ;;  %v28284_v39 = vpop.eup %28283 }
 0x4ff   :  { %v1682_v6 = vmul.f32 %v28284_v39, %v29653_v3  ;;  %v28286_v9 = vpop.eup %28285  ;;  %v3995_v3 = vpop.permute.xlu1 %3994  ;;  %v29917_v39 = vmul.f32 0.35355338, %v29778_v1 }
 0x500   :  { %26622 = vmatmul.mubr.msk.f32.vlgmr.msra.gmra.mrb[34].mxu1 %vm264_vm2, %v1680_v30  ;;  %v1684_v37 = vmul.f32 %v28286_v9, %v29681_v23 }
 0x501   :  { %26630 = vmatpush3.msra.mxu1 %v2599_v16  ;;  %26631 = vmatprep.mubr.msk.f32.mxu1 %vm28904_vm1, %v34547_v26 }
 0x502   :  { %26639 = vmatprep.subr.mxu1 %v34547_v26 }
 0x504   :  { %26632 = vmatmul.mubr.msk.f32.vlgmr.msra.gmra.mrb[36].mxu1 %vm264_vm2, %v1682_v6 }
 0x505   :  { %26640 = vmatpush3.msra.mxu1 %v29725_v36  ;;  %26641 = vmatprep.mubr.msk.f32.mxu1 %vm28904_vm1, %v34547_v26 }
 0x506   :  { %26649 = vmatprep.subr.mxu1 %v34547_v26 }
 0x508   :  { %26642 = vmatmul.mubr.msk.f32.vlgmr.msra.gmra.mrb[38].mxu1 %vm264_vm2, %v1684_v37 }
 0x509   :  { %26651 = vmatprep.mubr.msk.f32.mxu1 %vm28904_vm1, %v34547_v26 }
 0x50c   :  { %26650 = vmatpush3.xpose.msk.msra.mxu1 %vm264_vm2, %v2905_v25  ;;  %v29894_v25 = vpop.permute.xlu0 %4722 }
 0x50d   :  { %26659 = vmatprep.subr.mxu1 %v34547_v26 }
 0x50f   :  { %26652 = vmatmul.mubr.msk.f32.vlgmr.msra.gmra.mrb[40].mxu1 %vm264_vm2, %v29733_v7 }
 0x510   :  { %26660 = vmatpush3.xpose.msk.msra.mxu1 %vm264_vm2, %v3061_v54  ;;  %26661 = vmatprep.mubr.msk.f32.mxu1 %vm28904_vm1, %v34547_v26  ;;  %v29896_v54 = vpop.permute.xlu0 %5026 }
 0x511   :  { %26669 = vmatprep.subr.mxu1 %v34547_v26 }
 0x513   :  { %26662 = vmatmul.mubr.msk.f32.vlgmr.msra.gmra.mrb[42].mxu1 %vm264_vm2, %v29742_v11 }
 0x514   :  { %26670 = vmatpush3.xpose.msk.msra.mxu1 %vm264_vm2, %v3217_v51  ;;  %26671 = vmatprep.mubr.msk.f32.mxu1 %vm28904_vm1, %v34547_v26  ;;  %v29898_v51 = vpop.permute.xlu0 %5330 }
 0x515   :  { %26679 = vmatprep.subr.mxu1 %v34547_v26 }
 0x517   :  { %26672 = vmatmul.mubr.msk.f32.vlgmr.msra.gmra.mrb[44].mxu1 %vm264_vm2, %v29759_v15 }
 0x518   :  { %26680 = vmatpush3.xpose.msk.msra.mxu1 %vm264_vm2, %v3373_v4  ;;  %26681 = vmatprep.mubr.msk.f32.mxu1 %vm28904_vm1, %v34547_v26  ;;  %v29900_v10 = vpop.permute.xlu0 %5946 }
 0x519   :  { %26689 = vmatprep.subr.mxu1 %v34547_v26 }
 0x51b   :  { %26682 = vmatmul.mubr.msk.f32.vlgmr.msra.gmra.mrb[46].mxu1 %vm264_vm2, %v29776_v44 }
 0x51c   :  { %26690 = vmatpush3.xpose.msk.msra.mxu1 %vm264_vm2, %v3529_v5  ;;  %26691 = vmatprep.mubr.msk.f32.mxu1 %vm28904_vm1, %v34547_v26 }
 0x51d   :  { %26699 = vmatprep.subr.mxu1 %v34547_v26 }
 0x51f   :  { %26692 = vmatmul.mubr.msk.f32.vlgmr.msra.gmra.mrb[48].mxu1 %vm264_vm2, %v29790_v45 }
 0x520   :  { %26700 = vmatpush3.xpose.msk.msra.mxu1 %vm264_vm2, %v3685_v18  ;;  %26701 = vmatprep.mubr.msk.f32.mxu1 %vm28904_vm1, %v34547_v26  ;;  %v29904_v18 = vpop.permute.xlu0 %6024 }
 0x521   :  { %26709 = vmatprep.subr.mxu1 %v34547_v26 }
 0x523   :  { %26702 = vmatmul.mubr.msk.f32.vlgmr.msra.gmra.mrb[50].mxu1 %vm264_vm2, %v29796_v27 }
 0x524   :  { %26710 = vmatpush3.xpose.msk.msra.mxu1 %vm264_vm2, %v3841_v48  ;;  %26711 = vmatprep.mubr.msk.f32.mxu1 %vm28904_vm1, %v34547_v26  ;;  %v29910_v50 = vpop.permute.xlu0 %6102 }
 0x525   :  { %26719 = vmatprep.subr.mxu1 %v34547_v26 }
 0x527   :  { %26712 = vmatmul.mubr.msk.f32.vlgmr.msra.gmra.mrb[52].mxu1 %vm264_vm2, %v3839_v33 }
 0x528   :  { %26720 = vmatpush3.xpose.msk.msra.mxu1 %vm264_vm2, %v3997_v21  ;;  %26721 = vmatprep.mubr.msk.f32.mxu1 %vm28904_vm1, %v34547_v26  ;;  %v29912_v21 = vpop.permute.xlu0 %6180 }
 0x529   :  { %26729 = vmatprep.subr.mxu1 %v34547_v26 }
 0x52b   :  { %26722 = vmatmul.mubr.msk.f32.vlgmr.msra.gmra.mrb[54].mxu1 %vm264_vm2, %v3995_v3 }
 0x52c   :  { %26731 = vmatprep.mubr.msk.f32.mxu1 %vm28904_vm1, %v34547_v26 }
 0x56e   :  { %v29884_v23 = vpop.f32.mrb[24].mxu1 }
 0x56f   :  { %34647 = vst [vmem:[#allocation24_spill] sm:$0xff] %v29884_v23  ;;  %v26573_v36 = vpop.f32.mrb[25].mxu1 }
 0x570   :  { %v29923_v36 = vpop.permute.xlu0 %6258 }
 0x572   :  { %v29886_v7 = vpop.f32.mrb[26].mxu1 }
 0x573   :  { %34648 = vst [vmem:[#allocation25_spill] sm:$0xff] %v29886_v7  ;;  %v26583_v11 = vpop.f32.mrb[27].mxu1 }
 0x574   :  { %v29926_v11 = vmul.f32 0.35355338, %v29786_v46 }
 0x576   :  { %v29888_v15 = vpop.f32.mrb[28].mxu1  ;;  %v4181_v46 = vsel %vm264_vm2, %v29926_v11, -inf }
 0x577   :  { %34649 = vst [vmem:[#allocation26_spill] sm:$0xff] %v29888_v15  ;;  %v26593_v44 = vpop.f32.mrb[29].mxu1 }
 0x578   :  { %v4175_v44 = vsel %vm264_vm2, %v29917_v39, -inf }
 0x57a   :  { %v29890_v45 = vpop.f32.mrb[30].mxu1 }
 0x57b   :  { %34650 = vst [vmem:[#allocation27_spill] sm:$0xff] %v29890_v45  ;;  %v26603_v27 = vpop.f32.mrb[31].mxu1 }
 0x598   :  { %v29892_v63 = vpop.f32.mrb[32].mxu1 }
 0x599   :  { %34651 = vst [vmem:[#allocation28_spill] sm:$0xff] %v29892_v63  ;;  %v26613_v16 = vpop.f32.mrb[33].mxu1 }
 0x5d3   :  { %v29902_v4 = vpop.f32.mrb[34].mxu1 }
 0x5d4   :  { %34652 = vst [vmem:[#allocation29_spill] sm:$0xff] %v29902_v4  ;;  %v26623_v5 = vpop.f32.mrb[35].mxu1 }
 0x5d7   :  { %v29906_v61 = vpop.f32.mrb[36].mxu1 }
 0x5d8   :  { %34653 = vst [vmem:[#allocation30_spill] sm:$0xff] %v29906_v61  ;;  %v26633_v48 = vpop.f32.mrb[37].mxu1 }
 0x5d9   :  { %v29935_v48 = vmul.f32 0.35355338, %v29792_v8  ;;  %v29950_v8 = vmul.f32 0.35355338, %v29806_v40 }
 0x5db   :  { %v29908_v33 = vpop.f32.mrb[38].mxu1 }
 0x5dc   :  { %34654 = vst [vmem:[#allocation31_spill] sm:$0xff] %v29908_v33  ;;  %v26643_v12 = vpop.f32.mrb[39].mxu1 }
 0x5dd   :  { %v29938_v12 = vmul.f32 0.35355338, %v29798_v60  ;;  %v4187_v60 = vsel %vm264_vm2, %v29935_v48, -inf }
 0x5e2   :  { %v2976_v28 = vpop.f32.mrb[40].mxu1 }
 0x5e3   :  { %v29914_v20 = vmul.f32 0.35355338, %v2976_v28  ;;  %v26653_v30 = vpop.f32.mrb[41].mxu1 }
 0x5e4   :  { %v29944_v30 = vpop.permute.xlu0 %6336 }
 0x5e5   :  { %v4166_v6 = vsel %vm264_vm2, %v29914_v20, -inf }
 0x5e6   :  { %4167 = vmax.xlane.f32.xlu1 %v4166_v6  ;;  %v3132_v9 = vpop.f32.mrb[42].mxu1 }
 0x5e7   :  { %v29921_v37 = vmul.f32 0.35355338, %v3132_v9  ;;  %v26663_v3 = vpop.f32.mrb[43].mxu1 }
 0x5e8   :  { %v29947_v3 = vmul.f32 0.35355338, %v29802_v24  ;;  %v4205_v24 = vsel %vm264_vm2, %v29950_v8, -inf }
 0x5e9   :  { %v4172_v1 = vsel %vm264_vm2, %v29921_v37, -inf }
 0x5ea   :  { %4176 = vmax.xlane.f32.xlu1 %v4175_v44  ;;  %4173 = vmax.xlane.f32.xlu0 %v4172_v1  ;;  %v3288_v27 = vpop.f32.mrb[44].mxu1  ;;  %v4193_v44 = vsel %vm264_vm2, %v29938_v12, -inf }
 0x5eb   :  { %v29932_v16 = vmul.f32 0.35355338, %v3288_v27  ;;  %v26673_v5 = vpop.f32.mrb[45].mxu1 }
 0x5ec   :  { %v29956_v5 = vpop.permute.xlu0 %6414 }
 0x5ed   :  { %v4178_v28 = vsel %vm264_vm2, %v29932_v16, -inf }
 0x5ee   :  { %4182 = vmax.xlane.f32.xlu0 %v4181_v46  ;;  %4179 = vmax.xlane.f32.xlu1 %v4178_v28  ;;  %v3444_v6 = vpop.f32.mrb[46].mxu1  ;;  %v4199_v46 = vsel %vm264_vm2, %v29947_v3, -inf }
 0x5ef   :  { %v26683_v9 = vpop.f32.mrb[47].mxu1 }
 0x5f0   :  { %v29964_v9 = vpop.permute.xlu0 %6492 }
 0x5f2   :  { %4188 = vmax.xlane.f32.xlu0 %v4187_v60  ;;  %4194 = vmax.xlane.f32.xlu1 %v4193_v44  ;;  %v3600_v1 = vpop.f32.mrb[48].mxu1 }
 0x5f3   :  { %v26693_v27 = vpop.f32.mrb[49].mxu1  ;;  %v29985_v61 = vmul.f32 0.35355338, %v3600_v1 }
 0x5f4   :  { %v29970_v17 = vpop.permute.xlu0 %6490 }
 0x5f5   :  { %v4190_v2 = vsel %vm264_vm2, %v29985_v61, -inf }
 0x5f6   :  { %4200 = vmax.xlane.f32.xlu0 %v4199_v46  ;;  %4206 = vmax.xlane.f32.xlu1 %v4205_v24  ;;  %v29962_v40 = vpop.f32.mrb[50].mxu1 }
 0x5f7   :  { %v26703_v28 = vpop.f32.mrb[51].mxu1 }
 0x5f8   :  { %v29972_v33 = vpop.permute.xlu0 %6570 }
 0x5fa   :  { %v29966_v26 = vpop.f32.mrb[52].mxu1 }
 0x5fb   :  { %v26713_v60 = vpop.f32.mrb[53].mxu1 }
 0x5fc   :  { %v29976_v46 = vpop.permute.xlu0 %6648 }
 0x5fe   :  { %v29968_v44 = vpop.f32.mrb[54].mxu1 }
 0x5ff   :  { %v26723_v27 = vpop.f32.mrb[55].mxu1 }
 0x600   :  { %v29980_v24 = vpop.permute.xlu0 %6646  ;;  %v29983_v27 = vmul.f32 0.35355338, %v3444_v6 }
 0x602   :  { %v4184_v4 = vsel %vm264_vm2, %v29983_v27, -inf }
 0x604   :  { %v4171_v28 = vpop.xlane.xlu0 %4170 }
 0x605   :  { %v4215_v60 = vsub.f32 %v29818_v14, %v4171_v28  ;;  %v29996_v14 = vpop.permute.xlu1 %4570 }
 0x607   :  { %6724 = vrot.lane.b32.xlu1 %v29176_v56, %s28910_s30  ;;  %v4232_v32 = vmul.f32 1.442695, %v4215_v60 }
 0x609   :  { %28287 = vpow2.f32 %v4232_v32  ;;  %v4211_v32 = vsel %vm264_vm2, %v29988_v13, -inf  ;;  %v30002_v0 = vpop.permute.xlu1 %4874 }
 0x60c   :  { %6726 = vrot.lane.b32.xlu0 %v29176_v56, %s28911_s9 }
 0x60d   :  { %v30004_v1 = vpop.permute.xlu1 %5178 }
 0x611   :  { %v30006_v28 = vpop.permute.xlu1 %5482 }
 0x613   :  { %v29994_v63 = vpop.eup %28287 }
 0x614   :  { %v4265_v6 = vsel %vm264_vm2, %v29994_v63, 0.0 }
 0x615   :  { %v30008_v60 = vpop.permute.xlu1 %5944 }
 0x62b   :  { %4185 = vmax.xlane.f32.xlu0 %v4184_v4  ;;  %4191 = vmax.xlane.f32.xlu1 %v4190_v2  ;;  %v30014_v2 = vpop.permute.xlu1 %6022 }
 0x62f   :  { %4212 = vmax.xlane.f32.xlu0 %v4211_v32  ;;  %4266 = vadd.xlane.f32.xlu1 %v4265_v6  ;;  %v30016_v4 = vpop.permute.xlu1 %6100 }
 0x633   :  { %v30018_v32 = vpop.permute.xlu1 %6178 }
 0x637   :  { %v30020_v6 = vpop.permute.xlu1 %6256 }
 0x63b   :  { %v30022_v52 = vpop.permute.xlu1 %6334 }
 0x63f   :  { %v30024_v45 = vpop.permute.xlu1 %6412 }
 0x643   :  { %v30026_v19 = vpop.permute.xlu1 %6568 }
 0x645   :  { %6804 = vrot.lane.b32.xlu0 %v29160_v47, %s28911_s9 }
 0x649   :  { %6802 = vrot.lane.b32.xlu0 %v29160_v47, %s28910_s30 }
 0x673   :  { %v30028_v15 = vpop.xlane.xlu1 %4167 }
 0x677   :  { %v4177_v22 = vpop.xlane.xlu1 %4176  ;;  %v30030_v7 = vpop.xlane.xlu0 %4173 }
 0x678   :  { %v4217_v62 = vsub.f32 %v29917_v39, %v4177_v22 }
 0x67a   :  { %v4236_v23 = vmul.f32 1.442695, %v4217_v62 }
 0x67b   :  { %v30033_v47 = vpop.xlane.xlu1 %4179  ;;  %v4183_v49 = vpop.xlane.xlu0 %4182 }
 0x67c   :  { %28289 = vpow2.f32 %v4236_v23  ;;  %v4219_v43 = vsub.f32 %v29926_v11, %v4183_v49 }
 0x67e   :  { %v4240_v41 = vmul.f32 1.442695, %v4219_v43 }
 0x67f   :  { %v4195_v56 = vpop.xlane.xlu1 %4194  ;;  %v4189_v57 = vpop.xlane.xlu0 %4188 }
 0x680   :  { %v4223_v42 = vsub.f32 %v29938_v12, %v4195_v56  ;;  %v4221_v38 = vsub.f32 %v29935_v48, %v4189_v57  ;;  %28291 = vpow2.f32 %v4240_v41 }
 0x682   :  { %v4248_v34 = vmul.f32 1.442695, %v4223_v42  ;;  %v4244_v31 = vmul.f32 1.442695, %v4221_v38 }
 0x683   :  { %v4201_v35 = vpop.xlane.xlu0 %4200  ;;  %v4207_v57 = vpop.xlane.xlu1 %4206 }
 0x684   :  { %28293 = vpow2.f32 %v4248_v34  ;;  %v4225_v62 = vsub.f32 %v29947_v3, %v4201_v35  ;;  %v4227_v39 = vsub.f32 %v29950_v8, %v4207_v57 }
 0x685   :  { %28295 = vpow2.f32 %v4244_v31 }
 0x686   :  { %v30039_v22 = vpop.eup %28289  ;;  %v4252_v23 = vmul.f32 1.442695, %v4225_v62  ;;  %v4256_v11 = vmul.f32 1.442695, %v4227_v39 }
 0x687   :  { %v4271_v43 = vsel %vm264_vm2, %v30039_v22, 0.0  ;;  %v30064_v48 = vpop.permute.xlu1 %6724  ;;  %v30066_v12 = vpop.permute.xlu0 %6726 }
 0x688   :  { %4272 = vadd.xlane.f32.xlu0 %v4271_v43  ;;  %28297 = vpow2.f32 %v4252_v23 }
 0x689   :  { %28299 = vpow2.f32 %v4256_v11 }
 0x68a   :  { %v30043_v49 = vpop.eup %28291 }
 0x68b   :  { %v4277_v41 = vsel %vm264_vm2, %v30043_v49, 0.0 }
 0x68c   :  { %4278 = vadd.xlane.f32.xlu1 %v4277_v41 }
 0x68e   :  { %v30047_v38 = vpop.eup %28293 }
 0x68f   :  { %v30049_v34 = vpop.eup %28295  ;;  %v4289_v31 = vsel %vm264_vm2, %v30047_v38, 0.0 }
 0x690   :  { %v4283_v35 = vsel %vm264_vm2, %v30049_v34, 0.0  ;;  %4290 = vadd.xlane.f32.xlu1 %v4289_v31 }
 0x691   :  { %4284 = vadd.xlane.f32.xlu0 %v4283_v35 }
 0x692   :  { %v30055_v42 = vpop.eup %28297 }
 0x693   :  { %v4295_v56 = vsel %vm264_vm2, %v30055_v42, 0.0  ;;  %v30069_v35 = vpop.eup %28299 }
 0x694   :  { %v4301_v8 = vsel %vm264_vm2, %v30069_v35, 0.0 }
 0x695   :  { %4296 = vadd.xlane.f32.xlu0 %v4295_v56  ;;  %v30072_v56 = vmul.f32 0.35355338, %v29962_v40  ;;  %v34655_v40 = vmov 0.0  }
 0x697   :  { %v4196_v39 = vsel %vm264_vm2, %v30072_v56, -inf }
 0x6a1   :  { %6880 = vrot.lane.b32.xlu1 %v29186_v59, %s28910_s30 }
 0x6ab   :  { %6882 = vrot.lane.b32.xlu0 %v29186_v59, %s28911_s9 }
 0x6b8   :  { %v4192_v3 = vpop.xlane.xlu1 %4191  ;;  %v4186_v62 = vpop.xlane.xlu0 %4185 }
 0x6bc   :  { %v4267_v23 = vpop.xlane.xlu1 %4266  ;;  %v4213_v43 = vpop.xlane.xlu0 %4212 }
 0x6bd   :  { %v4229_v41 = vsub.f32 %v29988_v13, %v4213_v43  ;;  %28301 = vrcp.f32 %v4267_v23 }
 0x6bf   :  { %v4260_v31 = vmul.f32 1.442695, %v4229_v41 }
 0x6c1   :  { %28303 = vpow2.f32 %v4260_v31  ;;  %v4220_v31 = vsub.f32 %v29983_v27, %v4186_v62  ;;  %v30120_v27 = vpop.permute.xlu0 %6804 }
 0x6c5   :  { %4302 = vadd.xlane.f32.xlu1 %v4301_v8  ;;  %v30100_v8 = vmul.f32 0.35355338, %v29966_v26 }
 0x6c7   :  { %v28302_v57 = vpop.eup %28301 }
 0x6c8   :  { %v4327_v11 = vmul.f32 %v28302_v57, %v29994_v63  ;;  %v4214_v63 = vsub.f32 %v29914_v20, %v30028_v15  ;;  %v4222_v57 = vsub.f32 %v29985_v61, %v4192_v3  ;;  %v4202_v15 = vsel %vm264_vm2, %v30100_v8, -inf }
 0x6ca   :  { %4197 = vmax.xlane.f32.xlu0 %v4196_v39  ;;  %26737 = vmatmul.mubr.msk.f32.vlgmr.msra.gmra.mrb[56].mxu0 %vm264_vm2, %v4327_v11  ;;  %v4230_v43 = vmul.f32 1.442695, %v4214_v63  ;;  %v4242_v39 = vmul.f32 1.442695, %v4220_v31  ;;  %v30104_v11 = vmul.f32 0.35355338, %v29968_v44  ;;  %v30126_v63 = vpop.permute.xlu0 %6802 }
 0x6cb   :  { %v30079_v13 = vpop.eup %28303  ;;  %26745 = vmatpush3.msra.mxu0 %v29996_v14  ;;  %26746 = vmatprep.mubr.msk.f32.mxu0 %vm28904_vm1, %v34655_v40  ;;  %v4218_v14 = vsub.f32 %v29932_v16, %v30033_v47 }
 0x6cc   :  { %v4307_v23 = vsel %vm264_vm2, %v30079_v13, 0.0  ;;  %26754 = vmatprep.subr.mxu0 %v34655_v40  ;;  %28305 = vpow2.f32 %v4230_v43  ;;  %v4208_v47 = vsel %vm264_vm2, %v30104_v11, -inf }
 0x6cd   :  { %4308 = vadd.xlane.f32.xlu1 %v4307_v23  ;;  %v4238_v41 = vmul.f32 1.442695, %v4218_v14  ;;  %v4246_v23 = vmul.f32 1.442695, %v4222_v57 }
 0x6cf   :  { %28307 = vpow2.f32 %v4238_v41 }
 0x6d0   :  { %28309 = vpow2.f32 %v4242_v39 }
 0x6d1   :  { %28311 = vpow2.f32 %v4246_v23 }
 0x6d6   :  { %v30110_v20 = vpop.eup %28305 }
 0x6d7   :  { %v4262_v26 = vsel %vm264_vm2, %v30110_v20, 0.0 }
 0x6d9   :  { %v30114_v61 = vpop.eup %28307 }
 0x6da   :  { %v4274_v16 = vsel %vm264_vm2, %v30114_v61, 0.0  ;;  %v30118_v44 = vpop.eup %28309 }
 0x6db   :  { %v4280_v3 = vsel %vm264_vm2, %v30118_v44, 0.0  ;;  %v30124_v62 = vpop.eup %28311 }
 0x6dc   :  { %v4286_v43 = vsel %vm264_vm2, %v30124_v62, 0.0 }
 0x6de   :  { %6960 = vrot.lane.b32.xlu1 %v29170_v55, %s28911_s9 }
 0x6e0   :  { %6958 = vrot.lane.b32.xlu0 %v29170_v55, %s28910_s30 }
 0x6e4   :  { %7038 = vrot.lane.b32.xlu0 %v29184_v58, %s28911_s9 }
 0x702   :  { %4203 = vmax.xlane.f32.xlu1 %v4202_v15 }
 0x703   :  { %4209 = vmax.xlane.f32.xlu0 %v4208_v47 }
 0x707   :  { %4263 = vadd.xlane.f32.xlu0 %v4262_v26 }
 0x70b   :  { %4275 = vadd.xlane.f32.xlu0 %v4274_v16 }
 0x70f   :  { %4281 = vadd.xlane.f32.xlu0 %v4280_v3 }
 0x713   :  { %4287 = vadd.xlane.f32.xlu0 %v4286_v43  ;;  %7036 = vrot.lane.b32.xlu1 %v29184_v58, %s28910_s30 }
 0x715   :  { %v4273_v14 = vpop.xlane.xlu0 %4272 }
 0x716   :  { %28313 = vrcp.f32 %v4273_v14 }
 0x717   :  { %7116 = vrot.lane.b32.xlu1 %v29168_v53, %s28911_s9 }
 0x719   :  { %v4279_v41 = vpop.xlane.xlu1 %4278 }
 0x71a   :  { %28315 = vrcp.f32 %v4279_v41 }
 0x71b   :  { %7114 = vrot.lane.b32.xlu1 %v29168_v53, %s28910_s30 }
 0x71d   :  { %v4291_v57 = vpop.xlane.xlu1 %4290 }
 0x71e   :  { %v4285_v31 = vpop.xlane.xlu0 %4284 }
 0x71f   :  { %28317 = vrcp.f32 %v4285_v31 }
 0x720   :  { %v28314_v39 = vpop.eup %28313  ;;  %28319 = vrcp.f32 %v4291_v57 }
 0x721   :  { %v4329_v23 = vmul.f32 %v28314_v39, %v30039_v22  ;;  %v4216_v22 = vsub.f32 %v29921_v37, %v30030_v7 }
 0x722   :  { %v4297_v15 = vpop.xlane.xlu0 %4296 }
 0x723   :  { %26747 = vmatmul.mubr.msk.f32.vlgmr.msra.gmra.mrb[58].mxu0 %vm264_vm2, %v4329_v23  ;;  %28321 = vrcp.f32 %v4297_v15  ;;  %v4234_v43 = vmul.f32 1.442695, %v4216_v22 }
 0x724   :  { %26755 = vmatpush3.msra.mxu0 %v29894_v25  ;;  %26756 = vmatprep.mubr.msk.f32.mxu0 %vm28904_vm1, %v34655_v40  ;;  %v28316_v47 = vpop.eup %28315 }
 0x725   :  { %26764 = vmatprep.subr.mxu0 %v34655_v40  ;;  %v4331_v26 = vmul.f32 %v28316_v47, %v30043_v49  ;;  %28323 = vpow2.f32 %v4234_v43  ;;  %v30172_v49 = vpop.permute.xlu1 %6880 }
 0x727   :  { %26757 = vmatmul.mubr.msk.f32.vlgmr.msra.gmra.mrb[60].mxu0 %vm264_vm2, %v4331_v26 }
 0x728   :  { %26765 = vmatpush3.msra.mxu0 %v30002_v0  ;;  %26766 = vmatprep.mubr.msk.f32.mxu0 %vm28904_vm1, %v34655_v40 }
 0x729   :  { %v28318_v25 = vpop.eup %28317  ;;  %26774 = vmatprep.subr.mxu0 %v34655_v40 }
 0x72a   :  { %v4333_v16 = vmul.f32 %v28318_v25, %v30049_v34  ;;  %v28320_v3 = vpop.eup %28319 }
 0x72b   :  { %v4335_v7 = vmul.f32 %v28320_v3, %v30047_v38  ;;  %v30176_v38 = vpop.permute.xlu0 %6882 }
 0x72c   :  { %26767 = vmatmul.mubr.msk.f32.vlgmr.msra.gmra.mrb[62].mxu0 %vm264_vm2, %v4333_v16 }
 0x72d   :  { %26775 = vmatpush3.msra.mxu0 %v29896_v54  ;;  %26776 = vmatprep.mubr.msk.f32.mxu0 %vm28904_vm1, %v34655_v40  ;;  %v28322_v37 = vpop.eup %28321 }
 0x72e   :  { %26784 = vmatprep.subr.mxu0 %v34655_v40  ;;  %v4337_v54 = vmul.f32 %v28322_v37, %v30055_v42 }
 0x72f   :  { %v30168_v0 = vpop.eup %28323 }
 0x730   :  { %26777 = vmatmul.mubr.msk.f32.vlgmr.msra.gmra.mrb[64].mxu0 %vm264_vm2, %v4335_v7 }
 0x731   :  { %26785 = vmatpush3.msra.mxu0 %v30004_v1  ;;  %26786 = vmatprep.mubr.msk.f32.mxu0 %vm28904_vm1, %v34655_v40  ;;  %v4268_v1 = vsel %vm264_vm2, %v30168_v0, 0.0 }
 0x732   :  { %26794 = vmatprep.subr.mxu0 %v34655_v40 }
 0x734   :  { %26787 = vmatmul.mubr.msk.f32.vlgmr.msra.gmra.mrb[66].mxu0 %vm264_vm2, %v4337_v54 }
 0x735   :  { %26795 = vmatpush3.msra.mxu0 %v29898_v51  ;;  %26796 = vmatprep.mubr.msk.f32.mxu0 %vm28904_vm1, %v34655_v40 }
 0x736   :  { %26804 = vmatprep.subr.mxu0 %v34655_v40 }
 0x73f   :  { %4269 = vadd.xlane.f32.xlu1 %v4268_v1 }
 0x750   :  { %4494 = vrot.lane.b32.xlu1 %v29128_v29, %s28909_s8 }
 0x752   :  { %v4303_v34 = vpop.xlane.xlu1 %4302 }
 0x753   :  { %28325 = vrcp.f32 %v4303_v34 }
 0x757   :  { %v4198_v51 = vpop.xlane.xlu0 %4197 }
 0x758   :  { %v4224_v42 = vsub.f32 %v30072_v56, %v4198_v51 }
 0x75a   :  { %v4250_v14 = vmul.f32 1.442695, %v4224_v42  ;;  %v4309_v41 = vpop.xlane.xlu1 %4308 }
 0x75b   :  { %28327 = vrcp.f32 %v4309_v41 }
 0x75c   :  { %28329 = vpow2.f32 %v4250_v14 }
 0x75d   :  { %v28326_v31 = vpop.eup %28325 }
 0x75e   :  { %v4339_v57 = vmul.f32 %v28326_v31, %v30069_v35  ;;  %v34661_v35 = vld [vmem:[#allocation15_spill] sm:$0xff] }
 0x760   :  { %26797 = vmatmul.mubr.msk.f32.vlgmr.msra.gmra.mrb[68].mxu0 %vm264_vm2, %v4339_v57 }
 0x761   :  { %26805 = vmatpush3.msra.mxu0 %v30006_v28  ;;  %26806 = vmatprep.mubr.msk.f32.mxu0 %vm28904_vm1, %v34655_v40 }
 0x762   :  { %26861 = vmatprep.subr.mxu0 %v34655_v40 }
 0x765   :  { %v28328_v39 = vpop.eup %28327 }
 0x766   :  { %v30185_v23 = vpop.eup %28329  ;;  %v4341_v56 = vmul.f32 %v28328_v39, %v30079_v13  ;;  %v34662_v13 = vld [vmem:[#allocation14_spill] sm:$0xff] }
 0x767   :  { %v4292_v15 = vsel %vm264_vm2, %v30185_v23, 0.0 }
 0x768   :  { %4293 = vadd.xlane.f32.xlu0 %v4292_v15  ;;  %26807 = vmatmul.mubr.msk.f32.vlgmr.msra.gmra.mrb[70].mxu0 %vm264_vm2, %v4341_v56 }
 0x769   :  { %26862 = vmatpush3.xpose.msk.msra.mxu0 %vm264_vm2, %v29900_v10  ;;  %26863 = vmatprep.mubr.msk.f32.mxu0 %vm28904_vm1, %v34655_v40  ;;  %v6959_v10 = vpop.permute.xlu0 %6958 }
 0x76a   :  { %26866 = vmatprep.subr.mxu0 %v34655_v40 }
 0x76c   :  { %26864 = vmatmul.mubr.msk.f32.vlgmr.msra.gmra.mrb[72].mxu0 %vm264_vm2, %v30008_v60 }
 0x76d   :  { %26867 = vmatpush3.xpose.msk.msra.mxu0 %vm264_vm2, %v29904_v18  ;;  %26868 = vmatprep.mubr.msk.f32.mxu0 %vm28904_vm1, %v34655_v40 }
 0x76e   :  { %26871 = vmatprep.subr.mxu0 %v34655_v40 }
 0x770   :  { %26869 = vmatmul.mubr.msk.f32.vlgmr.msra.gmra.mrb[74].mxu0 %vm264_vm2, %v30014_v2 }
 0x771   :  { %26872 = vmatpush3.xpose.msk.msra.mxu0 %vm264_vm2, %v29910_v50  ;;  %26873 = vmatprep.mubr.msk.f32.mxu0 %vm28904_vm1, %v34655_v40 }
 0x772   :  { %26876 = vmatprep.subr.mxu0 %v34655_v40 }
 0x774   :  { %26874 = vmatmul.mubr.msk.f32.vlgmr.msra.gmra.mrb[76].mxu0 %vm264_vm2, %v30016_v4  ;;  %v34656_v4 = vld [vmem:[#allocation7_spill] sm:$0xff] }
 0x775   :  { %26877 = vmatpush3.xpose.msk.msra.mxu0 %vm264_vm2, %v29912_v21  ;;  %26878 = vmatprep.mubr.msk.f32.mxu0 %vm28904_vm1, %v34655_v40 }
 0x776   :  { %26881 = vmatprep.subr.mxu0 %v34655_v40 }
 0x778   :  { %26879 = vmatmul.mubr.msk.f32.vlgmr.msra.gmra.mrb[78].mxu0 %vm264_vm2, %v30018_v32  ;;  %v34657_v32 = vld [vmem:[#allocation5_spill] sm:$0xff] }
 0x779   :  { %26882 = vmatpush3.xpose.msk.msra.mxu0 %vm264_vm2, %v29923_v36  ;;  %26883 = vmatprep.mubr.msk.f32.mxu0 %vm28904_vm1, %v34655_v40 }
 0x77a   :  { %26886 = vmatprep.subr.mxu0 %v34655_v40 }
 0x77c   :  { %26884 = vmatmul.mubr.msk.f32.vlgmr.msra.gmra.mrb[80].mxu0 %vm264_vm2, %v30020_v6  ;;  %v34658_v6 = vld [vmem:[#allocation6_spill] sm:$0xff] }
 0x77d   :  { %26887 = vmatpush3.xpose.msk.msra.mxu0 %vm264_vm2, %v29944_v30  ;;  %26888 = vmatprep.mubr.msk.f32.mxu0 %vm28904_vm1, %v34655_v40 }
 0x77e   :  { %26891 = vmatprep.subr.mxu0 %v34655_v40 }
 0x780   :  { %26889 = vmatmul.mubr.msk.f32.vlgmr.msra.gmra.mrb[82].mxu0 %vm264_vm2, %v30022_v52  ;;  %v6961_v52 = vpop.permute.xlu1 %6960 }
 0x781   :  { %26892 = vmatpush3.xpose.msk.msra.mxu0 %vm264_vm2, %v29956_v5  ;;  %26893 = vmatprep.mubr.msk.f32.mxu0 %vm28904_vm1, %v34655_v40 }
 0x782   :  { %26896 = vmatprep.subr.mxu0 %v34655_v40 }
 0x784   :  { %26894 = vmatmul.mubr.msk.f32.vlgmr.msra.gmra.mrb[84].mxu0 %vm264_vm2, %v30024_v45  ;;  %v7039_v45 = vpop.permute.xlu0 %7038 }
 0x785   :  { %26897 = vmatpush3.xpose.msk.msra.mxu0 %vm264_vm2, %v29964_v9  ;;  %26898 = vmatprep.mubr.msk.f32.mxu0 %vm28904_vm1, %v34655_v40 }
 0x786   :  { %26901 = vmatprep.subr.mxu0 %v34655_v40 }
 0x788   :  { %26899 = vmatmul.mubr.msk.f32.vlgmr.msra.gmra.mrb[86].mxu0 %vm264_vm2, %v29970_v17 }
 0x789   :  { %26902 = vmatpush3.xpose.msk.msra.mxu0 %vm264_vm2, %v29972_v33  ;;  %26903 = vmatprep.mubr.msk.f32.mxu0 %vm28904_vm1, %v34655_v40 }
 0x78a   :  { %26906 = vmatprep.subr.mxu0 %v34655_v40 }
 0x78c   :  { %26904 = vmatmul.mubr.msk.f32.vlgmr.msra.gmra.mrb[88].mxu0 %vm264_vm2, %v30026_v19 }
 0x78d   :  { %26907 = vmatpush3.xpose.msk.msra.mxu0 %vm264_vm2, %v29976_v46  ;;  %26908 = vmatprep.mubr.msk.f32.mxu0 %vm28904_vm1, %v34655_v40 }
 0x78e   :  { %26911 = vmatprep.subr.mxu0 %v34655_v40 }
 0x78f   :  { %v4204_v17 = vpop.xlane.xlu1 %4203 }
 0x790   :  { %v4226_v18 = vsub.f32 %v30100_v8, %v4204_v17  ;;  %v4210_v33 = vpop.xlane.xlu0 %4209  ;;  %26909 = vmatmul.mubr.msk.f32.vlgmr.msra.gmra.mrb[90].mxu0 %vm264_vm2, %v29980_v24  ;;  %v34663_v8 = vld [vmem:[#allocation9_spill] sm:$0xff] }
 0x791   :  { %v4228_v50 = vsub.f32 %v30104_v11, %v4210_v33  ;;  %26912 = vmatpush3.xpose.msk.msra.mxu0 %vm264_vm2, %v30066_v12  ;;  %26913 = vmatprep.mubr.msk.f32.mxu0 %vm28904_vm1, %v34655_v40  ;;  %v34660_v12 = vld [vmem:[#allocation10_spill] sm:$0xff]  ;;  %v34664_v11 = vld [vmem:[#allocation11_spill] sm:$0xff] }
 0x792   :  { %v4254_v19 = vmul.f32 1.442695, %v4226_v18  ;;  %26916 = vmatprep.subr.mxu0 %v34655_v40 }
 0x793   :  { %v4258_v21 = vmul.f32 1.442695, %v4228_v50  ;;  %v7037_v36 = vpop.permute.xlu1 %7036 }
 0x794   :  { %28331 = vpow2.f32 %v4254_v19  ;;  %26914 = vmatmul.mubr.msk.f32.vlgmr.msra.gmra.mrb[92].mxu0 %vm264_vm2, %v30064_v48  ;;  %v34659_v48 = vld [vmem:[#allocation8_spill] sm:$0xff]  ;;  %v4264_v54 = vpop.xlane.xlu0 %4263 }
 0x795   :  { %28333 = vpow2.f32 %v4258_v21  ;;  %26917 = vmatpush3.xpose.msk.msra.mxu0 %vm264_vm2, %v30120_v27  ;;  %26918 = vmatprep.mubr.msk.f32.mxu0 %vm28904_vm1, %v34655_v40  ;;  %v34665_v27 = vld [vmem:[#allocation13_spill] sm:$0xff] }
 0x796   :  { %26921 = vmatprep.subr.mxu0 %v34655_v40  ;;  %28335 = vrcp.f32 %v4264_v54 }
 0x797   :  { %v7117_v60 = vpop.permute.xlu1 %7116 }
 0x798   :  { %26919 = vmatmul.mubr.msk.f32.vlgmr.msra.gmra.mrb[94].mxu0 %vm264_vm2, %v30126_v63  ;;  %v4276_v1 = vpop.xlane.xlu0 %4275 }
 0x799   :  { %26922 = vmatpush3.xpose.msk.msra.mxu0 %vm264_vm2, %v30176_v38  ;;  %26923 = vmatprep.mubr.msk.f32.mxu0 %vm28904_vm1, %v34655_v40 }
 0x79a   :  { %26926 = vmatprep.subr.mxu0 %v34655_v40 }
 0x79b   :  { %v7115_v2 = vpop.permute.xlu1 %7114 }
 0x79c   :  { %26924 = vmatmul.mubr.msk.f32.vlgmr.msra.gmra.mrb[96].mxu0 %vm264_vm2, %v30172_v49  ;;  %v4282_v49 = vpop.xlane.xlu0 %4281 }
 0x79d   :  { %26927 = vmatpush3.xpose.msk.msra.mxu0 %vm264_vm2, %v6961_v52  ;;  %26928 = vmatprep.mubr.msk.f32.mxu0 %vm28904_vm1, %v34655_v40  ;;  %v30292_v9 = vpop.f32.mrb[56].mxu0 }
 0x79e   :  { %v30287_v30 = vpop.eup %28331  ;;  %26931 = vmatprep.subr.mxu0 %v34655_v40  ;;  %v26738_v24 = vpop.f32.mrb[57].mxu0 }
 0x79f   :  { %v30290_v5 = vpop.eup %28333  ;;  %v4298_v46 = vsel %vm264_vm2, %v30287_v30, 0.0 }
 0x7a0   :  { %4299 = vadd.xlane.f32.xlu0 %v4298_v46  ;;  %26929 = vmatmul.mubr.msk.f32.vlgmr.msra.gmra.mrb[98].mxu0 %vm264_vm2, %v6959_v10  ;;  %v4304_v28 = vsel %vm264_vm2, %v30290_v5, 0.0  ;;  %v4288_v34 = vpop.xlane.xlu0 %4287  ;;  %v28336_v41 = vpop.eup %28335 }
 0x7a1   :  { %26932 = vmatpush3.xpose.msk.msra.mxu0 %vm264_vm2, %v7039_v45  ;;  %4305 = vadd.xlane.f32.xlu1 %v4304_v28  ;;  %v4326_v39 = vmul.f32 %v28336_v41, %v30110_v20 }
 0x7a2   :  { %26933 = vmatprep.mubr.msk.f32.mxu0 %vm28904_vm1, %v34655_v40  ;;  %26936 = vmatprep.subr.mxu0 %v34655_v40 }
 0x7a4   :  { %26934 = vmatmul.mubr.msk.f32.vlgmr.msra.gmra.mrb[100].mxu0 %vm264_vm2, %v7037_v36 }
 0x7a5   :  { %26937 = vmatpush3.xpose.msk.msra.mxu0 %vm264_vm2, %v7117_v60  ;;  %26938 = vmatprep.mubr.msk.f32.mxu0 %vm28904_vm1, %v34655_v40 }
 0x7a6   :  { %26946 = vmatprep.subr.mxu0 %v34655_v40 }
 0x7a8   :  { %26939 = vmatmul.mubr.msk.f32.vlgmr.msra.gmra.mrb[102].mxu0 %vm264_vm2, %v7115_v2 }
 0x7a9   :  { %26948 = vmatprep.mubr.msk.f32.mxu0 %vm28904_vm1, %v34655_v40 }
 0x7b2   :  { %5254 = vrot.lane.b32.xlu1 %v29186_v59, %s28909_s8 }
 0x7b6   :  { %7460 = vrot.lane.b32.xlu1 %v34656_v4, %s34577_s5  ;;  %4342 = vrot.lane.b32.xlu0 %v34657_v32, %s28909_s8 }
 0x7ba   :  { %7612 = vrot.lane.b32.xlu1 %v34658_v6, %s34577_s5  ;;  %4646 = vrot.lane.b32.xlu0 %v34659_v48, %s28909_s8 }
 0x7be   :  { %7688 = vrot.lane.b32.xlu1 %v34659_v48, %s34577_s5  ;;  %4798 = vrot.lane.b32.xlu0 %v34660_v12, %s28909_s8 }
 0x7c2   :  { %7840 = vrot.lane.b32.xlu1 %v34660_v12, %s34577_s5  ;;  %4950 = vrot.lane.b32.xlu0 %v34661_v35, %s28909_s8 }
 0x7c6   :  { %7992 = vrot.lane.b32.xlu1 %v34661_v35, %s34577_s5  ;;  %5102 = vrot.lane.b32.xlu0 %v34662_v13, %s28909_s8 }
 0x7ca   :  { %8144 = vrot.lane.b32.xlu1 %v34662_v13, %s34577_s5  ;;  %5406 = vrot.lane.b32.xlu0 %v29184_v58, %s28909_s8 }
 0x7cc   :  { %v4270_v38 = vpop.xlane.xlu1 %4269 }
 0x7cd   :  { %28337 = vrcp.f32 %v4270_v38 }
 0x7ce   :  { %7384 = vrot.lane.b32.xlu0 %v34657_v32, %s34577_s5  ;;  %28339 = vrcp.f32 %v4276_v1 }
 0x7cf   :  { %28341 = vrcp.f32 %v4282_v49 }
 0x7d0   :  { %v4495_v42 = vpop.permute.xlu1 %4494  ;;  %28343 = vrcp.f32 %v4288_v34 }
 0x7d2   :  { %7536 = vrot.lane.b32.xlu0 %v29128_v29, %s34577_s5 }
 0x7d6   :  { %7764 = vrot.lane.b32.xlu0 %v34663_v8, %s34577_s5 }
 0x7d7   :  { %v28338_v56 = vpop.eup %28337 }
 0x7d8   :  { %v4328_v20 = vmul.f32 %v28338_v56, %v30168_v0  ;;  %v28340_v17 = vpop.eup %28339 }
 0x7d9   :  { %v4330_v50 = vmul.f32 %v28340_v17, %v30114_v61  ;;  %v28342_v19 = vpop.eup %28341 }
 0x7da   :  { %7916 = vrot.lane.b32.xlu0 %v34664_v11, %s34577_s5  ;;  %v4332_v46 = vmul.f32 %v28342_v19, %v30118_v44  ;;  %v28344_v24 = vpop.eup %28343 }
 0x7de   :  { %8068 = vrot.lane.b32.xlu0 %v34665_v27, %s34577_s5 }
 0x7f5   :  { %v4294_v51 = vpop.xlane.xlu0 %4293 }
 0x7f6   :  { %v30347_v63 = vpop.f32.mrb[58].mxu0  ;;  %28345 = vrcp.f32 %v4294_v51 }
 0x7f7   :  { %v26748_v47 = vpop.f32.mrb[59].mxu0 }
 0x7f8   :  { %v4334_v47 = vmul.f32 %v28344_v24, %v30124_v62 }
 0x7fa   :  { %v30349_v26 = vpop.f32.mrb[60].mxu0 }
 0x7fb   :  { %v26758_v22 = vpop.f32.mrb[61].mxu0 }
 0x7ff   :  { %v30351_v25 = vpop.f32.mrb[62].mxu0 }
 0x800   :  { %v26768_v16 = vpop.f32.mrb[63].mxu0  ;;  %v28346_v22 = vpop.eup %28345 }
 0x801   :  { %v4336_v54 = vmul.f32 %v28346_v22, %v30185_v23 }
 0x803   :  { %v30353_v3 = vpop.f32.mrb[64].mxu0 }
 0x804   :  { %v26778_v43 = vpop.f32.mrb[65].mxu0 }
 0x807   :  { %v30355_v7 = vpop.f32.mrb[66].mxu0 }
 0x808   :  { %v26788_v37 = vpop.f32.mrb[67].mxu0 }
 0x82d   :  { %v4300_v14 = vpop.xlane.xlu0 %4299 }
 0x82e   :  { %v4306_v31 = vpop.xlane.xlu1 %4305  ;;  %28347 = vrcp.f32 %v4300_v14 }
 0x82f   :  { %28349 = vrcp.f32 %v4306_v31 }
 0x831   :  { %v4343_v57 = vpop.permute.xlu0 %4342 }
 0x832   :  { %v5255_v15 = vpop.permute.xlu1 %5254  ;;  %26730 = vmatpush3.msra.mxu1 %v4343_v57 }
 0x833   :  { %26732 = vmatmul.mubr.msk.f32.vlgmr.msra.gmra.mrb[56].mxu1 %vm264_vm2, %v4326_v39  ;;  %26739 = vmatprep.subr.mxu1 %v34655_v40  ;;  %v30360_v10 = vpop.f32.mrb[68].mxu0 }
 0x834   :  { %26740 = vmatpush3.msra.mxu1 %v4495_v42  ;;  %26741 = vmatprep.mubr.msk.f32.mxu1 %vm28904_vm1, %v34655_v40  ;;  %v26798_v52 = vpop.f32.mrb[69].mxu0 }
 0x835   :  { %v4647_v45 = vpop.permute.xlu0 %4646  ;;  %26749 = vmatprep.subr.mxu1 %v34655_v40 }
 0x836   :  { %v7461_v18 = vpop.permute.xlu1 %7460 }
 0x837   :  { %26947 = vmatpush3.msra.mxu0 %v7461_v18  ;;  %26742 = vmatmul.mubr.msk.f32.vlgmr.msra.gmra.mrb[58].mxu1 %vm264_vm2, %v4328_v20 }
 0x838   :  { %26750 = vmatpush3.msra.mxu1 %v4647_v45  ;;  %26751 = vmatprep.mubr.msk.f32.mxu1 %vm28904_vm1, %v34655_v40  ;;  %v28348_v62 = vpop.eup %28347 }
 0x839   :  { %v4799_v33 = vpop.permute.xlu0 %4798  ;;  %26759 = vmatprep.subr.mxu1 %v34655_v40  ;;  %26956 = vmatprep.subr.mxu0 %v34655_v40  ;;  %v4338_v51 = vmul.f32 %v28348_v62, %v30287_v30  ;;  %v28350_v23 = vpop.eup %28349 }
 0x83a   :  { %v4340_v39 = vmul.f32 %v28350_v23, %v30290_v5 }
 0x83b   :  { %26752 = vmatmul.mubr.msk.f32.vlgmr.msra.gmra.mrb[60].mxu1 %vm264_vm2, %v4330_v50  ;;  %v30373_v0 = vpop.f32.mrb[70].mxu0 }
 0x83c   :  { %26760 = vmatpush3.msra.mxu1 %v4799_v33  ;;  %v26808_v21 = vpop.f32.mrb[71].mxu0  ;;  %26761 = vmatprep.mubr.msk.f32.mxu1 %vm28904_vm1, %v34655_v40 }
 0x83d   :  { %v4951_v36 = vpop.permute.xlu0 %4950  ;;  %26769 = vmatprep.subr.mxu1 %v34655_v40 }
 0x83f   :  { %26762 = vmatmul.mubr.msk.f32.vlgmr.msra.gmra.mrb[62].mxu1 %vm264_vm2, %v4332_v46  ;;  %v6018_v61 = vpop.f32.mrb[72].mxu0 }
 0x840   :  { %26770 = vmatpush3.msra.mxu1 %v4951_v36  ;;  %v30380_v28 = vmul.f32 0.35355338, %v6018_v61  ;;  %v26865_v60 = vpop.f32.mrb[73].mxu0  ;;  %26771 = vmatprep.mubr.msk.f32.mxu1 %vm28904_vm1, %v34655_v40 }
 0x841   :  { %v5103_v2 = vpop.permute.xlu0 %5102  ;;  %26779 = vmatprep.subr.mxu1 %v34655_v40 }
 0x842   :  { %v7208_v44 = vsel %vm264_vm2, %v30380_v28, -inf }
 0x843   :  { %v6096_v16 = vpop.f32.mrb[74].mxu0  ;;  %7209 = vmax.xlane.f32.xlu1 %v7208_v44  ;;  %26772 = vmatmul.mubr.msk.f32.vlgmr.msra.gmra.mrb[64].mxu1 %vm264_vm2, %v4334_v47 }
 0x844   :  { %v30389_v43 = vmul.f32 0.35355338, %v6096_v16  ;;  %26780 = vmatpush3.msra.mxu1 %v5103_v2  ;;  %v26870_v37 = vpop.f32.mrb[75].mxu0  ;;  %26781 = vmatprep.mubr.msk.f32.mxu1 %vm28904_vm1, %v34655_v40 }
 0x845   :  { %26789 = vmatprep.subr.mxu1 %v34655_v40  ;;  %v5407_v14 = vpop.permute.xlu0 %5406 }
 0x846   :  { %v7211_v1 = vsel %vm264_vm2, %v30389_v43, -inf }
 0x847   :  { %v6174_v49 = vpop.f32.mrb[76].mxu0  ;;  %7212 = vmax.xlane.f32.xlu0 %v7211_v1  ;;  %26782 = vmatmul.mubr.msk.f32.vlgmr.msra.gmra.mrb[66].mxu1 %vm264_vm2, %v4336_v54 }
 0x848   :  { %v30398_v38 = vmul.f32 0.35355338, %v6174_v49  ;;  %26790 = vmatpush3.msra.mxu1 %v5255_v15  ;;  %v26875_v34 = vpop.f32.mrb[77].mxu0  ;;  %26791 = vmatprep.mubr.msk.f32.mxu1 %vm28904_vm1, %v34655_v40 }
 0x849   :  { %26799 = vmatprep.subr.mxu1 %v34655_v40 }
 0x84a   :  { %v7214_v42 = vsel %vm264_vm2, %v30398_v38, -inf }
 0x84b   :  { %v6252_v41 = vpop.f32.mrb[78].mxu0  ;;  %7215 = vmax.xlane.f32.xlu0 %v7214_v42  ;;  %26792 = vmatmul.mubr.msk.f32.vlgmr.msra.gmra.mrb[68].mxu1 %vm264_vm2, %v4338_v51 }
 0x84c   :  { %v30407_v31 = vmul.f32 0.35355338, %v6252_v41  ;;  %26800 = vmatpush3.msra.mxu1 %v5407_v14  ;;  %v26880_v57 = vpop.f32.mrb[79].mxu0  ;;  %26801 = vmatprep.mubr.msk.f32.mxu1 %vm28904_vm1, %v34655_v40 }
 0x84e   :  { %v7217_v30 = vsel %vm264_vm2, %v30407_v31, -inf }
 0x84f   :  { %v6330_v56 = vpop.f32.mrb[80].mxu0  ;;  %7218 = vmax.xlane.f32.xlu1 %v7217_v30  ;;  %26802 = vmatmul.mubr.msk.f32.vlgmr.msra.gmra.mrb[70].mxu1 %vm264_vm2, %v4340_v39 }
 0x850   :  { %v30415_v15 = vmul.f32 0.35355338, %v6330_v56  ;;  %v26885_v52 = vpop.f32.mrb[81].mxu0 }
 0x852   :  { %v7220_v45 = vsel %vm264_vm2, %v30415_v15, -inf }
 0x853   :  { %v6408_v20 = vpop.f32.mrb[82].mxu0  ;;  %7221 = vmax.xlane.f32.xlu0 %v7220_v45 }
 0x854   :  { %v30419_v17 = vmul.f32 0.35355338, %v6408_v20  ;;  %v26890_v18 = vpop.f32.mrb[83].mxu0 }
 0x856   :  { %v7223_v5 = vsel %vm264_vm2, %v30419_v17, -inf }
 0x857   :  { %v6486_v33 = vpop.f32.mrb[84].mxu0  ;;  %7224 = vmax.xlane.f32.xlu1 %v7223_v5 }
 0x858   :  { %v30423_v50 = vmul.f32 0.35355338, %v6486_v33  ;;  %v26895_v19 = vpop.f32.mrb[85].mxu0 }
 0x85a   :  { %v7226_v21 = vsel %vm264_vm2, %v30423_v50, -inf }
 0x85b   :  { %v6564_v36 = vpop.f32.mrb[86].mxu0  ;;  %7227 = vmax.xlane.f32.xlu0 %v7226_v21 }
 0x85c   :  { %v30427_v46 = vmul.f32 0.35355338, %v6564_v36  ;;  %v26900_v24 = vpop.f32.mrb[87].mxu0 }
 0x85e   :  { %v7229_v61 = vsel %vm264_vm2, %v30427_v46, -inf }
 0x85f   :  { %v6642_v60 = vpop.f32.mrb[88].mxu0  ;;  %7230 = vmax.xlane.f32.xlu1 %v7229_v61 }
 0x860   :  { %v30431_v2 = vmul.f32 0.35355338, %v6642_v60  ;;  %v26905_v47 = vpop.f32.mrb[89].mxu0  ;;  %v258_v60 = vld [vmem:[%s34666_s29 + $0x8] sm:$0xff] }
 0x861   :  { %26809 = vmatprep.subr.mxu1 %v258_v60  ;;  %v34667_v47 = vld [vmem:[#allocation12_spill] sm:$0xff] }
 0x862   :  { %v7232_v22 = vsel %vm264_vm2, %v30431_v2, -inf  ;;  %26810 = vmatpush3.msra.mxu1 %v258_v60 }
 0x863   :  { %v6720_v44 = vpop.f32.mrb[90].mxu0  ;;  %7233 = vmax.xlane.f32.xlu0 %v7232_v22  ;;  %v30475_v22 = vld [vmem:[%s34666_s29] sm:$0xff] }
 0x864   :  { %v30435_v16 = vmul.f32 0.35355338, %v6720_v44  ;;  %v26910_v37 = vpop.f32.mrb[91].mxu0  ;;  %26835 = vmatprep.subr.mxu1 %v30475_v22  ;;  %v30478_v44 = vpop.permute.xlu1 %7612 }
 0x865   :  { %v30480_v37 = vpop.permute.xlu0 %7384 }
 0x866   :  { %v7235_v54 = vsel %vm264_vm2, %v30435_v16, -inf }
 0x867   :  { %v6798_v62 = vpop.f32.mrb[92].mxu0  ;;  %7236 = vmax.xlane.f32.xlu1 %v7235_v54 }
 0x868   :  { %v30439_v1 = vmul.f32 0.35355338, %v6798_v62  ;;  %v26915_v49 = vpop.f32.mrb[93].mxu0  ;;  %v30482_v54 = vpop.permute.xlu1 %7688 }
 0x869   :  { %v30484_v62 = vpop.permute.xlu0 %7536 }
 0x86a   :  { %v7238_v34 = vsel %vm264_vm2, %v30439_v1, -inf }
 0x86b   :  { %v6876_v51 = vpop.f32.mrb[94].mxu0  ;;  %7239 = vmax.xlane.f32.xlu0 %v7238_v34 }
 0x86c   :  { %v30443_v23 = vmul.f32 0.35355338, %v6876_v51  ;;  %v26920_v42 = vpop.f32.mrb[95].mxu0  ;;  %v30486_v49 = vpop.permute.xlu1 %7840 }
 0x86d   :  { %v30488_v34 = vpop.permute.xlu0 %7764 }
 0x86e   :  { %v7241_v14 = vsel %vm264_vm2, %v30443_v23, -inf }
 0x86f   :  { %v6954_v41 = vpop.f32.mrb[96].mxu0  ;;  %7242 = vmax.xlane.f32.xlu1 %v7241_v14 }
 0x870   :  { %v30447_v57 = vmul.f32 0.35355338, %v6954_v41  ;;  %v26925_v39 = vpop.f32.mrb[97].mxu0  ;;  %v30490_v51 = vpop.permute.xlu1 %7992 }
 0x871   :  { %v30492_v42 = vpop.permute.xlu0 %7916 }
 0x872   :  { %v7244_v30 = vsel %vm264_vm2, %v30447_v57, -inf }
 0x873   :  { %7245 = vmax.xlane.f32.xlu0 %v7244_v30  ;;  %v7032_v56 = vpop.f32.mrb[98].mxu0 }
 0x874   :  { %v30451_v52 = vmul.f32 0.35355338, %v7032_v56  ;;  %v26930_v45 = vpop.f32.mrb[99].mxu0  ;;  %v30494_v14 = vpop.permute.xlu1 %8144 }
 0x875   :  { %34668 = vst [vmem:[#allocation7_spill] sm:$0xff] %v30494_v14  ;;  %v30496_v41 = vpop.permute.xlu0 %8068 }
 0x876   :  { %v7247_v20 = vsel %vm264_vm2, %v30451_v52, -inf  ;;  %34669 = vst [vmem:[#allocation5_spill] sm:$0xff] %v30496_v41 }
 0x877   :  { %v7110_v18 = vpop.f32.mrb[100].mxu0  ;;  %7248 = vmax.xlane.f32.xlu1 %v7247_v20 }
 0x878   :  { %v30455_v5 = vmul.f32 0.35355338, %v7110_v18  ;;  %v26935_v33 = vpop.f32.mrb[101].mxu0 }
 0x87a   :  { %v7250_v19 = vsel %vm264_vm2, %v30455_v5, -inf }
 0x87b   :  { %7251 = vmax.xlane.f32.xlu0 %v7250_v19  ;;  %v7188_v21 = vpop.f32.mrb[102].mxu0 }
 0x87c   :  { %v30459_v36 = vmul.f32 0.35355338, %v7188_v21  ;;  %v26940_v24 = vpop.f32.mrb[103].mxu0 }
 0x87e   :  { %v7253_v61 = vsel %vm264_vm2, %v30459_v36, -inf }
 0x87f   :  { %7254 = vmax.xlane.f32.xlu1 %v7253_v61 }
 0x890   :  { %8296 = vrot.lane.b32.xlu1 %v29186_v59, %s34577_s5 }
 0x891   :  { %8220 = vrot.lane.b32.xlu0 %v34667_v47, %s34577_s5 }
 0x895   :  { %8372 = vrot.lane.b32.xlu0 %v29170_v55, %s34577_s5 }
 0x8d0   :  { %v7210_v39 = vpop.xlane.xlu1 %7209 }
 0x8d1   :  { %v7256_v30 = vsub.f32 %v30380_v28, %v7210_v39 }
 0x8d3   :  { %v7272_v56 = vmul.f32 1.442695, %v7256_v30 }
 0x8d4   :  { %v7213_v45 = vpop.xlane.xlu0 %7212 }
 0x8d5   :  { %28351 = vpow2.f32 %v7272_v56  ;;  %v7257_v20 = vsub.f32 %v30389_v43, %v7213_v45 }
 0x8d7   :  { %v7274_v18 = vmul.f32 1.442695, %v7257_v20 }
 0x8d8   :  { %v7216_v33 = vpop.xlane.xlu0 %7215 }
 0x8d9   :  { %28353 = vpow2.f32 %v7274_v18  ;;  %v7258_v19 = vsub.f32 %v30398_v38, %v7216_v33 }
 0x8db   :  { %v7276_v21 = vmul.f32 1.442695, %v7258_v19 }
 0x8dc   :  { %v7219_v24 = vpop.xlane.xlu1 %7218 }
 0x8dd   :  { %28355 = vpow2.f32 %v7276_v21  ;;  %v7259_v61 = vsub.f32 %v30407_v31, %v7219_v24 }
 0x8df   :  { %v30502_v60 = vpop.eup %28351  ;;  %v7278_v14 = vmul.f32 1.442695, %v7259_v61 }
 0x8e0   :  { %v7222_v41 = vpop.xlane.xlu0 %7221  ;;  %v7304_v28 = vsel %vm264_vm2, %v30502_v60, 0.0 }
 0x8e1   :  { %28357 = vpow2.f32 %v7278_v14  ;;  %v7260_v43 = vsub.f32 %v30415_v15, %v7222_v41  ;;  %7305 = vadd.xlane.f32.xlu0 %v7304_v28 }
 0x8e3   :  { %v30507_v39 = vpop.eup %28353  ;;  %v7280_v30 = vmul.f32 1.442695, %v7260_v43 }
 0x8e4   :  { %v7225_v38 = vpop.xlane.xlu1 %7224  ;;  %v7307_v56 = vsel %vm264_vm2, %v30507_v39, 0.0 }
 0x8e5   :  { %28359 = vpow2.f32 %v7280_v30  ;;  %v7261_v31 = vsub.f32 %v30419_v17, %v7225_v38  ;;  %7308 = vadd.xlane.f32.xlu1 %v7307_v56 }
 0x8e7   :  { %v30512_v45 = vpop.eup %28355  ;;  %v7282_v20 = vmul.f32 1.442695, %v7261_v31 }
 0x8e8   :  { %v7228_v18 = vpop.xlane.xlu0 %7227  ;;  %v7310_v14 = vsel %vm264_vm2, %v30512_v45, 0.0 }
 0x8e9   :  { %28361 = vpow2.f32 %v7282_v20  ;;  %v7262_v15 = vsub.f32 %v30423_v50, %v7228_v18  ;;  %7311 = vadd.xlane.f32.xlu0 %v7310_v14 }
 0x8eb   :  { %v30517_v41 = vpop.eup %28357  ;;  %v7284_v33 = vmul.f32 1.442695, %v7262_v15 }
 0x8ec   :  { %v7231_v19 = vpop.xlane.xlu1 %7230  ;;  %v7313_v21 = vsel %vm264_vm2, %v30517_v41, 0.0 }
 0x8ed   :  { %28363 = vpow2.f32 %v7284_v33  ;;  %v7263_v17 = vsub.f32 %v30427_v46, %v7231_v19  ;;  %7314 = vadd.xlane.f32.xlu1 %v7313_v21 }
 0x8ef   :  { %v30522_v24 = vpop.eup %28359  ;;  %v7286_v61 = vmul.f32 1.442695, %v7263_v17 }
 0x8f0   :  { %v7234_v28 = vpop.xlane.xlu0 %7233  ;;  %v7316_v43 = vsel %vm264_vm2, %v30522_v24, 0.0 }
 0x8f1   :  { %28365 = vpow2.f32 %v7286_v61  ;;  %v7264_v50 = vsub.f32 %v30431_v2, %v7234_v28  ;;  %7317 = vadd.xlane.f32.xlu0 %v7316_v43 }
 0x8f3   :  { %v30527_v30 = vpop.eup %28361  ;;  %v7288_v38 = vmul.f32 1.442695, %v7264_v50 }
 0x8f4   :  { %v7237_v56 = vpop.xlane.xlu1 %7236  ;;  %v7319_v31 = vsel %vm264_vm2, %v30527_v30, 0.0 }
 0x8f5   :  { %28367 = vpow2.f32 %v7288_v38  ;;  %v7265_v46 = vsub.f32 %v30435_v16, %v7237_v56  ;;  %7320 = vadd.xlane.f32.xlu1 %v7319_v31 }
 0x8f7   :  { %v30532_v20 = vpop.eup %28363  ;;  %v7290_v18 = vmul.f32 1.442695, %v7265_v46 }
 0x8f8   :  { %v7240_v14 = vpop.xlane.xlu0 %7239  ;;  %v7322_v15 = vsel %vm264_vm2, %v30532_v20, 0.0 }
 0x8f9   :  { %28369 = vpow2.f32 %v7290_v18  ;;  %v7266_v2 = vsub.f32 %v30439_v1, %v7240_v14  ;;  %7323 = vadd.xlane.f32.xlu0 %v7322_v15 }
 0x8fb   :  { %v30537_v33 = vpop.eup %28365  ;;  %v7292_v19 = vmul.f32 1.442695, %v7266_v2 }
 0x8fc   :  { %v7243_v21 = vpop.xlane.xlu1 %7242  ;;  %v7325_v17 = vsel %vm264_vm2, %v30537_v33, 0.0 }
 0x8fd   :  { %28371 = vpow2.f32 %v7292_v19  ;;  %v7267_v16 = vsub.f32 %v30443_v23, %v7243_v21  ;;  %7326 = vadd.xlane.f32.xlu1 %v7325_v17 }
 0x8ff   :  { %v30542_v61 = vpop.eup %28367  ;;  %v7294_v28 = vmul.f32 1.442695, %v7267_v16 }
 0x900   :  { %v7246_v43 = vpop.xlane.xlu0 %7245  ;;  %v7328_v50 = vsel %vm264_vm2, %v30542_v61, 0.0 }
 0x901   :  { %28373 = vpow2.f32 %v7294_v28  ;;  %v7268_v1 = vsub.f32 %v30447_v57, %v7246_v43  ;;  %7329 = vadd.xlane.f32.xlu0 %v7328_v50 }
 0x903   :  { %v30547_v38 = vpop.eup %28369  ;;  %v7296_v56 = vmul.f32 1.442695, %v7268_v1 }
 0x904   :  { %v7249_v31 = vpop.xlane.xlu1 %7248  ;;  %v7331_v46 = vsel %vm264_vm2, %v30547_v38, 0.0 }
 0x905   :  { %28375 = vpow2.f32 %v7296_v56  ;;  %v7269_v23 = vsub.f32 %v30451_v52, %v7249_v31  ;;  %7332 = vadd.xlane.f32.xlu1 %v7331_v46 }
 0x906   :  { %v4414_v18 = vpop.f32.mrb[56].mxu1 }
 0x907   :  { %v30552_v14 = vpop.eup %28371  ;;  %v7298_v15 = vmul.f32 1.442695, %v7269_v23  ;;  %v26733_v2 = vpop.f32.mrb[57].mxu1  ;;  %26811 = vmatprep.mubr.msk.f32.mxu1 %vm264_vm2, %v4414_v18 }
 0x908   :  { %26812 = vmatmul.mubr.msk.f32.vlgmr.msra.gmra.mrb[72].mxu1 %vm264_vm2, %v30292_v9  ;;  %v7252_v57 = vpop.xlane.xlu0 %7251  ;;  %v7334_v19 = vsel %vm264_vm2, %v30552_v14, 0.0 }
 0x909   :  { %28377 = vpow2.f32 %v7298_v15  ;;  %v7270_v21 = vsub.f32 %v30455_v5, %v7252_v57  ;;  %7335 = vadd.xlane.f32.xlu0 %v7334_v19  ;;  %26836 = vmatpush3.msra.mxu1 %v30475_v22 }
 0x90a   :  { %v4566_v52 = vpop.f32.mrb[58].mxu1  ;;  %26941 = vmatprep.subr.mxu1 %v34655_v40 }
 0x90b   :  { %v30562_v17 = vpop.eup %28373  ;;  %v7300_v16 = vmul.f32 1.442695, %v7270_v21  ;;  %v26743_v28 = vpop.f32.mrb[59].mxu1  ;;  %26814 = vmatprep.mubr.msk.f32.mxu1 %vm264_vm2, %v4566_v52 }
 0x90c   :  { %v7255_v9 = vpop.xlane.xlu1 %7254  ;;  %26815 = vmatmul.mubr.msk.f32.gmra.mrb[74].mxu1 %vm264_vm2, %v30347_v63  ;;  %v7337_v43 = vsel %vm264_vm2, %v30562_v17, 0.0 }
 0x90d   :  { %28379 = vpow2.f32 %v7300_v16  ;;  %v7271_v5 = vsub.f32 %v30459_v36, %v7255_v9  ;;  %7338 = vadd.xlane.f32.xlu1 %v7337_v43  ;;  %v34670_v9 = vld [vmem:[#allocation24_spill] sm:$0xff]  ;;  %v34672_v43 = vld [vmem:[#allocation25_spill] sm:$0xff] }
 0x90e   :  { %v4718_v22 = vpop.f32.mrb[60].mxu1 }
 0x90f   :  { %v30570_v50 = vpop.eup %28375  ;;  %v7302_v1 = vmul.f32 1.442695, %v7271_v5  ;;  %v26753_v56 = vpop.f32.mrb[61].mxu1  ;;  %26817 = vmatprep.mubr.msk.f32.mxu1 %vm264_vm2, %v4718_v22  ;;  %v34675_v5 = vld [vmem:[#allocation18_spill] sm:$0xff]  ;;  %v34677_v22 = vld [vmem:[#allocation19_spill] sm:$0xff] }
 0x910   :  { %26818 = vmatmul.mubr.msk.f32.gmra.mrb[76].mxu1 %vm264_vm2, %v30349_v26  ;;  %v7340_v63 = vsel %vm264_vm2, %v30570_v50, 0.0  ;;  %v34679_v56 = vld [vmem:[#allocation20_spill] sm:$0xff] }
 0x911   :  { %28381 = vpow2.f32 %v7302_v1  ;;  %7341 = vadd.xlane.f32.xlu0 %v7340_v63  ;;  %v34678_v1 = vld [vmem:[#allocation28_spill] sm:$0xff]  ;;  %v34680_v63 = vld [vmem:[#allocation29_spill] sm:$0xff] }
 0x912   :  { %v4870_v31 = vpop.f32.mrb[62].mxu1 }
 0x913   :  { %v30577_v46 = vpop.eup %28377  ;;  %v26763_v36 = vpop.f32.mrb[63].mxu1  ;;  %26820 = vmatprep.mubr.msk.f32.mxu1 %vm264_vm2, %v4870_v31  ;;  %v34681_v31 = vld [vmem:[#allocation21_spill] sm:$0xff] }
 0x914   :  { %26821 = vmatmul.mubr.msk.f32.gmra.mrb[78].mxu1 %vm264_vm2, %v30351_v25  ;;  %v7343_v23 = vsel %vm264_vm2, %v30577_v46, 0.0  ;;  %v34682_v36 = vld [vmem:[#allocation30_spill] sm:$0xff] }
 0x915   :  { %7344 = vadd.xlane.f32.xlu1 %v7343_v23  ;;  %v34683_v23 = vld [vmem:[#allocation22_spill] sm:$0xff] }
 0x916   :  { %v5022_v18 = vpop.f32.mrb[64].mxu1 }
 0x917   :  { %v30584_v26 = vpop.eup %28379  ;;  %v26773_v15 = vpop.f32.mrb[65].mxu1  ;;  %26823 = vmatprep.mubr.msk.f32.mxu1 %vm264_vm2, %v5022_v18  ;;  %v34684_v18 = vld [vmem:[#allocation31_spill] sm:$0xff] }
 0x918   :  { %26824 = vmatmul.mubr.msk.f32.gmra.mrb[80].mxu1 %vm264_vm2, %v30353_v3  ;;  %v7346_v2 = vsel %vm264_vm2, %v30584_v26, 0.0  ;;  %v34685_v15 = vld [vmem:[#allocation23_spill] sm:$0xff] }
 0x919   :  { %7347 = vadd.xlane.f32.xlu1 %v7346_v2  ;;  %v30696_v2 = vpop.permute.xlu0 %8220 }
 0x91a   :  { %v5174_v57 = vpop.f32.mrb[66].mxu1 }
 0x91b   :  { %v30591_v19 = vpop.eup %28381  ;;  %v26783_v25 = vpop.f32.mrb[67].mxu1  ;;  %26826 = vmatprep.mubr.msk.f32.mxu1 %vm264_vm2, %v5174_v57 }
 0x91c   :  { %26827 = vmatmul.mubr.msk.f32.gmra.mrb[82].mxu1 %vm264_vm2, %v30355_v7  ;;  %v7349_v21 = vsel %vm264_vm2, %v30591_v19, 0.0  ;;  %v34671_v7 = vld [vmem:[#allocation16_spill] sm:$0xff]  ;;  %v30708_v25 = vpop.permute.xlu1 %8296 }
 0x91d   :  { %7350 = vadd.xlane.f32.xlu0 %v7349_v21  ;;  %v30702_v57 = vpop.permute.xlu0 %8372 }
 0x91e   :  { %v5326_v52 = vpop.f32.mrb[68].mxu1 }
 0x91f   :  { %v26793_v16 = vpop.f32.mrb[69].mxu1  ;;  %26829 = vmatprep.mubr.msk.f32.mxu1 %vm264_vm2, %v5326_v52 }
 0x920   :  { %26830 = vmatmul.mubr.msk.f32.gmra.mrb[84].mxu1 %vm264_vm2, %v30360_v10  ;;  %v34673_v10 = vld [vmem:[#allocation17_spill] sm:$0xff] }
 0x922   :  { %v5478_v3 = vpop.f32.mrb[70].mxu1 }
 0x923   :  { %v26803_v28 = vpop.f32.mrb[71].mxu1  ;;  %26832 = vmatprep.mubr.msk.f32.mxu1 %vm264_vm2, %v5478_v3 }
 0x924   :  { %26833 = vmatmul.mubr.msk.f32.gmra.mrb[86].mxu1 %vm264_vm2, %v30373_v0  ;;  %v34674_v0 = vld [vmem:[#allocation26_spill] sm:$0xff] }
 0x925   :  { %26837 = vmatprep.mubr.msk.f32.mxu1 %vm264_vm2, %v34670_v9 }
 0x928   :  { %26838 = vmatmul.mubr.msk.f32.vlgmr.msra.gmra.mrb[72].mxu1 %vm264_vm2, %v34671_v7 }
 0x929   :  { %26942 = vmatpush3.msra.mxu1 %v30480_v37  ;;  %26840 = vmatprep.mubr.msk.f32.mxu1 %vm264_vm2, %v34672_v43  ;;  %v34676_v37 = vld [vmem:[#allocation27_spill] sm:$0xff] }
 0x92a   :  { %8448 = vrot.lane.b32.xlu1 %v29184_v58, %s34577_s5  ;;  %26951 = vmatprep.subr.mxu1 %v34655_v40 }
 0x92c   :  { %26841 = vmatmul.mubr.msk.f32.gmra.mrb[74].mxu1 %vm264_vm2, %v34673_v10 }
 0x92d   :  { %26843 = vmatprep.mubr.msk.f32.mxu1 %vm264_vm2, %v34674_v0 }
 0x92e   :  { %8811 = vrot.lane.b32.xlu1 %v34657_v32, %s34575_s11 }
 0x930   :  { %26844 = vmatmul.mubr.msk.f32.gmra.mrb[76].mxu1 %vm264_vm2, %v34675_v5 }
 0x931   :  { %26846 = vmatprep.mubr.msk.f32.mxu1 %vm264_vm2, %v34676_v37 }
 0x932   :  { %8889 = vrot.lane.b32.xlu1 %v34656_v4, %s34575_s11 }
 0x933   :  { %8524 = vrot.lane.b32.xlu0 %v29168_v53, %s34577_s5 }
 0x934   :  { %26847 = vmatmul.mubr.msk.f32.gmra.mrb[78].mxu1 %vm264_vm2, %v34677_v22 }
 0x935   :  { %26849 = vmatprep.mubr.msk.f32.mxu1 %vm264_vm2, %v34678_v1  ;;  %v34686_v1 = vld [vmem:[#allocation5_spill] sm:$0xff] }
 0x936   :  { %8967 = vrot.lane.b32.xlu1 %v29128_v29, %s34575_s11 }
 0x937   :  { %8809 = vrot.lane.b32.xlu0 %v34657_v32, %s34573_s28 }
 0x938   :  { %26850 = vmatmul.mubr.msk.f32.gmra.mrb[80].mxu1 %vm264_vm2, %v34679_v56 }
 0x939   :  { %26852 = vmatprep.mubr.msk.f32.mxu1 %vm264_vm2, %v34680_v63  ;;  %v34687_v63 = vld [vmem:[#allocation7_spill] sm:$0xff] }
 0x93a   :  { %9045 = vrot.lane.b32.xlu1 %v34658_v6, %s34575_s11 }
 0x93b   :  { %8887 = vrot.lane.b32.xlu0 %v34656_v4, %s34573_s28 }
 0x93c   :  { %26853 = vmatmul.mubr.msk.f32.gmra.mrb[82].mxu1 %vm264_vm2, %v34681_v31 }
 0x93d   :  { %26855 = vmatprep.mubr.msk.f32.mxu1 %vm264_vm2, %v34682_v36 }
 0x93e   :  { %9123 = vrot.lane.b32.xlu1 %v34659_v48, %s34575_s11 }
 0x93f   :  { %8965 = vrot.lane.b32.xlu0 %v29128_v29, %s34573_s28 }
 0x940   :  { %26856 = vmatmul.mubr.msk.f32.gmra.mrb[84].mxu1 %vm264_vm2, %v34683_v23 }
 0x941   :  { %26858 = vmatprep.mubr.msk.f32.mxu1 %vm264_vm2, %v34684_v18 }
 0x942   :  { %9201 = vrot.lane.b32.xlu1 %v34663_v8, %s34575_s11 }
 0x943   :  { %9043 = vrot.lane.b32.xlu0 %v34658_v6, %s34573_s28 }
 0x944   :  { %26859 = vmatmul.mubr.msk.f32.gmra.mrb[86].mxu1 %vm264_vm2, %v34685_v15 }
 0x945   :  { %26943 = vmatprep.mubr.msk.f32.mxu1 %vm28904_vm1, %v34655_v40 }
 0x946   :  { %9279 = vrot.lane.b32.xlu1 %v34660_v12, %s34575_s11 }
 0x947   :  { %9121 = vrot.lane.b32.xlu0 %v34659_v48, %s34573_s28 }
 0x94a   :  { %9357 = vrot.lane.b32.xlu1 %v34664_v11, %s34575_s11 }
 0x94b   :  { %9199 = vrot.lane.b32.xlu0 %v34663_v8, %s34573_s28 }
 0x94e   :  { %9435 = vrot.lane.b32.xlu1 %v34661_v35, %s34575_s11 }
 0x94f   :  { %9277 = vrot.lane.b32.xlu0 %v34660_v12, %s34573_s28 }
 0x952   :  { %9433 = vrot.lane.b32.xlu1 %v34661_v35, %s34573_s28 }
 0x953   :  { %9355 = vrot.lane.b32.xlu0 %v34664_v11, %s34573_s28 }
 0x956   :  { %9591 = vrot.lane.b32.xlu1 %v34662_v13, %s34575_s11 }
 0x957   :  { %9513 = vrot.lane.b32.xlu0 %v34665_v27, %s34575_s11 }
 0x95a   :  { %9589 = vrot.lane.b32.xlu1 %v34662_v13, %s34573_s28 }
 0x95b   :  { %9511 = vrot.lane.b32.xlu0 %v34665_v27, %s34573_s28 }
 0x95e   :  { %9747 = vrot.lane.b32.xlu1 %v29186_v59, %s34575_s11 }
 0x95f   :  { %9669 = vrot.lane.b32.xlu0 %v34667_v47, %s34575_s11 }
 0x962   :  { %9745 = vrot.lane.b32.xlu1 %v29186_v59, %s34573_s28 }
 0x963   :  { %9667 = vrot.lane.b32.xlu0 %v34667_v47, %s34573_s28 }
 0x966   :  { %9903 = vrot.lane.b32.xlu1 %v29184_v58, %s34575_s11 }
 0x967   :  { %9825 = vrot.lane.b32.xlu0 %v29170_v55, %s34575_s11 }
 0x96a   :  { %9901 = vrot.lane.b32.xlu1 %v29184_v58, %s34573_s28 }
 0x96b   :  { %9823 = vrot.lane.b32.xlu0 %v29170_v55, %s34573_s28 }
 0x96e   :  { %10249 = vrot.lane.b32.xlu1 %v34657_v32, %s34571_s10  ;;  %v7306_v21 = vpop.xlane.xlu0 %7305 }
 0x96f   :  { %28383 = vrcp.f32 %v7306_v21  ;;  %9981 = vrot.lane.b32.xlu0 %v29168_v53, %s34575_s11 }
 0x972   :  { %v7309_v52 = vpop.xlane.xlu1 %7308 }
 0x973   :  { %28385 = vrcp.f32 %v7309_v52  ;;  %9979 = vrot.lane.b32.xlu0 %v29168_v53, %s34573_s28  ;;  %s34694_s28 = sld [smem:[#allocation56_spill]] }
 0x976   :  { %v7312_v16 = vpop.xlane.xlu0 %7311 }
 0x977   :  { %28387 = vrcp.f32 %v7312_v16  ;;  %10325 = vrot.lane.b32.xlu0 %v34656_v4, %s34571_s10 }
 0x979   :  { %v28384_v3 = vpop.eup %28383 }
 0x97a   :  { %v7368_v28 = vmul.f32 %v28384_v3, %v30502_v60  ;;  %v7315_v9 = vpop.xlane.xlu1 %7314 }
 0x97b   :  { %28389 = vrcp.f32 %v7315_v9 }
 0x97c   :  { %26944 = vmatmul.mubr.msk.f32.vlgmr.msra.gmra.mrb[88].mxu1 %vm264_vm2, %v7368_v28 }
 0x97d   :  { %v28386_v32 = vpop.eup %28385  ;;  %26952 = vmatpush3.msra.mxu1 %v30484_v62  ;;  %26953 = vmatprep.mubr.msk.f32.mxu1 %vm28904_vm1, %v34655_v40 }
 0x97e   :  { %v7318_v7 = vpop.xlane.xlu0 %7317  ;;  %v7369_v43 = vmul.f32 %v28386_v32, %v30507_v39  ;;  %26961 = vmatprep.subr.mxu1 %v34655_v40 }
 0x97f   :  { %28391 = vrcp.f32 %v7318_v7 }
 0x980   :  { %26949 = vmatmul.mubr.msk.f32.vlgmr.msra.gmra.mrb[104].mxu0 %vm264_vm2, %v7369_v43 }
 0x981   :  { %v28388_v4 = vpop.eup %28387  ;;  %26957 = vmatpush3.msra.mxu0 %v30478_v44  ;;  %26958 = vmatprep.mubr.msk.f32.mxu0 %vm28904_vm1, %v34655_v40 }
 0x982   :  { %v7321_v60 = vpop.xlane.xlu1 %7320  ;;  %v7370_v62 = vmul.f32 %v28388_v4, %v30512_v45  ;;  %26966 = vmatprep.subr.mxu0 %v34655_v40 }
 0x983   :  { %28393 = vrcp.f32 %v7321_v60 }
 0x984   :  { %26954 = vmatmul.mubr.msk.f32.vlgmr.msra.gmra.mrb[90].mxu1 %vm264_vm2, %v7370_v62 }
 0x985   :  { %v28390_v39 = vpop.eup %28389  ;;  %26962 = vmatpush3.msra.mxu1 %v30482_v54  ;;  %26963 = vmatprep.mubr.msk.f32.mxu1 %vm28904_vm1, %v34655_v40 }
 0x986   :  { %v7324_v10 = vpop.xlane.xlu0 %7323  ;;  %v7371_v44 = vmul.f32 %v28390_v39, %v30517_v41  ;;  %26971 = vmatprep.subr.mxu1 %v34655_v40 }
 0x987   :  { %28395 = vrcp.f32 %v7324_v10 }
 0x988   :  { %26959 = vmatmul.mubr.msk.f32.vlgmr.msra.gmra.mrb[106].mxu0 %vm264_vm2, %v7371_v44 }
 0x989   :  { %v28392_v45 = vpop.eup %28391  ;;  %26967 = vmatpush3.msra.mxu0 %v30488_v34  ;;  %26968 = vmatprep.mubr.msk.f32.mxu0 %vm28904_vm1, %v34655_v40 }
 0x98a   :  { %v7327_v0 = vpop.xlane.xlu1 %7326  ;;  %v7372_v54 = vmul.f32 %v28392_v45, %v30522_v24  ;;  %26976 = vmatprep.subr.mxu0 %v34655_v40 }
 0x98b   :  { %28397 = vrcp.f32 %v7327_v0 }
 0x98c   :  { %26964 = vmatmul.mubr.msk.f32.vlgmr.msra.gmra.mrb[92].mxu1 %vm264_vm2, %v7372_v54 }
 0x98d   :  { %v28394_v41 = vpop.eup %28393  ;;  %26972 = vmatpush3.msra.mxu1 %v30486_v49  ;;  %26973 = vmatprep.mubr.msk.f32.mxu1 %vm28904_vm1, %v34655_v40 }
 0x98e   :  { %v7330_v5 = vpop.xlane.xlu0 %7329  ;;  %v7373_v34 = vmul.f32 %v28394_v41, %v30527_v30  ;;  %26981 = vmatprep.subr.mxu1 %v34655_v40 }
 0x98f   :  { %28399 = vrcp.f32 %v7330_v5 }
 0x990   :  { %26969 = vmatmul.mubr.msk.f32.vlgmr.msra.gmra.mrb[108].mxu0 %vm264_vm2, %v7373_v34 }
 0x991   :  { %v28396_v24 = vpop.eup %28395  ;;  %26977 = vmatpush3.msra.mxu0 %v30492_v42  ;;  %26978 = vmatprep.mubr.msk.f32.mxu0 %vm28904_vm1, %v34655_v40 }
 0x992   :  { %v7333_v37 = vpop.xlane.xlu1 %7332  ;;  %v7374_v49 = vmul.f32 %v28396_v24, %v30532_v20  ;;  %26986 = vmatprep.subr.mxu0 %v34655_v40 }
 0x993   :  { %28401 = vrcp.f32 %v7333_v37 }
 0x994   :  { %26974 = vmatmul.mubr.msk.f32.vlgmr.msra.gmra.mrb[94].mxu1 %vm264_vm2, %v7374_v49 }
 0x995   :  { %v28398_v30 = vpop.eup %28397  ;;  %26982 = vmatpush3.msra.mxu1 %v30490_v51  ;;  %26983 = vmatprep.mubr.msk.f32.mxu1 %vm28904_vm1, %v34655_v40 }
 0x996   :  { %v7336_v22 = vpop.xlane.xlu0 %7335  ;;  %v7375_v42 = vmul.f32 %v28398_v30, %v30537_v33  ;;  %26991 = vmatprep.subr.mxu1 %v34655_v40 }
 0x997   :  { %28403 = vrcp.f32 %v7336_v22 }
 0x998   :  { %26979 = vmatmul.mubr.msk.f32.vlgmr.msra.gmra.mrb[110].mxu0 %vm264_vm2, %v7375_v42 }
 0x999   :  { %v28400_v20 = vpop.eup %28399  ;;  %26987 = vmatpush3.msra.mxu0 %v34686_v1  ;;  %26988 = vmatprep.mubr.msk.f32.mxu0 %vm28904_vm1, %v34655_v40 }
 0x99a   :  { %v7339_v56 = vpop.xlane.xlu1 %7338  ;;  %v7376_v51 = vmul.f32 %v28400_v20, %v30542_v61  ;;  %26996 = vmatprep.subr.mxu0 %v34655_v40 }
 0x99b   :  { %28405 = vrcp.f32 %v7339_v56 }
 0x99c   :  { %26984 = vmatmul.mubr.msk.f32.vlgmr.msra.gmra.mrb[96].mxu1 %vm264_vm2, %v7376_v51 }
 0x99d   :  { %v28402_v33 = vpop.eup %28401  ;;  %26992 = vmatpush3.msra.mxu1 %v34687_v63  ;;  %26993 = vmatprep.mubr.msk.f32.mxu1 %vm28904_vm1, %v34655_v40 }
 0x99e   :  { %v7342_v31 = vpop.xlane.xlu0 %7341  ;;  %v7377_v36 = vmul.f32 %v28402_v33, %v30547_v38  ;;  %27001 = vmatprep.subr.mxu1 %v34655_v40 }
 0x99f   :  { %28407 = vrcp.f32 %v7342_v31 }
 0x9a0   :  { %26989 = vmatmul.mubr.msk.f32.vlgmr.msra.gmra.mrb[112].mxu0 %vm264_vm2, %v7377_v36 }
 0x9a1   :  { %v28404_v61 = vpop.eup %28403  ;;  %26997 = vmatpush3.msra.mxu0 %v30696_v2  ;;  %26998 = vmatprep.mubr.msk.f32.mxu0 %vm28904_vm1, %v34655_v40 }
 0x9a2   :  { %v7345_v23 = vpop.xlane.xlu1 %7344  ;;  %v7378_v18 = vmul.f32 %v28404_v61, %v30552_v14  ;;  %27006 = vmatprep.subr.mxu0 %v34655_v40 }
 0x9a3   :  { %28409 = vrcp.f32 %v7345_v23 }
 0x9a4   :  { %26994 = vmatmul.mubr.msk.f32.vlgmr.msra.gmra.mrb[98].mxu1 %vm264_vm2, %v7378_v18 }
 0x9a5   :  { %v28406_v38 = vpop.eup %28405  ;;  %27002 = vmatpush3.msra.mxu1 %v30708_v25  ;;  %27003 = vmatprep.mubr.msk.f32.mxu1 %vm28904_vm1, %v34655_v40 }
 0x9a6   :  { %v7348_v15 = vpop.xlane.xlu1 %7347  ;;  %v7379_v2 = vmul.f32 %v28406_v38, %v30562_v17  ;;  %27011 = vmatprep.subr.mxu1 %v34655_v40  ;;  %v259_v17 = vld [vmem:[%s34666_s29 + $0x10] sm:$0xff] }
 0x9a7   :  { %28411 = vrcp.f32 %v7348_v15 }
 0x9a8   :  { %26999 = vmatmul.mubr.msk.f32.vlgmr.msra.gmra.mrb[114].mxu0 %vm264_vm2, %v7379_v2 }
 0x9a9   :  { %v28408_v14 = vpop.eup %28407  ;;  %27007 = vmatpush3.msra.mxu0 %v30702_v57  ;;  %27008 = vmatprep.mubr.msk.f32.mxu0 %vm28904_vm1, %v34655_v40 }
 0x9aa   :  { %v8449_v21 = vpop.permute.xlu1 %8448  ;;  %v7351_v52 = vpop.xlane.xlu0 %7350  ;;  %v7380_v25 = vmul.f32 %v28408_v14, %v30570_v50  ;;  %27016 = vmatprep.subr.mxu0 %v34655_v40 }
 0x9ab   :  { %28413 = vrcp.f32 %v7351_v52 }
 0x9ac   :  { %27004 = vmatmul.mubr.msk.f32.vlgmr.msra.gmra.mrb[100].mxu1 %vm264_vm2, %v7380_v25 }
 0x9ad   :  { %v28410_v16 = vpop.eup %28409  ;;  %27012 = vmatpush3.msra.mxu1 %v8449_v21  ;;  %27013 = vmatprep.mubr.msk.f32.mxu1 %vm28904_vm1, %v34655_v40 }
 0x9ae   :  { %v8812_v57 = vpop.permute.xlu1 %8811  ;;  %v8525_v3 = vpop.permute.xlu0 %8524  ;;  %v7381_v28 = vmul.f32 %v28410_v16, %v30577_v46  ;;  %27021 = vmatprep.subr.mxu1 %v259_v17 }
 0x9b0   :  { %27009 = vmatmul.mubr.msk.f32.vlgmr.msra.gmra.mrb[116].mxu0 %vm264_vm2, %v7381_v28 }
 0x9b1   :  { %v28412_v50 = vpop.eup %28411  ;;  %27017 = vmatpush3.msra.mxu0 %v8525_v3  ;;  %27018 = vmatprep.mubr.msk.f32.mxu0 %vm28904_vm1, %v34655_v40 }
 0x9b2   :  { %v8890_v9 = vpop.permute.xlu1 %8889  ;;  %v8810_v32 = vpop.permute.xlu0 %8809  ;;  %v7382_v7 = vmul.f32 %v28412_v50, %v30584_v26  ;;  %27047 = vmatprep.subr.mxu0 %v34655_v40 }
 0x9b4   :  { %27014 = vmatmul.mubr.msk.f32.vlgmr.msra.gmra.mrb[102].mxu1 %vm264_vm2, %v7382_v7 }
 0x9b5   :  { %v28414_v43 = vpop.eup %28413  ;;  %27022 = vmatpush3.msra.mxu1 %v259_v17 }
 0x9b6   :  { %v8968_v4 = vpop.permute.xlu1 %8967  ;;  %v8888_v46 = vpop.permute.xlu0 %8887  ;;  %v7383_v60 = vmul.f32 %v28414_v43, %v30591_v19  ;;  %27087 = vmatprep.subr.mxu1 %v34655_v40 }
 0x9b8   :  { %27019 = vmatmul.mubr.msk.f32.vlgmr.msra.gmra.mrb[118].mxu0 %vm264_vm2, %v7383_v60 }
 0x9b9   :  { %27048 = vmatpush3.xpose.msk.msra.mxu0 %vm264_vm2, %v8812_v57  ;;  %27049 = vmatprep.mubr.msk.f32.mxu0 %vm28904_vm1, %v34655_v40 }
 0x9ba   :  { %v8966_v26 = vpop.permute.xlu0 %8965  ;;  %27052 = vmatprep.subr.mxu0 %v34655_v40  ;;  %v9046_v62 = vpop.permute.xlu1 %9045 }
 0x9bc   :  { %27050 = vmatmul.mubr.msk.f32.vlgmr.msra.gmra.mrb[120].mxu0 %vm264_vm2, %v8810_v32 }
 0x9bd   :  { %27053 = vmatpush3.xpose.msk.msra.mxu0 %vm264_vm2, %v8890_v9  ;;  %27054 = vmatprep.mubr.msk.f32.mxu0 %vm28904_vm1, %v34655_v40 }
 0x9be   :  { %v9044_v19 = vpop.permute.xlu0 %9043  ;;  %27057 = vmatprep.subr.mxu0 %v34655_v40  ;;  %v9124_v39 = vpop.permute.xlu1 %9123 }
 0x9c0   :  { %27055 = vmatmul.mubr.msk.f32.vlgmr.msra.gmra.mrb[122].mxu0 %vm264_vm2, %v8888_v46 }
 0x9c1   :  { %27058 = vmatpush3.xpose.msk.msra.mxu0 %vm264_vm2, %v8968_v4  ;;  %27059 = vmatprep.mubr.msk.f32.mxu0 %vm28904_vm1, %v34655_v40 }
 0x9c2   :  { %v9122_v10 = vpop.permute.xlu0 %9121  ;;  %27062 = vmatprep.subr.mxu0 %v34655_v40  ;;  %v9202_v45 = vpop.permute.xlu1 %9201 }
 0x9c4   :  { %27060 = vmatmul.mubr.msk.f32.vlgmr.msra.gmra.mrb[124].mxu0 %vm264_vm2, %v8966_v26 }
 0x9c5   :  { %27063 = vmatpush3.xpose.msk.msra.mxu0 %vm264_vm2, %v9046_v62  ;;  %27064 = vmatprep.mubr.msk.f32.mxu0 %vm28904_vm1, %v34655_v40 }
 0x9c6   :  { %v9200_v44 = vpop.permute.xlu0 %9199  ;;  %27067 = vmatprep.subr.mxu0 %v34655_v40  ;;  %v9280_v54 = vpop.permute.xlu1 %9279 }
 0x9c8   :  { %27065 = vmatmul.mubr.msk.f32.vlgmr.msra.gmra.mrb[126].mxu0 %vm264_vm2, %v9044_v19 }
 0x9c9   :  { %27068 = vmatpush3.xpose.msk.msra.mxu0 %vm264_vm2, %v9124_v39  ;;  %27069 = vmatprep.mubr.msk.f32.mxu0 %vm28904_vm1, %v34655_v40 }
 0x9ca   :  { %v9278_v0 = vpop.permute.xlu0 %9277  ;;  %27072 = vmatprep.subr.mxu0 %v34655_v40  ;;  %v9358_v34 = vpop.permute.xlu1 %9357 }
 0x9cc   :  { %27070 = vmatmul.mubr.msk.f32.vlgmr.msra.gmra.mrb[128].mxu0 %vm264_vm2, %v9122_v10 }
 0x9cd   :  { %27073 = vmatpush3.xpose.msk.msra.mxu0 %vm264_vm2, %v9202_v45  ;;  %27074 = vmatprep.mubr.msk.f32.mxu0 %vm28904_vm1, %v34655_v40 }
 0x9ce   :  { %v9356_v41 = vpop.permute.xlu0 %9355  ;;  %27077 = vmatprep.subr.mxu0 %v34655_v40  ;;  %v9436_v63 = vpop.permute.xlu1 %9435 }
 0x9d0   :  { %27075 = vmatmul.mubr.msk.f32.vlgmr.msra.gmra.mrb[130].mxu0 %vm264_vm2, %v9200_v44 }
 0x9d1   :  { %27078 = vmatpush3.xpose.msk.msra.mxu0 %vm264_vm2, %v9280_v54  ;;  %27079 = vmatprep.mubr.msk.f32.mxu0 %vm28904_vm1, %v34655_v40 }
 0x9d2   :  { %v9514_v5 = vpop.permute.xlu0 %9513  ;;  %27082 = vmatprep.subr.mxu0 %v34655_v40  ;;  %v9434_v3 = vpop.permute.xlu1 %9433 }
 0x9d4   :  { %27080 = vmatmul.mubr.msk.f32.vlgmr.msra.gmra.mrb[132].mxu0 %vm264_vm2, %v9278_v0 }
 0x9d5   :  { %27083 = vmatpush3.xpose.msk.msra.mxu0 %vm264_vm2, %v9358_v34  ;;  %27084 = vmatprep.mubr.msk.f32.mxu0 %vm28904_vm1, %v34655_v40 }
 0x9d6   :  { %v9512_v24 = vpop.permute.xlu0 %9511  ;;  %27092 = vmatprep.subr.mxu0 %v34655_v40  ;;  %v9592_v32 = vpop.permute.xlu1 %9591 }
 0x9d8   :  { %27085 = vmatmul.mubr.msk.f32.vlgmr.msra.gmra.mrb[134].mxu0 %vm264_vm2, %v9356_v41 }
 0x9d9   :  { %27093 = vmatpush3.xpose.msk.msra.mxu0 %vm264_vm2, %v9514_v5  ;;  %27094 = vmatprep.mubr.msk.f32.mxu0 %vm28904_vm1, %v34655_v40 }
 0x9da   :  { %v9670_v37 = vpop.permute.xlu0 %9669  ;;  %27102 = vmatprep.subr.mxu0 %v34655_v40  ;;  %v9590_v46 = vpop.permute.xlu1 %9589 }
 0x9dc   :  { %27095 = vmatmul.mubr.msk.f32.vlgmr.msra.gmra.mrb[136].mxu0 %vm264_vm2, %v9512_v24 }
 0x9dd   :  { %27103 = vmatpush3.xpose.msk.msra.mxu0 %vm264_vm2, %v9670_v37  ;;  %27104 = vmatprep.mubr.msk.f32.mxu0 %vm28904_vm1, %v34655_v40 }
 0x9de   :  { %v9668_v49 = vpop.permute.xlu0 %9667  ;;  %27112 = vmatprep.subr.mxu0 %v34655_v40  ;;  %v9748_v19 = vpop.permute.xlu1 %9747 }
 0x9e0   :  { %27105 = vmatmul.mubr.msk.f32.vlgmr.msra.gmra.mrb[138].mxu0 %vm264_vm2, %v9668_v49 }
 0x9e1   :  { %27114 = vmatprep.mubr.msk.f32.mxu0 %vm28904_vm1, %v34655_v40 }
 0x9e2   :  { %v9826_v30 = vpop.permute.xlu0 %9825  ;;  %v9746_v45 = vpop.permute.xlu1 %9745 }
 0x9e3   :  { %27113 = vmatpush3.xpose.msk.msra.mxu0 %vm264_vm2, %v9826_v30 }
 0x9e4   :  { %27122 = vmatprep.subr.mxu0 %v34655_v40 }
 0x9e6   :  { %v9824_v22 = vpop.permute.xlu0 %9823  ;;  %v9904_v5 = vpop.permute.xlu1 %9903 }
 0x9e7   :  { %27115 = vmatmul.mubr.msk.f32.vlgmr.msra.gmra.mrb[140].mxu0 %vm264_vm2, %v9824_v22 }
 0x9e8   :  { %27124 = vmatprep.mubr.msk.f32.mxu0 %vm28904_vm1, %v34655_v40 }
 0x9ea   :  { %v9982_v42 = vpop.permute.xlu0 %9981 }
 0x9eb   :  { %27123 = vmatpush3.xpose.msk.msra.mxu0 %vm264_vm2, %v9982_v42  ;;  %v9902_v42 = vpop.permute.xlu1 %9901 }
 0x9ec   :  { %27132 = vmatprep.subr.mxu0 %v34655_v40 }
 0x9ee   :  { %v9980_v20 = vpop.permute.xlu0 %9979 }
 0x9ef   :  { %27125 = vmatmul.mubr.msk.f32.vlgmr.msra.gmra.mrb[142].mxu0 %vm264_vm2, %v9980_v20 }
 0x9f0   :  { %27134 = vmatprep.mubr.msk.f32.mxu0 %vm28904_vm1, %v34655_v40 }
 0x9f2   :  { %v10326_v1 = vpop.permute.xlu0 %10325 }
 0x9f3   :  { %27133 = vmatpush3.msra.mxu0 %v10326_v1 }
 0x9f4   :  { %27142 = vmatprep.subr.mxu0 %v34655_v40 }
 0xa4f   :  { %v7456_v56 = vpop.f32.mrb[88].mxu1 }
 0xa50   :  { %v26945_v51 = vpop.f32.mrb[89].mxu1  ;;  %27023 = vmatprep.mubr.msk.f32.mxu1 %vm264_vm2, %v7456_v56 }
 0xa53   :  { %v7532_v33 = vpop.f32.mrb[104].mxu0 }
 0xa54   :  { %v26950_v31 = vpop.f32.mrb[105].mxu0  ;;  %27024 = vmatmul.mubr.msk.f32.vlgmr.msra.gmra.mrb[72].mxu1 %vm264_vm2, %v7532_v33 }
 0xa55   :  { %27088 = vmatpush3.xpose.msk.msra.mxu1 %vm264_vm2, %v9436_v63  ;;  %v10250_v31 = vpop.permute.xlu1 %10249 }
 0xa56   :  { %27097 = vmatprep.subr.mxu1 %v34655_v40 }
 0xa57   :  { %v7608_v36 = vpop.f32.mrb[90].mxu1 }
 0xa58   :  { %v26955_v61 = vpop.f32.mrb[91].mxu1  ;;  %27026 = vmatprep.mubr.msk.f32.mxu1 %vm264_vm2, %v7608_v36 }
 0xa5b   :  { %v7684_v23 = vpop.f32.mrb[106].mxu0 }
 0xa5c   :  { %v26960_v18 = vpop.f32.mrb[107].mxu0  ;;  %27027 = vmatmul.mubr.msk.f32.gmra.mrb[74].mxu1 %vm264_vm2, %v7684_v23 }
 0xa5f   :  { %v7760_v38 = vpop.f32.mrb[92].mxu1 }
 0xa60   :  { %v26965_v15 = vpop.f32.mrb[93].mxu1  ;;  %27029 = vmatprep.mubr.msk.f32.mxu1 %vm264_vm2, %v7760_v38 }
 0xa63   :  { %v7836_v2 = vpop.f32.mrb[108].mxu0 }
 0xa64   :  { %v26970_v14 = vpop.f32.mrb[109].mxu0  ;;  %27030 = vmatmul.mubr.msk.f32.gmra.mrb[76].mxu1 %vm264_vm2, %v7836_v2 }
 0xa67   :  { %v7912_v21 = vpop.f32.mrb[94].mxu1 }
 0xa68   :  { %v26975_v52 = vpop.f32.mrb[95].mxu1  ;;  %27032 = vmatprep.mubr.msk.f32.mxu1 %vm264_vm2, %v7912_v21 }
 0xa6b   :  { %v7988_v25 = vpop.f32.mrb[110].mxu0 }
 0xa6c   :  { %v26980_v17 = vpop.f32.mrb[111].mxu0  ;;  %27033 = vmatmul.mubr.msk.f32.gmra.mrb[78].mxu1 %vm264_vm2, %v7988_v25 }
 0xa6f   :  { %v8064_v16 = vpop.f32.mrb[96].mxu1 }
 0xa70   :  { %v26985_v57 = vpop.f32.mrb[97].mxu1  ;;  %27035 = vmatprep.mubr.msk.f32.mxu1 %vm264_vm2, %v8064_v16 }
 0xa73   :  { %v8140_v28 = vpop.f32.mrb[112].mxu0 }
 0xa74   :  { %v26990_v50 = vpop.f32.mrb[113].mxu0  ;;  %27036 = vmatmul.mubr.msk.f32.gmra.mrb[80].mxu1 %vm264_vm2, %v8140_v28 }
 0xa77   :  { %v8216_v9 = vpop.f32.mrb[98].mxu1 }
 0xa78   :  { %v26995_v7 = vpop.f32.mrb[99].mxu1  ;;  %27038 = vmatprep.mubr.msk.f32.mxu1 %vm264_vm2, %v8216_v9 }
 0xa7b   :  { %v8292_v43 = vpop.f32.mrb[114].mxu0 }
 0xa7c   :  { %v27000_v4 = vpop.f32.mrb[115].mxu0  ;;  %27039 = vmatmul.mubr.msk.f32.gmra.mrb[82].mxu1 %vm264_vm2, %v8292_v43 }
 0xa7f   :  { %v8368_v60 = vpop.f32.mrb[100].mxu1 }
 0xa80   :  { %v27005_v26 = vpop.f32.mrb[101].mxu1  ;;  %27041 = vmatprep.mubr.msk.f32.mxu1 %vm264_vm2, %v8368_v60 }
 0xa83   :  { %v8444_v62 = vpop.f32.mrb[116].mxu0 }
 0xa84   :  { %v27010_v39 = vpop.f32.mrb[117].mxu0  ;;  %27042 = vmatmul.mubr.msk.f32.gmra.mrb[84].mxu1 %vm264_vm2, %v8444_v62 }
 0xa87   :  { %v8520_v10 = vpop.f32.mrb[102].mxu1 }
 0xa88   :  { %v27015_v44 = vpop.f32.mrb[103].mxu1  ;;  %27044 = vmatprep.mubr.msk.f32.mxu1 %vm264_vm2, %v8520_v10 }
 0xa8b   :  { %v8596_v0 = vpop.f32.mrb[118].mxu0 }
 0xa8c   :  { %v27020_v54 = vpop.f32.mrb[119].mxu0  ;;  %27045 = vmatmul.mubr.msk.f32.gmra.mrb[86].mxu1 %vm264_vm2, %v8596_v0 }
 0xa8d   :  { %27089 = vmatprep.mubr.msk.f32.mxu1 %vm28904_vm1, %v34655_v40 }
 0xa8f   :  { %v8883_v41 = vpop.f32.mrb[120].mxu0 }
 0xa90   :  { %v30890_v34 = vmul.f32 0.35355338, %v8883_v41  ;;  %v27051_v24 = vpop.f32.mrb[121].mxu0  ;;  %27090 = vmatmul.mubr.msk.f32.vlgmr.msra.gmra.mrb[104].mxu1 %vm264_vm2, %v9434_v3 }
 0xa91   :  { %27098 = vmatpush3.xpose.msk.msra.mxu1 %vm264_vm2, %v9592_v32  ;;  %27099 = vmatprep.mubr.msk.f32.mxu1 %vm28904_vm1, %v34655_v40 }
 0xa92   :  { %27107 = vmatprep.subr.mxu1 %v34655_v40  ;;  %v10073_v37 = vsel %vm264_vm2, %v30890_v34, -inf }
 0xa93   :  { %10074 = vmax.xlane.f32.xlu1 %v10073_v37  ;;  %v8961_v49 = vpop.f32.mrb[122].mxu0 }
 0xa94   :  { %v30899_v30 = vmul.f32 0.35355338, %v8961_v49  ;;  %v27056_v22 = vpop.f32.mrb[123].mxu0  ;;  %27100 = vmatmul.mubr.msk.f32.vlgmr.msra.gmra.mrb[106].mxu1 %vm264_vm2, %v9590_v46 }
 0xa95   :  { %27108 = vmatpush3.xpose.msk.msra.mxu1 %vm264_vm2, %v9748_v19  ;;  %27109 = vmatprep.mubr.msk.f32.mxu1 %vm28904_vm1, %v34655_v40 }
 0xa96   :  { %27117 = vmatprep.subr.mxu1 %v34655_v40  ;;  %v10076_v20 = vsel %vm264_vm2, %v30899_v30, -inf }
 0xa97   :  { %10077 = vmax.xlane.f32.xlu0 %v10076_v20  ;;  %v9039_v1 = vpop.f32.mrb[124].mxu0 }
 0xa98   :  { %v30908_v56 = vmul.f32 0.35355338, %v9039_v1  ;;  %v27061_v51 = vpop.f32.mrb[125].mxu0  ;;  %27110 = vmatmul.mubr.msk.f32.vlgmr.msra.gmra.mrb[108].mxu1 %vm264_vm2, %v9746_v45 }
 0xa99   :  { %27118 = vmatpush3.xpose.msk.msra.mxu1 %vm264_vm2, %v9904_v5  ;;  %27119 = vmatprep.mubr.msk.f32.mxu1 %vm28904_vm1, %v34655_v40 }
 0xa9a   :  { %27127 = vmatprep.subr.mxu1 %v34655_v40  ;;  %v10079_v33 = vsel %vm264_vm2, %v30908_v56, -inf }
 0xa9b   :  { %10080 = vmax.xlane.f32.xlu0 %v10079_v33  ;;  %v9117_v63 = vpop.f32.mrb[126].mxu0 }
 0xa9c   :  { %v30917_v36 = vmul.f32 0.35355338, %v9117_v63  ;;  %v27066_v61 = vpop.f32.mrb[127].mxu0  ;;  %27120 = vmatmul.mubr.msk.f32.vlgmr.msra.gmra.mrb[110].mxu1 %vm264_vm2, %v9902_v42 }
 0xa9d   :  { %27128 = vmatpush3.msra.mxu1 %v10250_v31  ;;  %27129 = vmatprep.mubr.msk.f32.mxu1 %vm28904_vm1, %v34655_v40 }
 0xa9e   :  { %v10082_v23 = vsel %vm264_vm2, %v30917_v36, -inf  ;;  %27137 = vmatprep.subr.mxu1 %v34655_v40 }
 0xa9f   :  { %10083 = vmax.xlane.f32.xlu1 %v10082_v23  ;;  %v9195_v18 = vpop.f32.mrb[128].mxu0 }
 0xaa0   :  { %v10061_v38 = vmul.f32 0.35355338, %v9195_v18  ;;  %v27071_v15 = vpop.f32.mrb[129].mxu0 }
 0xaa2   :  { %v10085_v2 = vsel %vm264_vm2, %v10061_v38, -inf }
 0xaa3   :  { %10086 = vmax.xlane.f32.xlu0 %v10085_v2  ;;  %v9273_v14 = vpop.f32.mrb[130].mxu0 }
 0xaa4   :  { %v30926_v21 = vmul.f32 0.35355338, %v9273_v14  ;;  %v27076_v52 = vpop.f32.mrb[131].mxu0 }
 0xaa6   :  { %v10088_v25 = vsel %vm264_vm2, %v30926_v21, -inf }
 0xaa7   :  { %10089 = vmax.xlane.f32.xlu1 %v10088_v25  ;;  %v9351_v17 = vpop.f32.mrb[132].mxu0 }
 0xaa8   :  { %v30930_v16 = vmul.f32 0.35355338, %v9351_v17  ;;  %v27081_v57 = vpop.f32.mrb[133].mxu0 }
 0xaaa   :  { %v10091_v3 = vsel %vm264_vm2, %v30930_v16, -inf }
 0xaab   :  { %10092 = vmax.xlane.f32.xlu0 %v10091_v3  ;;  %v9429_v28 = vpop.f32.mrb[134].mxu0 }
 0xaac   :  { %v30934_v50 = vmul.f32 0.35355338, %v9429_v28  ;;  %v27086_v9 = vpop.f32.mrb[135].mxu0 }
 0xaae   :  { %v10094_v32 = vsel %vm264_vm2, %v30934_v50, -inf }
 0xaaf   :  { %10095 = vmax.xlane.f32.xlu1 %v10094_v32  ;;  %v9585_v7 = vpop.f32.mrb[136].mxu0 }
 0xab0   :  { %v30938_v43 = vmul.f32 0.35355338, %v9585_v7  ;;  %v27096_v4 = vpop.f32.mrb[137].mxu0 }
 0xab2   :  { %v10100_v46 = vsel %vm264_vm2, %v30938_v43, -inf }
 0xab3   :  { %10101 = vmax.xlane.f32.xlu1 %v10100_v46  ;;  %v9741_v60 = vpop.f32.mrb[138].mxu0 }
 0xab4   :  { %v30942_v26 = vmul.f32 0.35355338, %v9741_v60  ;;  %v27106_v62 = vpop.f32.mrb[139].mxu0 }
 0xab6   :  { %v10106_v19 = vsel %vm264_vm2, %v30942_v26, -inf }
 0xab7   :  { %10107 = vmax.xlane.f32.xlu1 %v10106_v19 }
 0xaba   :  { %v9897_v39 = vpop.f32.mrb[140].mxu0 }
 0xabb   :  { %v30946_v10 = vmul.f32 0.35355338, %v9897_v39  ;;  %v27116_v44 = vpop.f32.mrb[141].mxu0 }
 0xabd   :  { %v10112_v45 = vsel %vm264_vm2, %v30946_v10, -inf }
 0xabe   :  { %10113 = vmax.xlane.f32.xlu1 %v10112_v45 }
 0xac2   :  { %v10053_v0 = vpop.f32.mrb[142].mxu0 }
 0xac3   :  { %v30950_v54 = vmul.f32 0.35355338, %v10053_v0  ;;  %v27126_v41 = vpop.f32.mrb[143].mxu0 }
 0xac5   :  { %v10118_v5 = vsel %vm264_vm2, %v30950_v54, -inf }
 0xac6   :  { %10119 = vmax.xlane.f32.xlu1 %v10118_v5 }
 0xb20   :  { %v10075_v24 = vpop.xlane.xlu1 %10074 }
 0xb21   :  { %v10121_v37 = vsub.f32 %v30890_v34, %v10075_v24 }
 0xb23   :  { %v10137_v49 = vmul.f32 1.442695, %v10121_v37 }
 0xb24   :  { %v10078_v22 = vpop.xlane.xlu0 %10077 }
 0xb25   :  { %28415 = vpow2.f32 %v10137_v49  ;;  %v10122_v42 = vsub.f32 %v30899_v30, %v10078_v22 }
 0xb27   :  { %v10139_v20 = vmul.f32 1.442695, %v10122_v42 }
 0xb28   :  { %v10081_v1 = vpop.xlane.xlu0 %10080 }
 0xb29   :  { %28417 = vpow2.f32 %v10139_v20  ;;  %v10123_v51 = vsub.f32 %v30908_v56, %v10081_v1 }
 0xb2b   :  { %v10141_v33 = vmul.f32 1.442695, %v10123_v51 }
 0xb2c   :  { %v10084_v63 = vpop.xlane.xlu1 %10083 }
 0xb2d   :  { %28419 = vpow2.f32 %v10141_v33  ;;  %v10124_v31 = vsub.f32 %v30917_v36, %v10084_v63 }
 0xb2f   :  { %v30958_v61 = vpop.eup %28415  ;;  %v10143_v23 = vmul.f32 1.442695, %v10124_v31 }
 0xb30   :  { %v10087_v18 = vpop.xlane.xlu0 %10086  ;;  %v10169_v34 = vsel %vm264_vm2, %v30958_v61, 0.0 }
 0xb31   :  { %28421 = vpow2.f32 %v10143_v23  ;;  %v10125_v15 = vsub.f32 %v10061_v38, %v10087_v18  ;;  %10170 = vadd.xlane.f32.xlu0 %v10169_v34 }
 0xb33   :  { %v30962_v30 = vpop.eup %28417  ;;  %v10145_v2 = vmul.f32 1.442695, %v10125_v15 }
 0xb34   :  { %v10090_v14 = vpop.xlane.xlu1 %10089  ;;  %v10172_v56 = vsel %vm264_vm2, %v30962_v30, 0.0 }
 0xb35   :  { %28423 = vpow2.f32 %v10145_v2  ;;  %v10126_v36 = vsub.f32 %v30926_v21, %v10090_v14  ;;  %10173 = vadd.xlane.f32.xlu1 %v10172_v56 }
 0xb37   :  { %v30967_v52 = vpop.eup %28419  ;;  %v10147_v25 = vmul.f32 1.442695, %v10126_v36 }
 0xb38   :  { %v10093_v17 = vpop.xlane.xlu0 %10092  ;;  %v10175_v57 = vsel %vm264_vm2, %v30967_v52, 0.0 }
 0xb39   :  { %28425 = vpow2.f32 %v10147_v25  ;;  %v10127_v38 = vsub.f32 %v30930_v16, %v10093_v17  ;;  %10176 = vadd.xlane.f32.xlu0 %v10175_v57 }
 0xb3b   :  { %v30972_v3 = vpop.eup %28421  ;;  %v10149_v28 = vmul.f32 1.442695, %v10127_v38 }
 0xb3c   :  { %v10096_v9 = vpop.xlane.xlu1 %10095  ;;  %v10178_v32 = vsel %vm264_vm2, %v30972_v3, 0.0 }
 0xb3d   :  { %28427 = vpow2.f32 %v10149_v28  ;;  %v10128_v21 = vsub.f32 %v30934_v50, %v10096_v9  ;;  %10179 = vadd.xlane.f32.xlu1 %v10178_v32 }
 0xb3f   :  { %v30977_v7 = vpop.eup %28423  ;;  %v10151_v4 = vmul.f32 1.442695, %v10128_v21 }
 0xb40   :  { %v10102_v46 = vpop.xlane.xlu1 %10101  ;;  %v10181_v60 = vsel %vm264_vm2, %v30977_v7, 0.0 }
 0xb41   :  { %28429 = vpow2.f32 %v10151_v4  ;;  %v10130_v16 = vsub.f32 %v30938_v43, %v10102_v46  ;;  %10182 = vadd.xlane.f32.xlu0 %v10181_v60 }
 0xb43   :  { %v30982_v62 = vpop.eup %28425  ;;  %v10155_v19 = vmul.f32 1.442695, %v10130_v16 }
 0xb44   :  { %v10108_v39 = vpop.xlane.xlu1 %10107  ;;  %v10184_v44 = vsel %vm264_vm2, %v30982_v62, 0.0 }
 0xb45   :  { %28431 = vpow2.f32 %v10155_v19  ;;  %v10132_v50 = vsub.f32 %v30942_v26, %v10108_v39  ;;  %10185 = vadd.xlane.f32.xlu1 %v10184_v44 }
 0xb47   :  { %v30987_v45 = vpop.eup %28427  ;;  %v10159_v0 = vmul.f32 1.442695, %v10132_v50 }
 0xb48   :  { %v10187_v41 = vsel %vm264_vm2, %v30987_v45, 0.0 }
 0xb49   :  { %28433 = vpow2.f32 %v10159_v0  ;;  %10188 = vadd.xlane.f32.xlu0 %v10187_v41 }
 0xb4b   :  { %v30991_v43 = vpop.eup %28429  ;;  %v10114_v5 = vpop.xlane.xlu1 %10113 }
 0xb4c   :  { %v10134_v24 = vsub.f32 %v30946_v10, %v10114_v5  ;;  %v10190_v37 = vsel %vm264_vm2, %v30991_v43, 0.0 }
 0xb4d   :  { %10191 = vadd.xlane.f32.xlu1 %v10190_v37 }
 0xb4e   :  { %v10163_v49 = vmul.f32 1.442695, %v10134_v24 }
 0xb4f   :  { %v30996_v26 = vpop.eup %28431 }
 0xb50   :  { %28435 = vpow2.f32 %v10163_v49  ;;  %v10196_v22 = vsel %vm264_vm2, %v30996_v26, 0.0 }
 0xb51   :  { %10197 = vadd.xlane.f32.xlu1 %v10196_v22 }
 0xb53   :  { %v31000_v42 = vpop.eup %28433 }
 0xb54   :  { %v10202_v20 = vsel %vm264_vm2, %v31000_v42, 0.0 }
 0xb55   :  { %10203 = vadd.xlane.f32.xlu1 %v10202_v20 }
 0xb5a   :  { %v31004_v1 = vpop.eup %28435 }
 0xb5b   :  { %v10208_v10 = vsel %vm264_vm2, %v31004_v1, 0.0 }
 0xb5c   :  { %10209 = vadd.xlane.f32.xlu0 %v10208_v10 }
 0xb63   :  { %v9507_v51 = vpop.f32.mrb[104].mxu1 }
 0xb64   :  { %v31008_v33 = vmul.f32 0.35355338, %v9507_v51  ;;  %v27091_v63 = vpop.f32.mrb[105].mxu1 }
 0xb66   :  { %10477 = vrot.lane.b32.xlu1 %v34658_v6, %s34571_s10  ;;  %v10097_v31 = vsel %vm264_vm2, %v31008_v33, -inf }
 0xb67   :  { %v9663_v23 = vpop.f32.mrb[106].mxu1  ;;  %10098 = vmax.xlane.f32.xlu0 %v10097_v31 }
 0xb68   :  { %v31014_v18 = vmul.f32 0.35355338, %v9663_v23  ;;  %v27101_v34 = vpop.f32.mrb[107].mxu1 }
 0xb6a   :  { %10629 = vrot.lane.b32.xlu1 %v34663_v8, %s34571_s10  ;;  %v10103_v15 = vsel %vm264_vm2, %v31014_v18, -inf }
 0xb6b   :  { %v9819_v2 = vpop.f32.mrb[108].mxu1  ;;  %10104 = vmax.xlane.f32.xlu0 %v10103_v15 }
 0xb6c   :  { %v31020_v14 = vmul.f32 0.35355338, %v9819_v2  ;;  %v27111_v56 = vpop.f32.mrb[109].mxu1 }
 0xb6e   :  { %10705 = vrot.lane.b32.xlu1 %v34660_v12, %s34571_s10  ;;  %v10109_v6 = vsel %vm264_vm2, %v31020_v14, -inf  ;;  %v10120_v12 = vpop.xlane.xlu1 %10119 }
 0xb6f   :  { %v9975_v36 = vpop.f32.mrb[110].mxu1  ;;  %10110 = vmax.xlane.f32.xlu0 %v10109_v6  ;;  %v10136_v57 = vsub.f32 %v30950_v54, %v10120_v12 }
 0xb70   :  { %v31026_v25 = vmul.f32 0.35355338, %v9975_v36  ;;  %v27121_v17 = vpop.f32.mrb[111].mxu1 }
 0xb72   :  { %10781 = vrot.lane.b32.xlu1 %v34664_v11, %s34571_s10  ;;  %v10115_v8 = vsel %vm264_vm2, %v31026_v25, -inf  ;;  %v10167_v11 = vmul.f32 1.442695, %v10136_v57 }
 0xb73   :  { %10116 = vmax.xlane.f32.xlu0 %v10115_v8 }
 0xb74   :  { %28437 = vpow2.f32 %v10167_v11 }
 0xb76   :  { %10857 = vrot.lane.b32.xlu1 %v34661_v35, %s34571_s10 }
 0xb7a   :  { %11009 = vrot.lane.b32.xlu1 %v34662_v13, %s34571_s10 }
 0xb7e   :  { %11161 = vrot.lane.b32.xlu1 %v29186_v59, %s34571_s10  ;;  %v31041_v38 = vpop.eup %28437 }
 0xb7f   :  { %v10214_v28 = vsel %vm264_vm2, %v31041_v38, 0.0 }
 0xb89   :  { %10401 = vrot.lane.b32.xlu0 %v29128_v29, %s34571_s10 }
 0xba8   :  { %10215 = vadd.xlane.f32.xlu0 %v10214_v28 }
 0xbbe   :  { %10553 = vrot.lane.b32.xlu0 %v34659_v48, %s34571_s10  ;;  %v10171_v35 = vpop.xlane.xlu0 %10170 }
 0xbbf   :  { %28439 = vrcp.f32 %v10171_v35 }
 0xbc2   :  { %v10174_v59 = vpop.xlane.xlu1 %10173  ;;  %10933 = vrot.lane.b32.xlu0 %v34665_v27, %s34571_s10 }
 0xbc3   :  { %28441 = vrcp.f32 %v10174_v59 }
 0xbc6   :  { %11085 = vrot.lane.b32.xlu0 %v34667_v47, %s34571_s10  ;;  %v10177_v21 = vpop.xlane.xlu0 %10176 }
 0xbc9   :  { %v28440_v29 = vpop.eup %28439 }
 0xbca   :  { %11237 = vrot.lane.b32.xlu0 %v29170_v55, %s34571_s10  ;;  %v10233_v13 = vmul.f32 %v28440_v29, %v30958_v61  ;;  %v10180_v27 = vpop.xlane.xlu1 %10179 }
 0xbcb   :  { %28443 = vrcp.f32 %v10180_v27 }
 0xbcc   :  { %27130 = vmatmul.mubr.msk.f32.vlgmr.msra.gmra.mrb[112].mxu1 %vm264_vm2, %v10233_v13 }
 0xbcd   :  { %v28442_v54 = vpop.eup %28441  ;;  %27139 = vmatprep.mubr.msk.f32.mxu1 %vm28904_vm1, %v34655_v40 }
 0xbce   :  { %v10234_v48 = vmul.f32 %v28442_v54, %v30962_v30  ;;  %v10183_v60 = vpop.xlane.xlu0 %10182 }
 0xbd0   :  { %27135 = vmatmul.mubr.msk.f32.vlgmr.msra.gmra.mrb[144].mxu0 %vm264_vm2, %v10234_v48 }
 0xbd1   :  { %27144 = vmatprep.mubr.msk.f32.mxu0 %vm28904_vm1, %v34655_v40 }
 0xbd2   :  { %v10186_v47 = vpop.xlane.xlu1 %10185 }
 0xbd3   :  { %28445 = vrcp.f32 %v10186_v47 }
 0xbd5   :  { %v28444_v32 = vpop.eup %28443 }
 0xbd6   :  { %v10236_v30 = vmul.f32 %v28444_v32, %v30972_v3  ;;  %v10189_v39 = vpop.xlane.xlu0 %10188 }
 0xbda   :  { %v10192_v9 = vpop.xlane.xlu1 %10191 }
 0xbdb   :  { %28447 = vrcp.f32 %v10192_v9 }
 0xbdc   :  { %28449 = vrcp.f32 %v10177_v21 }
 0xbdd   :  { %v28446_v46 = vpop.eup %28445 }
 0xbde   :  { %v31061_v55 = vpop.xlane.xlu1 %10197  ;;  %v10238_v19 = vmul.f32 %v28446_v46, %v30982_v62 }
 0xbe2   :  { %v31063_v61 = vpop.xlane.xlu1 %10203 }
 0xbe5   :  { %v28448_v44 = vpop.eup %28447 }
 0xbe6   :  { %v10478_v4 = vpop.permute.xlu1 %10477  ;;  %v10240_v41 = vmul.f32 %v28448_v44, %v30991_v43  ;;  %v28450_v63 = vpop.eup %28449 }
 0xbe7   :  { %27143 = vmatpush3.msra.mxu0 %v10478_v4 }
 0xbe8   :  { %27145 = vmatmul.mubr.msk.f32.vlgmr.msra.gmra.mrb[146].mxu0 %vm264_vm2, %v10236_v30  ;;  %27152 = vmatprep.subr.mxu0 %v34655_v40 }
 0xbe9   :  { %27154 = vmatprep.mubr.msk.f32.mxu0 %vm28904_vm1, %v34655_v40  ;;  %v10210_v50 = vpop.xlane.xlu0 %10209 }
 0xbea   :  { %v10630_v16 = vpop.permute.xlu1 %10629 }
 0xbeb   :  { %27153 = vmatpush3.msra.mxu0 %v10630_v16 }
 0xbec   :  { %27155 = vmatmul.mubr.msk.f32.vlgmr.msra.gmra.mrb[148].mxu0 %vm264_vm2, %v10238_v19  ;;  %27162 = vmatprep.subr.mxu0 %v34655_v40 }
 0xbed   :  { %27164 = vmatprep.mubr.msk.f32.mxu0 %vm28904_vm1, %v34655_v40 }
 0xbee   :  { %v10706_v3 = vpop.permute.xlu1 %10705 }
 0xbf2   :  { %v10782_v0 = vpop.permute.xlu1 %10781 }
 0xbf3   :  { %27163 = vmatpush3.msra.mxu0 %v10782_v0 }
 0xbf4   :  { %27165 = vmatmul.mubr.msk.f32.vlgmr.msra.gmra.mrb[150].mxu0 %vm264_vm2, %v10240_v41  ;;  %v10099_v5 = vpop.xlane.xlu0 %10098  ;;  %27172 = vmatprep.subr.mxu0 %v34655_v40 }
 0xbf5   :  { %v10129_v62 = vsub.f32 %v31008_v33, %v10099_v5  ;;  %27174 = vmatprep.mubr.msk.f32.mxu0 %vm28904_vm1, %v34655_v40 }
 0xbf7   :  { %v10153_v24 = vmul.f32 1.442695, %v10129_v62 }
 0xbf8   :  { %v10105_v37 = vpop.xlane.xlu0 %10104 }
 0xbf9   :  { %28451 = vpow2.f32 %v10153_v24  ;;  %v10131_v49 = vsub.f32 %v31014_v18, %v10105_v37  ;;  %v10235_v18 = vmul.f32 %v28450_v63, %v30967_v52 }
 0xbfb   :  { %v10157_v22 = vmul.f32 1.442695, %v10131_v49 }
 0xbfc   :  { %v10111_v20 = vpop.xlane.xlu0 %10110 }
 0xbfd   :  { %28453 = vpow2.f32 %v10157_v22  ;;  %v10133_v43 = vsub.f32 %v31020_v14, %v10111_v20 }
 0xbff   :  { %v10161_v10 = vmul.f32 1.442695, %v10133_v43 }
 0xc00   :  { %v10117_v51 = vpop.xlane.xlu0 %10116 }
 0xc01   :  { %28455 = vpow2.f32 %v10161_v10  ;;  %v10135_v33 = vsub.f32 %v31026_v25, %v10117_v51 }
 0xc03   :  { %v31084_v31 = vpop.eup %28451  ;;  %v10165_v23 = vmul.f32 1.442695, %v10135_v33 }
 0xc04   :  { %v10402_v34 = vpop.permute.xlu0 %10401  ;;  %v10193_v15 = vsel %vm264_vm2, %v31084_v31, 0.0 }
 0xc05   :  { %28457 = vpow2.f32 %v10165_v23  ;;  %10194 = vadd.xlane.f32.xlu0 %v10193_v15  ;;  %27138 = vmatpush3.msra.mxu1 %v10402_v34 }
 0xc06   :  { %27140 = vmatmul.mubr.msk.f32.vlgmr.msra.gmra.mrb[114].mxu1 %vm264_vm2, %v10235_v18  ;;  %27147 = vmatprep.subr.mxu1 %v34655_v40  ;;  %28459 = vrcp.f32 %v10183_v60 }
 0xc07   :  { %v31091_v2 = vpop.eup %28453  ;;  %27149 = vmatprep.mubr.msk.f32.mxu1 %vm28904_vm1, %v34655_v40  ;;  %28461 = vrcp.f32 %v10189_v39 }
 0xc08   :  { %v10199_v14 = vsel %vm264_vm2, %v31091_v2, 0.0  ;;  %28463 = vrcp.f32 %v31061_v55 }
 0xc09   :  { %10200 = vadd.xlane.f32.xlu0 %v10199_v14  ;;  %28465 = vrcp.f32 %v31063_v61 }
 0xc0a   :  { %28467 = vrcp.f32 %v10210_v50 }
 0xc0b   :  { %v31097_v56 = vpop.eup %28455 }
 0xc0c   :  { %v10205_v52 = vsel %vm264_vm2, %v31097_v56, 0.0 }
 0xc0d   :  { %10206 = vadd.xlane.f32.xlu0 %v10205_v52 }
 0xc0f   :  { %v31101_v6 = vpop.eup %28457 }
 0xc10   :  { %v10211_v36 = vsel %vm264_vm2, %v31101_v6, 0.0  ;;  %v28460_v17 = vpop.eup %28459 }
 0xc11   :  { %10212 = vadd.xlane.f32.xlu1 %v10211_v36  ;;  %v28462_v8 = vpop.eup %28461  ;;  %v10237_v57 = vmul.f32 %v28460_v17, %v30977_v7  ;;  %v10858_v7 = vpop.permute.xlu1 %10857 }
 0xc12   :  { %v28464_v11 = vpop.eup %28463 }
 0xc13   :  { %v10242_v28 = vmul.f32 %v28464_v11, %v30996_v26  ;;  %v28466_v35 = vpop.eup %28465 }
 0xc14   :  { %v10244_v29 = vmul.f32 %v28466_v35, %v31000_v42  ;;  %v28863_v35 = vld [vmem:[%s34626_s0 + $0x8] sm:$0xff] }
 0xc15   :  { %v11010_v54 = vpop.permute.xlu1 %11009 }
 0xc19   :  { %v11162_v27 = vpop.permute.xlu1 %11161 }
 0xc22   :  { %11313 = vrot.lane.b32.xlu1 %v29184_v58, %s34571_s10  ;;  %v10239_v58 = vmul.f32 %v28462_v8, %v30987_v45  ;;  %v28468_v45 = vpop.eup %28467 }
 0xc23   :  { %11389 = vrot.lane.b32.xlu0 %v29168_v53, %s34571_s10  ;;  %v10246_v13 = vmul.f32 %v28468_v45, %v31004_v1  ;;  %s34689_s10 = sld [smem:[#allocation53_spill]] }
 0xc35   :  { %v10216_v25 = vpop.xlane.xlu0 %10215 }
 0xc36   :  { %28469 = vrcp.f32 %v10216_v25 }
 0xc39   :  { %v10554_v12 = vpop.permute.xlu0 %10553 }
 0xc3a   :  { %27148 = vmatpush3.msra.mxu1 %v10554_v12 }
 0xc3b   :  { %27150 = vmatmul.mubr.msk.f32.vlgmr.msra.gmra.mrb[116].mxu1 %vm264_vm2, %v10237_v57  ;;  %27157 = vmatprep.subr.mxu1 %v34655_v40  ;;  %v31177_v57 = vld [vmem:[%s34688_s6] ss:$0 sm:$0xff]  ;;  %s34690_s6 = sld [smem:[#allocation51_spill]] }
 0xc3c   :  { %27158 = vmatpush3.msra.mxu1 %v10706_v3  ;;  %27159 = vmatprep.mubr.msk.f32.mxu1 %vm28904_vm1, %v34655_v40  ;;  %v260_v3 = vld [vmem:[%s34666_s29 + $0x18] sm:$0xff]  ;;  %s34692_s29 = sld [smem:[#allocation55_spill]] }
 0xc3d   :  { %v10934_v53 = vpop.permute.xlu0 %10933  ;;  %27167 = vmatprep.subr.mxu1 %v34655_v40 }
 0xc3e   :  { %27173 = vmatpush3.msra.mxu0 %v10934_v53 }
 0xc3f   :  { %27160 = vmatmul.mubr.msk.f32.vlgmr.msra.gmra.mrb[118].mxu1 %vm264_vm2, %v10239_v58  ;;  %27175 = vmatmul.mubr.msk.f32.vlgmr.msra.gmra.mrb[152].mxu0 %vm264_vm2, %v10242_v28 }
 0xc40   :  { %27168 = vmatpush3.msra.mxu1 %v10858_v7  ;;  %27182 = vmatprep.subr.mxu0 %v34655_v40  ;;  %v28470_v9 = vpop.eup %28469 }
 0xc41   :  { %v11086_v59 = vpop.permute.xlu0 %11085  ;;  %27184 = vmatprep.mubr.msk.f32.mxu0 %vm28904_vm1, %v34655_v40  ;;  %27169 = vmatprep.mubr.msk.f32.mxu1 %vm28904_vm1, %v34655_v40  ;;  %v10248_v21 = vmul.f32 %v28470_v9, %v31041_v38  ;;  %v28866_v9 = vld [vmem:[%s34626_s0 + $0x10] sm:$0xff] }
 0xc42   :  { %27183 = vmatpush3.msra.mxu0 %v11086_v59  ;;  %27177 = vmatprep.subr.mxu1 %v34655_v40  ;;  %v28864_v59 = vld [vmem:[%s34626_s0] sm:$0xff] }
 0xc43   :  { %27185 = vmatmul.mubr.msk.f32.vlgmr.msra.gmra.mrb[154].mxu0 %vm264_vm2, %v10244_v29  ;;  %27192 = vmatprep.subr.mxu0 %v34655_v40 }
 0xc44   :  { %27194 = vmatprep.mubr.msk.f32.mxu0 %vm28904_vm1, %v34655_v40 }
 0xc45   :  { %v11238_v26 = vpop.permute.xlu0 %11237 }
 0xc46   :  { %27193 = vmatpush3.msra.mxu0 %v11238_v26 }
 0xc47   :  { %27195 = vmatmul.mubr.msk.f32.vlgmr.msra.gmra.mrb[156].mxu0 %vm264_vm2, %v10246_v13  ;;  %27202 = vmatprep.subr.mxu0 %v34655_v40 }
 0xc48   :  { %27204 = vmatprep.mubr.msk.f32.mxu0 %vm28904_vm1, %v34655_v40 }
 0xc92   :  { %v10195_v42 = vpop.xlane.xlu0 %10194 }
 0xc93   :  { %28471 = vrcp.f32 %v10195_v42 }
 0xc96   :  { %v10201_v48 = vpop.xlane.xlu0 %10200 }
 0xc97   :  { %28473 = vrcp.f32 %v10201_v48 }
 0xc9a   :  { %v10207_v47 = vpop.xlane.xlu0 %10206 }
 0xc9b   :  { %28475 = vrcp.f32 %v10207_v47 }
 0xc9d   :  { %v28472_v55 = vpop.eup %28471 }
 0xc9e   :  { %v10213_v1 = vpop.xlane.xlu1 %10212  ;;  %v11390_v61 = vpop.permute.xlu0 %11389  ;;  %v10241_v32 = vmul.f32 %v28472_v55, %v31084_v31 }
 0xc9f   :  { %28477 = vrcp.f32 %v10213_v1  ;;  %v10321_v4 = vpop.f32.mrb[112].mxu1  ;;  %27203 = vmatpush3.msra.mxu0 %v11390_v61 }
 0xca0   :  { %v27131_v30 = vpop.f32.mrb[113].mxu1  ;;  %27170 = vmatmul.mubr.msk.f32.vlgmr.msra.gmra.mrb[120].mxu1 %vm264_vm2, %v10241_v32  ;;  %27205 = vmatmul.mubr.msk.f32.vlgmr.msra.gmra.mrb[158].mxu0 %vm264_vm2, %v10248_v21 }
 0xca1   :  { %v28474_v46 = vpop.eup %28473  ;;  %27178 = vmatpush3.msra.mxu1 %v11010_v54  ;;  %27179 = vmatprep.mubr.msk.f32.mxu1 %vm28904_vm1, %v34655_v40 }
 0xca2   :  { %27187 = vmatprep.subr.mxu1 %v34655_v40  ;;  %v10243_v60 = vmul.f32 %v28474_v46, %v31091_v2  ;;  %v11314_v44 = vpop.permute.xlu1 %11313  ;;  %v28867_v46 = vld [vmem:[%s34626_s0 + $0x28] sm:$0xff] }
 0xca3   :  { %v10397_v16 = vpop.f32.mrb[144].mxu0 }
 0xca4   :  { %v27136_v19 = vpop.f32.mrb[145].mxu0  ;;  %27180 = vmatmul.mubr.msk.f32.vlgmr.msra.gmra.mrb[122].mxu1 %vm264_vm2, %v10243_v60 }
 0xca5   :  { %v28476_v38 = vpop.eup %28475  ;;  %27188 = vmatpush3.msra.mxu1 %v11162_v27  ;;  %27189 = vmatprep.mubr.msk.f32.mxu1 %vm28904_vm1, %v34655_v40  ;;  %v28865_v27 = vld [vmem:[%s34626_s0 + $0x18] sm:$0xff] }
 0xca6   :  { %27197 = vmatprep.subr.mxu1 %v34655_v40  ;;  %v10245_v39 = vmul.f32 %v28476_v38, %v31097_v56 }
 0xca8   :  { %27190 = vmatmul.mubr.msk.f32.vlgmr.msra.gmra.mrb[124].mxu1 %vm264_vm2, %v10245_v39 }
 0xca9   :  { %v28478_v50 = vpop.eup %28477  ;;  %27198 = vmatpush3.msra.mxu1 %v11314_v44  ;;  %27199 = vmatprep.mubr.msk.f32.mxu1 %vm28904_vm1, %v34655_v40 }
 0xcaa   :  { %v10247_v0 = vmul.f32 %v28478_v50, %v31101_v6  ;;  %27207 = vmatprep.subr.mxu1 %v260_v3 }
 0xcac   :  { %27200 = vmatmul.mubr.msk.f32.vlgmr.msra.gmra.mrb[126].mxu1 %vm264_vm2, %v10247_v0 }
 0xcad   :  { %27209 = vmatprep.mubr.msk.f32.mxu1 %vm264_vm2, %v10321_v4  ;;  %27208 = vmatpush3.msra.mxu1 %v260_v3 }
 0xcb0   :  { %27210 = vmatmul.mubr.msk.f32.vlgmr.msra.gmra.mrb[72].mxu1 %vm264_vm2, %v10397_v16  ;;  %v28868_v16 = vld [vmem:[%s34626_s0 + $0x20] sm:$0xff] }
 0xcbb   :  { %v10549_v41 = vpop.f32.mrb[146].mxu0 }
 0xcbc   :  { %v27146_v5 = vpop.f32.mrb[147].mxu0 }
 0xcbf   :  { %v10701_v62 = vpop.f32.mrb[148].mxu0 }
 0xcc0   :  { %v27156_v24 = vpop.f32.mrb[149].mxu0 }
 0xcc7   :  { %v10853_v37 = vpop.f32.mrb[150].mxu0 }
 0xcc8   :  { %v27166_v49 = vpop.f32.mrb[151].mxu0 }
 0xcd9   :  { %v10473_v22 = vpop.f32.mrb[114].mxu1 }
 0xcda   :  { %v27141_v20 = vpop.f32.mrb[115].mxu1  ;;  %27212 = vmatprep.mubr.msk.f32.mxu1 %vm264_vm2, %v10473_v22 }
 0xcdb   :  { %27213 = vmatmul.mubr.msk.f32.gmra.mrb[74].mxu1 %vm264_vm2, %v10549_v41  ;;  %v28869_v41 = vld [vmem:[%s34626_s0 + $0x38] sm:$0xff] }
 0xd0e   :  { %v10625_v43 = vpop.f32.mrb[116].mxu1 }
 0xd0f   :  { %v27151_v10 = vpop.f32.mrb[117].mxu1  ;;  %27215 = vmatprep.mubr.msk.f32.mxu1 %vm264_vm2, %v10625_v43 }
 0xd10   :  { %27216 = vmatmul.mubr.msk.f32.gmra.mrb[76].mxu1 %vm264_vm2, %v10701_v62  ;;  %v28870_v62 = vld [vmem:[%s34626_s0 + $0x30] sm:$0xff] }
 0xd12   :  { %v10777_v51 = vpop.f32.mrb[118].mxu1  ;;  %v11005_v63 = vpop.f32.mrb[152].mxu0 }
 0xd13   :  { %v27161_v33 = vpop.f32.mrb[119].mxu1  ;;  %v27176_v31 = vpop.f32.mrb[153].mxu0  ;;  %27218 = vmatprep.mubr.msk.f32.mxu1 %vm264_vm2, %v10777_v51  ;;  %v28871_v51 = vld [vmem:[%s34626_s0 + $0x48] sm:$0xff] }
 0xd14   :  { %27219 = vmatmul.mubr.msk.f32.gmra.mrb[78].mxu1 %vm264_vm2, %v10853_v37  ;;  %v28872_v33 = vld [vmem:[%s34626_s0 + $0x40] sm:$0xff] }
 0xd16   :  { %v11157_v23 = vpop.f32.mrb[154].mxu0 }
 0xd17   :  { %v27186_v34 = vpop.f32.mrb[155].mxu0 }
 0xd1a   :  { %v11309_v15 = vpop.f32.mrb[156].mxu0 }
 0xd1b   :  { %v27196_v18 = vpop.f32.mrb[157].mxu0 }
 0xd73   :  { %v10929_v2 = vpop.f32.mrb[120].mxu1  ;;  %v11461_v14 = vpop.f32.mrb[158].mxu0 }
 0xd74   :  { %v27171_v56 = vpop.f32.mrb[121].mxu1  ;;  %v27206_v52 = vpop.f32.mrb[159].mxu0  ;;  %27221 = vmatprep.mubr.msk.f32.mxu1 %vm264_vm2, %v10929_v2 }
 0xd75   :  { %27222 = vmatmul.mubr.msk.f32.gmra.mrb[80].mxu1 %vm264_vm2, %v11005_v63 }
 0xd77   :  { %v11081_v6 = vpop.f32.mrb[122].mxu1 }
 0xd78   :  { %v27181_v36 = vpop.f32.mrb[123].mxu1  ;;  %27224 = vmatprep.mubr.msk.f32.mxu1 %vm264_vm2, %v11081_v6  ;;  %v28873_v6 = vld [vmem:[%s34626_s0 + $0x58] sm:$0xff] }
 0xd79   :  { %27225 = vmatmul.mubr.msk.f32.gmra.mrb[82].mxu1 %vm264_vm2, %v11157_v23 }
 0xd7b   :  { %v11233_v25 = vpop.f32.mrb[124].mxu1 }
 0xd7c   :  { %v27191_v17 = vpop.f32.mrb[125].mxu1  ;;  %27227 = vmatprep.mubr.msk.f32.mxu1 %vm264_vm2, %v11233_v25  ;;  %v28874_v25 = vld [vmem:[%s34626_s0 + $0x50] sm:$0xff] }
 0xd7d   :  { %27228 = vmatmul.mubr.msk.f32.gmra.mrb[84].mxu1 %vm264_vm2, %v11309_v15 }
 0xd7f   :  { %v11385_v8 = vpop.f32.mrb[126].mxu1 }
 0xd80   :  { %v27201_v12 = vpop.f32.mrb[127].mxu1  ;;  %27230 = vmatprep.mubr.msk.f32.mxu1 %vm264_vm2, %v11385_v8 }
 0xd81   :  { %27231 = vmatmul.mubr.msk.f32.gmra.mrb[86].mxu1 %vm264_vm2, %v11461_v14 }
 0xd83   :  { %v27211_v11 = vpop.f32.mrb[72].mxu1 }
 0xd84   :  { %v11682_v53 = vadd.f32 %v27211_v11, %v31177_v57  ;;  %v11579_v58 = vpop.f32.mrb[73].mxu1 }
 0xd85   :  { %v11681_v28 = vadd.f32 %v31177_v57, %v11579_v58 }
 0xd86   :  { %v31184_v7 = vadd.f32 %v28863_v35, %v11682_v53 }
 0xd87   :  { %v31189_v29 = vadd.f32 %v28864_v59, %v11681_v28 }
 0xd88   :  { %v11718_v45 = vsel %vm135_vm0, %v31184_v7, 0.0 }
 0xd89   :  { %11719 = vadd.xlane.f32.xlu0 %v11718_v45  ;;  %v11715_v26 = vsel %vm135_vm0, %v31189_v29, 0.0 }
 0xd8a   :  { %11716 = vadd.xlane.f32.xlu1 %v11715_v26 }
 0xdae   :  { %v27214_v13 = vpop.f32.mrb[74].mxu1 }
 0xdaf   :  { %v11684_v42 = vadd.f32 %v27214_v13, %v31177_v57  ;;  %v11589_v54 = vpop.f32.mrb[75].mxu1  ;;  %v28875_v13 = vld [vmem:[%s34626_s0 + $0x68] sm:$0xff] }
 0xdb0   :  { %v11683_v48 = vadd.f32 %v31177_v57, %v11589_v54  ;;  %v28876_v54 = vld [vmem:[%s34626_s0 + $0x60] sm:$0xff] }
 0xdb1   :  { %v31200_v47 = vadd.f32 %v28865_v27, %v11684_v42 }
 0xdb2   :  { %v31205_v55 = vadd.f32 %v28866_v9, %v11683_v48 }
 0xdb3   :  { %v11724_v1 = vsel %vm135_vm0, %v31200_v47, 0.0 }
 0xdb4   :  { %11725 = vadd.xlane.f32.xlu1 %v11724_v1  ;;  %v11721_v61 = vsel %vm135_vm0, %v31205_v55, 0.0 }
 0xdb5   :  { %11722 = vadd.xlane.f32.xlu0 %v11721_v61 }
 0xde3   :  { %v27217_v32 = vpop.f32.mrb[76].mxu1 }
 0xde4   :  { %v11686_v21 = vadd.f32 %v27217_v32, %v31177_v57  ;;  %v11599_v4 = vpop.f32.mrb[77].mxu1 }
 0xde5   :  { %v11685_v30 = vadd.f32 %v31177_v57, %v11599_v4 }
 0xde6   :  { %v31216_v60 = vadd.f32 %v28867_v46, %v11686_v21 }
 0xde7   :  { %v31221_v19 = vadd.f32 %v28868_v16, %v11685_v30  ;;  %v27220_v38 = vpop.f32.mrb[78].mxu1 }
 0xde8   :  { %v11688_v39 = vadd.f32 %v27220_v38, %v31177_v57  ;;  %v11609_v3 = vpop.f32.mrb[79].mxu1  ;;  %v11730_v44 = vsel %vm135_vm0, %v31216_v60, 0.0 }
 0xde9   :  { %v11687_v50 = vadd.f32 %v31177_v57, %v11609_v3  ;;  %11731 = vadd.xlane.f32.xlu1 %v11730_v44  ;;  %v11727_v0 = vsel %vm135_vm0, %v31221_v19, 0.0 }
 0xdea   :  { %v31232_v5 = vadd.f32 %v28869_v41, %v11688_v39  ;;  %11728 = vadd.xlane.f32.xlu0 %v11727_v0  ;;  %v28878_v39 = vld [vmem:[%s34626_s0 + $0x70] sm:$0xff] }
 0xdeb   :  { %v31237_v24 = vadd.f32 %v28870_v62, %v11687_v50 }
 0xdec   :  { %v11736_v37 = vsel %vm135_vm0, %v31232_v5, 0.0 }
 0xded   :  { %11737 = vadd.xlane.f32.xlu1 %v11736_v37  ;;  %v11733_v49 = vsel %vm135_vm0, %v31237_v24, 0.0 }
 0xdee   :  { %11734 = vadd.xlane.f32.xlu0 %v11733_v49 }
 0xe16   :  { %v11720_v2 = vpop.xlane.xlu0 %11719 }
 0xe17   :  { %v11717_v14 = vpop.xlane.xlu1 %11716  ;;  %v11765_v12 = vmul.f32 0.03125, %v11720_v2 }
 0xe18   :  { %v11764_v28 = vmul.f32 0.03125, %v11717_v14 }
 0xe19   :  { %v31288_v9 = vsub.f32 %v31184_v7, %v11765_v12  ;;  %v28877_v7 = vld [vmem:[%s34626_s0 + $0x78] sm:$0xff] }
 0xe1a   :  { %v31294_v4 = vsub.f32 %v31189_v29, %v11764_v28 }
 0xe1b   :  { %v11797_v44 = vmul.f32 %v31288_v9, %v31288_v9 }
 0xe1c   :  { %v11796_v41 = vmul.f32 %v31294_v4, %v31294_v4 }
 0xe1e   :  { %v11812_v37 = vsel %vm135_vm0, %v11796_v41, 0.0 }
 0xe41   :  { %v11726_v35 = vpop.xlane.xlu1 %11725 }
 0xe42   :  { %v11723_v26 = vpop.xlane.xlu0 %11722  ;;  %v11767_v1 = vmul.f32 0.03125, %v11726_v35 }
 0xe43   :  { %v11766_v30 = vmul.f32 0.03125, %v11723_v26 }
 0xe44   :  { %v31310_v3 = vsub.f32 %v31200_v47, %v11767_v1  ;;  %v11815_v47 = vsel %vm135_vm0, %v11797_v44, 0.0 }
 0xe45   :  { %v31317_v50 = vsub.f32 %v31205_v55, %v11766_v30 }
 0xe46   :  { %v11799_v62 = vmul.f32 %v31310_v3, %v31310_v3 }
 0xe47   :  { %v11798_v55 = vmul.f32 %v31317_v50, %v31317_v50 }
 0xe48   :  { %v27223_v22 = vpop.f32.mrb[80].mxu1  ;;  %v11821_v49 = vsel %vm135_vm0, %v11799_v62, 0.0 }
 0xe49   :  { %v11690_v20 = vadd.f32 %v27223_v22, %v31177_v57  ;;  %v11619_v43 = vpop.f32.mrb[81].mxu1  ;;  %v11818_v22 = vsel %vm135_vm0, %v11798_v55, 0.0 }
 0xe4a   :  { %v11689_v10 = vadd.f32 %v31177_v57, %v11619_v43 }
 0xe4b   :  { %v31248_v63 = vadd.f32 %v28871_v51, %v11690_v20 }
 0xe4c   :  { %v31253_v31 = vadd.f32 %v28872_v33, %v11689_v10  ;;  %v27226_v23 = vpop.f32.mrb[82].mxu1 }
 0xe4d   :  { %v11692_v34 = vadd.f32 %v27226_v23, %v31177_v57  ;;  %v11629_v15 = vpop.f32.mrb[83].mxu1  ;;  %v11742_v18 = vsel %vm135_vm0, %v31248_v63, 0.0 }
 0xe4e   :  { %v11691_v56 = vadd.f32 %v31177_v57, %v11629_v15  ;;  %11743 = vadd.xlane.f32.xlu1 %v11742_v18  ;;  %v11739_v52 = vsel %vm135_vm0, %v31253_v31, 0.0 }
 0xe4f   :  { %v31264_v36 = vadd.f32 %v28873_v6, %v11692_v34  ;;  %11740 = vadd.xlane.f32.xlu0 %v11739_v52 }
 0xe50   :  { %v31269_v17 = vadd.f32 %v28874_v25, %v11691_v56  ;;  %v27229_v8 = vpop.f32.mrb[84].mxu1 }
 0xe51   :  { %v11694_v11 = vadd.f32 %v27229_v8, %v31177_v57  ;;  %v11639_v53 = vpop.f32.mrb[85].mxu1  ;;  %v11748_v58 = vsel %vm135_vm0, %v31264_v36, 0.0 }
 0xe52   :  { %v11693_v59 = vadd.f32 %v31177_v57, %v11639_v53  ;;  %11749 = vadd.xlane.f32.xlu1 %v11748_v58  ;;  %v11745_v45 = vsel %vm135_vm0, %v31269_v17, 0.0 }
 0xe53   :  { %v31280_v42 = vadd.f32 %v28875_v13, %v11694_v11  ;;  %11746 = vadd.xlane.f32.xlu0 %v11745_v45  ;;  %v28208_v11 = vld [vmem:[%s34689_s10 + $0x8] sm:$0xff]  }
 0xe54   :  { %v31285_v48 = vadd.f32 %v28876_v54, %v11693_v59  ;;  %v27232_v27 = vpop.f32.mrb[86].mxu1 }
 0xe55   :  { %v11696_v61 = vadd.f32 %v27232_v27, %v31177_v57  ;;  %v11649_v32 = vpop.f32.mrb[87].mxu1  ;;  %v11754_v21 = vsel %vm135_vm0, %v31280_v42, 0.0 }
 0xe56   :  { %v11695_v46 = vadd.f32 %v31177_v57, %v11649_v32  ;;  %11755 = vadd.xlane.f32.xlu1 %v11754_v21  ;;  %v11751_v16 = vsel %vm135_vm0, %v31285_v48, 0.0 }
 0xe57   :  { %v31302_v38 = vadd.f32 %v28877_v7, %v11696_v61  ;;  %11752 = vadd.xlane.f32.xlu0 %v11751_v16 }
 0xe58   :  { %v31307_v29 = vadd.f32 %v28878_v39, %v11695_v46 }
 0xe59   :  { %v11760_v57 = vsel %vm135_vm0, %v31302_v38, 0.0 }
 0xe5a   :  { %11761 = vadd.xlane.f32.xlu1 %v11760_v57  ;;  %v11757_v0 = vsel %vm135_vm0, %v31307_v29, 0.0 }
 0xe5b   :  { %11758 = vadd.xlane.f32.xlu0 %v11757_v0 }
 0xe5e   :  { %11816 = vadd.xlane.f32.xlu1 %v11815_v47 }
 0xe5f   :  { %11813 = vadd.xlane.f32.xlu0 %v11812_v37 }
 0xe62   :  { %11822 = vadd.xlane.f32.xlu1 %v11821_v49 }
 0xe63   :  { %11819 = vadd.xlane.f32.xlu0 %v11818_v22 }
 0xe76   :  { %v11732_v20 = vpop.xlane.xlu1 %11731 }
 0xe77   :  { %v11769_v43 = vmul.f32 0.03125, %v11732_v20  ;;  %v11729_v10 = vpop.xlane.xlu0 %11728 }
 0xe78   :  { %v11768_v51 = vmul.f32 0.03125, %v11729_v10 }
 0xe79   :  { %v31332_v33 = vsub.f32 %v31216_v60, %v11769_v43 }
 0xe7a   :  { %v31335_v23 = vsub.f32 %v31221_v19, %v11768_v51  ;;  %v11738_v34 = vpop.xlane.xlu1 %11737 }
 0xe7b   :  { %v11771_v15 = vmul.f32 0.03125, %v11738_v34  ;;  %v11735_v18 = vpop.xlane.xlu0 %11734  ;;  %v11801_v2 = vmul.f32 %v31332_v33, %v31332_v33 }
 0xe7c   :  { %v11770_v14 = vmul.f32 0.03125, %v11735_v18  ;;  %v11800_v56 = vmul.f32 %v31335_v23, %v31335_v23 }
 0xe7d   :  { %v31342_v52 = vsub.f32 %v31232_v5, %v11771_v15  ;;  %v11827_v6 = vsel %vm135_vm0, %v11801_v2, 0.0  ;;  %v28207_v5 = vld [vmem:[%s34689_s10] sm:$0xff]   ;;  %s34691_s10 = sld [smem:[#allocation52_spill]] }
 0xe7e   :  { %v31346_v60 = vsub.f32 %v31237_v24, %v11770_v14  ;;  %11828 = vadd.xlane.f32.xlu1 %v11827_v6  ;;  %v11824_v19 = vsel %vm135_vm0, %v11800_v56, 0.0  ;;  %27233 = vmatprep.subr.bf16.mxu0 %v28207_v5 }
 0xe7f   :  { %11825 = vadd.xlane.f32.xlu0 %v11824_v19  ;;  %v11803_v25 = vmul.f32 %v31342_v52, %v31342_v52  ;;  %27234 = vmatpush3.bf16.msra.mxu0 %v28207_v5 }
 0xe80   :  { %v11802_v8 = vmul.f32 %v31346_v60, %v31346_v60  ;;  %27235 = vmatprep.subr.bf16.mxu0 %v28208_v11 }
 0xe81   :  { %v11833_v12 = vsel %vm135_vm0, %v11803_v25, 0.0 }
 0xe82   :  { %11834 = vadd.xlane.f32.xlu1 %v11833_v12  ;;  %v11830_v24 = vsel %vm135_vm0, %v11802_v8, 0.0 }
 0xe83   :  { %11831 = vadd.xlane.f32.xlu0 %v11830_v24  ;;  %27236 = vmatpush3.bf16.msra.mxu0 %v28208_v11  ;;  %v31412_v24 = vld [vmem:[%s34690_s6] ss:$0 sm:$0xff]  ;;  %s34695_s6 = sld [smem:[#allocation57_spill]] }
 0xedb   :  { %v11744_v53 = vpop.xlane.xlu1 %11743 }
 0xedc   :  { %v11773_v58 = vmul.f32 0.03125, %v11744_v53  ;;  %v11741_v28 = vpop.xlane.xlu0 %11740 }
 0xedd   :  { %v11772_v35 = vmul.f32 0.03125, %v11741_v28 }
 0xede   :  { %v31362_v59 = vsub.f32 %v31248_v63, %v11773_v58  ;;  %v31418_v58 = vld [vmem:[%s34691_s10] ss:$0 sm:$0xff] }
 0xedf   :  { %v31365_v45 = vsub.f32 %v31253_v31, %v11772_v35  ;;  %v11750_v26 = vpop.xlane.xlu1 %11749 }
 0xee0   :  { %v11775_v13 = vmul.f32 0.03125, %v11750_v26  ;;  %v11747_v54 = vpop.xlane.xlu0 %11746  ;;  %v11805_v27 = vmul.f32 %v31362_v59, %v31362_v59 }
 0xee1   :  { %v11774_v1 = vmul.f32 0.03125, %v11747_v54  ;;  %v11804_v61 = vmul.f32 %v31365_v45, %v31365_v45 }
 0xee2   :  { %v31372_v32 = vsub.f32 %v31264_v36, %v11775_v13  ;;  %v11839_v21 = vsel %vm135_vm0, %v11805_v27, 0.0 }
 0xee3   :  { %v31376_v63 = vsub.f32 %v31269_v17, %v11774_v1  ;;  %v11756_v31 = vpop.xlane.xlu1 %11755  ;;  %11840 = vadd.xlane.f32.xlu1 %v11839_v21  ;;  %v11836_v30 = vsel %vm135_vm0, %v11804_v61, 0.0 }
 0xee4   :  { %v11777_v46 = vmul.f32 0.03125, %v11756_v31  ;;  %11837 = vadd.xlane.f32.xlu0 %v11836_v30  ;;  %v11753_v16 = vpop.xlane.xlu0 %11752  ;;  %v11807_v7 = vmul.f32 %v31372_v32, %v31372_v32 }
 0xee5   :  { %v11776_v39 = vmul.f32 0.03125, %v11753_v16  ;;  %v11806_v36 = vmul.f32 %v31376_v63, %v31376_v63 }
 0xee6   :  { %v31384_v57 = vsub.f32 %v31280_v42, %v11777_v46  ;;  %v11845_v17 = vsel %vm135_vm0, %v11807_v7, 0.0 }
 0xee7   :  { %v31388_v44 = vsub.f32 %v31285_v48, %v11776_v39  ;;  %v11762_v0 = vpop.xlane.xlu1 %11761  ;;  %11846 = vadd.xlane.f32.xlu1 %v11845_v17  ;;  %v11842_v41 = vsel %vm135_vm0, %v11806_v36, 0.0 }
 0xee8   :  { %v11779_v47 = vmul.f32 0.03125, %v11762_v0  ;;  %11843 = vadd.xlane.f32.xlu0 %v11842_v41  ;;  %v11759_v62 = vpop.xlane.xlu0 %11758  ;;  %v11809_v37 = vmul.f32 %v31384_v57, %v31384_v57 }
 0xee9   :  { %v11778_v55 = vmul.f32 0.03125, %v11759_v62  ;;  %v11808_v42 = vmul.f32 %v31388_v44, %v31388_v44 }
 0xeea   :  { %v31396_v49 = vsub.f32 %v31302_v38, %v11779_v47  ;;  %v11851_v48 = vsel %vm135_vm0, %v11809_v37, 0.0 }
 0xeeb   :  { %v31400_v22 = vsub.f32 %v31307_v29, %v11778_v55  ;;  %11852 = vadd.xlane.f32.xlu1 %v11851_v48  ;;  %v11817_v20 = vpop.xlane.xlu1 %11816  ;;  %v11848_v43 = vsel %vm135_vm0, %v11808_v42, 0.0  ;;  %v28209_v42 = vld [vmem:[%s34692_s29] sm:$0xff]   ;;  %v28210_v48 = vld [vmem:[%s34692_s29 + $0x8] sm:$0xff]  }
 0xeec   :  { %v11861_v10 = vmul.f32 0.03125, %v11817_v20  ;;  %11849 = vadd.xlane.f32.xlu0 %v11848_v43  ;;  %v11814_v51 = vpop.xlane.xlu0 %11813  ;;  %v11811_v34 = vmul.f32 %v31396_v49, %v31396_v49  ;;  %27253 = vmatprep.subr.bf16.mxu1 %v28209_v42 }
 0xeed   :  { %v11860_v15 = vmul.f32 0.03125, %v11814_v51  ;;  %v11810_v38 = vmul.f32 %v31400_v22, %v31400_v22  ;;  %27254 = vmatpush3.bf16.msra.mxu1 %v28209_v42 }
 0xeee   :  { %v11877_v18 = vadd.f32 1e-05, %v11861_v10  ;;  %v11857_v2 = vsel %vm135_vm0, %v11811_v34, 0.0  ;;  %27255 = vmatprep.subr.bf16.mxu1 %v28210_v48 }
 0xeef   :  { %v11876_v14 = vadd.f32 1e-05, %v11860_v15  ;;  %11858 = vadd.xlane.f32.xlu1 %v11857_v2  ;;  %v11823_v29 = vpop.xlane.xlu1 %11822  ;;  %v11854_v56 = vsel %vm135_vm0, %v11810_v38, 0.0 }
 0xef0   :  { %28479 = vrsqrt.f32 %v11877_v18  ;;  %v11863_v6 = vmul.f32 0.03125, %v11823_v29  ;;  %11855 = vadd.xlane.f32.xlu0 %v11854_v56  ;;  %v11820_v19 = vpop.xlane.xlu0 %11819 }
 0xef1   :  { %28481 = vrsqrt.f32 %v11876_v14  ;;  %v11862_v25 = vmul.f32 0.03125, %v11820_v19  ;;  %27256 = vmatpush3.bf16.msra.mxu1 %v28210_v48 }
 0xef2   :  { %v11879_v8 = vadd.f32 1e-05, %v11863_v6 }
 0xef3   :  { %v11878_v12 = vadd.f32 1e-05, %v11862_v25 }
 0xef4   :  { %28483 = vrsqrt.f32 %v11879_v8  ;;  %v28212_v8 = vld [vmem:[%s34692_s29 + $0x18] sm:$0xff]  }
 0xef5   :  { %28485 = vrsqrt.f32 %v11878_v12 }
 0xefa   :  { %v28480_v5 = vpop.eup %28479 }
 0xefb   :  { %v28482_v11 = vpop.eup %28481  ;;  %v11909_v53 = vmul.f32 %v28480_v5, %v31288_v9 }
 0xefc   :  { %v11908_v28 = vmul.f32 %v28482_v11, %v31294_v4 }
 0xefd   :  { %v11931_v35 = vmul.f32 %v31412_v24, %v11909_v53 }
 0xefe   :  { %v28484_v26 = vpop.eup %28483  ;;  %v11930_v13 = vmul.f32 %v31412_v24, %v11908_v28 }
 0xeff   :  { %v28486_v54 = vpop.eup %28485  ;;  %v11911_v27 = vmul.f32 %v28484_v26, %v31310_v3  ;;  %v31425_v1 = vadd.f32 %v31418_v58, %v11931_v35 }
 0xf00   :  { %v11910_v9 = vmul.f32 %v28486_v54, %v31317_v50  ;;  %v31429_v61 = vadd.f32 %v31418_v58, %v11930_v13 }
 0xf01   :  { %v11933_v21 = vmul.f32 %v31412_v24, %v11911_v27 }
 0xf02   :  { %v11932_v4 = vmul.f32 %v31412_v24, %v11910_v9  ;;  %v11968_v31 = vpack.c.bf16 %v31425_v1, %v31429_v61 }
 0xf03   :  { %v31436_v30 = vadd.f32 %v31418_v58, %v11933_v21 }
 0xf04   :  { %27237 = vmatprep.mubr.msk.bf16.mxu0 %vm135_vm0, %v11968_v31  ;;  %v31440_v3 = vadd.f32 %v31418_v58, %v11932_v4 }
 0xf06   :  { %v11969_v50 = vpack.c.bf16 %v31436_v30, %v31440_v3 }
 0xf08   :  { %27238 = vmatmul.mubr.msk.bf16.vlgmr.msra.gmra.mrb[160].mxu0 %vm135_vm0, %v11969_v50 }
 0xf0b   :  { %v11829_v46 = vpop.xlane.xlu1 %11828 }
 0xf0c   :  { %v11865_v16 = vmul.f32 0.03125, %v11829_v46  ;;  %v11826_v7 = vpop.xlane.xlu0 %11825 }
 0xf0d   :  { %v11864_v39 = vmul.f32 0.03125, %v11826_v7 }
 0xf0e   :  { %v11881_v36 = vadd.f32 1e-05, %v11865_v16 }
 0xf0f   :  { %v11880_v17 = vadd.f32 1e-05, %v11864_v39  ;;  %v11835_v0 = vpop.xlane.xlu1 %11834 }
 0xf10   :  { %28487 = vrsqrt.f32 %v11881_v36  ;;  %v11867_v41 = vmul.f32 0.03125, %v11835_v0  ;;  %v11832_v47 = vpop.xlane.xlu0 %11831 }
 0xf11   :  { %28489 = vrsqrt.f32 %v11880_v17  ;;  %v11866_v62 = vmul.f32 0.03125, %v11832_v47 }
 0xf12   :  { %v11883_v37 = vadd.f32 1e-05, %v11867_v41 }
 0xf13   :  { %v11882_v55 = vadd.f32 1e-05, %v11866_v62 }
 0xf14   :  { %28491 = vrsqrt.f32 %v11883_v37 }
 0xf15   :  { %28493 = vrsqrt.f32 %v11882_v55 }
 0xf1a   :  { %v28488_v20 = vpop.eup %28487 }
 0xf1b   :  { %v28490_v43 = vpop.eup %28489  ;;  %v11913_v10 = vmul.f32 %v28488_v20, %v31332_v33 }
 0xf1c   :  { %v11912_v51 = vmul.f32 %v28490_v43, %v31335_v23 }
 0xf1d   :  { %v11935_v34 = vmul.f32 %v31412_v24, %v11913_v10 }
 0xf1e   :  { %v28492_v15 = vpop.eup %28491  ;;  %v11934_v38 = vmul.f32 %v31412_v24, %v11912_v51 }
 0xf1f   :  { %v28494_v18 = vpop.eup %28493  ;;  %v31456_v2 = vadd.f32 %v31418_v58, %v11935_v34  ;;  %v11915_v14 = vmul.f32 %v28492_v15, %v31342_v52 }
 0xf20   :  { %v31460_v29 = vadd.f32 %v31418_v58, %v11934_v38  ;;  %v11914_v56 = vmul.f32 %v28494_v18, %v31346_v60  ;;  %v28211_v60 = vld [vmem:[%s34692_s29 + $0x10] sm:$0xff]  }
 0xf21   :  { %v11937_v33 = vmul.f32 %v31412_v24, %v11915_v14  ;;  %27257 = vmatprep.subr.bf16.mxu1 %v28211_v60 }
 0xf22   :  { %v11970_v23 = vpack.c.bf16 %v31456_v2, %v31460_v29  ;;  %v11936_v6 = vmul.f32 %v31412_v24, %v11914_v56  ;;  %27258 = vmatpush3.bf16.msra.mxu1 %v28211_v60 }
 0xf23   :  { %v31468_v19 = vadd.f32 %v31418_v58, %v11937_v33  ;;  %27259 = vmatprep.subr.bf16.mxu1 %v28212_v8 }
 0xf24   :  { %27241 = vmatprep.mubr.msk.bf16.mxu0 %vm135_vm0, %v11970_v23  ;;  %v31472_v25 = vadd.f32 %v31418_v58, %v11936_v6 }
 0xf26   :  { %v11971_v52 = vpack.c.bf16 %v31468_v19, %v31472_v25  ;;  %27260 = vmatpush3.bf16.msra.mxu1 %v28212_v8 }
 0xf27   :  { %27297 = vmatprep.subr.mxu1 %v34655_v40 }
 0xf28   :  { %27242 = vmatmul.mubr.msk.bf16.gmra.mrb[164].mxu0 %vm135_vm0, %v11971_v52 }
 0xf70   :  { %v11841_v12 = vpop.xlane.xlu1 %11840 }
 0xf71   :  { %v11869_v5 = vmul.f32 0.03125, %v11841_v12  ;;  %v11838_v11 = vpop.xlane.xlu0 %11837 }
 0xf72   :  { %v11868_v53 = vmul.f32 0.03125, %v11838_v11 }
 0xf73   :  { %v11885_v28 = vadd.f32 1e-05, %v11869_v5 }
 0xf74   :  { %v11884_v35 = vadd.f32 1e-05, %v11868_v53  ;;  %v11847_v26 = vpop.xlane.xlu1 %11846 }
 0xf75   :  { %28495 = vrsqrt.f32 %v11885_v28  ;;  %v11871_v13 = vmul.f32 0.03125, %v11847_v26  ;;  %v11844_v54 = vpop.xlane.xlu0 %11843 }
 0xf76   :  { %28497 = vrsqrt.f32 %v11884_v35  ;;  %v11870_v27 = vmul.f32 0.03125, %v11844_v54 }
 0xf77   :  { %v11887_v9 = vadd.f32 1e-05, %v11871_v13 }
 0xf78   :  { %v11886_v21 = vadd.f32 1e-05, %v11870_v27  ;;  %v11853_v4 = vpop.xlane.xlu1 %11852 }
 0xf79   :  { %28499 = vrsqrt.f32 %v11887_v9  ;;  %v11873_v31 = vmul.f32 0.03125, %v11853_v4  ;;  %v11850_v50 = vpop.xlane.xlu0 %11849 }
 0xf7a   :  { %28501 = vrsqrt.f32 %v11886_v21  ;;  %v11872_v46 = vmul.f32 0.03125, %v11850_v50 }
 0xf7b   :  { %v11889_v16 = vadd.f32 1e-05, %v11873_v31 }
 0xf7c   :  { %v11888_v7 = vadd.f32 1e-05, %v11872_v46  ;;  %v11859_v39 = vpop.xlane.xlu1 %11858 }
 0xf7d   :  { %28503 = vrsqrt.f32 %v11889_v16  ;;  %v11875_v36 = vmul.f32 0.03125, %v11859_v39  ;;  %v11856_v17 = vpop.xlane.xlu0 %11855 }
 0xf7e   :  { %28505 = vrsqrt.f32 %v11888_v7  ;;  %v11874_v0 = vmul.f32 0.03125, %v11856_v17 }
 0xf7f   :  { %v28496_v41 = vpop.eup %28495  ;;  %v11891_v47 = vadd.f32 1e-05, %v11875_v36 }
 0xf80   :  { %v28498_v62 = vpop.eup %28497  ;;  %v11890_v37 = vadd.f32 1e-05, %v11874_v0  ;;  %v11917_v55 = vmul.f32 %v28496_v41, %v31362_v59 }
 0xf81   :  { %28507 = vrsqrt.f32 %v11891_v47  ;;  %v11916_v42 = vmul.f32 %v28498_v62, %v31365_v45 }
 0xf82   :  { %28509 = vrsqrt.f32 %v11890_v37  ;;  %v11939_v48 = vmul.f32 %v31412_v24, %v11917_v55 }
 0xf83   :  { %v28500_v20 = vpop.eup %28499  ;;  %v11938_v43 = vmul.f32 %v31412_v24, %v11916_v42 }
 0xf84   :  { %v28502_v10 = vpop.eup %28501  ;;  %v31489_v51 = vadd.f32 %v31418_v58, %v11939_v48  ;;  %v11919_v34 = vmul.f32 %v28500_v20, %v31372_v32 }
 0xf85   :  { %v31493_v15 = vadd.f32 %v31418_v58, %v11938_v43  ;;  %v11918_v59 = vmul.f32 %v28502_v10, %v31376_v63 }
 0xf86   :  { %v11941_v38 = vmul.f32 %v31412_v24, %v11919_v34 }
 0xf87   :  { %v28504_v45 = vpop.eup %28503  ;;  %v11972_v18 = vpack.c.bf16 %v31489_v51, %v31493_v15  ;;  %v11940_v14 = vmul.f32 %v31412_v24, %v11918_v59 }
 0xf88   :  { %v28506_v56 = vpop.eup %28505  ;;  %v31501_v33 = vadd.f32 %v31418_v58, %v11941_v38  ;;  %v11921_v23 = vmul.f32 %v28504_v45, %v31384_v57 }
 0xf89   :  { %27245 = vmatprep.mubr.msk.bf16.mxu0 %vm135_vm0, %v11972_v18  ;;  %v31506_v32 = vadd.f32 %v31418_v58, %v11940_v14  ;;  %v11920_v63 = vmul.f32 %v28506_v56, %v31388_v44 }
 0xf8a   :  { %v11943_v6 = vmul.f32 %v31412_v24, %v11921_v23 }
 0xf8b   :  { %v28508_v52 = vpop.eup %28507  ;;  %v11973_v60 = vpack.c.bf16 %v31501_v33, %v31506_v32  ;;  %v11942_v8 = vmul.f32 %v31412_v24, %v11920_v63 }
 0xf8c   :  { %v28510_v12 = vpop.eup %28509  ;;  %v31514_v5 = vadd.f32 %v31418_v58, %v11943_v6  ;;  %v11923_v57 = vmul.f32 %v28508_v52, %v31396_v49 }
 0xf8d   :  { %27246 = vmatmul.mubr.msk.bf16.gmra.mrb[168].mxu0 %vm135_vm0, %v11973_v60  ;;  %v31519_v11 = vadd.f32 %v31418_v58, %v11942_v8  ;;  %v11922_v44 = vmul.f32 %v28510_v12, %v31400_v22  ;;  %v25428_v22 = vld [vmem:[%s34693_s1] ss:$0 sm:$0xff] }
 0xf8e   :  { %v11945_v53 = vmul.f32 %v31412_v24, %v11923_v57 }
 0xf8f   :  { %v11974_v28 = vpack.c.bf16 %v31514_v5, %v31519_v11  ;;  %v11944_v35 = vmul.f32 %v31412_v24, %v11922_v44 }
 0xf90   :  { %v31527_v26 = vadd.f32 %v31418_v58, %v11945_v53 }
 0xf91   :  { %27249 = vmatprep.mubr.msk.bf16.mxu0 %vm135_vm0, %v11974_v28  ;;  %v31531_v49 = vadd.f32 %v31418_v58, %v11944_v35 }
 0xf93   :  { %v11975_v13 = vpack.c.bf16 %v31527_v26, %v31531_v49 }
 0xf95   :  { %27250 = vmatmul.mubr.msk.bf16.gmra.mrb[172].mxu0 %vm135_vm0, %v11975_v13 }
 0xfdb   :  { %v27239_v54 = vpop.f32.mrb[160].mxu0 }
 0xfdc   :  { %v12066_v27 = vadd.f32 %v27239_v54, %v25428_v22  ;;  %v12057_v24 = vpop.f32.mrb[161].mxu0 }
 0xfdd   :  { %v12058_v9 = vadd.f32 %v25428_v22, %v12057_v24  ;;  %v27240_v21 = vpop.f32.mrb[162].mxu0 }
 0xfde   :  { %v12069_v4 = vadd.f32 %v27240_v21, %v25428_v22  ;;  %v12060_v31 = vpop.f32.mrb[163].mxu0  ;;  %v12122_v46 = vmax.f32 %v12066_v27, 0.0 }
 0xfdf   :  { %v12061_v50 = vadd.f32 %v25428_v22, %v12060_v31  ;;  %v12120_v16 = vmax.f32 %v12058_v9, 0.0 }
 0xfe0   :  { %v12123_v58 = vmax.f32 %v12069_v4, 0.0 }
 0xfe1   :  { %v12121_v7 = vmax.f32 %v12061_v50, 0.0 }
 0xfe2   :  { %v12137_v39 = vpack.c.bf16 %v12123_v58, %v12122_v46 }
 0xfe3   :  { %v12136_v36 = vpack.c.bf16 %v12121_v7, %v12120_v16  ;;  %v31552_v16 = vld [vmem:[%s34694_s28] ss:$0 sm:$0xff] }
 0xfe5   :  { %27261 = vmatprep.mubr.msk.bf16.mxu1 %vm12183_vm3, %v12136_v36 }
 0xfe6   :  { %27262 = vmatmul.mubr.msk.bf16.vlgmr.msra.gmra.mrb[128].mxu1 %vm12183_vm3, %v12137_v39 }
 0xffb   :  { %v27243_v17 = vpop.f32.mrb[164].mxu0 }
 0xffc   :  { %v12082_v0 = vadd.f32 %v27243_v17, %v25428_v22  ;;  %v12073_v41 = vpop.f32.mrb[165].mxu0 }
 0xffd   :  { %v12074_v47 = vadd.f32 %v25428_v22, %v12073_v41  ;;  %v27244_v62 = vpop.f32.mrb[166].mxu0 }
 0xffe   :  { %v12085_v37 = vadd.f32 %v27244_v62, %v25428_v22  ;;  %v12076_v55 = vpop.f32.mrb[167].mxu0  ;;  %v12126_v48 = vmax.f32 %v12082_v0, 0.0 }
 0xfff   :  { %v12077_v42 = vadd.f32 %v25428_v22, %v12076_v55  ;;  %v12124_v43 = vmax.f32 %v12074_v47, 0.0 }
0x1000   :  { %v12127_v20 = vmax.f32 %v12085_v37, 0.0 }
0x1001   :  { %v12125_v10 = vmax.f32 %v12077_v42, 0.0 }
0x1002   :  { %v12139_v34 = vpack.c.bf16 %v12127_v20, %v12126_v48 }
0x1003   :  { %v12138_v59 = vpack.c.bf16 %v12125_v10, %v12124_v43 }
0x1005   :  { %27265 = vmatprep.mubr.msk.bf16.mxu1 %vm12183_vm3, %v12138_v59 }
0x1006   :  { %27266 = vmatmul.mubr.msk.bf16.gmra.mrb[132].mxu1 %vm12183_vm3, %v12139_v34 }
0x1060   :  { %v27247_v38 = vpop.f32.mrb[168].mxu0 }
0x1061   :  { %v12098_v45 = vadd.f32 %v27247_v38, %v25428_v22  ;;  %v12089_v18 = vpop.f32.mrb[169].mxu0 }
0x1062   :  { %v12090_v14 = vadd.f32 %v25428_v22, %v12089_v18  ;;  %v27248_v56 = vpop.f32.mrb[170].mxu0 }
0x1063   :  { %v12101_v23 = vadd.f32 %v27248_v56, %v25428_v22  ;;  %v12092_v63 = vpop.f32.mrb[171].mxu0  ;;  %v12130_v52 = vmax.f32 %v12098_v45, 0.0 }
0x1064   :  { %v12093_v6 = vadd.f32 %v25428_v22, %v12092_v63  ;;  %v12128_v8 = vmax.f32 %v12090_v14, 0.0 }
0x1065   :  { %v12131_v60 = vmax.f32 %v12101_v23, 0.0 }
0x1066   :  { %v12129_v12 = vmax.f32 %v12093_v6, 0.0 }
0x1067   :  { %v12141_v57 = vpack.c.bf16 %v12131_v60, %v12130_v52 }
0x1068   :  { %v12140_v44 = vpack.c.bf16 %v12129_v12, %v12128_v8  ;;  %v27251_v53 = vpop.f32.mrb[172].mxu0 }
0x1069   :  { %v12114_v28 = vadd.f32 %v27251_v53, %v25428_v22  ;;  %v12105_v35 = vpop.f32.mrb[173].mxu0 }
0x106a   :  { %v12106_v13 = vadd.f32 %v25428_v22, %v12105_v35  ;;  %v27252_v54 = vpop.f32.mrb[174].mxu0  ;;  %27269 = vmatprep.mubr.msk.bf16.mxu1 %vm12183_vm3, %v12140_v44 }
0x106b   :  { %v12117_v27 = vadd.f32 %v27252_v54, %v25428_v22  ;;  %v12108_v24 = vpop.f32.mrb[175].mxu0  ;;  %27270 = vmatmul.mubr.msk.bf16.gmra.mrb[136].mxu1 %vm12183_vm3, %v12141_v57  ;;  %v12134_v21 = vmax.f32 %v12114_v28, 0.0 }
0x106c   :  { %v12109_v9 = vadd.f32 %v25428_v22, %v12108_v24  ;;  %v12132_v31 = vmax.f32 %v12106_v13, 0.0 }
0x106d   :  { %v12135_v4 = vmax.f32 %v12117_v27, 0.0 }
0x106e   :  { %v12133_v50 = vmax.f32 %v12109_v9, 0.0 }
0x106f   :  { %v12143_v46 = vpack.c.bf16 %v12135_v4, %v12134_v21 }
0x1070   :  { %v12142_v58 = vpack.c.bf16 %v12133_v50, %v12132_v31 }
0x1072   :  { %27273 = vmatprep.mubr.msk.bf16.mxu1 %vm12183_vm3, %v12142_v58 }
0x1073   :  { %27274 = vmatmul.mubr.msk.bf16.gmra.mrb[140].mxu1 %vm12183_vm3, %v12143_v46 }
0x1074   :  { %27299 = vmatprep.mubr.msk.f32.mxu1 %vm28904_vm1, %v34655_v40 }
0x10b9   :  { %v27263_v7 = vpop.f32.mrb[128].mxu1 }
0x10ba   :  { %v12242_v22 = vpop.f32.mrb[129].mxu1  ;;  %v12251_v39 = vadd.f32 %v27263_v7, %v31552_v16 }
0x10bb   :  { %v12243_v36 = vadd.f32 %v31552_v16, %v12242_v22  ;;  %v27264_v17 = vpop.f32.mrb[130].mxu1 }
0x10bc   :  { %v12245_v0 = vpop.f32.mrb[131].mxu1  ;;  %v12254_v47 = vadd.f32 %v27264_v17, %v31552_v16  ;;  %v31562_v37 = vadd.f32 %v12251_v39, %v31440_v3 }
0x10bd   :  { %v31557_v41 = vadd.f32 %v12243_v36, %v31429_v61  ;;  %v12246_v62 = vadd.f32 %v31552_v16, %v12245_v0 }
0x10be   :  { %v31570_v48 = vadd.f32 %v12254_v47, %v31436_v30  ;;  %v12329_v20 = vsel %vm135_vm0, %v31562_v37, 0.0 }
0x10bf   :  { %v31565_v55 = vadd.f32 %v12246_v62, %v31425_v1  ;;  %v12323_v42 = vsel %vm135_vm0, %v31557_v41, 0.0 }
0x10c0   :  { %12324 = vadd.xlane.f32.xlu0 %v12323_v42  ;;  %v12332_v3 = vsel %vm135_vm0, %v31570_v48, 0.0 }
0x10c1   :  { %v12326_v61 = vsel %vm135_vm0, %v31565_v55, 0.0 }
0x10c2   :  { %12327 = vadd.xlane.f32.xlu1 %v12326_v61 }
0x10c4   :  { %12330 = vadd.xlane.f32.xlu0 %v12329_v20 }
0x10c6   :  { %12333 = vadd.xlane.f32.xlu1 %v12332_v3 }
0x10d9   :  { %v27267_v1 = vpop.f32.mrb[132].mxu1 }
0x10da   :  { %v12258_v43 = vpop.f32.mrb[133].mxu1  ;;  %v12267_v10 = vadd.f32 %v27267_v1, %v31552_v16 }
0x10db   :  { %v12259_v34 = vadd.f32 %v31552_v16, %v12258_v43  ;;  %v27268_v30 = vpop.f32.mrb[134].mxu1 }
0x10dc   :  { %v12261_v59 = vpop.f32.mrb[135].mxu1  ;;  %v12270_v45 = vadd.f32 %v27268_v30, %v31552_v16  ;;  %v31586_v14 = vadd.f32 %v12267_v10, %v31472_v25 }
0x10dd   :  { %v31581_v38 = vadd.f32 %v12259_v34, %v31460_v29  ;;  %v12262_v18 = vadd.f32 %v31552_v16, %v12261_v59 }
0x10de   :  { %v31594_v63 = vadd.f32 %v12270_v45, %v31468_v19  ;;  %v12341_v6 = vsel %vm135_vm0, %v31586_v14, 0.0 }
0x10df   :  { %v31589_v56 = vadd.f32 %v12262_v18, %v31456_v2  ;;  %v12335_v23 = vsel %vm135_vm0, %v31581_v38, 0.0 }
0x10e0   :  { %12336 = vadd.xlane.f32.xlu0 %v12335_v23  ;;  %v12344_v25 = vsel %vm135_vm0, %v31594_v63, 0.0 }
0x10e1   :  { %v12338_v29 = vsel %vm135_vm0, %v31589_v56, 0.0 }
0x10e2   :  { %12339 = vadd.xlane.f32.xlu1 %v12338_v29 }
0x10e4   :  { %12342 = vadd.xlane.f32.xlu0 %v12341_v6 }
0x10e6   :  { %12345 = vadd.xlane.f32.xlu1 %v12344_v25 }
0x113e   :  { %v27271_v2 = vpop.f32.mrb[136].mxu1 }
0x113f   :  { %v12274_v52 = vpop.f32.mrb[137].mxu1  ;;  %v12283_v60 = vadd.f32 %v27271_v2, %v31552_v16 }
0x1140   :  { %v12275_v8 = vadd.f32 %v31552_v16, %v12274_v52  ;;  %v27272_v19 = vpop.f32.mrb[138].mxu1 }
0x1141   :  { %v12277_v12 = vpop.f32.mrb[139].mxu1  ;;  %v12286_v44 = vadd.f32 %v27272_v19, %v31552_v16  ;;  %v31610_v28 = vadd.f32 %v12283_v60, %v31506_v32 }
0x1142   :  { %v31605_v57 = vadd.f32 %v12275_v8, %v31493_v15  ;;  %v12278_v53 = vadd.f32 %v31552_v16, %v12277_v12 }
0x1143   :  { %v31618_v54 = vadd.f32 %v12286_v44, %v31501_v33 }
0x1144   :  { %v31613_v35 = vadd.f32 %v12278_v53, %v31489_v51  ;;  %v12347_v13 = vsel %vm135_vm0, %v31605_v57, 0.0  ;;  %v12353_v51 = vsel %vm135_vm0, %v31610_v28, 0.0 }
0x1145   :  { %12348 = vadd.xlane.f32.xlu0 %v12347_v13  ;;  %v12356_v46 = vsel %vm135_vm0, %v31618_v54, 0.0 }
0x1146   :  { %v27275_v27 = vpop.f32.mrb[140].mxu1  ;;  %v12350_v15 = vsel %vm135_vm0, %v31613_v35, 0.0 }
0x1147   :  { %12351 = vadd.xlane.f32.xlu1 %v12350_v15  ;;  %v12290_v24 = vpop.f32.mrb[141].mxu1  ;;  %v12299_v9 = vadd.f32 %v27275_v27, %v31552_v16  ;;  %v28213_v27 = vld [vmem:[%s34527_s13] sm:$0xff]  }
0x1148   :  { %v12291_v32 = vadd.f32 %v31552_v16, %v12290_v24  ;;  %v27276_v21 = vpop.f32.mrb[142].mxu1  ;;  %27277 = vmatprep.subr.bf16.mxu0 %v28213_v27 }
0x1149   :  { %12354 = vadd.xlane.f32.xlu0 %v12353_v51  ;;  %v12293_v4 = vpop.f32.mrb[143].mxu1  ;;  %v12302_v33 = vadd.f32 %v27276_v21, %v31552_v16  ;;  %v31634_v58 = vadd.f32 %v12299_v9, %v31531_v49  ;;  %27278 = vmatpush3.bf16.msra.mxu0 %v28213_v27 }
0x114a   :  { %v31627_v31 = vadd.f32 %v12291_v32, %v31519_v11  ;;  %v12294_v50 = vadd.f32 %v31552_v16, %v12293_v4 }
0x114b   :  { %12357 = vadd.xlane.f32.xlu1 %v12356_v46  ;;  %v31642_v39 = vadd.f32 %v12302_v33, %v31527_v26 }
0x114c   :  { %v31637_v7 = vadd.f32 %v12294_v50, %v31514_v5  ;;  %v12359_v22 = vsel %vm135_vm0, %v31627_v31, 0.0  ;;  %v12365_v5 = vsel %vm135_vm0, %v31634_v58, 0.0 }
0x114d   :  { %12360 = vadd.xlane.f32.xlu0 %v12359_v22  ;;  %v12325_v11 = vpop.xlane.xlu0 %12324  ;;  %v12368_v42 = vsel %vm135_vm0, %v31642_v39, 0.0 }
0x114e   :  { %v12371_v36 = vmul.f32 0.03125, %v12325_v11  ;;  %v12362_v16 = vsel %vm135_vm0, %v31637_v7, 0.0 }
0x114f   :  { %v12328_v17 = vpop.xlane.xlu1 %12327  ;;  %12363 = vadd.xlane.f32.xlu1 %v12362_v16 }
0x1150   :  { %v31647_v49 = vsub.f32 %v31557_v41, %v12371_v36  ;;  %v12372_v0 = vmul.f32 0.03125, %v12328_v17 }
0x1151   :  { %12366 = vadd.xlane.f32.xlu0 %v12365_v5  ;;  %v12331_v47 = vpop.xlane.xlu0 %12330 }
0x1152   :  { %v31652_v62 = vsub.f32 %v31565_v55, %v12372_v0  ;;  %v12373_v26 = vmul.f32 0.03125, %v12331_v47  ;;  %v12403_v61 = vmul.f32 %v31647_v49, %v31647_v49 }
0x1153   :  { %v12334_v20 = vpop.xlane.xlu1 %12333  ;;  %12369 = vadd.xlane.f32.xlu1 %v12368_v42 }
0x1154   :  { %v31659_v41 = vsub.f32 %v31562_v37, %v12373_v26  ;;  %v12374_v3 = vmul.f32 0.03125, %v12334_v20  ;;  %v12419_v1 = vsel %vm135_vm0, %v12403_v61, 0.0  ;;  %v12404_v43 = vmul.f32 %v31652_v62, %v31652_v62 }
0x1155   :  { %12420 = vadd.xlane.f32.xlu0 %v12419_v1 }
0x1156   :  { %v31665_v55 = vsub.f32 %v31570_v48, %v12374_v3  ;;  %v12422_v10 = vsel %vm135_vm0, %v12404_v43, 0.0  ;;  %v12405_v34 = vmul.f32 %v31659_v41, %v31659_v41 }
0x1157   :  { %12423 = vadd.xlane.f32.xlu1 %v12422_v10 }
0x1158   :  { %v12425_v30 = vsel %vm135_vm0, %v12405_v34, 0.0  ;;  %v12406_v37 = vmul.f32 %v31665_v55, %v31665_v55 }
0x1159   :  { %12426 = vadd.xlane.f32.xlu0 %v12425_v30 }
0x115a   :  { %v12428_v59 = vsel %vm135_vm0, %v12406_v37, 0.0 }
0x115b   :  { %12429 = vadd.xlane.f32.xlu1 %v12428_v59 }
0x116d   :  { %v12337_v45 = vpop.xlane.xlu0 %12336 }
0x116e   :  { %v12375_v18 = vmul.f32 0.03125, %v12337_v45 }
0x116f   :  { %v12340_v23 = vpop.xlane.xlu1 %12339 }
0x1170   :  { %v31675_v48 = vsub.f32 %v31581_v38, %v12375_v18  ;;  %v12376_v29 = vmul.f32 0.03125, %v12340_v23 }
0x1171   :  { %v12343_v6 = vpop.xlane.xlu0 %12342 }
0x1172   :  { %v31678_v25 = vsub.f32 %v31589_v56, %v12376_v29  ;;  %v12377_v2 = vmul.f32 0.03125, %v12343_v6  ;;  %v12407_v52 = vmul.f32 %v31675_v48, %v31675_v48 }
0x1173   :  { %v12346_v60 = vpop.xlane.xlu1 %12345 }
0x1174   :  { %v31683_v8 = vsub.f32 %v31586_v14, %v12377_v2  ;;  %v12378_v19 = vmul.f32 0.03125, %v12346_v60  ;;  %v12431_v12 = vsel %vm135_vm0, %v12407_v52, 0.0  ;;  %v12408_v38 = vmul.f32 %v31678_v25, %v31678_v25 }
0x1175   :  { %12432 = vadd.xlane.f32.xlu0 %v12431_v12 }
0x1176   :  { %v31689_v44 = vsub.f32 %v31594_v63, %v12378_v19  ;;  %v12434_v56 = vsel %vm135_vm0, %v12408_v38, 0.0  ;;  %v12409_v53 = vmul.f32 %v31683_v8, %v31683_v8  ;;  %v28214_v63 = vld [vmem:[%s34527_s13 + $0x8] sm:$0xff]  }
0x1177   :  { %12435 = vadd.xlane.f32.xlu1 %v12434_v56  ;;  %27279 = vmatprep.subr.bf16.mxu0 %v28214_v63 }
0x1178   :  { %v12437_v13 = vsel %vm135_vm0, %v12409_v53, 0.0  ;;  %v12410_v14 = vmul.f32 %v31689_v44, %v31689_v44  ;;  %27280 = vmatpush3.bf16.msra.mxu0 %v28214_v63 }
0x1179   :  { %12438 = vadd.xlane.f32.xlu0 %v12437_v13  ;;  %27307 = vmatprep.subr.mxu0 %v34655_v40 }
0x117a   :  { %v12440_v15 = vsel %vm135_vm0, %v12410_v14, 0.0 }
0x117b   :  { %12441 = vadd.xlane.f32.xlu1 %v12440_v15  ;;  %v31756_v15 = vld [vmem:[%s34695_s6] ss:$0 sm:$0xff]  ;;  %s28916_s6 = smov [#allocation2]  }
0x117c   :  { %s25150_s0 = sshll.u32 %s28916_s6, 4  ;;  %s25151_s0 = int_to_ptr.vmem [resolvable:$true] %s25150_s0 }
0x117d   :  { %s28879_s28 = scalar_lea.vmem %s25151_s0, 128  ;;  %p28884_p1 = scmp.lt.s32.totalorder %s25151_s0, %s25151_s0 }
0x117e   :  { %p28880_p0 = scmp.ne.s32.totalorder %s25151_s0, %s28879_s28  ;;  %p28885_p2 = scmp.lt.s32.totalorder %s28879_s28, %s28879_s28 }
0x1180   :  { %p28886_p3 = por %p28885_p2, %p28884_p1 }
0x1182   :  { %p28887_p4 = pnand %p28886_p3, %p28880_p0 }
0x11d2   :  { %v12349_v24 = vpop.xlane.xlu0 %12348 }
0x11d3   :  { %v12379_v9 = vmul.f32 0.03125, %v12349_v24 }
0x11d4   :  { %v12352_v32 = vpop.xlane.xlu1 %12351 }
0x11d5   :  { %v31706_v21 = vsub.f32 %v31605_v57, %v12379_v9  ;;  %v12380_v51 = vmul.f32 0.03125, %v12352_v32 }
0x11d6   :  { %v12355_v4 = vpop.xlane.xlu0 %12354 }
0x11d7   :  { %v31709_v33 = vsub.f32 %v31613_v35, %v12380_v51  ;;  %v12381_v50 = vmul.f32 0.03125, %v12355_v4  ;;  %v12411_v46 = vmul.f32 %v31706_v21, %v31706_v21  ;;  %v31764_v4 = vld [vmem:[%s34526_s12] ss:$0 sm:$0xff] }
0x11d8   :  { %v12358_v22 = vpop.xlane.xlu1 %12357 }
0x11d9   :  { %v31714_v11 = vsub.f32 %v31610_v28, %v12381_v50  ;;  %v12382_v36 = vmul.f32 0.03125, %v12358_v22  ;;  %v12443_v16 = vsel %vm135_vm0, %v12411_v46, 0.0  ;;  %v12412_v57 = vmul.f32 %v31709_v33, %v31709_v33 }
0x11da   :  { %12444 = vadd.xlane.f32.xlu0 %v12443_v16  ;;  %v12361_v17 = vpop.xlane.xlu0 %12360 }
0x11db   :  { %v31720_v0 = vsub.f32 %v31618_v54, %v12382_v36  ;;  %v12383_v35 = vmul.f32 0.03125, %v12361_v17  ;;  %v12446_v5 = vsel %vm135_vm0, %v12412_v57, 0.0  ;;  %v12413_v47 = vmul.f32 %v31714_v11, %v31714_v11 }
0x11dc   :  { %12447 = vadd.xlane.f32.xlu1 %v12446_v5  ;;  %v12364_v28 = vpop.xlane.xlu1 %12363 }
0x11dd   :  { %v31726_v26 = vsub.f32 %v31627_v31, %v12383_v35  ;;  %v12384_v42 = vmul.f32 0.03125, %v12364_v28  ;;  %v12449_v61 = vsel %vm135_vm0, %v12413_v47, 0.0  ;;  %v12414_v20 = vmul.f32 %v31720_v0, %v31720_v0 }
0x11de   :  { %12450 = vadd.xlane.f32.xlu0 %v12449_v61  ;;  %v12367_v54 = vpop.xlane.xlu0 %12366 }
0x11df   :  { %v31732_v3 = vsub.f32 %v31637_v7, %v12384_v42  ;;  %v12385_v1 = vmul.f32 0.03125, %v12367_v54  ;;  %v12452_v43 = vsel %vm135_vm0, %v12414_v20, 0.0  ;;  %v12415_v10 = vmul.f32 %v31726_v26, %v31726_v26 }
0x11e0   :  { %12453 = vadd.xlane.f32.xlu1 %v12452_v43  ;;  %v12370_v31 = vpop.xlane.xlu1 %12369 }
0x11e1   :  { %v31738_v34 = vsub.f32 %v31634_v58, %v12385_v1  ;;  %v12386_v30 = vmul.f32 0.03125, %v12370_v31  ;;  %v12455_v37 = vsel %vm135_vm0, %v12415_v10, 0.0  ;;  %v12416_v59 = vmul.f32 %v31732_v3, %v31732_v3 }
0x11e2   :  { %12456 = vadd.xlane.f32.xlu0 %v12455_v37  ;;  %v12421_v7 = vpop.xlane.xlu0 %12420 }
0x11e3   :  { %v31744_v45 = vsub.f32 %v31642_v39, %v12386_v30  ;;  %v12467_v18 = vmul.f32 0.03125, %v12421_v7  ;;  %v12458_v23 = vsel %vm135_vm0, %v12416_v59, 0.0  ;;  %v12417_v29 = vmul.f32 %v31738_v34, %v31738_v34 }
0x11e4   :  { %12459 = vadd.xlane.f32.xlu1 %v12458_v23  ;;  %v12424_v58 = vpop.xlane.xlu1 %12423 }
0x11e5   :  { %v12483_v6 = vadd.f32 1e-05, %v12467_v18  ;;  %v12468_v2 = vmul.f32 0.03125, %v12424_v58  ;;  %v12461_v52 = vsel %vm135_vm0, %v12417_v29, 0.0  ;;  %v12418_v60 = vmul.f32 %v31744_v45, %v31744_v45 }
0x11e6   :  { %12462 = vadd.xlane.f32.xlu0 %v12461_v52  ;;  %v12427_v19 = vpop.xlane.xlu0 %12426 }
0x11e7   :  { %28511 = vrsqrt.f32 %v12483_v6  ;;  %v12484_v39 = vadd.f32 1e-05, %v12468_v2  ;;  %v12469_v12 = vmul.f32 0.03125, %v12427_v19  ;;  %v12464_v38 = vsel %vm135_vm0, %v12418_v60, 0.0 }
0x11e8   :  { %12465 = vadd.xlane.f32.xlu1 %v12464_v38  ;;  %v12430_v56 = vpop.xlane.xlu1 %12429 }
0x11e9   :  { %28513 = vrsqrt.f32 %v12484_v39  ;;  %v12485_v53 = vadd.f32 1e-05, %v12469_v12  ;;  %v12470_v13 = vmul.f32 0.03125, %v12430_v56 }
0x11eb   :  { %28515 = vrsqrt.f32 %v12485_v53  ;;  %v12486_v14 = vadd.f32 1e-05, %v12470_v13 }
0x11ed   :  { %28517 = vrsqrt.f32 %v12486_v14 }
0x11f1   :  { %v28512_v27 = vpop.eup %28511 }
0x11f2   :  { %v12515_v63 = vmul.f32 %v28512_v27, %v31647_v49 }
0x11f3   :  { %v28514_v24 = vpop.eup %28513 }
0x11f4   :  { %v12516_v9 = vmul.f32 %v28514_v24, %v31652_v62  ;;  %v12537_v32 = vmul.f32 %v31756_v15, %v12515_v63 }
0x11f5   :  { %v28516_v51 = vpop.eup %28515 }
0x11f6   :  { %v12517_v50 = vmul.f32 %v28516_v51, %v31659_v41  ;;  %v12538_v46 = vmul.f32 %v31756_v15, %v12516_v9  ;;  %v31771_v16 = vadd.f32 %v31764_v4, %v12537_v32 }
0x11f7   :  { %v28518_v22 = vpop.eup %28517 }
0x11f8   :  { %v12539_v36 = vmul.f32 %v31756_v15, %v12517_v50  ;;  %v12518_v49 = vmul.f32 %v28518_v22, %v31665_v55  ;;  %34696 = vst [vmem:[#allocation6_spill] sm:$0xff] %v31771_v16  ;;  %v31774_v62 = vadd.f32 %v31764_v4, %v12538_v46 }
0x11fa   :  { %34697 = vst [vmem:[#allocation8_spill] sm:$0xff] %v31774_v62  ;;  %v12540_v57 = vmul.f32 %v31756_v15, %v12518_v49  ;;  %v12575_v17 = vpack.c.bf16 %v31774_v62, %v31771_v16  ;;  %v31780_v41 = vadd.f32 %v31764_v4, %v12539_v36 }
0x11fc   :  { %34698 = vst [vmem:[#allocation10_spill] sm:$0xff] %v31780_v41  ;;  %v31783_v35 = vadd.f32 %v31764_v4, %v12540_v57  ;;  %27281 = vmatprep.mubr.msk.bf16.mxu0 %vm135_vm0, %v12575_v17 }
0x11fe   :  { %34699 = vst [vmem:[#allocation15_spill] sm:$0xff] %v31783_v35  ;;  %v12576_v55 = vpack.c.bf16 %v31783_v35, %v31780_v41 }
0x1200   :  { %27282 = vmatmul.mubr.msk.bf16.vlgmr.msra.gmra.mrb[176].mxu0 %vm135_vm0, %v12576_v55 }
0x1202   :  { %v12433_v5 = vpop.xlane.xlu0 %12432 }
0x1203   :  { %v12471_v47 = vmul.f32 0.03125, %v12433_v5 }
0x1204   :  { %v12436_v28 = vpop.xlane.xlu1 %12435 }
0x1205   :  { %v12487_v42 = vadd.f32 1e-05, %v12471_v47  ;;  %v12472_v61 = vmul.f32 0.03125, %v12436_v28 }
0x1206   :  { %v12439_v20 = vpop.xlane.xlu0 %12438 }
0x1207   :  { %28519 = vrsqrt.f32 %v12487_v42  ;;  %v12488_v54 = vadd.f32 1e-05, %v12472_v61  ;;  %v12473_v1 = vmul.f32 0.03125, %v12439_v20 }
0x1208   :  { %v12442_v43 = vpop.xlane.xlu1 %12441 }
0x1209   :  { %28521 = vrsqrt.f32 %v12488_v54  ;;  %v12489_v10 = vadd.f32 1e-05, %v12473_v1  ;;  %v12474_v31 = vmul.f32 0.03125, %v12442_v43 }
0x120b   :  { %28523 = vrsqrt.f32 %v12489_v10  ;;  %v12490_v30 = vadd.f32 1e-05, %v12474_v31 }
0x120d   :  { %28525 = vrsqrt.f32 %v12490_v30 }
0x1211   :  { %v28520_v37 = vpop.eup %28519 }
0x1212   :  { %v12519_v59 = vmul.f32 %v28520_v37, %v31675_v48 }
0x1213   :  { %v28522_v7 = vpop.eup %28521 }
0x1214   :  { %v12520_v18 = vmul.f32 %v28522_v7, %v31678_v25  ;;  %v12541_v23 = vmul.f32 %v31756_v15, %v12519_v59 }
0x1215   :  { %v28524_v29 = vpop.eup %28523 }
0x1216   :  { %v12542_v58 = vmul.f32 %v31756_v15, %v12520_v18  ;;  %v12521_v6 = vmul.f32 %v28524_v29, %v31683_v8  ;;  %v31795_v52 = vadd.f32 %v31764_v4, %v12541_v23 }
0x1217   :  { %v28526_v2 = vpop.eup %28525 }
0x1218   :  { %34700 = vst [vmem:[#allocation14_spill] sm:$0xff] %v31795_v52  ;;  %v31798_v60 = vadd.f32 %v31764_v4, %v12542_v58  ;;  %v12522_v19 = vmul.f32 %v28526_v2, %v31689_v44  ;;  %v12543_v48 = vmul.f32 %v31756_v15, %v12521_v6 }
0x121a   :  { %34701 = vst [vmem:[#allocation9_spill] sm:$0xff] %v31798_v60  ;;  %v12577_v25 = vpack.c.bf16 %v31798_v60, %v31795_v52  ;;  %v12544_v39 = vmul.f32 %v31756_v15, %v12522_v19  ;;  %v31807_v8 = vadd.f32 %v31764_v4, %v12543_v48 }
0x121c   :  { %27285 = vmatprep.mubr.msk.bf16.mxu0 %vm135_vm0, %v12577_v25  ;;  %34702 = vst [vmem:[#allocation11_spill] sm:$0xff] %v31807_v8  ;;  %v31810_v12 = vadd.f32 %v31764_v4, %v12544_v39 }
0x121e   :  { %34703 = vst [vmem:[#allocation13_spill] sm:$0xff] %v31810_v12  ;;  %v12578_v38 = vpack.c.bf16 %v31810_v12, %v31807_v8 }
0x1220   :  { %27286 = vmatmul.mubr.msk.bf16.gmra.mrb[180].mxu0 %vm135_vm0, %v12578_v38 }
0x1267   :  { %v12445_v44 = vpop.xlane.xlu0 %12444 }
0x1268   :  { %v12475_v56 = vmul.f32 0.03125, %v12445_v44 }
0x1269   :  { %v12448_v53 = vpop.xlane.xlu1 %12447 }
0x126a   :  { %v12491_v13 = vadd.f32 1e-05, %v12475_v56  ;;  %v12476_v14 = vmul.f32 0.03125, %v12448_v53 }
0x126b   :  { %v12451_v27 = vpop.xlane.xlu0 %12450 }
0x126c   :  { %28527 = vrsqrt.f32 %v12491_v13  ;;  %v12492_v63 = vadd.f32 1e-05, %v12476_v14  ;;  %v12477_v24 = vmul.f32 0.03125, %v12451_v27 }
0x126d   :  { %v12454_v9 = vpop.xlane.xlu1 %12453 }
0x126e   :  { %28529 = vrsqrt.f32 %v12492_v63  ;;  %v12493_v32 = vadd.f32 1e-05, %v12477_v24  ;;  %v12478_v51 = vmul.f32 0.03125, %v12454_v9 }
0x126f   :  { %v12457_v50 = vpop.xlane.xlu0 %12456 }
0x1270   :  { %28531 = vrsqrt.f32 %v12493_v32  ;;  %v12494_v46 = vadd.f32 1e-05, %v12478_v51  ;;  %v12479_v22 = vmul.f32 0.03125, %v12457_v50 }
0x1271   :  { %v12460_v36 = vpop.xlane.xlu1 %12459 }
0x1272   :  { %28533 = vrsqrt.f32 %v12494_v46  ;;  %v12495_v49 = vadd.f32 1e-05, %v12479_v22  ;;  %v12480_v57 = vmul.f32 0.03125, %v12460_v36 }
0x1273   :  { %v12463_v17 = vpop.xlane.xlu0 %12462 }
0x1274   :  { %28535 = vrsqrt.f32 %v12495_v49  ;;  %v12496_v55 = vadd.f32 1e-05, %v12480_v57  ;;  %v12481_v5 = vmul.f32 0.03125, %v12463_v17 }
0x1275   :  { %v12466_v47 = vpop.xlane.xlu1 %12465 }
0x1276   :  { %v28528_v28 = vpop.eup %28527  ;;  %28537 = vrsqrt.f32 %v12496_v55  ;;  %v12497_v42 = vadd.f32 1e-05, %v12481_v5  ;;  %v12482_v61 = vmul.f32 0.03125, %v12466_v47 }
0x1277   :  { %v12523_v20 = vmul.f32 %v28528_v28, %v31706_v21 }
0x1278   :  { %v28530_v54 = vpop.eup %28529  ;;  %28539 = vrsqrt.f32 %v12497_v42  ;;  %v12498_v1 = vadd.f32 1e-05, %v12482_v61 }
0x1279   :  { %v12524_v43 = vmul.f32 %v28530_v54, %v31709_v33  ;;  %v12545_v10 = vmul.f32 %v31756_v15, %v12523_v20 }
0x127a   :  { %v28532_v31 = vpop.eup %28531  ;;  %28541 = vrsqrt.f32 %v12498_v1 }
0x127b   :  { %v12546_v30 = vmul.f32 %v31756_v15, %v12524_v43  ;;  %v12525_v37 = vmul.f32 %v28532_v31, %v31714_v11  ;;  %v31821_v7 = vadd.f32 %v31764_v4, %v12545_v10 }
0x127c   :  { %v28534_v59 = vpop.eup %28533 }
0x127d   :  { %34704 = vst [vmem:[#allocation12_spill] sm:$0xff] %v31821_v7  ;;  %v31824_v18 = vadd.f32 %v31764_v4, %v12546_v30  ;;  %v12526_v21 = vmul.f32 %v28534_v59, %v31720_v0  ;;  %v12547_v23 = vmul.f32 %v31756_v15, %v12525_v37 }
0x127e   :  { %v28536_v33 = vpop.eup %28535 }
0x127f   :  { %34705 = vst [vmem:[#allocation24_spill] sm:$0xff] %v31824_v18  ;;  %v12579_v29 = vpack.c.bf16 %v31824_v18, %v31821_v7  ;;  %v12548_v58 = vmul.f32 %v31756_v15, %v12526_v21  ;;  %v12527_v6 = vmul.f32 %v28536_v33, %v31726_v26  ;;  %v31834_v2 = vadd.f32 %v31764_v4, %v12547_v23 }
0x1280   :  { %v28538_v11 = vpop.eup %28537 }
0x1281   :  { %27289 = vmatprep.mubr.msk.bf16.mxu0 %vm135_vm0, %v12579_v29  ;;  %34706 = vst [vmem:[#allocation16_spill] sm:$0xff] %v31834_v2  ;;  %v31837_v19 = vadd.f32 %v31764_v4, %v12548_v58  ;;  %v12528_v0 = vmul.f32 %v28538_v11, %v31732_v3  ;;  %v12549_v48 = vmul.f32 %v31756_v15, %v12527_v6 }
0x1282   :  { %v28540_v25 = vpop.eup %28539 }
0x1283   :  { %34707 = vst [vmem:[#allocation25_spill] sm:$0xff] %v31837_v19  ;;  %v12580_v39 = vpack.c.bf16 %v31837_v19, %v31834_v2  ;;  %v12550_v38 = vmul.f32 %v31756_v15, %v12528_v0  ;;  %v12529_v26 = vmul.f32 %v28540_v25, %v31738_v34  ;;  %v31847_v56 = vadd.f32 %v31764_v4, %v12549_v48 }
0x1284   :  { %v28542_v44 = vpop.eup %28541 }
0x1285   :  { %27290 = vmatmul.mubr.msk.bf16.gmra.mrb[184].mxu0 %vm135_vm0, %v12580_v39  ;;  %34708 = vst [vmem:[#allocation17_spill] sm:$0xff] %v31847_v56  ;;  %v31850_v53 = vadd.f32 %v31764_v4, %v12550_v38  ;;  %v12530_v3 = vmul.f32 %v28542_v44, %v31744_v45  ;;  %v12551_v13 = vmul.f32 %v31756_v15, %v12529_v26  ;;  %v31872_v45 = vld [vmem:[%s34528_s14] ss:$0 sm:$0xff]  ;;  %s34739_s14 = smov 48  }
0x1287   :  { %34709 = vst [vmem:[#allocation26_spill] sm:$0xff] %v31850_v53  ;;  %v12581_v14 = vpack.c.bf16 %v31850_v53, %v31847_v56  ;;  %v12552_v27 = vmul.f32 %v31756_v15, %v12530_v3  ;;  %v31859_v34 = vadd.f32 %v31764_v4, %v12551_v13 }
0x1289   :  { %27293 = vmatprep.mubr.msk.bf16.mxu0 %vm135_vm0, %v12581_v14  ;;  %34710 = vst [vmem:[#allocation18_spill] sm:$0xff] %v31859_v34  ;;  %v31862_v63 = vadd.f32 %v31764_v4, %v12552_v27 }
0x128b   :  { %34711 = vst [vmem:[#allocation27_spill] sm:$0xff] %v31862_v63  ;;  %v12582_v24 = vpack.c.bf16 %v31862_v63, %v31859_v34 }
0x128d   :  { %27294 = vmatmul.mubr.msk.bf16.gmra.mrb[188].mxu0 %vm135_vm0, %v12582_v24 }
0x128e   :  { %27309 = vmatprep.mubr.msk.f32.mxu0 %vm28904_vm1, %v34655_v40 }
0x12d3   :  { %v27283_v15 = vpop.f32.mrb[176].mxu0 }
0x12d4   :  { %v12664_v9 = vpop.f32.mrb[177].mxu0  ;;  %v31941_v33 = vadd.f32 %v27283_v15, %v31872_v45 }
0x12d5   :  { %v31875_v32 = vadd.f32 %v31872_v45, %v12664_v9  ;;  %v27284_v4 = vpop.f32.mrb[178].mxu0 }
0x12d6   :  { %v12667_v51 = vpop.f32.mrb[179].mxu0  ;;  %v31885_v46 = vadd.f32 %v27284_v4, %v31872_v45  ;;  %34717 = vst [vmem:[#allocation30_spill] sm:$0xff] %v31941_v33 }
0x12d7   :  { %v31878_v50 = vadd.f32 %v31872_v45, %v12667_v51  ;;  %12732 = vrot.lane.b32.xlu0 %v31875_v32, %s28905_s2 }
0x12d8   :  { %34713 = vst [vmem:[#allocation28_spill] sm:$0xff] %v31885_v46 }
0x12d9   :  { %34712 = vst [vmem:[#allocation19_spill] sm:$0xff] %v31878_v50  ;;  %12809 = vrot.lane.b32.xlu1 %v31878_v50, %s28905_s2 }
0x12dd   :  { %12963 = vrot.lane.b32.xlu1 %v31885_v46, %s28905_s2 }
0x12f3   :  { %v27287_v22 = vpop.f32.mrb[180].mxu0 }
0x12f4   :  { %v12680_v36 = vpop.f32.mrb[181].mxu0  ;;  %v31951_v6 = vadd.f32 %v27287_v22, %v31872_v45 }
0x12f5   :  { %v27288_v49 = vpop.f32.mrb[182].mxu0  ;;  %v31938_v23 = vadd.f32 %v31872_v45, %v12680_v36 }
0x12f6   :  { %v31890_v57 = vadd.f32 %v27288_v49, %v31872_v45  ;;  %v12683_v17 = vpop.f32.mrb[183].mxu0  ;;  %34719 = vst [vmem:[#allocation31_spill] sm:$0xff] %v31951_v6 }
0x12f7   :  { %v31893_v55 = vadd.f32 %v31872_v45, %v12683_v17 }
0x12f8   :  { %34714 = vst [vmem:[#allocation20_spill] sm:$0xff] %v31890_v57  ;;  %13271 = vrot.lane.b32.xlu1 %v31890_v57, %s28905_s2 }
0x12f9   :  { %34715 = vst [vmem:[#allocation29_spill] sm:$0xff] %v31893_v55  ;;  %13117 = vrot.lane.b32.xlu0 %v31893_v55, %s28905_s2 }
0x1349   :  { %v12733_v5 = vpop.permute.xlu0 %12732 }
0x134a   :  { %27298 = vmatpush3.xpose.msk.msra.mxu1 %vm264_vm2, %v12733_v5 }
0x134b   :  { %v12810_v47 = vpop.permute.xlu1 %12809  ;;  %27302 = vmatprep.subr.mxu1 %v34655_v40 }
0x134d   :  { %27300 = vmatmul.mubr.msk.f32.vlgmr.msra.gmra.mrb[144].mxu1 %vm264_vm2, %v31875_v32 }
0x134e   :  { %27303 = vmatpush3.xpose.msk.msra.mxu1 %vm264_vm2, %v12810_v47  ;;  %27304 = vmatprep.mubr.msk.f32.mxu1 %vm28904_vm1, %v34655_v40 }
0x134f   :  { %27312 = vmatprep.subr.mxu1 %v34655_v40  ;;  %v12964_v28 = vpop.permute.xlu1 %12963 }
0x1351   :  { %27305 = vmatmul.mubr.msk.f32.vlgmr.msra.gmra.mrb[146].mxu1 %vm264_vm2, %v31878_v50 }
0x1352   :  { %27313 = vmatpush3.xpose.msk.msra.mxu1 %vm264_vm2, %v12964_v28  ;;  %27314 = vmatprep.mubr.msk.f32.mxu1 %vm28904_vm1, %v34655_v40 }
0x1353   :  { %27322 = vmatprep.subr.mxu1 %v34655_v40 }
0x1355   :  { %27315 = vmatmul.mubr.msk.f32.vlgmr.msra.gmra.mrb[148].mxu1 %vm264_vm2, %v31885_v46 }
0x1356   :  { %27324 = vmatprep.mubr.msk.f32.mxu1 %vm28904_vm1, %v34655_v40 }
0x1358   :  { %v27291_v42 = vpop.f32.mrb[184].mxu0 }
0x1359   :  { %v12696_v61 = vpop.f32.mrb[185].mxu0  ;;  %v31965_v48 = vadd.f32 %v27291_v42, %v31872_v45 }
0x135a   :  { %v27292_v20 = vpop.f32.mrb[186].mxu0  ;;  %v31948_v29 = vadd.f32 %v31872_v45, %v12696_v61 }
0x135b   :  { %v31918_v54 = vadd.f32 %v27292_v20, %v31872_v45  ;;  %v12699_v1 = vpop.f32.mrb[187].mxu0  ;;  %34720 = vst [vmem:[#allocation23_spill] sm:$0xff] %v31965_v48 }
0x135c   :  { %v31921_v43 = vadd.f32 %v31872_v45, %v12699_v1  ;;  %34718 = vst [vmem:[#allocation22_spill] sm:$0xff] %v31948_v29 }
0x135d   :  { %13579 = vrot.lane.b32.xlu1 %v31918_v54, %s28905_s2 }
0x135e   :  { %34716 = vst [vmem:[#allocation21_spill] sm:$0xff] %v31921_v43  ;;  %13425 = vrot.lane.b32.xlu0 %v31921_v43, %s28905_s2 }
0x1360   :  { %v27295_v10 = vpop.f32.mrb[188].mxu0 }
0x1361   :  { %v12712_v31 = vpop.f32.mrb[189].mxu0  ;;  %v31978_v25 = vadd.f32 %v27295_v10, %v31872_v45 }
0x1362   :  { %v27296_v30 = vpop.f32.mrb[190].mxu0  ;;  %v31960_v11 = vadd.f32 %v31872_v45, %v12712_v31 }
0x1363   :  { %v31928_v37 = vadd.f32 %v27296_v30, %v31872_v45  ;;  %v12715_v59 = vpop.f32.mrb[191].mxu0 }
0x1364   :  { %v31931_v21 = vadd.f32 %v31872_v45, %v12715_v59 }
0x1365   :  { %13887 = vrot.lane.b32.xlu1 %v31928_v37, %s28905_s2 }
0x1366   :  { %13733 = vrot.lane.b32.xlu0 %v31931_v21, %s28905_s2 }
0x1369   :  { %13040 = vrot.lane.b32.xlu1 %v31938_v23, %s28905_s2 }
0x136a   :  { %12886 = vrot.lane.b32.xlu0 %v31941_v33, %s28905_s2  ;;  %v13272_v0 = vpop.permute.xlu1 %13271 }
0x136b   :  { %v13118_v58 = vpop.permute.xlu0 %13117 }
0x136c   :  { %27323 = vmatpush3.xpose.msk.msra.mxu1 %vm264_vm2, %v13118_v58 }
0x136d   :  { %13348 = vrot.lane.b32.xlu1 %v31948_v29, %s28905_s2  ;;  %27332 = vmatprep.subr.mxu1 %v34655_v40 }
0x136e   :  { %13194 = vrot.lane.b32.xlu0 %v31951_v6, %s28905_s2 }
0x136f   :  { %27325 = vmatmul.mubr.msk.f32.vlgmr.msra.gmra.mrb[150].mxu1 %vm264_vm2, %v31893_v55 }
0x1370   :  { %27333 = vmatpush3.xpose.msk.msra.mxu1 %vm264_vm2, %v13272_v0  ;;  %27334 = vmatprep.mubr.msk.f32.mxu1 %vm28904_vm1, %v34655_v40 }
0x1371   :  { %13656 = vrot.lane.b32.xlu1 %v31960_v11, %s28905_s2  ;;  %27342 = vmatprep.subr.mxu1 %v34655_v40 }
0x1372   :  { %13502 = vrot.lane.b32.xlu0 %v31965_v48, %s28905_s2 }
0x1373   :  { %27335 = vmatmul.mubr.msk.f32.vlgmr.msra.gmra.mrb[152].mxu1 %vm264_vm2, %v31890_v57 }
0x1374   :  { %27344 = vmatprep.mubr.msk.f32.mxu1 %vm28904_vm1, %v34655_v40 }
0x1376   :  { %13810 = vrot.lane.b32.xlu0 %v31978_v25, %s28905_s2 }
0x13cf   :  { %v13580_v38 = vpop.permute.xlu1 %13579 }
0x13d0   :  { %v13426_v39 = vpop.permute.xlu0 %13425 }
0x13d1   :  { %27343 = vmatpush3.xpose.msk.msra.mxu1 %vm264_vm2, %v13426_v39 }
0x13d2   :  { %27352 = vmatprep.subr.mxu1 %v34655_v40 }
0x13d4   :  { %27345 = vmatmul.mubr.msk.f32.vlgmr.msra.gmra.mrb[154].mxu1 %vm264_vm2, %v31921_v43 }
0x13d5   :  { %27353 = vmatpush3.xpose.msk.msra.mxu1 %vm264_vm2, %v13580_v38  ;;  %27354 = vmatprep.mubr.msk.f32.mxu1 %vm28904_vm1, %v34655_v40 }
0x13d6   :  { %27362 = vmatprep.subr.mxu1 %v34655_v40 }
0x13d7   :  { %v13888_v44 = vpop.permute.xlu1 %13887 }
0x13d8   :  { %27355 = vmatmul.mubr.msk.f32.vlgmr.msra.gmra.mrb[156].mxu1 %vm264_vm2, %v31918_v54  ;;  %v13734_v26 = vpop.permute.xlu0 %13733 }
0x13d9   :  { %27363 = vmatpush3.xpose.msk.msra.mxu1 %vm264_vm2, %v13734_v26  ;;  %27364 = vmatprep.mubr.msk.f32.mxu1 %vm28904_vm1, %v34655_v40 }
0x13da   :  { %27372 = vmatprep.subr.mxu1 %v34655_v40 }
0x13db   :  { %v13041_v13 = vpop.permute.xlu1 %13040 }
0x13dc   :  { %27365 = vmatmul.mubr.msk.f32.vlgmr.msra.gmra.mrb[158].mxu1 %vm264_vm2, %v31931_v21  ;;  %v12887_v3 = vpop.permute.xlu0 %12886 }
0x13dd   :  { %27308 = vmatpush3.xpose.msk.msra.mxu0 %vm264_vm2, %v12887_v3  ;;  %27373 = vmatpush3.xpose.msk.msra.mxu1 %vm264_vm2, %v13888_v44 }
0x13de   :  { %27374 = vmatprep.mubr.msk.f32.mxu1 %vm28904_vm1, %v34655_v40  ;;  %27317 = vmatprep.subr.mxu0 %v34655_v40 }
0x13df   :  { %27382 = vmatprep.subr.mxu1 %v34655_v40  ;;  %v13349_v27 = vpop.permute.xlu1 %13348 }
0x13e0   :  { %27310 = vmatmul.mubr.msk.f32.vlgmr.msra.gmra.mrb[192].mxu0 %vm264_vm2, %v31941_v33  ;;  %27375 = vmatmul.mubr.msk.f32.vlgmr.msra.gmra.mrb[160].mxu1 %vm264_vm2, %v31928_v37  ;;  %v13195_v14 = vpop.permute.xlu0 %13194 }
0x13e1   :  { %27318 = vmatpush3.xpose.msk.msra.mxu0 %vm264_vm2, %v13041_v13  ;;  %27319 = vmatprep.mubr.msk.f32.mxu0 %vm28904_vm1, %v34655_v40 }
0x13e2   :  { %27327 = vmatprep.subr.mxu0 %v34655_v40  ;;  %27384 = vmatprep.mubr.msk.f32.mxu1 %vm28904_vm1, %v34655_v40 }
0x13e3   :  { %v13657_v45 = vpop.permute.xlu1 %13656 }
0x13e4   :  { %27320 = vmatmul.mubr.msk.f32.vlgmr.msra.gmra.mrb[194].mxu0 %vm264_vm2, %v31938_v23  ;;  %v13503_v24 = vpop.permute.xlu0 %13502 }
0x13e5   :  { %27328 = vmatpush3.xpose.msk.msra.mxu0 %vm264_vm2, %v13195_v14  ;;  %27329 = vmatprep.mubr.msk.f32.mxu0 %vm28904_vm1, %v34655_v40 }
0x13e6   :  { %27337 = vmatprep.subr.mxu0 %v34655_v40 }
0x13e8   :  { %27330 = vmatmul.mubr.msk.f32.vlgmr.msra.gmra.mrb[196].mxu0 %vm264_vm2, %v31951_v6  ;;  %v13811_v15 = vpop.permute.xlu0 %13810 }
0x13e9   :  { %27338 = vmatpush3.xpose.msk.msra.mxu0 %vm264_vm2, %v13349_v27  ;;  %27339 = vmatprep.mubr.msk.f32.mxu0 %vm28904_vm1, %v34655_v40 }
0x13ea   :  { %27347 = vmatprep.subr.mxu0 %v34655_v40 }
0x13ec   :  { %27340 = vmatmul.mubr.msk.f32.vlgmr.msra.gmra.mrb[198].mxu0 %vm264_vm2, %v31948_v29 }
0x13ed   :  { %27348 = vmatpush3.xpose.msk.msra.mxu0 %vm264_vm2, %v13503_v24  ;;  %27349 = vmatprep.mubr.msk.f32.mxu0 %vm28904_vm1, %v34655_v40 }
0x13ee   :  { %27357 = vmatprep.subr.mxu0 %v34655_v40 }
0x13f0   :  { %27350 = vmatmul.mubr.msk.f32.vlgmr.msra.gmra.mrb[200].mxu0 %vm264_vm2, %v31965_v48 }
0x13f1   :  { %27358 = vmatpush3.xpose.msk.msra.mxu0 %vm264_vm2, %v13657_v45  ;;  %27359 = vmatprep.mubr.msk.f32.mxu0 %vm28904_vm1, %v34655_v40 }
0x13f2   :  { %27367 = vmatprep.subr.mxu0 %v34655_v40 }
0x13f4   :  { %27360 = vmatmul.mubr.msk.f32.vlgmr.msra.gmra.mrb[202].mxu0 %vm264_vm2, %v31960_v11 }
0x13f5   :  { %27368 = vmatpush3.xpose.msk.msra.mxu0 %vm264_vm2, %v13811_v15  ;;  %27369 = vmatprep.mubr.msk.f32.mxu0 %vm28904_vm1, %v34655_v40 }
0x13f6   :  { %27377 = vmatprep.subr.mxu0 %v34655_v40 }
0x13f8   :  { %27370 = vmatmul.mubr.msk.f32.vlgmr.msra.gmra.mrb[204].mxu0 %vm264_vm2, %v31978_v25 }
0x13f9   :  { %27379 = vmatprep.mubr.msk.f32.mxu0 %vm28904_vm1, %v34655_v40 }
0x1420   :  { %v32050_v9 = vpop.f32.mrb[144].mxu1 }
0x1421   :  { %v27301_v4 = vpop.f32.mrb[145].mxu1 }
0x1424   :  { %v12881_v51 = vpop.f32.mrb[146].mxu1 }
0x1425   :  { %v13964_v22 = vmul.f32 0.35355338, %v12881_v51  ;;  %v27306_v36 = vpop.f32.mrb[147].mxu1 }
0x1427   :  { %v13982_v49 = vsel %vm264_vm2, %v13964_v22, -inf }
0x1428   :  { %13983 = vmax.xlane.f32.xlu1 %v13982_v49  ;;  %v13035_v17 = vpop.f32.mrb[148].mxu1 }
0x1429   :  { %v13966_v5 = vmul.f32 0.35355338, %v13035_v17  ;;  %v27316_v47 = vpop.f32.mrb[149].mxu1 }
0x142b   :  { %v13988_v28 = vsel %vm264_vm2, %v13966_v5, -inf }
0x142c   :  { %13989 = vmax.xlane.f32.xlu0 %v13988_v28 }
0x1442   :  { %v13189_v42 = vpop.f32.mrb[150].mxu1 }
0x1443   :  { %v13968_v61 = vmul.f32 0.35355338, %v13189_v42  ;;  %v27326_v20 = vpop.f32.mrb[151].mxu1 }
0x1445   :  { %v13994_v1 = vsel %vm264_vm2, %v13968_v61, -inf }
0x1446   :  { %13995 = vmax.xlane.f32.xlu0 %v13994_v1  ;;  %v13343_v10 = vpop.f32.mrb[152].mxu1 }
0x1447   :  { %v13970_v31 = vmul.f32 0.35355338, %v13343_v10  ;;  %v27336_v30 = vpop.f32.mrb[153].mxu1 }
0x1449   :  { %v14000_v59 = vsel %vm264_vm2, %v13970_v31, -inf }
0x144a   :  { %14001 = vmax.xlane.f32.xlu1 %v14000_v59 }
0x14a7   :  { %v13497_v58 = vpop.f32.mrb[154].mxu1 }
0x14a8   :  { %v27346_v0 = vpop.f32.mrb[155].mxu1 }
0x14a9   :  { %v13972_v0 = vmul.f32 0.35355338, %v13497_v58 }
0x14ab   :  { %v13651_v39 = vpop.f32.mrb[156].mxu1 }
0x14ac   :  { %v32056_v38 = vmul.f32 0.35355338, %v13651_v39  ;;  %v27356_v26 = vpop.f32.mrb[157].mxu1 }
0x14ae   :  { %v14012_v44 = vsel %vm264_vm2, %v32056_v38, -inf }
0x14af   :  { %14013 = vmax.xlane.f32.xlu1 %v14012_v44  ;;  %v13805_v3 = vpop.f32.mrb[158].mxu1 }
0x14b0   :  { %v27366_v13 = vpop.f32.mrb[159].mxu1 }
0x14b1   :  { %v14006_v13 = vsel %vm264_vm2, %v13972_v0, -inf }
0x14b3   :  { %v32060_v14 = vpop.f32.mrb[192].mxu0  ;;  %v13959_v27 = vpop.f32.mrb[160].mxu1 }
0x14b4   :  { %v27311_v24 = vpop.f32.mrb[193].mxu0  ;;  %v27376_v45 = vpop.f32.mrb[161].mxu1 }
0x14b5   :  { %v13984_v15 = vpop.xlane.xlu1 %13983 }
0x14b6   :  { %v14028_v4 = vsub.f32 %v13964_v22, %v13984_v15 }
0x14b7   :  { %v32062_v51 = vpop.f32.mrb[194].mxu0 }
0x14b8   :  { %v14045_v36 = vmul.f32 1.442695, %v14028_v4  ;;  %v27321_v49 = vpop.f32.mrb[195].mxu0 }
0x14b9   :  { %v13990_v17 = vpop.xlane.xlu0 %13989 }
0x14ba   :  { %28543 = vpow2.f32 %v14045_v36  ;;  %v14030_v47 = vsub.f32 %v13966_v5, %v13990_v17 }
0x14bb   :  { %v32064_v28 = vpop.f32.mrb[196].mxu0 }
0x14bc   :  { %v14049_v42 = vmul.f32 1.442695, %v14030_v47  ;;  %v27331_v20 = vpop.f32.mrb[197].mxu0 }
0x14bd   :  { %v32085_v20 = vmul.f32 0.35355338, %v13805_v3 }
0x14be   :  { %28545 = vpow2.f32 %v14049_v42 }
0x14bf   :  { %v32066_v1 = vpop.f32.mrb[198].mxu0 }
0x14c0   :  { %v27341_v10 = vpop.f32.mrb[199].mxu0 }
0x14c3   :  { %v32068_v30 = vpop.f32.mrb[200].mxu0 }
0x14c4   :  { %v32070_v59 = vpop.eup %28543  ;;  %v27351_v22 = vpop.f32.mrb[201].mxu0 }
0x14c5   :  { %v14078_v39 = vsel %vm264_vm2, %v32070_v59, 0.0 }
0x14c6   :  { %14079 = vadd.xlane.f32.xlu0 %v14078_v39  ;;  %v32091_v39 = vmul.f32 0.35355338, %v13959_v27 }
0x14c7   :  { %v32074_v26 = vpop.f32.mrb[202].mxu0 }
0x14c8   :  { %v32076_v5 = vpop.eup %28545  ;;  %v27361_v44 = vpop.f32.mrb[203].mxu0  ;;  %v14024_v3 = vsel %vm264_vm2, %v32091_v39, -inf }
0x14c9   :  { %v14084_v24 = vsel %vm264_vm2, %v32076_v5, 0.0 }
0x14ca   :  { %14007 = vmax.xlane.f32.xlu0 %v14006_v13  ;;  %14085 = vadd.xlane.f32.xlu1 %v14084_v24 }
0x14cb   :  { %v32081_v45 = vpop.f32.mrb[204].mxu0 }
0x14cc   :  { %v27371_v15 = vpop.f32.mrb[205].mxu0 }
0x14d3   :  { %v13996_v58 = vpop.xlane.xlu0 %13995 }
0x14d4   :  { %v14032_v4 = vsub.f32 %v13968_v61, %v13996_v58 }
0x14d6   :  { %v14053_v36 = vmul.f32 1.442695, %v14032_v4 }
0x14d7   :  { %v14002_v49 = vpop.xlane.xlu1 %14001 }
0x14d8   :  { %28547 = vpow2.f32 %v14053_v36  ;;  %v14034_v17 = vsub.f32 %v13970_v31, %v14002_v49  ;;  %v14018_v31 = vsel %vm264_vm2, %v32085_v20, -inf }
0x14da   :  { %v14057_v47 = vmul.f32 1.442695, %v14034_v17 }
0x14dc   :  { %28549 = vpow2.f32 %v14057_v47 }
0x14e2   :  { %v32083_v42 = vpop.eup %28547 }
0x14e3   :  { %v14090_v10 = vsel %vm264_vm2, %v32083_v42, 0.0 }
0x14e4   :  { %14091 = vadd.xlane.f32.xlu0 %v14090_v10 }
0x14e6   :  { %v32089_v22 = vpop.eup %28549 }
0x14e7   :  { %v14096_v61 = vsel %vm264_vm2, %v32089_v22, 0.0 }
0x14e8   :  { %14097 = vadd.xlane.f32.xlu1 %v14096_v61  ;;  %14019 = vmax.xlane.f32.xlu0 %v14018_v31 }
0x14ec   :  { %14025 = vmax.xlane.f32.xlu1 %v14024_v3 }
0x14fd   :  { %14231 = vrot.lane.b32.xlu1 %v31878_v50, %s28906_s3 }
0x14fe   :  { %14383 = vrot.lane.b32.xlu0 %v31885_v46, %s28906_s3 }
0x1501   :  { %14535 = vrot.lane.b32.xlu1 %v31893_v55, %s28906_s3 }
0x1502   :  { %14991 = vrot.lane.b32.xlu0 %v31918_v54, %s28906_s3 }
0x1505   :  { %14687 = vrot.lane.b32.xlu1 %v31890_v57, %s28906_s3 }
0x1506   :  { %15295 = vrot.lane.b32.xlu0 %v31928_v37, %s28906_s3 }
0x1509   :  { %14839 = vrot.lane.b32.xlu1 %v31921_v43, %s28906_s3 }
0x150a   :  { %15449 = vrot.lane.b32.xlu0 %v31878_v50, %s28908_s4 }
0x150d   :  { %15143 = vrot.lane.b32.xlu1 %v31931_v21, %s28906_s3 }
0x150e   :  { %15605 = vrot.lane.b32.xlu0 %v31885_v46, %s28908_s4 }
0x1511   :  { %15451 = vrot.lane.b32.xlu1 %v31878_v50, %s28907_s7 }
0x1515   :  { %15607 = vrot.lane.b32.xlu1 %v31885_v46, %s28907_s7 }
0x153c   :  { %v14014_v27 = vpop.xlane.xlu1 %14013 }
0x153d   :  { %v14038_v44 = vsub.f32 %v32056_v38, %v14014_v27 }
0x153f   :  { %v14065_v13 = vmul.f32 1.442695, %v14038_v44 }
0x1541   :  { %28551 = vpow2.f32 %v14065_v13 }
0x154b   :  { %v32124_v24 = vpop.eup %28551 }
0x154c   :  { %v14108_v15 = vsel %vm264_vm2, %v32124_v24, 0.0 }
0x154d   :  { %14109 = vadd.xlane.f32.xlu1 %v14108_v15 }
0x1553   :  { %v14080_v58 = vpop.xlane.xlu0 %14079 }
0x1557   :  { %v14008_v4 = vpop.xlane.xlu0 %14007 }
0x1558   :  { %v14036_v36 = vsub.f32 %v13972_v0, %v14008_v4  ;;  %v14086_v0 = vpop.xlane.xlu1 %14085 }
0x155a   :  { %v14061_v49 = vmul.f32 1.442695, %v14036_v36 }
0x155c   :  { %28553 = vpow2.f32 %v14061_v49 }
0x155d   :  { %28555 = vrcp.f32 %v14080_v58 }
0x155e   :  { %15763 = vrot.lane.b32.xlu1 %v31893_v55, %s28907_s7  ;;  %28557 = vrcp.f32 %v14086_v0 }
0x1562   :  { %15919 = vrot.lane.b32.xlu1 %v31890_v57, %s28907_s7 }
0x1566   :  { %v32132_v38 = vpop.eup %28553  ;;  %16075 = vrot.lane.b32.xlu1 %v31921_v43, %s28907_s7 }
0x1567   :  { %v14102_v17 = vsel %vm264_vm2, %v32132_v38, 0.0  ;;  %v28556_v3 = vpop.eup %28555 }
0x1568   :  { %14103 = vadd.xlane.f32.xlu0 %v14102_v17  ;;  %v14140_v44 = vmul.f32 %v28556_v3, %v32070_v59  ;;  %v28558_v13 = vpop.eup %28557 }
0x1569   :  { %v14142_v4 = vmul.f32 %v28558_v13, %v32076_v5 }
0x156a   :  { %16231 = vrot.lane.b32.xlu1 %v31918_v54, %s28907_s7 }
0x156e   :  { %16387 = vrot.lane.b32.xlu1 %v31931_v21, %s28907_s7 }
0x1571   :  { %v14092_v47 = vpop.xlane.xlu0 %14091 }
0x1572   :  { %28559 = vrcp.f32 %v14092_v47 }
0x1575   :  { %v14098_v10 = vpop.xlane.xlu1 %14097  ;;  %v14020_v61 = vpop.xlane.xlu0 %14019 }
0x1576   :  { %28561 = vrcp.f32 %v14098_v10  ;;  %v14040_v47 = vsub.f32 %v32085_v20, %v14020_v61  ;;  %v32174_v10 = vmul.f32 0.35355338, %v32062_v51  ;;  %v32185_v20 = vmul.f32 0.35355338, %v32068_v30 }
0x1577   :  { %v32190_v61 = vmul.f32 0.35355338, %v32081_v45 }
0x1579   :  { %v14026_v31 = vpop.xlane.xlu1 %14025  ;;  %v14384_v15 = vpop.permute.xlu0 %14383 }
0x157c   :  { %v28560_v59 = vpop.eup %28559 }
0x157d   :  { %v14232_v27 = vpop.permute.xlu1 %14231  ;;  %v14144_v49 = vmul.f32 %v28560_v59, %v32083_v42  ;;  %v32169_v42 = vmul.f32 0.35355338, %v32050_v9  ;;  %v13991_v9 = vsel %vm264_vm2, %v32174_v10, -inf }
0x157e   :  { %27383 = vmatpush3.msra.mxu1 %v14232_v27  ;;  %15761 = vrot.lane.b32.xlu0 %v31893_v55, %s28908_s4  ;;  %v14042_v27 = vsub.f32 %v32091_v39, %v14026_v31  ;;  %v14021_v31 = vsel %vm264_vm2, %v32190_v61, -inf }
0x157f   :  { %27385 = vmatmul.mubr.msk.f32.vlgmr.msra.gmra.mrb[162].mxu1 %vm264_vm2, %v14140_v44  ;;  %27392 = vmatprep.subr.mxu1 %v34655_v40  ;;  %v13979_v3 = vsel %vm264_vm2, %v32169_v42, -inf  ;;  %v32180_v44 = vmul.f32 0.35355338, %v32064_v28  ;;  %v14009_v28 = vsel %vm264_vm2, %v32185_v20, -inf }
0x1580   :  { %27393 = vmatpush3.msra.mxu1 %v14384_v15  ;;  %27394 = vmatprep.mubr.msk.f32.mxu1 %vm28904_vm1, %v34655_v40  ;;  %v28562_v17 = vpop.eup %28561  ;;  %v14073_v13 = vmul.f32 1.442695, %v14042_v27 }
0x1581   :  { %v14536_v58 = vpop.permute.xlu1 %14535  ;;  %27402 = vmatprep.subr.mxu1 %v34655_v40  ;;  %v14146_v0 = vmul.f32 %v28562_v17, %v32089_v22  ;;  %v14069_v22 = vmul.f32 1.442695, %v14040_v47  ;;  %v13997_v51 = vsel %vm264_vm2, %v32180_v44, -inf  ;;  %v32223_v47 = vmul.f32 0.35355338, %v32074_v26 }
0x1582   :  { %15917 = vrot.lane.b32.xlu0 %v31890_v57, %s28908_s4 }
0x1583   :  { %27395 = vmatmul.mubr.msk.f32.vlgmr.msra.gmra.mrb[164].mxu1 %vm264_vm2, %v14142_v4  ;;  %28563 = vpow2.f32 %v14069_v22  ;;  %v32213_v4 = vmul.f32 0.35355338, %v32060_v14 }
0x1584   :  { %27403 = vmatpush3.msra.mxu1 %v14536_v58  ;;  %27404 = vmatprep.mubr.msk.f32.mxu1 %vm28904_vm1, %v34655_v40  ;;  %28565 = vpow2.f32 %v14073_v13  ;;  %v14992_v58 = vpop.permute.xlu0 %14991 }
0x1585   :  { %v14688_v36 = vpop.permute.xlu1 %14687  ;;  %27412 = vmatprep.subr.mxu1 %v34655_v40  ;;  %v13985_v17 = vsel %vm264_vm2, %v32213_v4, -inf }
0x1586   :  { %16073 = vrot.lane.b32.xlu0 %v31921_v43, %s28908_s4 }
0x1587   :  { %27405 = vmatmul.mubr.msk.f32.vlgmr.msra.gmra.mrb[166].mxu1 %vm264_vm2, %v14144_v49  ;;  %v32216_v49 = vmul.f32 0.35355338, %v32066_v1  ;;  %v14015_v1 = vsel %vm264_vm2, %v32223_v47, -inf }
0x1588   :  { %27413 = vmatpush3.msra.mxu1 %v14688_v36  ;;  %27414 = vmatprep.mubr.msk.f32.mxu1 %vm28904_vm1, %v34655_v40  ;;  %v15296_v59 = vpop.permute.xlu0 %15295 }
0x1589   :  { %v14840_v5 = vpop.permute.xlu1 %14839  ;;  %27422 = vmatprep.subr.mxu1 %v34655_v40 }
0x158b   :  { %27415 = vmatmul.mubr.msk.f32.vlgmr.msra.gmra.mrb[168].mxu1 %vm264_vm2, %v14146_v0 }
0x158c   :  { %27423 = vmatpush3.msra.mxu1 %v14840_v5  ;;  %27424 = vmatprep.mubr.msk.f32.mxu1 %vm28904_vm1, %v34655_v40  ;;  %v32220_v5 = vpop.permute.xlu0 %15449 }
0x158d   :  { %27432 = vmatprep.subr.mxu1 %v34655_v40  ;;  %v32194_v39 = vpop.eup %28563  ;;  %v15144_v36 = vpop.permute.xlu1 %15143 }
0x158e   :  { %v14114_v30 = vsel %vm264_vm2, %v32194_v39, 0.0  ;;  %v32200_v15 = vpop.eup %28565 }
0x158f   :  { %v14120_v45 = vsel %vm264_vm2, %v32200_v15, 0.0 }
0x1590   :  { %v15606_v14 = vpop.permute.xlu0 %15605 }
0x1591   :  { %v15452_v0 = vpop.permute.xlu1 %15451 }
0x1592   :  { %13980 = vmax.xlane.f32.xlu1 %v13979_v3  ;;  %v14003_v3 = vsel %vm264_vm2, %v32216_v49, -inf }
0x1595   :  { %v15608_v22 = vpop.permute.xlu1 %15607 }
0x1596   :  { %13992 = vmax.xlane.f32.xlu1 %v13991_v9 }
0x159a   :  { %13998 = vmax.xlane.f32.xlu1 %v13997_v51 }
0x159e   :  { %14010 = vmax.xlane.f32.xlu1 %v14009_v28 }
0x15a2   :  { %14022 = vmax.xlane.f32.xlu1 %v14021_v31 }
0x15a5   :  { %14115 = vadd.xlane.f32.xlu0 %v14114_v30 }
0x15a9   :  { %14121 = vadd.xlane.f32.xlu0 %v14120_v45 }
0x15bf   :  { %16229 = vrot.lane.b32.xlu0 %v31918_v54, %s28908_s4 }
0x15c3   :  { %16385 = vrot.lane.b32.xlu0 %v31931_v21, %s28908_s4 }
0x15c7   :  { %16543 = vrot.lane.b32.xlu0 %v31928_v37, %s28907_s7 }
0x15cb   :  { %16541 = vrot.lane.b32.xlu0 %v31928_v37, %s28908_s4 }
0x15da   :  { %v14110_v27 = vpop.xlane.xlu1 %14109 }
0x15de   :  { %v15764_v26 = vpop.permute.xlu1 %15763 }
0x15e2   :  { %v15920_v30 = vpop.permute.xlu1 %15919 }
0x15ea   :  { %13986 = vmax.xlane.f32.xlu0 %v13985_v17 }
0x15ee   :  { %14004 = vmax.xlane.f32.xlu0 %v14003_v3 }
0x15f2   :  { %14016 = vmax.xlane.f32.xlu0 %v14015_v1 }
0x15f5   :  { %v14104_v9 = vpop.xlane.xlu0 %14103 }
0x15f6   :  { %28567 = vrcp.f32 %v14104_v9 }
0x15f7   :  { %28569 = vrcp.f32 %v14110_v27 }
0x15f9   :  { %v15762_v1 = vpop.permute.xlu0 %15761 }
0x1600   :  { %v28568_v13 = vpop.eup %28567 }
0x1601   :  { %v14148_v51 = vmul.f32 %v28568_v13, %v32132_v38  ;;  %v28570_v28 = vpop.eup %28569  ;;  %v16076_v38 = vpop.permute.xlu1 %16075 }
0x1602   :  { %v14150_v31 = vmul.f32 %v28570_v28, %v32124_v24  ;;  %v15918_v13 = vpop.permute.xlu0 %15917 }
0x1603   :  { %27425 = vmatmul.mubr.msk.f32.vlgmr.msra.gmra.mrb[170].mxu1 %vm264_vm2, %v14148_v51 }
0x1604   :  { %27433 = vmatpush3.msra.mxu1 %v14992_v58  ;;  %27434 = vmatprep.mubr.msk.f32.mxu1 %vm28904_vm1, %v34655_v40 }
0x1605   :  { %27442 = vmatprep.subr.mxu1 %v34655_v40  ;;  %v16232_v45 = vpop.permute.xlu1 %16231 }
0x1606   :  { %v16074_v28 = vpop.permute.xlu0 %16073 }
0x1607   :  { %27435 = vmatmul.mubr.msk.f32.vlgmr.msra.gmra.mrb[172].mxu1 %vm264_vm2, %v14150_v31 }
0x1608   :  { %27443 = vmatpush3.msra.mxu1 %v15144_v36  ;;  %27444 = vmatprep.mubr.msk.f32.mxu1 %vm28904_vm1, %v34655_v40 }
0x1609   :  { %27452 = vmatprep.subr.mxu1 %v34655_v40  ;;  %v32239_v17 = vpop.permute.xlu1 %16387 }
0x161f   :  { %v13981_v58 = vpop.xlane.xlu1 %13980 }
0x1620   :  { %v14027_v3 = vsub.f32 %v32169_v42, %v13981_v58 }
0x1622   :  { %v14043_v27 = vmul.f32 1.442695, %v14027_v3 }
0x1623   :  { %v13993_v9 = vpop.xlane.xlu1 %13992 }
0x1624   :  { %28571 = vpow2.f32 %v14043_v27  ;;  %v14031_v24 = vsub.f32 %v32174_v10, %v13993_v9 }
0x1626   :  { %v14051_v36 = vmul.f32 1.442695, %v14031_v24 }
0x1628   :  { %28573 = vpow2.f32 %v14051_v36 }
0x162e   :  { %v32243_v51 = vpop.eup %28571 }
0x162f   :  { %v14075_v31 = vsel %vm264_vm2, %v32243_v51, 0.0 }
0x1630   :  { %14076 = vadd.xlane.f32.xlu0 %v14075_v31 }
0x1632   :  { %v32247_v34 = vpop.eup %28573  ;;  %v14116_v63 = vpop.xlane.xlu0 %14115 }
0x1633   :  { %28575 = vrcp.f32 %v14116_v63  ;;  %v14087_v42 = vsel %vm264_vm2, %v32247_v34, 0.0 }
0x1634   :  { %14088 = vadd.xlane.f32.xlu0 %v14087_v42 }
0x1636   :  { %v14122_v58 = vpop.xlane.xlu0 %14121 }
0x1637   :  { %28577 = vrcp.f32 %v14122_v58 }
0x163d   :  { %v28576_v10 = vpop.eup %28575 }
0x163e   :  { %v14152_v3 = vmul.f32 %v28576_v10, %v32194_v39 }
0x1640   :  { %27445 = vmatmul.mubr.msk.f32.vlgmr.msra.gmra.mrb[174].mxu1 %vm264_vm2, %v14152_v3 }
0x1641   :  { %v28578_v27 = vpop.eup %28577  ;;  %27453 = vmatpush3.msra.mxu1 %v15296_v59  ;;  %27454 = vmatprep.mubr.msk.f32.mxu1 %vm28904_vm1, %v34655_v40 }
0x1642   :  { %v14154_v9 = vmul.f32 %v28578_v27, %v32200_v15  ;;  %27462 = vmatprep.subr.mxu1 %v34655_v40  ;;  %v16230_v15 = vpop.permute.xlu0 %16229 }
0x1644   :  { %27455 = vmatmul.mubr.msk.f32.vlgmr.msra.gmra.mrb[176].mxu1 %vm264_vm2, %v14154_v9 }
0x1645   :  { %27464 = vmatprep.mubr.msk.f32.mxu1 %vm28904_vm1, %v34655_v40 }
0x1648   :  { %27463 = vmatpush3.xpose.msk.msra.mxu1 %vm264_vm2, %v15452_v0  ;;  %v16386_v0 = vpop.permute.xlu0 %16385 }
0x1649   :  { %27472 = vmatprep.subr.mxu1 %v34655_v40 }
0x164b   :  { %27465 = vmatmul.mubr.msk.f32.vlgmr.msra.gmra.mrb[178].mxu1 %vm264_vm2, %v32220_v5 }
0x164c   :  { %27473 = vmatpush3.xpose.msk.msra.mxu1 %vm264_vm2, %v15608_v22  ;;  %27474 = vmatprep.mubr.msk.f32.mxu1 %vm28904_vm1, %v34655_v40 }
0x164d   :  { %27482 = vmatprep.subr.mxu1 %v34655_v40 }
0x164f   :  { %27475 = vmatmul.mubr.msk.f32.vlgmr.msra.gmra.mrb[180].mxu1 %vm264_vm2, %v15606_v14 }
0x1650   :  { %27483 = vmatpush3.xpose.msk.msra.mxu1 %vm264_vm2, %v15764_v26  ;;  %27484 = vmatprep.mubr.msk.f32.mxu1 %vm28904_vm1, %v34655_v40 }
0x1651   :  { %27492 = vmatprep.subr.mxu1 %v34655_v40 }
0x1652   :  { %v32273_v63 = vpop.f32.mrb[162].mxu1 }
0x1653   :  { %34721 = vst [vmem:[#allocation5_spill] sm:$0xff] %v32273_v63  ;;  %27485 = vmatmul.mubr.msk.f32.vlgmr.msra.gmra.mrb[182].mxu1 %vm264_vm2, %v15762_v1  ;;  %v27386_v39 = vpop.f32.mrb[163].mxu1 }
0x1654   :  { %27493 = vmatpush3.xpose.msk.msra.mxu1 %vm264_vm2, %v15920_v30  ;;  %27494 = vmatprep.mubr.msk.f32.mxu1 %vm28904_vm1, %v34655_v40 }
0x1655   :  { %27502 = vmatprep.subr.mxu1 %v34655_v40 }
0x1656   :  { %v32280_v59 = vpop.f32.mrb[164].mxu1 }
0x1657   :  { %34722 = vst [vmem:[#allocation7_spill] sm:$0xff] %v32280_v59  ;;  %27495 = vmatmul.mubr.msk.f32.vlgmr.msra.gmra.mrb[184].mxu1 %vm264_vm2, %v15918_v13  ;;  %v27396_v5 = vpop.f32.mrb[165].mxu1 }
0x1658   :  { %27503 = vmatpush3.xpose.msk.msra.mxu1 %vm264_vm2, %v16076_v38  ;;  %27504 = vmatprep.mubr.msk.f32.mxu1 %vm28904_vm1, %v34655_v40  ;;  %v16544_v38 = vpop.permute.xlu0 %16543 }
0x1659   :  { %27512 = vmatprep.subr.mxu1 %v34655_v40 }
0x165a   :  { %v32287_v14 = vpop.f32.mrb[166].mxu1 }
0x165b   :  { %34723 = vst [vmem:[#allocation32_spill] sm:$0xff] %v32287_v14  ;;  %27505 = vmatmul.mubr.msk.f32.vlgmr.msra.gmra.mrb[186].mxu1 %vm264_vm2, %v16074_v28  ;;  %v27406_v22 = vpop.f32.mrb[167].mxu1 }
0x165c   :  { %27513 = vmatpush3.xpose.msk.msra.mxu1 %vm264_vm2, %v16232_v45  ;;  %27514 = vmatprep.mubr.msk.f32.mxu1 %vm28904_vm1, %v34655_v40  ;;  %v16542_v45 = vpop.permute.xlu0 %16541 }
0x165d   :  { %27522 = vmatprep.subr.mxu1 %v34655_v40 }
0x165e   :  { %v32294_v26 = vpop.f32.mrb[168].mxu1 }
0x165f   :  { %34724 = vst [vmem:[#allocation33_spill] sm:$0xff] %v32294_v26  ;;  %27515 = vmatmul.mubr.msk.f32.vlgmr.msra.gmra.mrb[188].mxu1 %vm264_vm2, %v16230_v15  ;;  %v27416_v30 = vpop.f32.mrb[169].mxu1 }
0x1660   :  { %27523 = vmatpush3.xpose.msk.msra.mxu1 %vm264_vm2, %v32239_v17  ;;  %27524 = vmatprep.mubr.msk.f32.mxu1 %vm28904_vm1, %v34655_v40  ;;  %v13999_v17 = vpop.xlane.xlu1 %13998 }
0x1661   :  { %27532 = vmatprep.subr.mxu1 %v34655_v40  ;;  %v14033_v24 = vsub.f32 %v32180_v44, %v13999_v17 }
0x1663   :  { %27525 = vmatmul.mubr.msk.f32.vlgmr.msra.gmra.mrb[190].mxu1 %vm264_vm2, %v16386_v0  ;;  %v14055_v28 = vmul.f32 1.442695, %v14033_v24 }
0x1664   :  { %27533 = vmatpush3.xpose.msk.msra.mxu1 %vm264_vm2, %v16544_v38  ;;  %27534 = vmatprep.mubr.msk.f32.mxu1 %vm28904_vm1, %v34655_v40  ;;  %v14011_v1 = vpop.xlane.xlu1 %14010 }
0x1665   :  { %27542 = vmatprep.subr.mxu1 %v34655_v40  ;;  %v14037_v31 = vsub.f32 %v32185_v20, %v14011_v1 }
0x1667   :  { %27535 = vmatmul.mubr.msk.f32.vlgmr.msra.gmra.mrb[192].mxu1 %vm264_vm2, %v16542_v45  ;;  %v14063_v27 = vmul.f32 1.442695, %v14037_v31 }
0x1668   :  { %27544 = vmatprep.mubr.msk.f32.mxu1 %vm28904_vm1, %v34655_v40  ;;  %v14023_v58 = vpop.xlane.xlu1 %14022 }
0x1669   :  { %v14041_v9 = vsub.f32 %v32190_v61, %v14023_v58 }
0x1677   :  { %v13987_v36 = vpop.xlane.xlu0 %13986 }
0x1678   :  { %v14029_v13 = vsub.f32 %v32213_v4, %v13987_v36  ;;  %v14071_v4 = vmul.f32 1.442695, %v14041_v9 }
0x167a   :  { %v14047_v42 = vmul.f32 1.442695, %v14029_v13 }
0x167b   :  { %v14005_v10 = vpop.xlane.xlu0 %14004 }
0x167c   :  { %28579 = vpow2.f32 %v14047_v42  ;;  %v14035_v3 = vsub.f32 %v32216_v49, %v14005_v10 }
0x167d   :  { %28581 = vpow2.f32 %v14055_v28 }
0x167e   :  { %v14059_v39 = vmul.f32 1.442695, %v14035_v3 }
0x167f   :  { %v14017_v15 = vpop.xlane.xlu0 %14016 }
0x1680   :  { %28583 = vpow2.f32 %v14059_v39  ;;  %v14039_v44 = vsub.f32 %v32223_v47, %v14017_v15 }
0x1681   :  { %28585 = vpow2.f32 %v14063_v27 }
0x1682   :  { %v14067_v5 = vmul.f32 1.442695, %v14039_v44 }
0x1684   :  { %28587 = vpow2.f32 %v14067_v5 }
0x1685   :  { %28589 = vpow2.f32 %v14071_v4 }
0x1686   :  { %v32316_v20 = vpop.eup %28579 }
0x1687   :  { %v14081_v0 = vsel %vm264_vm2, %v32316_v20, 0.0  ;;  %v32320_v49 = vpop.eup %28581 }
0x1688   :  { %14082 = vadd.xlane.f32.xlu1 %v14081_v0  ;;  %v14093_v61 = vsel %vm264_vm2, %v32320_v49, 0.0 }
0x168a   :  { %v32322_v22 = vpop.eup %28583 }
0x168b   :  { %v14099_v47 = vsel %vm264_vm2, %v32322_v22, 0.0  ;;  %v32328_v30 = vpop.eup %28585 }
0x168c   :  { %14094 = vadd.xlane.f32.xlu1 %v14093_v61  ;;  %14100 = vadd.xlane.f32.xlu0 %v14099_v47  ;;  %v14105_v45 = vsel %vm264_vm2, %v32328_v30, 0.0 }
0x168e   :  { %v32330_v38 = vpop.eup %28587 }
0x168f   :  { %v14111_v17 = vsel %vm264_vm2, %v32330_v38, 0.0  ;;  %v32336_v1 = vpop.eup %28589 }
0x1690   :  { %14106 = vadd.xlane.f32.xlu1 %v14105_v45  ;;  %14112 = vadd.xlane.f32.xlu0 %v14111_v17  ;;  %v14117_v24 = vsel %vm264_vm2, %v32336_v1, 0.0 }
0x1694   :  { %14118 = vadd.xlane.f32.xlu0 %v14117_v24 }
0x16a1   :  { %14155 = vrot.lane.b32.xlu1 %v31875_v32, %s28906_s3 }
0x16a5   :  { %14459 = vrot.lane.b32.xlu1 %v31938_v23, %s28906_s3 }
0x16a9   :  { %14611 = vrot.lane.b32.xlu1 %v31951_v6, %s28906_s3 }
0x16aa   :  { %14307 = vrot.lane.b32.xlu0 %v31941_v33, %s28906_s3 }
0x16ad   :  { %14763 = vrot.lane.b32.xlu1 %v31948_v29, %s28906_s3 }
0x16ae   :  { %14915 = vrot.lane.b32.xlu0 %v31965_v48, %s28906_s3 }
0x16b1   :  { %15067 = vrot.lane.b32.xlu1 %v31960_v11, %s28906_s3 }
0x16b2   :  { %15219 = vrot.lane.b32.xlu0 %v31978_v25, %s28906_s3 }
0x16b5   :  { %15373 = vrot.lane.b32.xlu1 %v31875_v32, %s28907_s7 }
0x16b6   :  { %15371 = vrot.lane.b32.xlu0 %v31875_v32, %s28908_s4 }
0x16b9   :  { %15529 = vrot.lane.b32.xlu1 %v31941_v33, %s28907_s7 }
0x16ba   :  { %15527 = vrot.lane.b32.xlu0 %v31941_v33, %s28908_s4 }
0x16bd   :  { %15685 = vrot.lane.b32.xlu1 %v31938_v23, %s28907_s7  ;;  %v14077_v42 = vpop.xlane.xlu0 %14076 }
0x16be   :  { %15683 = vrot.lane.b32.xlu0 %v31938_v23, %s28908_s4  ;;  %28591 = vrcp.f32 %v14077_v42 }
0x16c1   :  { %15841 = vrot.lane.b32.xlu1 %v31951_v6, %s28907_s7  ;;  %v14089_v3 = vpop.xlane.xlu0 %14088 }
0x16c2   :  { %15839 = vrot.lane.b32.xlu0 %v31951_v6, %s28908_s4 }
0x16c5   :  { %15997 = vrot.lane.b32.xlu1 %v31948_v29, %s28907_s7 }
0x16c6   :  { %15995 = vrot.lane.b32.xlu0 %v31948_v29, %s28908_s4 }
0x16c8   :  { %v28592_v0 = vpop.eup %28591 }
0x16c9   :  { %16153 = vrot.lane.b32.xlu1 %v31965_v48, %s28907_s7  ;;  %v14139_v24 = vmul.f32 %v28592_v0, %v32243_v51 }
0x16ca   :  { %16151 = vrot.lane.b32.xlu0 %v31965_v48, %s28908_s4 }
0x16cd   :  { %16309 = vrot.lane.b32.xlu1 %v31960_v11, %s28907_s7 }
0x16ce   :  { %16307 = vrot.lane.b32.xlu0 %v31960_v11, %s28908_s4 }
0x16d1   :  { %16465 = vrot.lane.b32.xlu1 %v31978_v25, %s28907_s7 }
0x16d2   :  { %16463 = vrot.lane.b32.xlu0 %v31978_v25, %s28908_s4 }
0x16d5   :  { %16887 = vrot.lane.b32.xlu1 %v31878_v50, %s28909_s8 }
0x16d6   :  { %v32390_v36 = vpop.f32.mrb[170].mxu1  ;;  %17039 = vrot.lane.b32.xlu0 %v31885_v46, %s28909_s8 }
0x16d7   :  { %34725 = vst [vmem:[#allocation34_spill] sm:$0xff] %v32390_v36  ;;  %v27426_v13 = vpop.f32.mrb[171].mxu1 }
0x16d9   :  { %17191 = vrot.lane.b32.xlu1 %v31893_v55, %s28909_s8 }
0x16da   :  { %v32396_v28 = vpop.f32.mrb[172].mxu1  ;;  %17647 = vrot.lane.b32.xlu0 %v31918_v54, %s28909_s8 }
0x16db   :  { %34726 = vst [vmem:[#allocation35_spill] sm:$0xff] %v32396_v28  ;;  %v27436_v31 = vpop.f32.mrb[173].mxu1 }
0x16dd   :  { %17343 = vrot.lane.b32.xlu1 %v31890_v57, %s28909_s8 }
0x16de   :  { %17951 = vrot.lane.b32.xlu0 %v31928_v37, %s28909_s8 }
0x16e1   :  { %17495 = vrot.lane.b32.xlu1 %v31921_v43, %s28909_s8 }
0x16e2   :  { %18413 = vrot.lane.b32.xlu0 %v31875_v32, %s28910_s30 }
0x16e5   :  { %17799 = vrot.lane.b32.xlu1 %v31931_v21, %s28909_s8 }
0x16e6   :  { %18491 = vrot.lane.b32.xlu0 %v31878_v50, %s28910_s30 }
0x16e9   :  { %18415 = vrot.lane.b32.xlu1 %v31875_v32, %s28911_s9 }
0x16ea   :  { %18569 = vrot.lane.b32.xlu0 %v31941_v33, %s28910_s30 }
0x16ed   :  { %18493 = vrot.lane.b32.xlu1 %v31878_v50, %s28911_s9 }
0x16ee   :  { %18647 = vrot.lane.b32.xlu0 %v31885_v46, %s28910_s30 }
0x16f1   :  { %18571 = vrot.lane.b32.xlu1 %v31941_v33, %s28911_s9 }
0x16f2   :  { %18725 = vrot.lane.b32.xlu0 %v31938_v23, %s28910_s30 }
0x16f5   :  { %18649 = vrot.lane.b32.xlu1 %v31885_v46, %s28911_s9 }
0x16f6   :  { %18803 = vrot.lane.b32.xlu0 %v31893_v55, %s28910_s30 }
0x16f9   :  { %18727 = vrot.lane.b32.xlu1 %v31938_v23, %s28911_s9 }
0x16fa   :  { %18881 = vrot.lane.b32.xlu0 %v31951_v6, %s28910_s30 }
0x16fd   :  { %18805 = vrot.lane.b32.xlu1 %v31893_v55, %s28911_s9 }
0x1701   :  { %18883 = vrot.lane.b32.xlu1 %v31951_v6, %s28911_s9 }
0x1705   :  { %18961 = vrot.lane.b32.xlu1 %v31890_v57, %s28911_s9 }
0x1709   :  { %18959 = vrot.lane.b32.xlu1 %v31890_v57, %s28910_s30 }
0x1713   :  { %v32440_v58 = vpop.f32.mrb[174].mxu1 }
0x1714   :  { %34727 = vst [vmem:[#allocation36_spill] sm:$0xff] %v32440_v58  ;;  %v27446_v10 = vpop.f32.mrb[175].mxu1 }
0x1715   :  { %v14083_v27 = vpop.xlane.xlu1 %14082 }
0x1716   :  { %28593 = vrcp.f32 %v14083_v27 }
0x1717   :  { %v32442_v9 = vpop.f32.mrb[176].mxu1  ;;  %28595 = vrcp.f32 %v14089_v3 }
0x1718   :  { %34728 = vst [vmem:[#allocation37_spill] sm:$0xff] %v32442_v9  ;;  %v27456_v39 = vpop.f32.mrb[177].mxu1 }
0x1719   :  { %v14095_v15 = vpop.xlane.xlu1 %14094  ;;  %v14101_v44 = vpop.xlane.xlu0 %14100 }
0x171a   :  { %28597 = vrcp.f32 %v14095_v15 }
0x171b   :  { %28599 = vrcp.f32 %v14101_v44 }
0x171d   :  { %v14107_v4 = vpop.xlane.xlu1 %14106  ;;  %v14113_v5 = vpop.xlane.xlu0 %14112 }
0x171e   :  { %v15523_v61 = vpop.f32.mrb[178].mxu1  ;;  %28601 = vrcp.f32 %v14107_v4 }
0x171f   :  { %v27466_v47 = vpop.f32.mrb[179].mxu1  ;;  %v32456_v0 = vmul.f32 0.35355338, %v15523_v61  ;;  %28603 = vrcp.f32 %v14113_v5 }
0x1720   :  { %v28594_v13 = vpop.eup %28593 }
0x1721   :  { %v14156_v45 = vpop.permute.xlu1 %14155  ;;  %v14119_v17 = vpop.xlane.xlu0 %14118  ;;  %v14141_v27 = vmul.f32 %v28594_v13, %v32316_v20  ;;  %v16638_v4 = vsel %vm264_vm2, %v32456_v0, -inf }
0x1722   :  { %v32445_v31 = vpop.f32.mrb[180].mxu1  ;;  %27378 = vmatpush3.msra.mxu0 %v14156_v45  ;;  %v28596_v39 = vpop.eup %28595  ;;  %28605 = vrcp.f32 %v14119_v17 }
0x1723   :  { %v27476_v42 = vpop.f32.mrb[181].mxu1  ;;  %27380 = vmatmul.mubr.msk.f32.vlgmr.msra.gmra.mrb[206].mxu0 %vm264_vm2, %v14139_v24  ;;  %27387 = vmatprep.subr.mxu0 %v34655_v40  ;;  %v14143_v20 = vmul.f32 %v28596_v39, %v32247_v34 }
0x1724   :  { %27389 = vmatprep.mubr.msk.f32.mxu0 %vm28904_vm1, %v34655_v40  ;;  %v28598_v47 = vpop.eup %28597 }
0x1725   :  { %v14460_v10 = vpop.permute.xlu1 %14459  ;;  %v14308_v3 = vpop.permute.xlu0 %14307  ;;  %v14145_v34 = vmul.f32 %v28598_v47, %v32320_v49 }
0x1726   :  { %v32452_v15 = vpop.f32.mrb[182].mxu1  ;;  %27388 = vmatpush3.msra.mxu0 %v14308_v3 }
0x1727   :  { %v27486_v51 = vpop.f32.mrb[183].mxu1  ;;  %27390 = vmatmul.mubr.msk.f32.vlgmr.msra.gmra.mrb[208].mxu0 %vm264_vm2, %v14141_v27  ;;  %27397 = vmatprep.subr.mxu0 %v34655_v40 }
0x1728   :  { %27398 = vmatpush3.msra.mxu0 %v14460_v10  ;;  %27399 = vmatprep.mubr.msk.f32.mxu0 %vm28904_vm1, %v34655_v40  ;;  %v28600_v10 = vpop.eup %28599 }
0x1729   :  { %v14612_v44 = vpop.permute.xlu1 %14611  ;;  %27407 = vmatprep.subr.mxu0 %v34655_v40  ;;  %v14916_v24 = vpop.permute.xlu0 %14915  ;;  %v14147_v49 = vmul.f32 %v28600_v10, %v32322_v22 }
0x172a   :  { %v15991_v45 = vpop.f32.mrb[184].mxu1 }
0x172b   :  { %v27496_v13 = vpop.f32.mrb[185].mxu1  ;;  %27400 = vmatmul.mubr.msk.f32.vlgmr.msra.gmra.mrb[210].mxu0 %vm264_vm2, %v14143_v20  ;;  %v32463_v42 = vmul.f32 0.35355338, %v15991_v45 }
0x172c   :  { %27408 = vmatpush3.msra.mxu0 %v14612_v44  ;;  %27409 = vmatprep.mubr.msk.f32.mxu0 %vm28904_vm1, %v34655_v40  ;;  %v28602_v44 = vpop.eup %28601 }
0x172d   :  { %16639 = vmax.xlane.f32.xlu1 %v16638_v4  ;;  %v14764_v61 = vpop.permute.xlu1 %14763  ;;  %27417 = vmatprep.subr.mxu0 %v34655_v40  ;;  %v16656_v5 = vsel %vm264_vm2, %v32463_v42, -inf  ;;  %v15220_v39 = vpop.permute.xlu0 %15219  ;;  %v14149_v45 = vmul.f32 %v28602_v44, %v32328_v30 }
0x172e   :  { %v32471_v3 = vpop.f32.mrb[186].mxu1  ;;  %v28604_v13 = vpop.eup %28603 }
0x172f   :  { %v27506_v27 = vpop.f32.mrb[187].mxu1  ;;  %27410 = vmatmul.mubr.msk.f32.vlgmr.msra.gmra.mrb[212].mxu0 %vm264_vm2, %v14145_v34  ;;  %v14151_v34 = vmul.f32 %v28604_v13, %v32330_v38  ;;  %v28606_v10 = vpop.eup %28605 }
0x1730   :  { %27418 = vmatpush3.msra.mxu0 %v14764_v61  ;;  %27419 = vmatprep.mubr.msk.f32.mxu0 %vm28904_vm1, %v34655_v40 }
0x1731   :  { %16657 = vmax.xlane.f32.xlu1 %v16656_v5  ;;  %v15068_v51 = vpop.permute.xlu1 %15067  ;;  %27427 = vmatprep.subr.mxu0 %v34655_v40  ;;  %v15372_v61 = vpop.permute.xlu0 %15371 }
0x1732   :  { %v32480_v20 = vpop.f32.mrb[188].mxu1 }
0x1733   :  { %v27516_v47 = vpop.f32.mrb[189].mxu1  ;;  %27420 = vmatmul.mubr.msk.f32.vlgmr.msra.gmra.mrb[214].mxu0 %vm264_vm2, %v14147_v49  ;;  %v14153_v49 = vmul.f32 %v28606_v10, %v32336_v1 }
0x1734   :  { %27428 = vmatpush3.msra.mxu0 %v14916_v24  ;;  %27429 = vmatprep.mubr.msk.f32.mxu0 %vm28904_vm1, %v34655_v40 }
0x1735   :  { %v15374_v17 = vpop.permute.xlu1 %15373  ;;  %27437 = vmatprep.subr.mxu0 %v34655_v40  ;;  %v15528_v5 = vpop.permute.xlu0 %15527 }
0x1736   :  { %v32487_v4 = vpop.f32.mrb[190].mxu1 }
0x1737   :  { %v27526_v22 = vpop.f32.mrb[191].mxu1  ;;  %27430 = vmatmul.mubr.msk.f32.vlgmr.msra.gmra.mrb[216].mxu0 %vm264_vm2, %v14149_v45 }
0x1738   :  { %27438 = vmatpush3.msra.mxu0 %v15068_v51  ;;  %27439 = vmatprep.mubr.msk.f32.mxu0 %vm28904_vm1, %v34655_v40 }
0x1739   :  { %v15530_v24 = vpop.permute.xlu1 %15529  ;;  %27447 = vmatprep.subr.mxu0 %v34655_v40  ;;  %v15684_v44 = vpop.permute.xlu0 %15683 }
0x173a   :  { %v32494_v27 = vpop.f32.mrb[192].mxu1 }
0x173b   :  { %v27536_v30 = vpop.f32.mrb[193].mxu1  ;;  %27440 = vmatmul.mubr.msk.f32.vlgmr.msra.gmra.mrb[218].mxu0 %vm264_vm2, %v14151_v34  ;;  %v32545_v34 = vmul.f32 0.35355338, %v32480_v20 }
0x173c   :  { %27448 = vmatpush3.msra.mxu0 %v15220_v39  ;;  %27449 = vmatprep.mubr.msk.f32.mxu0 %vm28904_vm1, %v34655_v40 }
0x173d   :  { %v15686_v51 = vpop.permute.xlu1 %15685  ;;  %27457 = vmatprep.subr.mxu0 %v34655_v40  ;;  %v15840_v1 = vpop.permute.xlu0 %15839  ;;  %v16668_v30 = vsel %vm264_vm2, %v32545_v34, -inf }
0x173f   :  { %27450 = vmatmul.mubr.msk.f32.vlgmr.msra.gmra.mrb[220].mxu0 %vm264_vm2, %v14153_v49 }
0x1740   :  { %27459 = vmatprep.mubr.msk.f32.mxu0 %vm28904_vm1, %v34655_v40 }
0x1741   :  { %v15842_v38 = vpop.permute.xlu1 %15841  ;;  %v15996_v45 = vpop.permute.xlu0 %15995 }
0x1742   :  { %19039 = vrot.lane.b32.xlu1 %v31948_v29, %s28911_s9 }
0x1743   :  { %27458 = vmatpush3.xpose.msk.msra.mxu0 %vm264_vm2, %v15374_v17 }
0x1744   :  { %27467 = vmatprep.subr.mxu0 %v34655_v40 }
0x1745   :  { %v15998_v39 = vpop.permute.xlu1 %15997 }
0x1746   :  { %27460 = vmatmul.mubr.msk.f32.vlgmr.msra.gmra.mrb[222].mxu0 %vm264_vm2, %v15372_v61  ;;  %v16152_v61 = vpop.permute.xlu0 %16151 }
0x1747   :  { %27468 = vmatpush3.xpose.msk.msra.mxu0 %vm264_vm2, %v15530_v24  ;;  %27469 = vmatprep.mubr.msk.f32.mxu0 %vm28904_vm1, %v34655_v40 }
0x1748   :  { %27477 = vmatprep.subr.mxu0 %v34655_v40 }
0x1749   :  { %v16154_v47 = vpop.permute.xlu1 %16153 }
0x174a   :  { %27470 = vmatmul.mubr.msk.f32.vlgmr.msra.gmra.mrb[224].mxu0 %vm264_vm2, %v15528_v5  ;;  %v16308_v24 = vpop.permute.xlu0 %16307 }
0x174b   :  { %27478 = vmatpush3.xpose.msk.msra.mxu0 %vm264_vm2, %v15686_v51  ;;  %27479 = vmatprep.mubr.msk.f32.mxu0 %vm28904_vm1, %v34655_v40 }
0x174c   :  { %27487 = vmatprep.subr.mxu0 %v34655_v40 }
0x174d   :  { %v16310_v17 = vpop.permute.xlu1 %16309 }
0x174e   :  { %27480 = vmatmul.mubr.msk.f32.vlgmr.msra.gmra.mrb[226].mxu0 %vm264_vm2, %v15684_v44  ;;  %v16464_v10 = vpop.permute.xlu0 %16463 }
0x174f   :  { %27488 = vmatpush3.xpose.msk.msra.mxu0 %vm264_vm2, %v15842_v38  ;;  %27489 = vmatprep.mubr.msk.f32.mxu0 %vm28904_vm1, %v34655_v40 }
0x1750   :  { %27497 = vmatprep.subr.mxu0 %v34655_v40 }
0x1751   :  { %v16466_v13 = vpop.permute.xlu1 %16465 }
0x1752   :  { %27490 = vmatmul.mubr.msk.f32.vlgmr.msra.gmra.mrb[228].mxu0 %vm264_vm2, %v15840_v1 }
0x1753   :  { %27498 = vmatpush3.xpose.msk.msra.mxu0 %vm264_vm2, %v15998_v39  ;;  %27499 = vmatprep.mubr.msk.f32.mxu0 %vm28904_vm1, %v34655_v40 }
0x1754   :  { %27507 = vmatprep.subr.mxu0 %v34655_v40 }
0x1755   :  { %v16888_v22 = vpop.permute.xlu1 %16887 }
0x1756   :  { %27500 = vmatmul.mubr.msk.f32.vlgmr.msra.gmra.mrb[230].mxu0 %vm264_vm2, %v15996_v45  ;;  %27543 = vmatpush3.msra.mxu1 %v16888_v22 }
0x1757   :  { %27508 = vmatpush3.xpose.msk.msra.mxu0 %vm264_vm2, %v16154_v47  ;;  %27509 = vmatprep.mubr.msk.f32.mxu0 %vm28904_vm1, %v34655_v40 }
0x1758   :  { %27517 = vmatprep.subr.mxu0 %v34655_v40  ;;  %27552 = vmatprep.subr.mxu1 %v34655_v40 }
0x1759   :  { %v32604_v8 = vpop.permute.xlu1 %17191 }
0x175a   :  { %27510 = vmatmul.mubr.msk.f32.vlgmr.msra.gmra.mrb[232].mxu0 %vm264_vm2, %v16152_v61 }
0x175b   :  { %27518 = vmatpush3.xpose.msk.msra.mxu0 %vm264_vm2, %v16310_v17  ;;  %27519 = vmatprep.mubr.msk.f32.mxu0 %vm28904_vm1, %v34655_v40 }
0x175c   :  { %27527 = vmatprep.subr.mxu0 %v34655_v40 }
0x175e   :  { %27520 = vmatmul.mubr.msk.f32.vlgmr.msra.gmra.mrb[234].mxu0 %vm264_vm2, %v16308_v24 }
0x175f   :  { %27528 = vmatpush3.xpose.msk.msra.mxu0 %vm264_vm2, %v16466_v13  ;;  %27529 = vmatprep.mubr.msk.f32.mxu0 %vm28904_vm1, %v34655_v40 }
0x1760   :  { %27537 = vmatprep.subr.mxu0 %v34655_v40 }
0x1762   :  { %27530 = vmatmul.mubr.msk.f32.vlgmr.msra.gmra.mrb[236].mxu0 %vm264_vm2, %v16464_v10 }
0x1763   :  { %27539 = vmatprep.mubr.msk.f32.mxu0 %vm28904_vm1, %v34655_v40 }
0x1766   :  { %16669 = vmax.xlane.f32.xlu1 %v16668_v30 }
0x17f6   :  { %v32552_v5 = vpop.f32.mrb[206].mxu0 }
0x17f7   :  { %34729 = vst [vmem:[#allocation38_spill] sm:$0xff] %v32552_v5  ;;  %v27381_v51 = vpop.f32.mrb[207].mxu0 }
0x17fa   :  { %v32554_v49 = vpop.f32.mrb[208].mxu0 }
0x17fb   :  { %34730 = vst [vmem:[#allocation39_spill] sm:$0xff] %v32554_v49  ;;  %v27391_v38 = vpop.f32.mrb[209].mxu0 }
0x17fe   :  { %v32556_v44 = vpop.f32.mrb[210].mxu0 }
0x17ff   :  { %34731 = vst [vmem:[#allocation40_spill] sm:$0xff] %v32556_v44  ;;  %v27401_v20 = vpop.f32.mrb[211].mxu0 }
0x1800   :  { %v32571_v20 = vmul.f32 0.35355338, %v32445_v31 }
0x1802   :  { %v32558_v39 = vpop.f32.mrb[212].mxu0 }
0x1803   :  { %34732 = vst [vmem:[#allocation41_spill] sm:$0xff] %v32558_v39  ;;  %v27411_v1 = vpop.f32.mrb[213].mxu0 }
0x1806   :  { %v32560_v47 = vpop.f32.mrb[214].mxu0 }
0x1807   :  { %34733 = vst [vmem:[#allocation42_spill] sm:$0xff] %v32560_v47  ;;  %v27421_v17 = vpop.f32.mrb[215].mxu0 }
0x180a   :  { %v32562_v45 = vpop.f32.mrb[216].mxu0 }
0x180b   :  { %34734 = vst [vmem:[#allocation43_spill] sm:$0xff] %v32562_v45  ;;  %v27431_v13 = vpop.f32.mrb[217].mxu0 }
0x180e   :  { %v32564_v61 = vpop.f32.mrb[218].mxu0 }
0x180f   :  { %34735 = vst [vmem:[#allocation44_spill] sm:$0xff] %v32564_v61  ;;  %v27441_v22 = vpop.f32.mrb[219].mxu0 }
0x1810   :  { %v32578_v22 = vmul.f32 0.35355338, %v32452_v15 }
0x1812   :  { %v32566_v24 = vpop.f32.mrb[220].mxu0  ;;  %v16650_v15 = vsel %vm264_vm2, %v32578_v22, -inf }
0x1813   :  { %34736 = vst [vmem:[#allocation45_spill] sm:$0xff] %v32566_v24  ;;  %v27451_v10 = vpop.f32.mrb[221].mxu0 }
0x1814   :  { %v32581_v10 = vmul.f32 0.35355338, %v32494_v27 }
0x1816   :  { %v16680_v27 = vsel %vm264_vm2, %v32581_v10, -inf }
0x1819   :  { %v15445_v30 = vpop.f32.mrb[222].mxu0 }
0x181a   :  { %v32568_v51 = vmul.f32 0.35355338, %v15445_v30  ;;  %v27461_v38 = vpop.f32.mrb[223].mxu0  ;;  %v16644_v30 = vsel %vm264_vm2, %v32571_v20, -inf }
0x181c   :  { %v16635_v1 = vsel %vm264_vm2, %v32568_v51, -inf }
0x181d   :  { %16636 = vmax.xlane.f32.xlu0 %v16635_v1  ;;  %v15601_v17 = vpop.f32.mrb[224].mxu0 }
0x181e   :  { %v32575_v56 = vmul.f32 0.35355338, %v15601_v17  ;;  %v27471_v13 = vpop.f32.mrb[225].mxu0  ;;  %v32588_v17 = vmul.f32 0.35355338, %v32471_v3 }
0x1820   :  { %v16641_v31 = vsel %vm264_vm2, %v32575_v56, -inf  ;;  %v16662_v2 = vsel %vm264_vm2, %v32588_v17, -inf }
0x1821   :  { %16645 = vmax.xlane.f32.xlu0 %v16644_v30  ;;  %16642 = vmax.xlane.f32.xlu1 %v16641_v31  ;;  %v15757_v38 = vpop.f32.mrb[226].mxu0 }
0x1822   :  { %v27481_v1 = vpop.f32.mrb[227].mxu0  ;;  %v32629_v12 = vmul.f32 0.35355338, %v15757_v38 }
0x1824   :  { %v16647_v35 = vsel %vm264_vm2, %v32629_v12, -inf }
0x1825   :  { %16651 = vmax.xlane.f32.xlu0 %v16650_v15  ;;  %16681 = vmax.xlane.f32.xlu1 %v16680_v27  ;;  %v15913_v13 = vpop.f32.mrb[228].mxu0 }
0x1826   :  { %v27491_v53 = vpop.f32.mrb[229].mxu0  ;;  %v32631_v52 = vmul.f32 0.35355338, %v15913_v13  ;;  %v32645_v13 = vpop.permute.xlu0 %17039 }
0x1828   :  { %v16653_v16 = vsel %vm264_vm2, %v32631_v52, -inf }
0x1829   :  { %16663 = vmax.xlane.f32.xlu0 %v16662_v2  ;;  %v32596_v30 = vpop.f32.mrb[230].mxu0  ;;  %v32610_v2 = vpop.permute.xlu1 %17343 }
0x182a   :  { %v27501_v31 = vpop.f32.mrb[231].mxu0  ;;  %v32649_v9 = vpop.permute.xlu0 %17647 }
0x182d   :  { %v32598_v1 = vpop.f32.mrb[232].mxu0 }
0x182e   :  { %v27511_v3 = vpop.f32.mrb[233].mxu0  ;;  %v32655_v24 = vpop.permute.xlu0 %17951 }
0x182f   :  { %v32625_v3 = vmul.f32 0.35355338, %v32487_v4 }
0x1831   :  { %v32600_v19 = vpop.f32.mrb[234].mxu0  ;;  %v16674_v60 = vsel %vm264_vm2, %v32625_v3, -inf }
0x1832   :  { %v27521_v7 = vpop.f32.mrb[235].mxu0 }
0x1833   :  { %v32616_v7 = vpop.permute.xlu1 %17495 }
0x1835   :  { %v32602_v18 = vpop.f32.mrb[236].mxu0 }
0x1836   :  { %19117 = vrot.lane.b32.xlu1 %v31921_v43, %s28911_s9  ;;  %v27531_v53 = vpop.f32.mrb[237].mxu0 }
0x1837   :  { %v32618_v15 = vpop.permute.xlu1 %17799 }
0x183a   :  { %19115 = vrot.lane.b32.xlu1 %v31921_v43, %s28910_s30 }
0x183b   :  { %v32620_v27 = vpop.permute.xlu1 %18415 }
0x183e   :  { %19195 = vrot.lane.b32.xlu1 %v31965_v48, %s28911_s9 }
0x183f   :  { %19037 = vrot.lane.b32.xlu0 %v31948_v29, %s28910_s30  ;;  %v32622_v31 = vpop.permute.xlu1 %18493 }
0x1843   :  { %v32627_v53 = vpop.permute.xlu1 %18571 }
0x1847   :  { %v32635_v41 = vpop.permute.xlu1 %18649 }
0x184b   :  { %v32641_v4 = vpop.permute.xlu1 %18727 }
0x184f   :  { %v32643_v38 = vpop.permute.xlu1 %18805 }
0x1853   :  { %v32647_v62 = vpop.permute.xlu1 %18883 }
0x185e   :  { %16675 = vmax.xlane.f32.xlu0 %v16674_v60  ;;  %v32651_v60 = vpop.permute.xlu1 %18961 }
0x1862   :  { %16648 = vmax.xlane.f32.xlu0 %v16647_v35  ;;  %16654 = vmax.xlane.f32.xlu1 %v16653_v16  ;;  %v32659_v16 = vpop.permute.xlu1 %18959  ;;  %v32661_v35 = vpop.permute.xlu0 %18413 }
0x1866   :  { %v16640_v58 = vpop.xlane.xlu1 %16639  ;;  %v32664_v28 = vpop.permute.xlu0 %18491 }
0x1867   :  { %v16684_v61 = vsub.f32 %v32456_v0, %v16640_v58 }
0x1869   :  { %v16701_v45 = vmul.f32 1.442695, %v16684_v61 }
0x186a   :  { %v32666_v36 = vpop.permute.xlu0 %18569  ;;  %v16658_v58 = vpop.xlane.xlu1 %16657 }
0x186b   :  { %28607 = vpow2.f32 %v16701_v45  ;;  %v16690_v5 = vsub.f32 %v32463_v42, %v16658_v58  ;;  %v32692_v42 = vmul.f32 0.35355338, %v32596_v30 }
0x186d   :  { %v16713_v43 = vmul.f32 1.442695, %v16690_v5 }
0x186e   :  { %v32668_v47 = vpop.permute.xlu0 %18647  ;;  %v32682_v61 = vpop.permute.xlu1 %19039 }
0x1872   :  { %v32672_v39 = vpop.permute.xlu0 %18725  ;;  %v16670_v50 = vpop.xlane.xlu1 %16669 }
0x1873   :  { %v16694_v57 = vsub.f32 %v32545_v34, %v16670_v50  ;;  %v16659_v50 = vsel %vm264_vm2, %v32692_v42, -inf }
0x1875   :  { %v32670_v26 = vpop.eup %28607  ;;  %v16721_v6 = vmul.f32 1.442695, %v16694_v57 }
0x1876   :  { %v16734_v14 = vsel %vm264_vm2, %v32670_v26, 0.0  ;;  %v32676_v44 = vpop.permute.xlu0 %18803 }
0x1878   :  { %19193 = vrot.lane.b32.xlu0 %v31965_v48, %s28910_s30 }
0x187a   :  { %v32678_v59 = vpop.permute.xlu0 %18881 }
0x187c   :  { %19273 = vrot.lane.b32.xlu0 %v31918_v54, %s28911_s9 }
0x189b   :  { %16735 = vadd.xlane.f32.xlu0 %v16734_v14 }
0x18aa   :  { %v32680_v0 = vpop.xlane.xlu0 %16636 }
0x18ae   :  { %v16646_v45 = vpop.xlane.xlu0 %16645  ;;  %v32716_v34 = vpop.xlane.xlu1 %16642 }
0x18af   :  { %v16686_v49 = vsub.f32 %v32571_v20, %v16646_v45 }
0x18b1   :  { %v16705_v63 = vmul.f32 1.442695, %v16686_v49 }
0x18b2   :  { %v16652_v46 = vpop.xlane.xlu0 %16651  ;;  %v16682_v5 = vpop.xlane.xlu1 %16681 }
0x18b3   :  { %v16688_v29 = vsub.f32 %v32578_v22, %v16652_v46  ;;  %28609 = vpow2.f32 %v16705_v63  ;;  %v16698_v22 = vsub.f32 %v32581_v10, %v16682_v5  ;;  %v32735_v10 = vmul.f32 0.35355338, %v32600_v19 }
0x18b4   :  { %v32752_v5 = vmul.f32 0.35355338, %v32598_v1 }
0x18b5   :  { %v16709_v14 = vmul.f32 1.442695, %v16688_v29  ;;  %v16729_v58 = vmul.f32 1.442695, %v16698_v22  ;;  %v16683_v22 = vsub.f32 %v32568_v51, %v32680_v0 }
0x18b6   :  { %v16664_v55 = vpop.xlane.xlu0 %16663  ;;  %v32764_v1 = vpop.permute.xlu1 %19117 }
0x18b7   :  { %v16692_v33 = vsub.f32 %v32588_v17, %v16664_v55  ;;  %28611 = vpow2.f32 %v16709_v14 }
0x18b8   :  { %28613 = vpow2.f32 %v16713_v43 }
0x18b9   :  { %v16717_v48 = vmul.f32 1.442695, %v16692_v33 }
0x18ba   :  { %v32722_v20 = vpop.permute.xlu0 %19037  ;;  %v32766_v51 = vpop.permute.xlu1 %19115 }
0x18bb   :  { %28615 = vpow2.f32 %v16717_v48 }
0x18bc   :  { %28617 = vpow2.f32 %v16721_v6 }
0x18bd   :  { %v32689_v49 = vpop.eup %28609 }
0x18be   :  { %v16740_v46 = vsel %vm264_vm2, %v32689_v49, 0.0 }
0x18bf   :  { %16741 = vadd.xlane.f32.xlu1 %v16740_v46 }
0x18c1   :  { %v32696_v29 = vpop.eup %28611 }
0x18c2   :  { %v16746_v55 = vsel %vm264_vm2, %v32696_v29, 0.0  ;;  %v32702_v57 = vpop.eup %28613 }
0x18c3   :  { %16660 = vmax.xlane.f32.xlu1 %v16659_v50  ;;  %16747 = vadd.xlane.f32.xlu0 %v16746_v55  ;;  %v16752_v6 = vsel %vm264_vm2, %v32702_v57, 0.0 }
0x18c5   :  { %v32704_v43 = vpop.eup %28615 }
0x18c6   :  { %v16758_v33 = vsel %vm264_vm2, %v32704_v43, 0.0  ;;  %v32710_v48 = vpop.eup %28617 }
0x18c7   :  { %16753 = vadd.xlane.f32.xlu1 %v16752_v6  ;;  %16759 = vadd.xlane.f32.xlu0 %v16758_v33  ;;  %v16764_v63 = vsel %vm264_vm2, %v32710_v48, 0.0 }
0x18cb   :  { %16765 = vadd.xlane.f32.xlu1 %v16764_v63 }
0x18dc   :  { %19351 = vrot.lane.b32.xlu1 %v31960_v11, %s28911_s9 }
0x18e0   :  { %19349 = vrot.lane.b32.xlu1 %v31960_v11, %s28910_s30 }
0x18e4   :  { %19429 = vrot.lane.b32.xlu1 %v31931_v21, %s28911_s9 }
0x18eb   :  { %v16676_v17 = vpop.xlane.xlu0 %16675 }
0x18ec   :  { %v16696_v30 = vsub.f32 %v32625_v3, %v16676_v17  ;;  %v16671_v3 = vsel %vm264_vm2, %v32735_v10, -inf }
0x18ee   :  { %v16725_v45 = vmul.f32 1.442695, %v16696_v30  ;;  %v16699_v30 = vmul.f32 1.442695, %v16683_v22 }
0x18ef   :  { %v16649_v33 = vpop.xlane.xlu0 %16648 }
0x18f0   :  { %28619 = vpow2.f32 %v16725_v45 }
0x18f1   :  { %28621 = vpow2.f32 %v16729_v58  ;;  %v16665_v58 = vsel %vm264_vm2, %v32752_v5, -inf }
0x18f3   :  { %v32743_v6 = vpop.permute.xlu0 %19193 }
0x18f7   :  { %v32749_v19 = vpop.permute.xlu0 %19273 }
0x18fa   :  { %v32726_v14 = vpop.eup %28619 }
0x18fb   :  { %v16770_v46 = vsel %vm264_vm2, %v32726_v14, 0.0  ;;  %v32730_v50 = vpop.eup %28621 }
0x18fc   :  { %16771 = vadd.xlane.f32.xlu0 %v16770_v46  ;;  %v16776_v55 = vsel %vm264_vm2, %v32730_v50, 0.0  ;;  %v32770_v46 = vpop.permute.xlu1 %19195 }
0x1900   :  { %16777 = vadd.xlane.f32.xlu0 %v16776_v55  ;;  %v16655_v55 = vpop.xlane.xlu1 %16654 }
0x1908   :  { %16672 = vmax.xlane.f32.xlu1 %v16671_v3 }
0x1916   :  { %19271 = vrot.lane.b32.xlu0 %v31918_v54, %s28910_s30 }
0x1919   :  { %19505 = vrot.lane.b32.xlu1 %v31978_v25, %s28910_s30 }
0x191d   :  { %19585 = vrot.lane.b32.xlu1 %v31928_v37, %s28911_s9 }
0x1921   :  { %19583 = vrot.lane.b32.xlu1 %v31928_v37, %s28910_s30 }
0x1928   :  { %v16736_v63 = vpop.xlane.xlu0 %16735 }
0x1929   :  { %28623 = vrcp.f32 %v16736_v63 }
0x192a   :  { %28625 = vpow2.f32 %v16699_v30 }
0x1933   :  { %v28624_v17 = vpop.eup %28623 }
0x1934   :  { %v16796_v45 = vmul.f32 %v28624_v17, %v32670_v26  ;;  %v32768_v0 = vpop.eup %28625 }
0x1935   :  { %16666 = vmax.xlane.f32.xlu0 %v16665_v58  ;;  %v16731_v26 = vsel %vm264_vm2, %v32768_v0, 0.0 }
0x1936   :  { %27545 = vmatmul.mubr.msk.f32.vlgmr.msra.gmra.mrb[194].mxu1 %vm264_vm2, %v16796_v45 }
0x1937   :  { %27553 = vmatpush3.msra.mxu1 %v32645_v13  ;;  %27554 = vmatprep.mubr.msk.f32.mxu1 %vm28904_vm1, %v34655_v40 }
0x1938   :  { %27562 = vmatprep.subr.mxu1 %v34655_v40 }
0x1945   :  { %16732 = vadd.xlane.f32.xlu1 %v16731_v26 }
0x194b   :  { %19427 = vrot.lane.b32.xlu0 %v31931_v21, %s28910_s30  ;;  %s34748_s30 = smov 104  }
0x194c   :  { %v16742_v13 = vpop.xlane.xlu1 %16741 }
0x194d   :  { %28627 = vrcp.f32 %v16742_v13  ;;  %v16685_v13 = vsub.f32 %v32575_v56, %v32716_v34 }
0x194f   :  { %19507 = vrot.lane.b32.xlu0 %v31978_v25, %s28911_s9  ;;  %s34760_s9 = smov 40  }
0x1950   :  { %v16661_v3 = vpop.xlane.xlu1 %16660  ;;  %v16748_v63 = vpop.xlane.xlu0 %16747 }
0x1951   :  { %28629 = vrcp.f32 %v16748_v63 }
0x1954   :  { %v16754_v22 = vpop.xlane.xlu1 %16753  ;;  %v16760_v17 = vpop.xlane.xlu0 %16759 }
0x1955   :  { %28631 = vrcp.f32 %v16754_v22  ;;  %v16687_v22 = vsub.f32 %v32629_v12, %v16649_v33 }
0x1956   :  { %28633 = vrcp.f32 %v16760_v17  ;;  %v16689_v17 = vsub.f32 %v32631_v52, %v16655_v55  ;;  %v32804_v52 = vmul.f32 0.35355338, %v32602_v18 }
0x1957   :  { %v28628_v30 = vpop.eup %28627 }
0x1958   :  { %v16798_v58 = vmul.f32 %v28628_v30, %v32689_v49  ;;  %v16766_v45 = vpop.xlane.xlu1 %16765  ;;  %v16703_v49 = vmul.f32 1.442695, %v16685_v13  ;;  %v16711_v33 = vmul.f32 1.442695, %v16689_v17  ;;  %v34743_v17 = vld [vmem:[#allocation21_spill] sm:$0xff] }
0x1959   :  { %28635 = vrcp.f32 %v16766_v45 }
0x195a   :  { %27555 = vmatmul.mubr.msk.f32.vlgmr.msra.gmra.mrb[196].mxu1 %vm264_vm2, %v16798_v58  ;;  %28637 = vpow2.f32 %v16703_v49 }
0x195b   :  { %v28630_v26 = vpop.eup %28629  ;;  %27563 = vmatpush3.msra.mxu1 %v32604_v8  ;;  %27564 = vmatprep.mubr.msk.f32.mxu1 %vm28904_vm1, %v34655_v40 }
0x195c   :  { %27572 = vmatprep.subr.mxu1 %v34655_v40  ;;  %v16800_v63 = vmul.f32 %v28630_v26, %v32696_v29  ;;  %v16707_v29 = vmul.f32 1.442695, %v16687_v22 }
0x195e   :  { %27565 = vmatmul.mubr.msk.f32.vlgmr.msra.gmra.mrb[198].mxu1 %vm264_vm2, %v16800_v63  ;;  %28639 = vpow2.f32 %v16707_v29  ;;  %v34744_v29 = vld [vmem:[#allocation22_spill] sm:$0xff] }
0x195f   :  { %27573 = vmatpush3.msra.mxu1 %v32610_v2  ;;  %27574 = vmatprep.mubr.msk.f32.mxu1 %vm28904_vm1, %v34655_v40  ;;  %v28632_v56 = vpop.eup %28631  ;;  %28641 = vpow2.f32 %v16711_v33 }
0x1960   :  { %27582 = vmatprep.subr.mxu1 %v34655_v40  ;;  %v16802_v8 = vmul.f32 %v28632_v56, %v32702_v57  ;;  %v28634_v34 = vpop.eup %28633  ;;  %v16691_v57 = vsub.f32 %v32692_v42, %v16661_v3  ;;  %v16677_v42 = vsel %vm264_vm2, %v32804_v52, -inf }
0x1961   :  { %v16804_v12 = vmul.f32 %v28634_v34, %v32704_v43  ;;  %v34742_v34 = vld [vmem:[#allocation20_spill] sm:$0xff] }
0x1962   :  { %27575 = vmatmul.mubr.msk.f32.vlgmr.msra.gmra.mrb[200].mxu1 %vm264_vm2, %v16802_v8  ;;  %v16715_v43 = vmul.f32 1.442695, %v16691_v57 }
0x1963   :  { %27583 = vmatpush3.msra.mxu1 %v32616_v7  ;;  %27584 = vmatprep.mubr.msk.f32.mxu1 %vm28904_vm1, %v34655_v40  ;;  %v28636_v2 = vpop.eup %28635 }
0x1964   :  { %27592 = vmatprep.subr.mxu1 %v34655_v40  ;;  %v16806_v7 = vmul.f32 %v28636_v2, %v32710_v48  ;;  %v32817_v18 = vpop.eup %28637  ;;  %28643 = vpow2.f32 %v16715_v43  ;;  %v34746_v2 = vld [vmem:[#allocation28_spill] sm:$0xff] }
0x1966   :  { %27585 = vmatmul.mubr.msk.f32.vlgmr.msra.gmra.mrb[202].mxu1 %vm264_vm2, %v16804_v12  ;;  %v34745_v12 = vld [vmem:[#allocation19_spill] sm:$0xff] }
0x1967   :  { %27593 = vmatpush3.msra.mxu1 %v32649_v9  ;;  %27594 = vmatprep.mubr.msk.f32.mxu1 %vm28904_vm1, %v34655_v40  ;;  %v16737_v9 = vsel %vm264_vm2, %v32817_v18, 0.0 }
0x1968   :  { %27602 = vmatprep.subr.mxu1 %v34655_v40  ;;  %v32822_v48 = vpop.eup %28639 }
0x1969   :  { %v32826_v55 = vpop.eup %28641 }
0x196a   :  { %27595 = vmatmul.mubr.msk.f32.vlgmr.msra.gmra.mrb[204].mxu1 %vm264_vm2, %v16806_v7  ;;  %v16749_v3 = vsel %vm264_vm2, %v32826_v55, 0.0 }
0x196b   :  { %27603 = vmatpush3.msra.mxu1 %v32618_v15  ;;  %27604 = vmatprep.mubr.msk.f32.mxu1 %vm28904_vm1, %v34655_v40  ;;  %v16743_v15 = vsel %vm264_vm2, %v32822_v48, 0.0 }
0x196c   :  { %27612 = vmatprep.subr.mxu1 %v34655_v40 }
0x196e   :  { %16678 = vmax.xlane.f32.xlu0 %v16677_v42  ;;  %v32830_v30 = vpop.eup %28643 }
0x196f   :  { %v16755_v58 = vsel %vm264_vm2, %v32830_v30, 0.0 }
0x1972   :  { %16738 = vadd.xlane.f32.xlu0 %v16737_v9 }
0x1976   :  { %16744 = vadd.xlane.f32.xlu0 %v16743_v15 }
0x197a   :  { %16750 = vadd.xlane.f32.xlu0 %v16749_v3 }
0x197e   :  { %16756 = vadd.xlane.f32.xlu0 %v16755_v58 }
0x1989   :  { %v16772_v45 = vpop.xlane.xlu0 %16771 }
0x198a   :  { %28645 = vrcp.f32 %v16772_v45 }
0x198d   :  { %v16778_v26 = vpop.xlane.xlu0 %16777 }
0x198e   :  { %28647 = vrcp.f32 %v16778_v26 }
0x1994   :  { %v28646_v13 = vpop.eup %28645 }
0x1995   :  { %v16808_v63 = vmul.f32 %v28646_v13, %v32726_v14  ;;  %v34737_v14 = vld [vmem:[#allocation31_spill] sm:$0xff] }
0x1997   :  { %27605 = vmatmul.mubr.msk.f32.vlgmr.msra.gmra.mrb[206].mxu1 %vm264_vm2, %v16808_v63 }
0x1998   :  { %v28648_v49 = vpop.eup %28647  ;;  %27613 = vmatpush3.msra.mxu1 %v32655_v24  ;;  %27614 = vmatprep.mubr.msk.f32.mxu1 %vm28904_vm1, %v34655_v40 }
0x1999   :  { %v16810_v22 = vmul.f32 %v28648_v49, %v32730_v50  ;;  %27669 = vmatprep.subr.mxu1 %v34655_v40  ;;  %v34738_v50 = vld [vmem:[#allocation23_spill] sm:$0xff] }
0x199b   :  { %27615 = vmatmul.mubr.msk.f32.vlgmr.msra.gmra.mrb[208].mxu1 %vm264_vm2, %v16810_v22 }
0x199c   :  { %27671 = vmatprep.mubr.msk.f32.mxu1 %vm28904_vm1, %v34655_v40 }
0x199f   :  { %27670 = vmatpush3.xpose.msk.msra.mxu1 %vm264_vm2, %v32620_v27 }
0x19a0   :  { %27674 = vmatprep.subr.mxu1 %v34655_v40 }
0x19a2   :  { %27672 = vmatmul.mubr.msk.f32.vlgmr.msra.gmra.mrb[210].mxu1 %vm264_vm2, %v32661_v35 }
0x19a3   :  { %27675 = vmatpush3.xpose.msk.msra.mxu1 %vm264_vm2, %v32622_v31  ;;  %27676 = vmatprep.mubr.msk.f32.mxu1 %vm28904_vm1, %v34655_v40 }
0x19a4   :  { %27679 = vmatprep.subr.mxu1 %v34655_v40 }
0x19a6   :  { %27677 = vmatmul.mubr.msk.f32.vlgmr.msra.gmra.mrb[212].mxu1 %vm264_vm2, %v32664_v28  ;;  %v19352_v28 = vpop.permute.xlu1 %19351 }
0x19a7   :  { %27680 = vmatpush3.xpose.msk.msra.mxu1 %vm264_vm2, %v32627_v53  ;;  %27681 = vmatprep.mubr.msk.f32.mxu1 %vm28904_vm1, %v34655_v40 }
0x19a8   :  { %27684 = vmatprep.subr.mxu1 %v34655_v40 }
0x19aa   :  { %27682 = vmatmul.mubr.msk.f32.vlgmr.msra.gmra.mrb[214].mxu1 %vm264_vm2, %v32666_v36 }
0x19ab   :  { %27685 = vmatpush3.xpose.msk.msra.mxu1 %vm264_vm2, %v32635_v41  ;;  %27686 = vmatprep.mubr.msk.f32.mxu1 %vm28904_vm1, %v34655_v40  ;;  %v19350_v41 = vpop.permute.xlu1 %19349 }
0x19ac   :  { %27689 = vmatprep.subr.mxu1 %v34655_v40 }
0x19ae   :  { %27687 = vmatmul.mubr.msk.f32.vlgmr.msra.gmra.mrb[216].mxu1 %vm264_vm2, %v32668_v47 }
0x19af   :  { %27690 = vmatpush3.xpose.msk.msra.mxu1 %vm264_vm2, %v32641_v4  ;;  %27691 = vmatprep.mubr.msk.f32.mxu1 %vm28904_vm1, %v34655_v40  ;;  %v19430_v36 = vpop.permute.xlu1 %19429 }
0x19b0   :  { %27694 = vmatprep.subr.mxu1 %v34655_v40 }
0x19b2   :  { %27692 = vmatmul.mubr.msk.f32.vlgmr.msra.gmra.mrb[218].mxu1 %vm264_vm2, %v32672_v39 }
0x19b3   :  { %27695 = vmatpush3.xpose.msk.msra.mxu1 %vm264_vm2, %v32643_v38  ;;  %27696 = vmatprep.mubr.msk.f32.mxu1 %vm28904_vm1, %v34655_v40  ;;  %v16673_v39 = vpop.xlane.xlu1 %16672 }
0x19b4   :  { %27699 = vmatprep.subr.mxu1 %v34655_v40 }
0x19b6   :  { %27697 = vmatmul.mubr.msk.f32.vlgmr.msra.gmra.mrb[220].mxu1 %vm264_vm2, %v32676_v44  ;;  %v19272_v44 = vpop.permute.xlu0 %19271 }
0x19b7   :  { %27700 = vmatpush3.xpose.msk.msra.mxu1 %vm264_vm2, %v32647_v62  ;;  %27701 = vmatprep.mubr.msk.f32.mxu1 %vm28904_vm1, %v34655_v40  ;;  %v16695_v62 = vsub.f32 %v32735_v10, %v16673_v39  ;;  %v19506_v4 = vpop.permute.xlu1 %19505 }
0x19b8   :  { %27704 = vmatprep.subr.mxu1 %v34655_v40 }
0x19b9   :  { %v16723_v24 = vmul.f32 1.442695, %v16695_v62 }
0x19ba   :  { %27702 = vmatmul.mubr.msk.f32.vlgmr.msra.gmra.mrb[222].mxu1 %vm264_vm2, %v32678_v59 }
0x19bb   :  { %27705 = vmatpush3.xpose.msk.msra.mxu1 %vm264_vm2, %v32651_v60  ;;  %27706 = vmatprep.mubr.msk.f32.mxu1 %vm28904_vm1, %v34655_v40 }
0x19bc   :  { %27709 = vmatprep.subr.mxu1 %v34655_v40 }
0x19be   :  { %27707 = vmatmul.mubr.msk.f32.vlgmr.msra.gmra.mrb[224].mxu1 %vm264_vm2, %v32659_v16 }
0x19bf   :  { %27710 = vmatpush3.xpose.msk.msra.mxu1 %vm264_vm2, %v32682_v61  ;;  %27711 = vmatprep.mubr.msk.f32.mxu1 %vm28904_vm1, %v34655_v40  ;;  %v19586_v61 = vpop.permute.xlu1 %19585 }
0x19c0   :  { %27714 = vmatprep.subr.mxu1 %v34655_v40 }
0x19c2   :  { %27712 = vmatmul.mubr.msk.f32.vlgmr.msra.gmra.mrb[226].mxu1 %vm264_vm2, %v32722_v20  ;;  %v16667_v59 = vpop.xlane.xlu0 %16666 }
0x19c3   :  { %27715 = vmatpush3.xpose.msk.msra.mxu1 %vm264_vm2, %v32764_v1  ;;  %v16693_v47 = vsub.f32 %v32752_v5, %v16667_v59  ;;  %27716 = vmatprep.mubr.msk.f32.mxu1 %vm28904_vm1, %v34655_v40  ;;  %v19584_v20 = vpop.permute.xlu1 %19583  ;;  %v34740_v5 = vld [vmem:[#allocation30_spill] sm:$0xff] }
0x19c4   :  { %27719 = vmatprep.subr.mxu1 %v34655_v40 }
0x19c5   :  { %v16719_v27 = vmul.f32 1.442695, %v16693_v47 }
0x19c6   :  { %27717 = vmatmul.mubr.msk.f32.vlgmr.msra.gmra.mrb[228].mxu1 %vm264_vm2, %v32766_v51  ;;  %v19428_v31 = vpop.permute.xlu0 %19427  ;;  %v34741_v51 = vld [vmem:[#allocation29_spill] sm:$0xff] }
0x19c7   :  { %28649 = vpow2.f32 %v16719_v27  ;;  %27720 = vmatpush3.xpose.msk.msra.mxu1 %vm264_vm2, %v32770_v46  ;;  %27721 = vmatprep.mubr.msk.f32.mxu1 %vm28904_vm1, %v34655_v40 }
0x19c8   :  { %27724 = vmatprep.subr.mxu1 %v34655_v40  ;;  %28651 = vpow2.f32 %v16723_v24 }
0x19ca   :  { %27722 = vmatmul.mubr.msk.f32.vlgmr.msra.gmra.mrb[230].mxu1 %vm264_vm2, %v32743_v6  ;;  %v19508_v16 = vpop.permute.xlu0 %19507 }
0x19cb   :  { %27725 = vmatpush3.xpose.msk.msra.mxu1 %vm264_vm2, %v32749_v19  ;;  %27726 = vmatprep.mubr.msk.f32.mxu1 %vm28904_vm1, %v34655_v40 }
0x19cc   :  { %27729 = vmatprep.subr.mxu1 %v34655_v40 }
0x19ce   :  { %27727 = vmatmul.mubr.msk.f32.vlgmr.msra.gmra.mrb[232].mxu1 %vm264_vm2, %v19272_v44 }
0x19cf   :  { %27730 = vmatpush3.xpose.msk.msra.mxu1 %vm264_vm2, %v19352_v28  ;;  %27731 = vmatprep.mubr.msk.f32.mxu1 %vm28904_vm1, %v34655_v40 }
0x19d0   :  { %27734 = vmatprep.subr.mxu1 %v34655_v40 }
0x19d1   :  { %v32931_v53 = vpop.eup %28649 }
0x19d2   :  { %27732 = vmatmul.mubr.msk.f32.vlgmr.msra.gmra.mrb[234].mxu1 %vm264_vm2, %v19350_v41  ;;  %v16761_v38 = vsel %vm264_vm2, %v32931_v53, 0.0  ;;  %v32936_v60 = vpop.eup %28651  ;;  %v16733_v63 = vpop.xlane.xlu1 %16732 }
0x19d3   :  { %27735 = vmatpush3.xpose.msk.msra.mxu1 %vm264_vm2, %v19430_v36  ;;  %16762 = vadd.xlane.f32.xlu0 %v16761_v38  ;;  %v16767_v35 = vsel %vm264_vm2, %v32936_v60, 0.0 }
0x19d4   :  { %27736 = vmatprep.mubr.msk.f32.mxu1 %vm28904_vm1, %v34655_v40  ;;  %27739 = vmatprep.subr.mxu1 %v34655_v40 }
0x19d6   :  { %27737 = vmatmul.mubr.msk.f32.vlgmr.msra.gmra.mrb[236].mxu1 %vm264_vm2, %v19428_v31 }
0x19d7   :  { %27740 = vmatpush3.xpose.msk.msra.mxu1 %vm264_vm2, %v19508_v16  ;;  %16768 = vadd.xlane.f32.xlu0 %v16767_v35 }
0x19d8   :  { %27741 = vmatprep.mubr.msk.f32.mxu1 %vm28904_vm1, %v34655_v40  ;;  %27744 = vmatprep.subr.mxu1 %v34655_v40 }
0x19da   :  { %27742 = vmatmul.mubr.msk.f32.vlgmr.msra.gmra.mrb[238].mxu1 %vm264_vm2, %v19506_v4 }
0x19db   :  { %27745 = vmatpush3.xpose.msk.msra.mxu1 %vm264_vm2, %v19586_v61  ;;  %27746 = vmatprep.mubr.msk.f32.mxu1 %vm28904_vm1, %v34655_v40 }
0x19dc   :  { %27754 = vmatprep.subr.mxu1 %v34655_v40 }
0x19de   :  { %27747 = vmatmul.mubr.msk.f32.vlgmr.msra.gmra.mrb[240].mxu1 %vm264_vm2, %v19584_v20 }
0x19df   :  { %27756 = vmatprep.mubr.msk.f32.mxu1 %vm28904_vm1, %v34655_v40 }
0x19ed   :  { %16811 = vrot.lane.b32.xlu0 %v31875_v32, %s28909_s8 }
0x19f1   :  { %17115 = vrot.lane.b32.xlu0 %v31938_v23, %s28909_s8 }
0x19f5   :  { %17267 = vrot.lane.b32.xlu0 %v34737_v14, %s28909_s8 }
0x19f9   :  { %17571 = vrot.lane.b32.xlu0 %v34738_v50, %s28909_s8 }
0x19fb   :  { %v16679_v10 = vpop.xlane.xlu0 %16678 }
0x19fc   :  { %v16697_v6 = vsub.f32 %v32804_v52, %v16679_v10 }
0x19fd   :  { %17875 = vrot.lane.b32.xlu0 %v31978_v25, %s28909_s8 }
0x19fe   :  { %v16727_v19 = vmul.f32 1.442695, %v16697_v6 }
0x19ff   :  { %v16739_v45 = vpop.xlane.xlu0 %16738 }
0x1a00   :  { %28653 = vpow2.f32 %v16727_v19 }
0x1a01   :  { %19853 = vrot.lane.b32.xlu0 %v31875_v32, %s34739_s14  ;;  %28655 = vrcp.f32 %v16733_v63 }
0x1a02   :  { %28657 = vrcp.f32 %v16739_v45 }
0x1a03   :  { %v16745_v26 = vpop.xlane.xlu0 %16744 }
0x1a04   :  { %28659 = vrcp.f32 %v16745_v26 }
0x1a05   :  { %20005 = vrot.lane.b32.xlu0 %v34740_v5, %s34739_s14 }
0x1a07   :  { %v16751_v13 = vpop.xlane.xlu0 %16750 }
0x1a08   :  { %28661 = vrcp.f32 %v16751_v13 }
0x1a09   :  { %v32972_v1 = vpop.f32.mrb[194].mxu1  ;;  %20233 = vrot.lane.b32.xlu0 %v34741_v51, %s34739_s14 }
0x1a0a   :  { %v32976_v46 = vpop.eup %28653  ;;  %v27546_v56 = vpop.f32.mrb[195].mxu1 }
0x1a0b   :  { %v16773_v8 = vsel %vm264_vm2, %v32976_v46, 0.0  ;;  %v33012_v49 = vpop.xlane.xlu0 %16756  ;;  %v28656_v41 = vpop.eup %28655 }
0x1a0c   :  { %16774 = vadd.xlane.f32.xlu1 %v16773_v8  ;;  %v16795_v44 = vmul.f32 %v28656_v41, %v32768_v0  ;;  %28663 = vrcp.f32 %v33012_v49 }
0x1a0d   :  { %20385 = vrot.lane.b32.xlu0 %v34742_v34, %s34739_s14 }
0x1a11   :  { %20537 = vrot.lane.b32.xlu0 %v34743_v17, %s34739_s14 }
0x1a1d   :  { %16963 = vrot.lane.b32.xlu1 %v34740_v5, %s28909_s8 }
0x1a21   :  { %17419 = vrot.lane.b32.xlu1 %v34744_v29, %s28909_s8 }
0x1a25   :  { %17723 = vrot.lane.b32.xlu1 %v31960_v11, %s28909_s8  ;;  %s34747_s8 = smov 72  }
0x1a29   :  { %19929 = vrot.lane.b32.xlu1 %v34745_v12, %s34739_s14 }
0x1a2d   :  { %20081 = vrot.lane.b32.xlu1 %v34746_v2, %s34739_s14  ;;  %v32994_v33 = vpop.f32.mrb[196].mxu1 }
0x1a2e   :  { %v27556_v57 = vpop.f32.mrb[197].mxu1 }
0x1a31   :  { %20157 = vrot.lane.b32.xlu1 %v31938_v23, %s34739_s14  ;;  %v32998_v52 = vpop.f32.mrb[198].mxu1 }
0x1a32   :  { %v27566_v7 = vpop.f32.mrb[199].mxu1 }
0x1a35   :  { %20309 = vrot.lane.b32.xlu1 %v34737_v14, %s34739_s14  ;;  %v33002_v43 = vpop.f32.mrb[200].mxu1 }
0x1a36   :  { %v27576_v42 = vpop.f32.mrb[201].mxu1 }
0x1a39   :  { %20461 = vrot.lane.b32.xlu1 %v34744_v29, %s34739_s14  ;;  %v33006_v9 = vpop.f32.mrb[202].mxu1 }
0x1a3a   :  { %v27586_v15 = vpop.f32.mrb[203].mxu1 }
0x1a3d   :  { %20613 = vrot.lane.b32.xlu1 %v34738_v50, %s34739_s14  ;;  %v33010_v3 = vpop.f32.mrb[204].mxu1 }
0x1a3e   :  { %v27596_v58 = vpop.f32.mrb[205].mxu1 }
0x1a60   :  { %v33014_v22 = vpop.xlane.xlu0 %16762 }
0x1a61   :  { %28665 = vrcp.f32 %v33014_v22 }
0x1a64   :  { %v33016_v28 = vpop.xlane.xlu0 %16768 }
0x1a65   :  { %28667 = vrcp.f32 %v33016_v28 }
0x1a68   :  { %v16812_v36 = vpop.permute.xlu0 %16811 }
0x1a69   :  { %27538 = vmatpush3.msra.mxu0 %v16812_v36 }
0x1a6a   :  { %27540 = vmatmul.mubr.msk.f32.vlgmr.msra.gmra.mrb[238].mxu0 %vm264_vm2, %v16795_v44  ;;  %v33020_v39 = vpop.f32.mrb[206].mxu1  ;;  %27547 = vmatprep.subr.mxu0 %v34655_v40 }
0x1a6b   :  { %v27606_v62 = vpop.f32.mrb[207].mxu1  ;;  %27549 = vmatprep.mubr.msk.f32.mxu0 %vm28904_vm1, %v34655_v40 }
0x1a6c   :  { %v17116_v26 = vpop.permute.xlu0 %17115 }
0x1a6e   :  { %v33025_v59 = vpop.f32.mrb[208].mxu1 }
0x1a6f   :  { %v27616_v47 = vpop.f32.mrb[209].mxu1 }
0x1a75   :  { %v18487_v24 = vpop.f32.mrb[210].mxu1 }
0x1a76   :  { %v33027_v27 = vmul.f32 0.35355338, %v18487_v24  ;;  %v27673_v31 = vpop.f32.mrb[211].mxu1 }
0x1a78   :  { %v19677_v0 = vsel %vm264_vm2, %v33027_v27, -inf }
0x1a79   :  { %v18565_v4 = vpop.f32.mrb[212].mxu1  ;;  %19678 = vmax.xlane.f32.xlu1 %v19677_v0 }
0x1a7a   :  { %v33031_v38 = vmul.f32 0.35355338, %v18565_v4  ;;  %v27678_v16 = vpop.f32.mrb[213].mxu1 }
0x1a7c   :  { %v19680_v35 = vsel %vm264_vm2, %v33031_v38, -inf }
0x1a7d   :  { %v18643_v61 = vpop.f32.mrb[214].mxu1  ;;  %19681 = vmax.xlane.f32.xlu0 %v19680_v35 }
0x1a7e   :  { %v33035_v20 = vmul.f32 0.35355338, %v18643_v61  ;;  %v27683_v10 = vpop.f32.mrb[215].mxu1 }
0x1a80   :  { %v19683_v6 = vsel %vm264_vm2, %v33035_v20, -inf }
0x1a81   :  { %v18721_v19 = vpop.f32.mrb[216].mxu1  ;;  %19684 = vmax.xlane.f32.xlu0 %v19683_v6 }
0x1a82   :  { %v33039_v56 = vmul.f32 0.35355338, %v18721_v19  ;;  %v27688_v8 = vpop.f32.mrb[217].mxu1 }
0x1a84   :  { %v19686_v57 = vsel %vm264_vm2, %v33039_v56, -inf }
0x1a85   :  { %v18799_v7 = vpop.f32.mrb[218].mxu1  ;;  %19687 = vmax.xlane.f32.xlu1 %v19686_v57  ;;  %v28658_v57 = vpop.eup %28657 }
0x1a86   :  { %v33043_v42 = vmul.f32 0.35355338, %v18799_v7  ;;  %v27693_v15 = vpop.f32.mrb[219].mxu1  ;;  %v16797_v13 = vmul.f32 %v28658_v57, %v32817_v18 }
0x1a88   :  { %v19689_v58 = vsel %vm264_vm2, %v33043_v42, -inf }
0x1a89   :  { %v18877_v63 = vpop.f32.mrb[220].mxu1  ;;  %19690 = vmax.xlane.f32.xlu0 %v19689_v58 }
0x1a8a   :  { %v33047_v41 = vmul.f32 0.35355338, %v18877_v63  ;;  %v27698_v36 = vpop.f32.mrb[221].mxu1 }
0x1a8c   :  { %v19692_v44 = vsel %vm264_vm2, %v33047_v41, -inf }
0x1a8d   :  { %v18955_v62 = vpop.f32.mrb[222].mxu1  ;;  %19693 = vmax.xlane.f32.xlu1 %v19692_v44  ;;  %v28660_v44 = vpop.eup %28659 }
0x1a8e   :  { %v33051_v47 = vmul.f32 0.35355338, %v18955_v62  ;;  %v27703_v24 = vpop.f32.mrb[223].mxu1 }
0x1a90   :  { %v19695_v31 = vsel %vm264_vm2, %v33051_v47, -inf }
0x1a91   :  { %v19033_v0 = vpop.f32.mrb[224].mxu1  ;;  %19696 = vmax.xlane.f32.xlu0 %v19695_v31 }
0x1a92   :  { %v33055_v4 = vmul.f32 0.35355338, %v19033_v0  ;;  %v27708_v16 = vpop.f32.mrb[225].mxu1  ;;  %v16799_v0 = vmul.f32 %v28660_v44, %v32822_v48 }
0x1a93   :  { %v28662_v16 = vpop.eup %28661 }
0x1a94   :  { %v19698_v35 = vsel %vm264_vm2, %v33055_v4, -inf  ;;  %v16801_v48 = vmul.f32 %v28662_v16, %v32826_v55  ;;  %v28664_v57 = vpop.eup %28663 }
0x1a95   :  { %v19111_v61 = vpop.f32.mrb[226].mxu1  ;;  %19699 = vmax.xlane.f32.xlu1 %v19698_v35  ;;  %v16803_v55 = vmul.f32 %v28664_v57, %v32830_v30 }
0x1a96   :  { %v33059_v10 = vmul.f32 0.35355338, %v19111_v61  ;;  %v27713_v6 = vpop.f32.mrb[227].mxu1 }
0x1a97   :  { %v17268_v6 = vpop.permute.xlu0 %17267 }
0x1a98   :  { %v19701_v45 = vsel %vm264_vm2, %v33059_v10, -inf }
0x1a99   :  { %v19189_v19 = vpop.f32.mrb[228].mxu1  ;;  %19702 = vmax.xlane.f32.xlu0 %v19701_v45  ;;  %v16775_v8 = vpop.xlane.xlu1 %16774 }
0x1a9a   :  { %v33063_v7 = vmul.f32 0.35355338, %v19189_v19  ;;  %v27718_v15 = vpop.f32.mrb[229].mxu1  ;;  %28669 = vrcp.f32 %v16775_v8 }
0x1a9b   :  { %v17572_v8 = vpop.permute.xlu0 %17571 }
0x1a9c   :  { %v19704_v58 = vsel %vm264_vm2, %v33063_v7, -inf }
0x1a9d   :  { %v19267_v63 = vpop.f32.mrb[230].mxu1  ;;  %19705 = vmax.xlane.f32.xlu1 %v19704_v58  ;;  %v16964_v36 = vpop.permute.xlu1 %16963 }
0x1a9e   :  { %v33069_v62 = vmul.f32 0.35355338, %v19267_v63  ;;  %v27723_v24 = vpop.f32.mrb[231].mxu1  ;;  %27548 = vmatpush3.msra.mxu0 %v16964_v36  ;;  %v28666_v36 = vpop.eup %28665 }
0x1a9f   :  { %27550 = vmatmul.mubr.msk.f32.vlgmr.msra.gmra.mrb[240].mxu0 %vm264_vm2, %v16797_v13  ;;  %27557 = vmatprep.subr.mxu0 %v34655_v40  ;;  %v16805_v30 = vmul.f32 %v28666_v36, %v32931_v53 }
0x1aa0   :  { %v19707_v49 = vsel %vm264_vm2, %v33069_v62, -inf  ;;  %27558 = vmatpush3.msra.mxu0 %v17116_v26  ;;  %27559 = vmatprep.mubr.msk.f32.mxu0 %vm28904_vm1, %v34655_v40 }
0x1aa1   :  { %v19345_v31 = vpop.f32.mrb[232].mxu1  ;;  %19708 = vmax.xlane.f32.xlu0 %v19707_v49  ;;  %v17420_v18 = vpop.permute.xlu1 %17419  ;;  %27567 = vmatprep.subr.mxu0 %v34655_v40 }
0x1aa2   :  { %v33080_v35 = vmul.f32 0.35355338, %v19345_v31  ;;  %v27728_v61 = vpop.f32.mrb[233].mxu1  ;;  %v28668_v31 = vpop.eup %28667 }
0x1aa3   :  { %27560 = vmatmul.mubr.msk.f32.vlgmr.msra.gmra.mrb[242].mxu0 %vm264_vm2, %v16799_v0 }
0x1aa4   :  { %27568 = vmatpush3.msra.mxu0 %v17268_v6  ;;  %v19710_v22 = vsel %vm264_vm2, %v33080_v35, -inf  ;;  %27569 = vmatprep.mubr.msk.f32.mxu0 %vm28904_vm1, %v34655_v40  ;;  %v16807_v6 = vmul.f32 %v28668_v31, %v32936_v60  ;;  %v28670_v53 = vpop.eup %28669  ;;  %v12728_v60 = vld [vmem:[%s34529_s15 + $0x8] sm:$0xff] }
0x1aa5   :  { %v19423_v45 = vpop.f32.mrb[234].mxu1  ;;  %19711 = vmax.xlane.f32.xlu1 %v19710_v22  ;;  %v17724_v19 = vpop.permute.xlu1 %17723  ;;  %27577 = vmatprep.subr.mxu0 %v34655_v40  ;;  %v16809_v57 = vmul.f32 %v28670_v53, %v32976_v46 }
0x1aa6   :  { %v33090_v15 = vmul.f32 0.35355338, %v19423_v45  ;;  %v27733_v26 = vpop.f32.mrb[235].mxu1 }
0x1aa7   :  { %27570 = vmatmul.mubr.msk.f32.vlgmr.msra.gmra.mrb[244].mxu0 %vm264_vm2, %v16801_v48  ;;  %v17876_v48 = vpop.permute.xlu0 %17875 }
0x1aa8   :  { %27578 = vmatpush3.msra.mxu0 %v17420_v18  ;;  %v19713_v28 = vsel %vm264_vm2, %v33090_v15, -inf  ;;  %27579 = vmatprep.mubr.msk.f32.mxu0 %vm28904_vm1, %v34655_v40 }
0x1aa9   :  { %19714 = vmax.xlane.f32.xlu0 %v19713_v28  ;;  %v19501_v58 = vpop.f32.mrb[236].mxu1  ;;  %v19930_v63 = vpop.permute.xlu1 %19929  ;;  %27587 = vmatprep.subr.mxu0 %v34655_v40 }
0x1aaa   :  { %v33099_v13 = vmul.f32 0.35355338, %v19501_v58  ;;  %v27738_v44 = vpop.f32.mrb[237].mxu1  ;;  %27755 = vmatpush3.msra.mxu1 %v19930_v63 }
0x1aab   :  { %27580 = vmatmul.mubr.msk.f32.vlgmr.msra.gmra.mrb[246].mxu0 %vm264_vm2, %v16803_v55  ;;  %27764 = vmatprep.subr.mxu1 %v34655_v40  ;;  %v33138_v46 = vpop.permute.xlu0 %19853 }
0x1aac   :  { %27588 = vmatpush3.msra.mxu0 %v17572_v8  ;;  %v19716_v24 = vsel %vm264_vm2, %v33099_v13, -inf  ;;  %27589 = vmatprep.mubr.msk.f32.mxu0 %vm28904_vm1, %v34655_v40 }
0x1aad   :  { %v19579_v49 = vpop.f32.mrb[238].mxu1  ;;  %19717 = vmax.xlane.f32.xlu1 %v19716_v24  ;;  %27597 = vmatprep.subr.mxu0 %v34655_v40  ;;  %v33136_v26 = vpop.permute.xlu1 %20081 }
0x1aae   :  { %v33109_v18 = vmul.f32 0.35355338, %v19579_v49  ;;  %v27743_v0 = vpop.f32.mrb[239].mxu1 }
0x1aaf   :  { %27590 = vmatmul.mubr.msk.f32.vlgmr.msra.gmra.mrb[248].mxu0 %vm264_vm2, %v16805_v30  ;;  %v33142_v58 = vpop.permute.xlu0 %20005 }
0x1ab0   :  { %27598 = vmatpush3.msra.mxu0 %v17724_v19  ;;  %v19719_v16 = vsel %vm264_vm2, %v33109_v18, -inf  ;;  %27599 = vmatprep.mubr.msk.f32.mxu0 %vm28904_vm1, %v34655_v40 }
0x1ab1   :  { %19720 = vmax.xlane.f32.xlu0 %v19719_v16  ;;  %v19657_v61 = vpop.f32.mrb[240].mxu1  ;;  %27607 = vmatprep.subr.mxu0 %v34655_v40  ;;  %v33140_v28 = vpop.permute.xlu1 %20157 }
0x1ab2   :  { %v33118_v22 = vmul.f32 0.35355338, %v19657_v61  ;;  %v27748_v45 = vpop.f32.mrb[241].mxu1 }
0x1ab3   :  { %27600 = vmatmul.mubr.msk.f32.vlgmr.msra.gmra.mrb[250].mxu0 %vm264_vm2, %v16807_v6  ;;  %v33146_v55 = vpop.permute.xlu0 %20233  ;;  %v33161_v6 = vld [vmem:[%s34529_s15] sm:$0xff] }
0x1ab4   :  { %27608 = vmatpush3.msra.mxu0 %v17876_v48  ;;  %v19722_v19 = vsel %vm264_vm2, %v33118_v22, -inf  ;;  %27609 = vmatprep.mubr.msk.f32.mxu0 %vm28904_vm1, %v34655_v40 }
0x1ab5   :  { %19723 = vmax.xlane.f32.xlu1 %v19722_v19  ;;  %27617 = vmatprep.subr.mxu0 %v12728_v60  ;;  %v33144_v63 = vpop.permute.xlu1 %20309 }
0x1ab7   :  { %27610 = vmatmul.mubr.msk.f32.vlgmr.msra.gmra.mrb[252].mxu0 %vm264_vm2, %v16809_v57  ;;  %v33150_v44 = vpop.permute.xlu0 %20385 }
0x1ab8   :  { %27618 = vmatpush3.msra.mxu0 %v12728_v60 }
0x1ab9   :  { %v33148_v36 = vpop.permute.xlu1 %20461  ;;  %27643 = vmatprep.subr.mxu0 %v33161_v6 }
0x1abb   :  { %v33154_v24 = vpop.permute.xlu0 %20537 }
0x1abd   :  { %v33152_v8 = vpop.permute.xlu1 %20613 }
0x1ac6   :  { %20765 = vrot.lane.b32.xlu1 %v31960_v11, %s34739_s14 }
0x1ac7   :  { %20689 = vrot.lane.b32.xlu0 %v31918_v54, %s34739_s14 }
0x1acb   :  { %20841 = vrot.lane.b32.xlu0 %v31931_v21, %s34739_s14 }
0x1b06   :  { %v19679_v49 = vpop.xlane.xlu1 %19678 }
0x1b07   :  { %v19725_v30 = vsub.f32 %v33027_v27, %v19679_v49 }
0x1b09   :  { %v19741_v31 = vmul.f32 1.442695, %v19725_v30 }
0x1b0a   :  { %v19682_v0 = vpop.xlane.xlu0 %19681 }
0x1b0b   :  { %28671 = vpow2.f32 %v19741_v31  ;;  %v19726_v16 = vsub.f32 %v33031_v38, %v19682_v0 }
0x1b0d   :  { %v19743_v61 = vmul.f32 1.442695, %v19726_v16 }
0x1b0e   :  { %v19685_v53 = vpop.xlane.xlu0 %19684 }
0x1b0f   :  { %28673 = vpow2.f32 %v19743_v61  ;;  %v19727_v45 = vsub.f32 %v33035_v20, %v19685_v53 }
0x1b11   :  { %v19745_v48 = vmul.f32 1.442695, %v19727_v45 }
0x1b12   :  { %v19688_v19 = vpop.xlane.xlu1 %19687 }
0x1b13   :  { %28675 = vpow2.f32 %v19745_v48  ;;  %v19728_v27 = vsub.f32 %v33039_v56, %v19688_v19 }
0x1b15   :  { %v33166_v57 = vpop.eup %28671  ;;  %v19747_v38 = vmul.f32 1.442695, %v19728_v27 }
0x1b16   :  { %v19691_v60 = vpop.xlane.xlu0 %19690  ;;  %v19773_v49 = vsel %vm264_vm2, %v33166_v57, 0.0 }
0x1b17   :  { %28677 = vpow2.f32 %v19747_v38  ;;  %v19729_v30 = vsub.f32 %v33043_v42, %v19691_v60  ;;  %19774 = vadd.xlane.f32.xlu0 %v19773_v49 }
0x1b19   :  { %v33171_v31 = vpop.eup %28673  ;;  %v19749_v0 = vmul.f32 1.442695, %v19729_v30 }
0x1b1a   :  { %v19694_v20 = vpop.xlane.xlu1 %19693  ;;  %v19776_v16 = vsel %vm264_vm2, %v33171_v31, 0.0 }
0x1b1b   :  { %28679 = vpow2.f32 %v19749_v0  ;;  %v19730_v56 = vsub.f32 %v33047_v41, %v19694_v20  ;;  %19777 = vadd.xlane.f32.xlu1 %v19776_v16 }
0x1b1d   :  { %v33176_v61 = vpop.eup %28675  ;;  %v19751_v53 = vmul.f32 1.442695, %v19730_v56 }
0x1b1e   :  { %v19697_v45 = vpop.xlane.xlu0 %19696  ;;  %v19779_v48 = vsel %vm264_vm2, %v33176_v61, 0.0 }
0x1b1f   :  { %28681 = vpow2.f32 %v19751_v53  ;;  %v19731_v42 = vsub.f32 %v33051_v47, %v19697_v45  ;;  %19780 = vadd.xlane.f32.xlu0 %v19779_v48 }
0x1b21   :  { %v33181_v19 = vpop.eup %28677  ;;  %v19753_v27 = vmul.f32 1.442695, %v19731_v42 }
0x1b22   :  { %v19700_v38 = vpop.xlane.xlu1 %19699  ;;  %v19782_v60 = vsel %vm264_vm2, %v33181_v19, 0.0 }
0x1b23   :  { %28683 = vpow2.f32 %v19753_v27  ;;  %v19732_v41 = vsub.f32 %v33055_v4, %v19700_v38  ;;  %19783 = vadd.xlane.f32.xlu1 %v19782_v60 }
0x1b25   :  { %v33186_v49 = vpop.eup %28679  ;;  %v19755_v30 = vmul.f32 1.442695, %v19732_v41 }
0x1b26   :  { %v19703_v0 = vpop.xlane.xlu0 %19702  ;;  %v19785_v20 = vsel %vm264_vm2, %v33186_v49, 0.0 }
0x1b27   :  { %28685 = vpow2.f32 %v19755_v30  ;;  %v19733_v47 = vsub.f32 %v33059_v10, %v19703_v0  ;;  %19786 = vadd.xlane.f32.xlu0 %v19785_v20 }
0x1b29   :  { %v33191_v16 = vpop.eup %28681  ;;  %v19757_v56 = vmul.f32 1.442695, %v19733_v47 }
0x1b2a   :  { %v19706_v53 = vpop.xlane.xlu1 %19705  ;;  %v19788_v45 = vsel %vm264_vm2, %v33191_v16, 0.0 }
0x1b2b   :  { %28687 = vpow2.f32 %v19757_v56  ;;  %v19734_v4 = vsub.f32 %v33063_v7, %v19706_v53  ;;  %19789 = vadd.xlane.f32.xlu1 %v19788_v45 }
0x1b2d   :  { %v33196_v48 = vpop.eup %28683  ;;  %v19759_v42 = vmul.f32 1.442695, %v19734_v4 }
0x1b2e   :  { %v19709_v27 = vpop.xlane.xlu0 %19708  ;;  %v19791_v38 = vsel %vm264_vm2, %v33196_v48, 0.0 }
0x1b2f   :  { %28689 = vpow2.f32 %v19759_v42  ;;  %v19735_v10 = vsub.f32 %v33069_v62, %v19709_v27  ;;  %19792 = vadd.xlane.f32.xlu0 %v19791_v38 }
0x1b31   :  { %v33201_v60 = vpop.eup %28685  ;;  %v19761_v41 = vmul.f32 1.442695, %v19735_v10 }
0x1b32   :  { %v19712_v30 = vpop.xlane.xlu1 %19711  ;;  %v19794_v0 = vsel %vm264_vm2, %v33201_v60, 0.0 }
0x1b33   :  { %28691 = vpow2.f32 %v19761_v41  ;;  %v19736_v7 = vsub.f32 %v33080_v35, %v19712_v30  ;;  %19795 = vadd.xlane.f32.xlu1 %v19794_v0 }
0x1b35   :  { %v33206_v20 = vpop.eup %28687  ;;  %v19763_v47 = vmul.f32 1.442695, %v19736_v7 }
0x1b36   :  { %v19715_v56 = vpop.xlane.xlu0 %19714  ;;  %v19797_v53 = vsel %vm264_vm2, %v33206_v20, 0.0 }
0x1b37   :  { %28693 = vpow2.f32 %v19763_v47  ;;  %v19737_v62 = vsub.f32 %v33090_v15, %v19715_v56  ;;  %19798 = vadd.xlane.f32.xlu0 %v19797_v53 }
0x1b39   :  { %v33211_v45 = vpop.eup %28689  ;;  %v19765_v4 = vmul.f32 1.442695, %v19737_v62 }
0x1b3a   :  { %v19718_v42 = vpop.xlane.xlu1 %19717  ;;  %v19800_v27 = vsel %vm264_vm2, %v33211_v45, 0.0 }
0x1b3b   :  { %28695 = vpow2.f32 %v19765_v4  ;;  %v19738_v35 = vsub.f32 %v33099_v13, %v19718_v42  ;;  %19801 = vadd.xlane.f32.xlu1 %v19800_v27 }
0x1b3d   :  { %v33216_v38 = vpop.eup %28691  ;;  %v19767_v10 = vmul.f32 1.442695, %v19738_v35  ;;  %v16883_v41 = vpop.f32.mrb[238].mxu0 }
0x1b3e   :  { %v19721_v30 = vpop.xlane.xlu0 %19720  ;;  %v27541_v0 = vpop.f32.mrb[239].mxu0  ;;  %27619 = vmatprep.mubr.msk.f32.mxu0 %vm264_vm2, %v16883_v41  ;;  %v19803_v15 = vsel %vm264_vm2, %v33216_v38, 0.0 }
0x1b3f   :  { %28697 = vpow2.f32 %v19767_v10  ;;  %v19739_v7 = vsub.f32 %v33109_v18, %v19721_v30  ;;  %19804 = vadd.xlane.f32.xlu0 %v19803_v15  ;;  %27620 = vmatmul.mubr.msk.f32.vlgmr.msra.gmra.mrb[254].mxu0 %vm264_vm2, %v32972_v1 }
0x1b40   :  { %27644 = vmatpush3.msra.mxu0 %v33161_v6 }
0x1b41   :  { %v33225_v13 = vpop.eup %28693  ;;  %v19769_v47 = vmul.f32 1.442695, %v19739_v7  ;;  %27749 = vmatprep.subr.mxu0 %v34655_v40 }
0x1b42   :  { %v19724_v56 = vpop.xlane.xlu1 %19723  ;;  %v19806_v53 = vsel %vm264_vm2, %v33225_v13, 0.0 }
0x1b43   :  { %28699 = vpow2.f32 %v19769_v47  ;;  %v19740_v62 = vsub.f32 %v33118_v22, %v19724_v56  ;;  %19807 = vadd.xlane.f32.xlu1 %v19806_v53 }
0x1b45   :  { %v33231_v18 = vpop.eup %28695  ;;  %v19771_v4 = vmul.f32 1.442695, %v19740_v62 }
0x1b46   :  { %v19809_v1 = vsel %vm264_vm2, %v33231_v18, 0.0 }
0x1b47   :  { %28701 = vpow2.f32 %v19771_v4  ;;  %19810 = vadd.xlane.f32.xlu0 %v19809_v1  ;;  %v34751_v1 = vld [vmem:[#allocation39_spill] sm:$0xff] }
0x1b49   :  { %v33235_v6 = vpop.eup %28697 }
0x1b4a   :  { %v19812_v42 = vsel %vm264_vm2, %v33235_v6, 0.0 }
0x1b4b   :  { %19813 = vadd.xlane.f32.xlu1 %v19812_v42  ;;  %v34753_v42 = vld [vmem:[#allocation40_spill] sm:$0xff] }
0x1b4d   :  { %v33239_v27 = vpop.eup %28699 }
0x1b4e   :  { %v19815_v22 = vsel %vm264_vm2, %v33239_v27, 0.0 }
0x1b4f   :  { %19816 = vadd.xlane.f32.xlu1 %v19815_v22  ;;  %v34755_v22 = vld [vmem:[#allocation41_spill] sm:$0xff] }
0x1b51   :  { %v33243_v35 = vpop.eup %28701 }
0x1b52   :  { %v19818_v10 = vsel %vm264_vm2, %v33243_v35, 0.0 }
0x1b53   :  { %19819 = vadd.xlane.f32.xlu0 %v19818_v10  ;;  %v33340_v10 = vpop.permute.xlu0 %20689 }
0x1b60   :  { %20917 = vrot.lane.b32.xlu1 %v31978_v25, %s34739_s14 }
0x1b64   :  { %21280 = vrot.lane.b32.xlu1 %v31875_v32, %s34747_s8 }
0x1b68   :  { %21358 = vrot.lane.b32.xlu1 %v34745_v12, %s34747_s8 }
0x1b69   :  { %20993 = vrot.lane.b32.xlu0 %v31928_v37, %s34739_s14 }
0x1b6c   :  { %21436 = vrot.lane.b32.xlu1 %v34740_v5, %s34747_s8 }
0x1b6d   :  { %21278 = vrot.lane.b32.xlu0 %v31875_v32, %s34748_s30 }
0x1b70   :  { %21514 = vrot.lane.b32.xlu1 %v34746_v2, %s34747_s8 }
0x1b71   :  { %21356 = vrot.lane.b32.xlu0 %v34745_v12, %s34748_s30 }
0x1b72   :  { %v17035_v41 = vpop.f32.mrb[240].mxu0 }
0x1b73   :  { %v27551_v30 = vpop.f32.mrb[241].mxu0  ;;  %27622 = vmatprep.mubr.msk.f32.mxu0 %vm264_vm2, %v17035_v41  ;;  %v34756_v41 = vld [vmem:[#allocation33_spill] sm:$0xff] }
0x1b74   :  { %21592 = vrot.lane.b32.xlu1 %v31938_v23, %s34747_s8  ;;  %27623 = vmatmul.mubr.msk.f32.gmra.mrb[0].mxu0 %vm264_vm2, %v32994_v33  ;;  %v34757_v30 = vld [vmem:[#allocation42_spill] sm:$0xff] }
0x1b75   :  { %21434 = vrot.lane.b32.xlu0 %v34740_v5, %s34748_s30 }
0x1b76   :  { %v17187_v0 = vpop.f32.mrb[242].mxu0 }
0x1b77   :  { %v27561_v15 = vpop.f32.mrb[243].mxu0  ;;  %27625 = vmatprep.mubr.msk.f32.mxu0 %vm264_vm2, %v17187_v0  ;;  %v33350_v0 = vpop.permute.xlu0 %20841 }
0x1b78   :  { %21670 = vrot.lane.b32.xlu1 %v34741_v51, %s34747_s8  ;;  %27626 = vmatmul.mubr.msk.f32.gmra.mrb[2].mxu0 %vm264_vm2, %v32998_v52  ;;  %v34758_v15 = vld [vmem:[#allocation34_spill] sm:$0xff] }
0x1b79   :  { %21512 = vrot.lane.b32.xlu0 %v34746_v2, %s34748_s30 }
0x1b7a   :  { %v17339_v7 = vpop.f32.mrb[244].mxu0 }
0x1b7b   :  { %v27571_v47 = vpop.f32.mrb[245].mxu0  ;;  %27628 = vmatprep.mubr.msk.f32.mxu0 %vm264_vm2, %v17339_v7  ;;  %v34759_v7 = vld [vmem:[#allocation43_spill] sm:$0xff] }
0x1b7c   :  { %21748 = vrot.lane.b32.xlu1 %v34737_v14, %s34747_s8  ;;  %27629 = vmatmul.mubr.msk.f32.gmra.mrb[4].mxu0 %vm264_vm2, %v33002_v43  ;;  %v33360_v47 = vpop.permute.xlu1 %20765 }
0x1b7d   :  { %21590 = vrot.lane.b32.xlu0 %v31938_v23, %s34748_s30 }
0x1b7e   :  { %v17491_v33 = vpop.f32.mrb[246].mxu0 }
0x1b7f   :  { %v27581_v56 = vpop.f32.mrb[247].mxu0  ;;  %27631 = vmatprep.mubr.msk.f32.mxu0 %vm264_vm2, %v17491_v33 }
0x1b80   :  { %21826 = vrot.lane.b32.xlu1 %v34742_v34, %s34747_s8  ;;  %27632 = vmatmul.mubr.msk.f32.gmra.mrb[6].mxu0 %vm264_vm2, %v33006_v9  ;;  %v34761_v56 = vld [vmem:[#allocation35_spill] sm:$0xff] }
0x1b81   :  { %21668 = vrot.lane.b32.xlu0 %v34741_v51, %s34748_s30 }
0x1b82   :  { %v17643_v52 = vpop.f32.mrb[248].mxu0 }
0x1b83   :  { %v27591_v53 = vpop.f32.mrb[249].mxu0  ;;  %27634 = vmatprep.mubr.msk.f32.mxu0 %vm264_vm2, %v17643_v52  ;;  %v34762_v52 = vld [vmem:[#allocation44_spill] sm:$0xff] }
0x1b84   :  { %21904 = vrot.lane.b32.xlu1 %v34744_v29, %s34747_s8  ;;  %27635 = vmatmul.mubr.msk.f32.gmra.mrb[8].mxu0 %vm264_vm2, %v33010_v3  ;;  %v34749_v3 = vld [vmem:[#allocation38_spill] sm:$0xff] }
0x1b85   :  { %21746 = vrot.lane.b32.xlu0 %v34737_v14, %s34748_s30 }
0x1b86   :  { %v17795_v43 = vpop.f32.mrb[250].mxu0 }
0x1b87   :  { %v27601_v62 = vpop.f32.mrb[251].mxu0  ;;  %27637 = vmatprep.mubr.msk.f32.mxu0 %vm264_vm2, %v17795_v43  ;;  %v34763_v43 = vld [vmem:[#allocation36_spill] sm:$0xff] }
0x1b88   :  { %21902 = vrot.lane.b32.xlu1 %v34744_v29, %s34748_s30  ;;  %27638 = vmatmul.mubr.msk.f32.gmra.mrb[10].mxu0 %vm264_vm2, %v33020_v39  ;;  %v34750_v39 = vld [vmem:[#allocation5_spill] sm:$0xff] }
0x1b89   :  { %21824 = vrot.lane.b32.xlu0 %v34742_v34, %s34748_s30 }
0x1b8a   :  { %v17947_v9 = vpop.f32.mrb[252].mxu0 }
0x1b8b   :  { %v27611_v4 = vpop.f32.mrb[253].mxu0  ;;  %27640 = vmatprep.mubr.msk.f32.mxu0 %vm264_vm2, %v17947_v9  ;;  %v34765_v9 = vld [vmem:[#allocation37_spill] sm:$0xff] }
0x1b8c   :  { %22060 = vrot.lane.b32.xlu1 %v34738_v50, %s34747_s8  ;;  %27641 = vmatmul.mubr.msk.f32.gmra.mrb[12].mxu0 %vm264_vm2, %v33025_v59  ;;  %v34752_v59 = vld [vmem:[#allocation7_spill] sm:$0xff] }
0x1b8d   :  { %21982 = vrot.lane.b32.xlu0 %v34743_v17, %s34747_s8  ;;  %27645 = vmatprep.mubr.msk.f32.mxu0 %vm264_vm2, %v34749_v3 }
0x1b90   :  { %22058 = vrot.lane.b32.xlu1 %v34738_v50, %s34748_s30  ;;  %27646 = vmatmul.mubr.msk.f32.vlgmr.msra.gmra.mrb[254].mxu0 %vm264_vm2, %v34750_v39 }
0x1b91   :  { %27750 = vmatpush3.msra.mxu0 %v33138_v46  ;;  %21980 = vrot.lane.b32.xlu0 %v34743_v17, %s34748_s30  ;;  %v34754_v46 = vld [vmem:[#allocation32_spill] sm:$0xff] }
0x1b92   :  { %27648 = vmatprep.mubr.msk.f32.mxu0 %vm264_vm2, %v34751_v1  ;;  %27759 = vmatprep.subr.mxu0 %v34655_v40 }
0x1b94   :  { %22216 = vrot.lane.b32.xlu1 %v31960_v11, %s34747_s8  ;;  %27649 = vmatmul.mubr.msk.f32.gmra.mrb[0].mxu0 %vm264_vm2, %v34752_v59 }
0x1b95   :  { %22138 = vrot.lane.b32.xlu0 %v31918_v54, %s34747_s8  ;;  %27651 = vmatprep.mubr.msk.f32.mxu0 %vm264_vm2, %v34753_v42 }
0x1b98   :  { %22214 = vrot.lane.b32.xlu1 %v31960_v11, %s34748_s30  ;;  %27652 = vmatmul.mubr.msk.f32.gmra.mrb[2].mxu0 %vm264_vm2, %v34754_v46 }
0x1b99   :  { %22136 = vrot.lane.b32.xlu0 %v31918_v54, %s34748_s30  ;;  %27654 = vmatprep.mubr.msk.f32.mxu0 %vm264_vm2, %v34755_v22 }
0x1b9c   :  { %22372 = vrot.lane.b32.xlu1 %v31978_v25, %s34747_s8  ;;  %27655 = vmatmul.mubr.msk.f32.gmra.mrb[4].mxu0 %vm264_vm2, %v34756_v41 }
0x1b9d   :  { %22294 = vrot.lane.b32.xlu0 %v31931_v21, %s34747_s8  ;;  %27657 = vmatprep.mubr.msk.f32.mxu0 %vm264_vm2, %v34757_v30 }
0x1ba0   :  { %22370 = vrot.lane.b32.xlu1 %v31978_v25, %s34748_s30  ;;  %27658 = vmatmul.mubr.msk.f32.gmra.mrb[6].mxu0 %vm264_vm2, %v34758_v15 }
0x1ba1   :  { %22292 = vrot.lane.b32.xlu0 %v31931_v21, %s34748_s30  ;;  %27660 = vmatprep.mubr.msk.f32.mxu0 %vm264_vm2, %v34759_v7 }
0x1ba4   :  { %22794 = vrot.lane.b32.xlu1 %v34745_v12, %s34760_s9  ;;  %v19775_v33 = vpop.xlane.xlu0 %19774  ;;  %27661 = vmatmul.mubr.msk.f32.gmra.mrb[8].mxu0 %vm264_vm2, %v34761_v56  ;;  %v34764_v12 = vld [vmem:[#allocation45_spill] sm:$0xff] }
0x1ba5   :  { %28703 = vrcp.f32 %v19775_v33  ;;  %22450 = vrot.lane.b32.xlu0 %v31928_v37, %s34747_s8  ;;  %27663 = vmatprep.mubr.msk.f32.mxu0 %vm264_vm2, %v34762_v52 }
0x1ba8   :  { %v19778_v53 = vpop.xlane.xlu1 %19777  ;;  %27664 = vmatmul.mubr.msk.f32.gmra.mrb[10].mxu0 %vm264_vm2, %v34763_v43 }
0x1ba9   :  { %28705 = vrcp.f32 %v19778_v53  ;;  %22448 = vrot.lane.b32.xlu0 %v31928_v37, %s34748_s30  ;;  %27666 = vmatprep.mubr.msk.f32.mxu0 %vm264_vm2, %v34764_v12 }
0x1bac   :  { %v19781_v62 = vpop.xlane.xlu0 %19780  ;;  %27667 = vmatmul.mubr.msk.f32.gmra.mrb[12].mxu0 %vm264_vm2, %v34765_v9 }
0x1bad   :  { %28707 = vrcp.f32 %v19781_v62  ;;  %22718 = vrot.lane.b32.xlu0 %v31875_v32, %s34760_s9  ;;  %27751 = vmatprep.mubr.msk.f32.mxu0 %vm28904_vm1, %v34655_v40 }
0x1baf   :  { %v28704_v4 = vpop.eup %28703 }
0x1bb0   :  { %v19837_v3 = vmul.f32 %v28704_v4, %v33166_v57  ;;  %v19784_v39 = vpop.xlane.xlu1 %19783 }
0x1bb1   :  { %28709 = vrcp.f32 %v19784_v39 }
0x1bb2   :  { %27752 = vmatmul.mubr.msk.f32.vlgmr.msra.gmra.mrb[14].mxu0 %vm264_vm2, %v19837_v3 }
0x1bb3   :  { %v28706_v1 = vpop.eup %28705  ;;  %27760 = vmatpush3.msra.mxu0 %v33142_v58  ;;  %27761 = vmatprep.mubr.msk.f32.mxu0 %vm28904_vm1, %v34655_v40 }
0x1bb4   :  { %v19787_v59 = vpop.xlane.xlu0 %19786  ;;  %v19838_v42 = vmul.f32 %v28706_v1, %v33171_v31  ;;  %27769 = vmatprep.subr.mxu0 %v34655_v40 }
0x1bb5   :  { %28711 = vrcp.f32 %v19787_v59 }
0x1bb6   :  { %27757 = vmatmul.mubr.msk.f32.vlgmr.msra.gmra.mrb[242].mxu1 %vm264_vm2, %v19838_v42 }
0x1bb7   :  { %v28708_v32 = vpop.eup %28707  ;;  %27765 = vmatpush3.msra.mxu1 %v33136_v26  ;;  %27766 = vmatprep.mubr.msk.f32.mxu1 %vm28904_vm1, %v34655_v40 }
0x1bb8   :  { %v19839_v57 = vmul.f32 %v28708_v32, %v33176_v61  ;;  %v19790_v58 = vpop.xlane.xlu1 %19789  ;;  %27774 = vmatprep.subr.mxu1 %v34655_v40 }
0x1bb9   :  { %28713 = vrcp.f32 %v19790_v58 }
0x1bba   :  { %27762 = vmatmul.mubr.msk.f32.vlgmr.msra.gmra.mrb[16].mxu0 %vm264_vm2, %v19839_v57 }
0x1bbb   :  { %v28710_v31 = vpop.eup %28709  ;;  %27770 = vmatpush3.msra.mxu0 %v33140_v28  ;;  %27771 = vmatprep.mubr.msk.f32.mxu0 %vm28904_vm1, %v34655_v40 }
0x1bbc   :  { %v19793_v46 = vpop.xlane.xlu0 %19792  ;;  %v19840_v26 = vmul.f32 %v28710_v31, %v33181_v19  ;;  %27779 = vmatprep.subr.mxu0 %v34655_v40 }
0x1bbd   :  { %28715 = vrcp.f32 %v19793_v46 }
0x1bbe   :  { %27767 = vmatmul.mubr.msk.f32.vlgmr.msra.gmra.mrb[244].mxu1 %vm264_vm2, %v19840_v26 }
0x1bbf   :  { %v28712_v61 = vpop.eup %28711  ;;  %27775 = vmatpush3.msra.mxu1 %v33146_v55  ;;  %27776 = vmatprep.mubr.msk.f32.mxu1 %vm28904_vm1, %v34655_v40 }
0x1bc0   :  { %v19841_v22 = vmul.f32 %v28712_v61, %v33186_v49  ;;  %v19796_v28 = vpop.xlane.xlu1 %19795  ;;  %27784 = vmatprep.subr.mxu1 %v34655_v40 }
0x1bc1   :  { %28717 = vrcp.f32 %v19796_v28 }
0x1bc2   :  { %27772 = vmatmul.mubr.msk.f32.vlgmr.msra.gmra.mrb[18].mxu0 %vm264_vm2, %v19841_v22 }
0x1bc3   :  { %v28714_v19 = vpop.eup %28713  ;;  %27780 = vmatpush3.msra.mxu0 %v33144_v63  ;;  %27781 = vmatprep.mubr.msk.f32.mxu0 %vm28904_vm1, %v34655_v40 }
0x1bc4   :  { %v19799_v41 = vpop.xlane.xlu0 %19798  ;;  %v19842_v55 = vmul.f32 %v28714_v19, %v33191_v16  ;;  %27789 = vmatprep.subr.mxu0 %v34655_v40 }
0x1bc5   :  { %28719 = vrcp.f32 %v19799_v41 }
0x1bc6   :  { %27777 = vmatmul.mubr.msk.f32.vlgmr.msra.gmra.mrb[246].mxu1 %vm264_vm2, %v19842_v55 }
0x1bc7   :  { %v28716_v49 = vpop.eup %28715  ;;  %27785 = vmatpush3.msra.mxu1 %v33150_v44  ;;  %27786 = vmatprep.mubr.msk.f32.mxu1 %vm28904_vm1, %v34655_v40 }
0x1bc8   :  { %v19843_v30 = vmul.f32 %v28716_v49, %v33196_v48  ;;  %v19802_v63 = vpop.xlane.xlu1 %19801  ;;  %27794 = vmatprep.subr.mxu1 %v34655_v40 }
0x1bc9   :  { %28721 = vrcp.f32 %v19802_v63 }
0x1bca   :  { %27782 = vmatmul.mubr.msk.f32.vlgmr.msra.gmra.mrb[20].mxu0 %vm264_vm2, %v19843_v30 }
0x1bcb   :  { %v28718_v16 = vpop.eup %28717  ;;  %27790 = vmatpush3.msra.mxu0 %v33148_v36  ;;  %27791 = vmatprep.mubr.msk.f32.mxu0 %vm28904_vm1, %v34655_v40 }
0x1bcc   :  { %v19805_v15 = vpop.xlane.xlu0 %19804  ;;  %v19844_v44 = vmul.f32 %v28718_v16, %v33201_v60  ;;  %27799 = vmatprep.subr.mxu0 %v34655_v40 }
0x1bcd   :  { %28723 = vrcp.f32 %v19805_v15 }
0x1bce   :  { %27787 = vmatmul.mubr.msk.f32.vlgmr.msra.gmra.mrb[248].mxu1 %vm264_vm2, %v19844_v44 }
0x1bcf   :  { %v28720_v48 = vpop.eup %28719  ;;  %27795 = vmatpush3.msra.mxu1 %v33154_v24  ;;  %27796 = vmatprep.mubr.msk.f32.mxu1 %vm28904_vm1, %v34655_v40 }
0x1bd0   :  { %v19845_v7 = vmul.f32 %v28720_v48, %v33206_v20  ;;  %v19808_v36 = vpop.xlane.xlu1 %19807  ;;  %27804 = vmatprep.subr.mxu1 %v34655_v40 }
0x1bd1   :  { %28725 = vrcp.f32 %v19808_v36 }
0x1bd2   :  { %27792 = vmatmul.mubr.msk.f32.vlgmr.msra.gmra.mrb[22].mxu0 %vm264_vm2, %v19845_v7 }
0x1bd3   :  { %v28722_v60 = vpop.eup %28721  ;;  %27800 = vmatpush3.msra.mxu0 %v33152_v8  ;;  %27801 = vmatprep.mubr.msk.f32.mxu0 %vm28904_vm1, %v34655_v40 }
0x1bd4   :  { %v19811_v33 = vpop.xlane.xlu0 %19810  ;;  %v19846_v24 = vmul.f32 %v28722_v60, %v33211_v45  ;;  %27809 = vmatprep.subr.mxu0 %v34655_v40 }
0x1bd5   :  { %28727 = vrcp.f32 %v19811_v33 }
0x1bd6   :  { %27797 = vmatmul.mubr.msk.f32.vlgmr.msra.gmra.mrb[250].mxu1 %vm264_vm2, %v19846_v24 }
0x1bd7   :  { %v28724_v20 = vpop.eup %28723  ;;  %27805 = vmatpush3.msra.mxu1 %v33340_v10  ;;  %27806 = vmatprep.mubr.msk.f32.mxu1 %vm28904_vm1, %v34655_v40 }
0x1bd8   :  { %v19847_v56 = vmul.f32 %v28724_v20, %v33216_v38  ;;  %v19814_v8 = vpop.xlane.xlu1 %19813  ;;  %27814 = vmatprep.subr.mxu1 %v34655_v40 }
0x1bd9   :  { %28729 = vrcp.f32 %v19814_v8 }
0x1bda   :  { %27802 = vmatmul.mubr.msk.f32.vlgmr.msra.gmra.mrb[24].mxu0 %vm264_vm2, %v19847_v56 }
0x1bdb   :  { %v28726_v45 = vpop.eup %28725  ;;  %27810 = vmatpush3.msra.mxu0 %v33360_v47  ;;  %27811 = vmatprep.mubr.msk.f32.mxu0 %vm28904_vm1, %v34655_v40 }
0x1bdc   :  { %v19817_v52 = vpop.xlane.xlu1 %19816  ;;  %v19848_v10 = vmul.f32 %v28726_v45, %v33225_v13  ;;  %27819 = vmatprep.subr.mxu0 %v34655_v40  ;;  %v12729_v13 = vld [vmem:[%s34529_s15 + $0x10] sm:$0xff] }
0x1bdd   :  { %28731 = vrcp.f32 %v19817_v52 }
0x1bde   :  { %27807 = vmatmul.mubr.msk.f32.vlgmr.msra.gmra.mrb[252].mxu1 %vm264_vm2, %v19848_v10 }
0x1bdf   :  { %v28728_v38 = vpop.eup %28727  ;;  %27815 = vmatpush3.msra.mxu1 %v33350_v0  ;;  %27816 = vmatprep.mubr.msk.f32.mxu1 %vm28904_vm1, %v34655_v40 }
0x1be0   :  { %v19849_v53 = vmul.f32 %v28728_v38, %v33231_v18  ;;  %v20918_v47 = vpop.permute.xlu1 %20917  ;;  %v19820_v43 = vpop.xlane.xlu0 %19819  ;;  %27824 = vmatprep.subr.mxu1 %v34655_v40 }
0x1be1   :  { %28733 = vrcp.f32 %v19820_v43 }
0x1be2   :  { %27812 = vmatmul.mubr.msk.f32.vlgmr.msra.gmra.mrb[26].mxu0 %vm264_vm2, %v19849_v53 }
0x1be3   :  { %v28730_v12 = vpop.eup %28729  ;;  %27820 = vmatpush3.msra.mxu0 %v20918_v47  ;;  %27821 = vmatprep.mubr.msk.f32.mxu0 %vm28904_vm1, %v34655_v40 }
0x1be4   :  { %v21281_v0 = vpop.permute.xlu1 %21280  ;;  %v20994_v62 = vpop.permute.xlu0 %20993  ;;  %v19850_v18 = vmul.f32 %v28730_v12, %v33235_v6  ;;  %27829 = vmatprep.subr.mxu0 %v12729_v13 }
0x1be6   :  { %27817 = vmatmul.mubr.msk.f32.vlgmr.msra.gmra.mrb[254].mxu1 %vm264_vm2, %v19850_v18 }
0x1be7   :  { %v28732_v9 = vpop.eup %28731  ;;  %27825 = vmatpush3.msra.mxu1 %v20994_v62  ;;  %27826 = vmatprep.mubr.msk.f32.mxu1 %vm28904_vm1, %v34655_v40 }
0x1be8   :  { %v19851_v4 = vmul.f32 %v28732_v9, %v33239_v27  ;;  %v21359_v3 = vpop.permute.xlu1 %21358  ;;  %v21279_v39 = vpop.permute.xlu0 %21278  ;;  %27855 = vmatprep.subr.mxu1 %v34655_v40 }
0x1bea   :  { %27822 = vmatmul.mubr.msk.f32.vlgmr.msra.gmra.mrb[28].mxu0 %vm264_vm2, %v19851_v4 }
0x1beb   :  { %v28734_v1 = vpop.eup %28733  ;;  %27830 = vmatpush3.msra.mxu0 %v12729_v13 }
0x1bec   :  { %v19852_v6 = vmul.f32 %v28734_v1, %v33243_v35  ;;  %v21437_v59 = vpop.permute.xlu1 %21436  ;;  %v21357_v42 = vpop.permute.xlu0 %21356  ;;  %27895 = vmatprep.subr.mxu0 %v34655_v40 }
0x1bee   :  { %27827 = vmatmul.mubr.msk.f32.vlgmr.msra.gmra.mrb[0].mxu1 %vm264_vm2, %v19852_v6 }
0x1bef   :  { %27856 = vmatpush3.xpose.msk.msra.mxu1 %vm264_vm2, %v21281_v0  ;;  %27857 = vmatprep.mubr.msk.f32.mxu1 %vm28904_vm1, %v34655_v40 }
0x1bf0   :  { %v21515_v27 = vpop.permute.xlu1 %21514  ;;  %v21435_v32 = vpop.permute.xlu0 %21434  ;;  %27860 = vmatprep.subr.mxu1 %v34655_v40 }
0x1bf2   :  { %27858 = vmatmul.mubr.msk.f32.vlgmr.msra.gmra.mrb[2].mxu1 %vm264_vm2, %v21279_v39 }
0x1bf3   :  { %27861 = vmatpush3.xpose.msk.msra.mxu1 %vm264_vm2, %v21359_v3  ;;  %27862 = vmatprep.mubr.msk.f32.mxu1 %vm28904_vm1, %v34655_v40 }
0x1bf4   :  { %v21593_v35 = vpop.permute.xlu1 %21592  ;;  %v21513_v57 = vpop.permute.xlu0 %21512  ;;  %27865 = vmatprep.subr.mxu1 %v34655_v40 }
0x1bf6   :  { %27863 = vmatmul.mubr.msk.f32.vlgmr.msra.gmra.mrb[4].mxu1 %vm264_vm2, %v21357_v42 }
0x1bf7   :  { %27866 = vmatpush3.xpose.msk.msra.mxu1 %vm264_vm2, %v21437_v59  ;;  %27867 = vmatprep.mubr.msk.f32.mxu1 %vm28904_vm1, %v34655_v40 }
0x1bf8   :  { %v21671_v58 = vpop.permute.xlu1 %21670  ;;  %v21591_v31 = vpop.permute.xlu0 %21590  ;;  %27870 = vmatprep.subr.mxu1 %v34655_v40 }
0x1bfa   :  { %27868 = vmatmul.mubr.msk.f32.vlgmr.msra.gmra.mrb[6].mxu1 %vm264_vm2, %v21435_v32 }
0x1bfb   :  { %27871 = vmatpush3.xpose.msk.msra.mxu1 %vm264_vm2, %v21515_v27  ;;  %27872 = vmatprep.mubr.msk.f32.mxu1 %vm28904_vm1, %v34655_v40 }
0x1bfc   :  { %v21749_v46 = vpop.permute.xlu1 %21748  ;;  %v21669_v26 = vpop.permute.xlu0 %21668  ;;  %27875 = vmatprep.subr.mxu1 %v34655_v40 }
0x1bfe   :  { %27873 = vmatmul.mubr.msk.f32.vlgmr.msra.gmra.mrb[8].mxu1 %vm264_vm2, %v21513_v57 }
0x1bff   :  { %27876 = vmatpush3.xpose.msk.msra.mxu1 %vm264_vm2, %v21593_v35  ;;  %27877 = vmatprep.mubr.msk.f32.mxu1 %vm28904_vm1, %v34655_v40 }
0x1c00   :  { %v21827_v61 = vpop.permute.xlu1 %21826  ;;  %v21747_v22 = vpop.permute.xlu0 %21746  ;;  %27880 = vmatprep.subr.mxu1 %v34655_v40 }
0x1c02   :  { %27878 = vmatmul.mubr.msk.f32.vlgmr.msra.gmra.mrb[10].mxu1 %vm264_vm2, %v21591_v31 }
0x1c03   :  { %27881 = vmatpush3.xpose.msk.msra.mxu1 %vm264_vm2, %v21671_v58  ;;  %27882 = vmatprep.mubr.msk.f32.mxu1 %vm28904_vm1, %v34655_v40 }
0x1c04   :  { %v21905_v28 = vpop.permute.xlu1 %21904  ;;  %v21825_v19 = vpop.permute.xlu0 %21824  ;;  %27885 = vmatprep.subr.mxu1 %v34655_v40 }
0x1c06   :  { %27883 = vmatmul.mubr.msk.f32.vlgmr.msra.gmra.mrb[12].mxu1 %vm264_vm2, %v21669_v26 }
0x1c07   :  { %27886 = vmatpush3.xpose.msk.msra.mxu1 %vm264_vm2, %v21749_v46  ;;  %27887 = vmatprep.mubr.msk.f32.mxu1 %vm28904_vm1, %v34655_v40 }
0x1c08   :  { %v33504_v41 = vpop.permute.xlu1 %21902  ;;  %v21983_v55 = vpop.permute.xlu0 %21982  ;;  %27890 = vmatprep.subr.mxu1 %v34655_v40 }
0x1c0a   :  { %27888 = vmatmul.mubr.msk.f32.vlgmr.msra.gmra.mrb[14].mxu1 %vm264_vm2, %v21747_v22 }
0x1c0b   :  { %27891 = vmatpush3.xpose.msk.msra.mxu1 %vm264_vm2, %v21827_v61  ;;  %27892 = vmatprep.mubr.msk.f32.mxu1 %vm28904_vm1, %v34655_v40 }
0x1c0c   :  { %v33511_v49 = vpop.permute.xlu1 %22060  ;;  %v21981_v30 = vpop.permute.xlu0 %21980  ;;  %27900 = vmatprep.subr.mxu1 %v34655_v40 }
0x1c0e   :  { %27893 = vmatmul.mubr.msk.f32.vlgmr.msra.gmra.mrb[16].mxu1 %vm264_vm2, %v21825_v19 }
0x1c0f   :  { %27901 = vmatpush3.xpose.msk.msra.mxu1 %vm264_vm2, %v21983_v55  ;;  %27902 = vmatprep.mubr.msk.f32.mxu1 %vm28904_vm1, %v34655_v40 }
0x1c10   :  { %v33518_v63 = vpop.permute.xlu1 %22058  ;;  %v22139_v16 = vpop.permute.xlu0 %22138  ;;  %27910 = vmatprep.subr.mxu1 %v34655_v40 }
0x1c12   :  { %27903 = vmatmul.mubr.msk.f32.vlgmr.msra.gmra.mrb[18].mxu1 %vm264_vm2, %v21981_v30 }
0x1c13   :  { %27911 = vmatpush3.xpose.msk.msra.mxu1 %vm264_vm2, %v22139_v16  ;;  %27912 = vmatprep.mubr.msk.f32.mxu1 %vm28904_vm1, %v34655_v40 }
0x1c14   :  { %v33525_v15 = vpop.permute.xlu1 %22216  ;;  %v22137_v44 = vpop.permute.xlu0 %22136  ;;  %27920 = vmatprep.subr.mxu1 %v34655_v40 }
0x1c16   :  { %27913 = vmatmul.mubr.msk.f32.vlgmr.msra.gmra.mrb[20].mxu1 %vm264_vm2, %v22137_v44 }
0x1c17   :  { %27922 = vmatprep.mubr.msk.f32.mxu1 %vm28904_vm1, %v34655_v40 }
0x1c18   :  { %v33531_v48 = vpop.permute.xlu1 %22214  ;;  %v22295_v7 = vpop.permute.xlu0 %22294 }
0x1c19   :  { %27921 = vmatpush3.xpose.msk.msra.mxu1 %vm264_vm2, %v22295_v7 }
0x1c1a   :  { %27930 = vmatprep.subr.mxu1 %v34655_v40 }
0x1c1c   :  { %v33535_v36 = vpop.permute.xlu1 %22372  ;;  %v22293_v60 = vpop.permute.xlu0 %22292 }
0x1c1d   :  { %27923 = vmatmul.mubr.msk.f32.vlgmr.msra.gmra.mrb[22].mxu1 %vm264_vm2, %v22293_v60 }
0x1c1e   :  { %27932 = vmatprep.mubr.msk.f32.mxu1 %vm28904_vm1, %v34655_v40 }
0x1c20   :  { %v33540_v33 = vpop.permute.xlu1 %22370  ;;  %v22451_v24 = vpop.permute.xlu0 %22450 }
0x1c21   :  { %27931 = vmatpush3.xpose.msk.msra.mxu1 %vm264_vm2, %v22451_v24 }
0x1c22   :  { %27940 = vmatprep.subr.mxu1 %v34655_v40 }
0x1c24   :  { %v22795_v20 = vpop.permute.xlu1 %22794  ;;  %v22449_v56 = vpop.permute.xlu0 %22448 }
0x1c25   :  { %27933 = vmatmul.mubr.msk.f32.vlgmr.msra.gmra.mrb[24].mxu1 %vm264_vm2, %v22449_v56 }
0x1c26   :  { %27941 = vmatpush3.msra.mxu1 %v22795_v20  ;;  %27942 = vmatprep.mubr.msk.f32.mxu1 %vm28904_vm1, %v34655_v40 }
0x1c27   :  { %27950 = vmatprep.subr.mxu1 %v34655_v40 }
0x1c28   :  { %v22719_v56 = vpop.permute.xlu0 %22718 }
0x1c85   :  { %v19925_v8 = vpop.f32.mrb[14].mxu0 }
0x1c86   :  { %v27753_v45 = vpop.f32.mrb[15].mxu0  ;;  %27831 = vmatprep.mubr.msk.f32.mxu0 %vm264_vm2, %v19925_v8 }
0x1c89   :  { %v20001_v52 = vpop.f32.mrb[242].mxu1 }
0x1c8a   :  { %v27758_v10 = vpop.f32.mrb[243].mxu1  ;;  %27832 = vmatmul.mubr.msk.f32.vlgmr.msra.gmra.mrb[254].mxu0 %vm264_vm2, %v20001_v52 }
0x1c8b   :  { %27896 = vmatpush3.xpose.msk.msra.mxu0 %vm264_vm2, %v21905_v28 }
0x1c8c   :  { %27905 = vmatprep.subr.mxu0 %v34655_v40 }
0x1c8d   :  { %v20077_v38 = vpop.f32.mrb[16].mxu0 }
0x1c8e   :  { %v27763_v53 = vpop.f32.mrb[17].mxu0  ;;  %27834 = vmatprep.mubr.msk.f32.mxu0 %vm264_vm2, %v20077_v38 }
0x1c91   :  { %v20153_v47 = vpop.f32.mrb[244].mxu1 }
0x1c92   :  { %v27768_v43 = vpop.f32.mrb[245].mxu1  ;;  %27835 = vmatmul.mubr.msk.f32.gmra.mrb[0].mxu0 %vm264_vm2, %v20153_v47 }
0x1c95   :  { %v20229_v13 = vpop.f32.mrb[18].mxu0 }
0x1c96   :  { %v27773_v12 = vpop.f32.mrb[19].mxu0  ;;  %27837 = vmatprep.mubr.msk.f32.mxu0 %vm264_vm2, %v20229_v13 }
0x1c99   :  { %v20305_v0 = vpop.f32.mrb[246].mxu1 }
0x1c9a   :  { %v27778_v62 = vpop.f32.mrb[247].mxu1  ;;  %27838 = vmatmul.mubr.msk.f32.gmra.mrb[2].mxu0 %vm264_vm2, %v20305_v0 }
0x1c9d   :  { %v20381_v18 = vpop.f32.mrb[20].mxu0 }
0x1c9e   :  { %v27783_v9 = vpop.f32.mrb[21].mxu0  ;;  %27840 = vmatprep.mubr.msk.f32.mxu0 %vm264_vm2, %v20381_v18 }
0x1ca1   :  { %v20457_v4 = vpop.f32.mrb[248].mxu1 }
0x1ca2   :  { %v27788_v3 = vpop.f32.mrb[249].mxu1  ;;  %27841 = vmatmul.mubr.msk.f32.gmra.mrb[4].mxu0 %vm264_vm2, %v20457_v4 }
0x1ca5   :  { %v20533_v39 = vpop.f32.mrb[22].mxu0 }
0x1ca6   :  { %v27793_v1 = vpop.f32.mrb[23].mxu0  ;;  %27843 = vmatprep.mubr.msk.f32.mxu0 %vm264_vm2, %v20533_v39 }
0x1ca9   :  { %v20609_v6 = vpop.f32.mrb[250].mxu1 }
0x1caa   :  { %v27798_v59 = vpop.f32.mrb[251].mxu1  ;;  %27844 = vmatmul.mubr.msk.f32.gmra.mrb[6].mxu0 %vm264_vm2, %v20609_v6 }
0x1cad   :  { %v20685_v42 = vpop.f32.mrb[24].mxu0 }
0x1cae   :  { %v27803_v27 = vpop.f32.mrb[25].mxu0  ;;  %27846 = vmatprep.mubr.msk.f32.mxu0 %vm264_vm2, %v20685_v42 }
0x1cb1   :  { %v20761_v32 = vpop.f32.mrb[252].mxu1 }
0x1cb2   :  { %v27808_v35 = vpop.f32.mrb[253].mxu1  ;;  %27847 = vmatmul.mubr.msk.f32.gmra.mrb[8].mxu0 %vm264_vm2, %v20761_v32 }
0x1cb5   :  { %v20837_v57 = vpop.f32.mrb[26].mxu0 }
0x1cb6   :  { %v27813_v58 = vpop.f32.mrb[27].mxu0  ;;  %27849 = vmatprep.mubr.msk.f32.mxu0 %vm264_vm2, %v20837_v57 }
0x1cb9   :  { %v20913_v31 = vpop.f32.mrb[254].mxu1 }
0x1cba   :  { %v27818_v46 = vpop.f32.mrb[255].mxu1  ;;  %27850 = vmatmul.mubr.msk.f32.gmra.mrb[10].mxu0 %vm264_vm2, %v20913_v31 }
0x1cbd   :  { %v20989_v26 = vpop.f32.mrb[28].mxu0 }
0x1cbe   :  { %v27823_v61 = vpop.f32.mrb[29].mxu0  ;;  %27852 = vmatprep.mubr.msk.f32.mxu0 %vm264_vm2, %v20989_v26 }
0x1cc1   :  { %v21065_v22 = vpop.f32.mrb[0].mxu1 }
0x1cc2   :  { %v27828_v28 = vpop.f32.mrb[1].mxu1  ;;  %27853 = vmatmul.mubr.msk.f32.gmra.mrb[12].mxu0 %vm264_vm2, %v21065_v22 }
0x1cc3   :  { %27897 = vmatprep.mubr.msk.f32.mxu0 %vm28904_vm1, %v34655_v40 }
0x1cc5   :  { %v21352_v19 = vpop.f32.mrb[2].mxu1 }
0x1cc6   :  { %v33568_v55 = vmul.f32 0.35355338, %v21352_v19  ;;  %v27859_v30 = vpop.f32.mrb[3].mxu1  ;;  %27898 = vmatmul.mubr.msk.f32.vlgmr.msra.gmra.mrb[30].mxu0 %vm264_vm2, %v33504_v41 }
0x1cc7   :  { %27906 = vmatpush3.xpose.msk.msra.mxu0 %vm264_vm2, %v33511_v49  ;;  %27907 = vmatprep.mubr.msk.f32.mxu0 %vm28904_vm1, %v34655_v40 }
0x1cc8   :  { %27915 = vmatprep.subr.mxu0 %v34655_v40  ;;  %v22542_v16 = vsel %vm264_vm2, %v33568_v55, -inf }
0x1cc9   :  { %22543 = vmax.xlane.f32.xlu1 %v22542_v16  ;;  %v21430_v44 = vpop.f32.mrb[4].mxu1 }
0x1cca   :  { %v33579_v7 = vmul.f32 0.35355338, %v21430_v44  ;;  %v27864_v60 = vpop.f32.mrb[5].mxu1  ;;  %27908 = vmatmul.mubr.msk.f32.vlgmr.msra.gmra.mrb[32].mxu0 %vm264_vm2, %v33518_v63 }
0x1ccb   :  { %27916 = vmatpush3.xpose.msk.msra.mxu0 %vm264_vm2, %v33525_v15  ;;  %27917 = vmatprep.mubr.msk.f32.mxu0 %vm28904_vm1, %v34655_v40 }
0x1ccc   :  { %27925 = vmatprep.subr.mxu0 %v34655_v40  ;;  %v22545_v41 = vsel %vm264_vm2, %v33579_v7, -inf }
0x1ccd   :  { %22546 = vmax.xlane.f32.xlu0 %v22545_v41  ;;  %v21508_v49 = vpop.f32.mrb[6].mxu1 }
0x1cce   :  { %v33590_v24 = vmul.f32 0.35355338, %v21508_v49  ;;  %v27869_v20 = vpop.f32.mrb[7].mxu1  ;;  %27918 = vmatmul.mubr.msk.f32.vlgmr.msra.gmra.mrb[34].mxu0 %vm264_vm2, %v33531_v48 }
0x1ccf   :  { %27926 = vmatpush3.xpose.msk.msra.mxu0 %vm264_vm2, %v33535_v36  ;;  %27927 = vmatprep.mubr.msk.f32.mxu0 %vm28904_vm1, %v34655_v40 }
0x1cd0   :  { %27935 = vmatprep.subr.mxu0 %v34655_v40  ;;  %v22548_v63 = vsel %vm264_vm2, %v33590_v24, -inf }
0x1cd1   :  { %22549 = vmax.xlane.f32.xlu0 %v22548_v63  ;;  %v21586_v15 = vpop.f32.mrb[8].mxu1 }
0x1cd2   :  { %v33601_v8 = vmul.f32 0.35355338, %v21586_v15  ;;  %v27874_v45 = vpop.f32.mrb[9].mxu1  ;;  %27928 = vmatmul.mubr.msk.f32.vlgmr.msra.gmra.mrb[36].mxu0 %vm264_vm2, %v33540_v33 }
0x1cd3   :  { %27936 = vmatpush3.msra.mxu0 %v22719_v56  ;;  %27937 = vmatprep.mubr.msk.f32.mxu0 %vm28904_vm1, %v34655_v40 }
0x1cd4   :  { %v22551_v48 = vsel %vm264_vm2, %v33601_v8, -inf  ;;  %27945 = vmatprep.subr.mxu0 %v34655_v40 }
0x1cd5   :  { %22552 = vmax.xlane.f32.xlu1 %v22551_v48  ;;  %v21664_v36 = vpop.f32.mrb[10].mxu1 }
0x1cd6   :  { %v22530_v52 = vmul.f32 0.35355338, %v21664_v36  ;;  %v27879_v10 = vpop.f32.mrb[11].mxu1 }
0x1cd8   :  { %v22554_v38 = vsel %vm264_vm2, %v22530_v52, -inf }
0x1cd9   :  { %22555 = vmax.xlane.f32.xlu0 %v22554_v38  ;;  %v21742_v53 = vpop.f32.mrb[12].mxu1 }
0x1cda   :  { %v33611_v47 = vmul.f32 0.35355338, %v21742_v53  ;;  %v27884_v33 = vpop.f32.mrb[13].mxu1 }
0x1cdc   :  { %v22557_v43 = vsel %vm264_vm2, %v33611_v47, -inf }
0x1cdd   :  { %22558 = vmax.xlane.f32.xlu1 %v22557_v43  ;;  %v21820_v13 = vpop.f32.mrb[14].mxu1 }
0x1cde   :  { %v33615_v12 = vmul.f32 0.35355338, %v21820_v13  ;;  %v27889_v0 = vpop.f32.mrb[15].mxu1 }
0x1ce0   :  { %v22560_v62 = vsel %vm264_vm2, %v33615_v12, -inf }
0x1ce1   :  { %22561 = vmax.xlane.f32.xlu0 %v22560_v62  ;;  %v21898_v18 = vpop.f32.mrb[16].mxu1 }
0x1ce2   :  { %v33619_v9 = vmul.f32 0.35355338, %v21898_v18  ;;  %v27894_v4 = vpop.f32.mrb[17].mxu1 }
0x1ce4   :  { %v22563_v3 = vsel %vm264_vm2, %v33619_v9, -inf }
0x1ce5   :  { %22564 = vmax.xlane.f32.xlu1 %v22563_v3  ;;  %v22054_v39 = vpop.f32.mrb[18].mxu1 }
0x1ce6   :  { %v33623_v1 = vmul.f32 0.35355338, %v22054_v39  ;;  %v27904_v6 = vpop.f32.mrb[19].mxu1 }
0x1ce8   :  { %v22569_v59 = vsel %vm264_vm2, %v33623_v1, -inf }
0x1ce9   :  { %22570 = vmax.xlane.f32.xlu1 %v22569_v59  ;;  %v22210_v42 = vpop.f32.mrb[20].mxu1 }
0x1cea   :  { %v33627_v27 = vmul.f32 0.35355338, %v22210_v42  ;;  %v27914_v32 = vpop.f32.mrb[21].mxu1 }
0x1cec   :  { %v22575_v35 = vsel %vm264_vm2, %v33627_v27, -inf }
0x1ced   :  { %22576 = vmax.xlane.f32.xlu1 %v22575_v35 }
0x1cf0   :  { %v22366_v57 = vpop.f32.mrb[22].mxu1 }
0x1cf1   :  { %v33631_v58 = vmul.f32 0.35355338, %v22366_v57  ;;  %v27924_v31 = vpop.f32.mrb[23].mxu1 }
0x1cf3   :  { %v22581_v46 = vsel %vm264_vm2, %v33631_v58, -inf }
0x1cf4   :  { %22582 = vmax.xlane.f32.xlu1 %v22581_v46 }
0x1cf8   :  { %v22522_v26 = vpop.f32.mrb[24].mxu1 }
0x1cf9   :  { %v33635_v61 = vmul.f32 0.35355338, %v22522_v26  ;;  %v27934_v22 = vpop.f32.mrb[25].mxu1 }
0x1cfb   :  { %v22587_v28 = vsel %vm264_vm2, %v33635_v61, -inf }
0x1cfc   :  { %22588 = vmax.xlane.f32.xlu1 %v22587_v28 }
0x1d56   :  { %v22544_v19 = vpop.xlane.xlu1 %22543 }
0x1d57   :  { %v22590_v30 = vsub.f32 %v33568_v55, %v22544_v19 }
0x1d59   :  { %v22606_v16 = vmul.f32 1.442695, %v22590_v30 }
0x1d5a   :  { %v22547_v44 = vpop.xlane.xlu0 %22546 }
0x1d5b   :  { %28735 = vpow2.f32 %v22606_v16  ;;  %v22591_v60 = vsub.f32 %v33579_v7, %v22547_v44 }
0x1d5d   :  { %v22608_v41 = vmul.f32 1.442695, %v22591_v60 }
0x1d5e   :  { %v22550_v49 = vpop.xlane.xlu0 %22549 }
0x1d5f   :  { %28737 = vpow2.f32 %v22608_v41  ;;  %v22592_v20 = vsub.f32 %v33590_v24, %v22550_v49 }
0x1d61   :  { %v22610_v63 = vmul.f32 1.442695, %v22592_v20 }
0x1d62   :  { %v22553_v15 = vpop.xlane.xlu1 %22552 }
0x1d63   :  { %28739 = vpow2.f32 %v22610_v63  ;;  %v22593_v56 = vsub.f32 %v33601_v8, %v22553_v15 }
0x1d65   :  { %v33643_v45 = vpop.eup %28735  ;;  %v22612_v48 = vmul.f32 1.442695, %v22593_v56 }
0x1d66   :  { %v22556_v36 = vpop.xlane.xlu0 %22555  ;;  %v22638_v55 = vsel %vm264_vm2, %v33643_v45, 0.0 }
0x1d67   :  { %28741 = vpow2.f32 %v22612_v48  ;;  %v22594_v10 = vsub.f32 %v22530_v52, %v22556_v36  ;;  %22639 = vadd.xlane.f32.xlu0 %v22638_v55 }
0x1d69   :  { %v33647_v7 = vpop.eup %28737  ;;  %v22614_v38 = vmul.f32 1.442695, %v22594_v10 }
0x1d6a   :  { %v22559_v53 = vpop.xlane.xlu1 %22558  ;;  %v22641_v24 = vsel %vm264_vm2, %v33647_v7, 0.0 }
0x1d6b   :  { %28743 = vpow2.f32 %v22614_v38  ;;  %v22595_v8 = vsub.f32 %v33611_v47, %v22559_v53  ;;  %22642 = vadd.xlane.f32.xlu1 %v22641_v24 }
0x1d6d   :  { %v33652_v33 = vpop.eup %28739  ;;  %v22616_v43 = vmul.f32 1.442695, %v22595_v8 }
0x1d6e   :  { %v22562_v13 = vpop.xlane.xlu0 %22561  ;;  %v22644_v0 = vsel %vm264_vm2, %v33652_v33, 0.0 }
0x1d6f   :  { %28745 = vpow2.f32 %v22616_v43  ;;  %v22596_v52 = vsub.f32 %v33615_v12, %v22562_v13  ;;  %22645 = vadd.xlane.f32.xlu0 %v22644_v0 }
0x1d71   :  { %v33657_v62 = vpop.eup %28741  ;;  %v22618_v18 = vmul.f32 1.442695, %v22596_v52 }
0x1d72   :  { %v22565_v4 = vpop.xlane.xlu1 %22564  ;;  %v22647_v3 = vsel %vm264_vm2, %v33657_v62, 0.0 }
0x1d73   :  { %28747 = vpow2.f32 %v22618_v18  ;;  %v22597_v47 = vsub.f32 %v33619_v9, %v22565_v4  ;;  %22648 = vadd.xlane.f32.xlu1 %v22647_v3 }
0x1d75   :  { %v33662_v39 = vpop.eup %28743  ;;  %v22620_v6 = vmul.f32 1.442695, %v22597_v47 }
0x1d76   :  { %v22571_v59 = vpop.xlane.xlu1 %22570  ;;  %v22650_v42 = vsel %vm264_vm2, %v33662_v39, 0.0 }
0x1d77   :  { %28749 = vpow2.f32 %v22620_v6  ;;  %v22599_v12 = vsub.f32 %v33623_v1, %v22571_v59  ;;  %22651 = vadd.xlane.f32.xlu0 %v22650_v42 }
0x1d79   :  { %v33667_v32 = vpop.eup %28745  ;;  %v22624_v35 = vmul.f32 1.442695, %v22599_v12 }
0x1d7a   :  { %v22577_v57 = vpop.xlane.xlu1 %22576  ;;  %v22653_v31 = vsel %vm264_vm2, %v33667_v32, 0.0 }
0x1d7b   :  { %28751 = vpow2.f32 %v22624_v35  ;;  %v22601_v9 = vsub.f32 %v33627_v27, %v22577_v57  ;;  %22654 = vadd.xlane.f32.xlu1 %v22653_v31 }
0x1d7d   :  { %v33672_v46 = vpop.eup %28747  ;;  %v22628_v26 = vmul.f32 1.442695, %v22601_v9 }
0x1d7e   :  { %v22656_v22 = vsel %vm264_vm2, %v33672_v46, 0.0 }
0x1d7f   :  { %28753 = vpow2.f32 %v22628_v26  ;;  %22657 = vadd.xlane.f32.xlu0 %v22656_v22 }
0x1d81   :  { %v33676_v1 = vpop.eup %28749  ;;  %v22583_v28 = vpop.xlane.xlu1 %22582 }
0x1d82   :  { %v22603_v19 = vsub.f32 %v33631_v58, %v22583_v28  ;;  %v22659_v30 = vsel %vm264_vm2, %v33676_v1, 0.0 }
0x1d83   :  { %22660 = vadd.xlane.f32.xlu1 %v22659_v30 }
0x1d84   :  { %v22632_v16 = vmul.f32 1.442695, %v22603_v19 }
0x1d85   :  { %v33681_v27 = vpop.eup %28751  ;;  %v33683_v44 = vpop.f32.mrb[8].mxu0 }
0x1d86   :  { %28755 = vpow2.f32 %v22632_v16  ;;  %v33685_v60 = vpop.f32.mrb[9].mxu0  ;;  %v22665_v41 = vsel %vm264_vm2, %v33681_v27, 0.0 }
0x1d87   :  { %22666 = vadd.xlane.f32.xlu1 %v22665_v41 }
0x1d89   :  { %v33689_v49 = vpop.eup %28753  ;;  %v22589_v48 = vpop.xlane.xlu1 %22588 }
0x1d8a   :  { %v22671_v58 = vsel %vm264_vm2, %v33689_v49, 0.0  ;;  %v22605_v10 = vsub.f32 %v33635_v61, %v22589_v48 }
0x1d8b   :  { %22672 = vadd.xlane.f32.xlu1 %v22671_v58 }
0x1d8c   :  { %v22636_v8 = vmul.f32 1.442695, %v22605_v10 }
0x1d8d   :  { %v33693_v20 = vpop.f32.mrb[10].mxu0 }
0x1d8e   :  { %v33695_v63 = vpop.f32.mrb[11].mxu0  ;;  %28757 = vpow2.f32 %v22636_v8 }
0x1d90   :  { %v33697_v15 = vpop.eup %28755 }
0x1d91   :  { %v22677_v56 = vsel %vm264_vm2, %v33697_v15, 0.0 }
0x1d92   :  { %22678 = vadd.xlane.f32.xlu1 %v22677_v56 }
0x1d95   :  { %v33701_v36 = vpop.f32.mrb[12].mxu0 }
0x1d96   :  { %v33703_v55 = vpop.f32.mrb[13].mxu0 }
0x1d98   :  { %v33726_v35 = vpop.eup %28757 }
0x1d99   :  { %v21976_v38 = vpop.f32.mrb[30].mxu0 }
0x1d9a   :  { %v33706_v53 = vmul.f32 0.35355338, %v21976_v38  ;;  %v27899_v24 = vpop.f32.mrb[31].mxu0 }
0x1d9c   :  { %v22566_v43 = vsel %vm264_vm2, %v33706_v53, -inf }
0x1d9d   :  { %v22132_v13 = vpop.f32.mrb[32].mxu0  ;;  %22567 = vmax.xlane.f32.xlu0 %v22566_v43 }
0x1d9e   :  { %v33710_v0 = vmul.f32 0.35355338, %v22132_v13  ;;  %v27909_v52 = vpop.f32.mrb[33].mxu0 }
0x1da0   :  { %v22572_v18 = vsel %vm264_vm2, %v33710_v0, -inf }
0x1da1   :  { %v22288_v4 = vpop.f32.mrb[34].mxu0  ;;  %22573 = vmax.xlane.f32.xlu0 %v22572_v18 }
0x1da2   :  { %v33714_v61 = vmul.f32 0.35355338, %v22288_v4  ;;  %v27919_v3 = vpop.f32.mrb[35].mxu0 }
0x1da3   :  { %22946 = vrot.lane.b32.xlu1 %v34746_v2, %s34760_s9  ;;  %v22683_v2 = vsel %vm264_vm2, %v33726_v35, 0.0 }
0x1da4   :  { %v22578_v47 = vsel %vm264_vm2, %v33714_v61, -inf }
0x1da5   :  { %v22444_v6 = vpop.f32.mrb[36].mxu0  ;;  %22579 = vmax.xlane.f32.xlu0 %v22578_v47 }
0x1da6   :  { %v33720_v59 = vmul.f32 0.35355338, %v22444_v6  ;;  %v27929_v42 = vpop.f32.mrb[37].mxu0 }
0x1da7   :  { %23022 = vrot.lane.b32.xlu1 %v31938_v23, %s34760_s9 }
0x1da8   :  { %v22584_v12 = vsel %vm264_vm2, %v33720_v59, -inf }
0x1da9   :  { %22585 = vmax.xlane.f32.xlu0 %v22584_v12 }
0x1dab   :  { %23174 = vrot.lane.b32.xlu1 %v34737_v14, %s34760_s9 }
0x1dad   :  { %22684 = vadd.xlane.f32.xlu0 %v22683_v2 }
0x1daf   :  { %23326 = vrot.lane.b32.xlu1 %v34744_v29, %s34760_s9 }
0x1db3   :  { %23478 = vrot.lane.b32.xlu1 %v34738_v50, %s34760_s9 }
0x1db7   :  { %23630 = vrot.lane.b32.xlu1 %v31960_v11, %s34760_s9 }
0x1dc3   :  { %22870 = vrot.lane.b32.xlu0 %v34740_v5, %s34760_s9 }
0x1dc7   :  { %23098 = vrot.lane.b32.xlu0 %v34741_v51, %s34760_s9 }
0x1dcb   :  { %23250 = vrot.lane.b32.xlu0 %v34742_v34, %s34760_s9 }
0x1dcf   :  { %23402 = vrot.lane.b32.xlu0 %v34743_v17, %s34760_s9 }
0x1dd3   :  { %23554 = vrot.lane.b32.xlu0 %v31918_v54, %s34760_s9 }
0x1dd7   :  { %23706 = vrot.lane.b32.xlu0 %v31931_v21, %s34760_s9 }
0x1df4   :  { %v22640_v23 = vpop.xlane.xlu0 %22639 }
0x1df5   :  { %28759 = vrcp.f32 %v22640_v23 }
0x1df8   :  { %v22643_v11 = vpop.xlane.xlu1 %22642 }
0x1df9   :  { %28761 = vrcp.f32 %v22643_v11 }
0x1dff   :  { %v28760_v14 = vpop.eup %28759 }
0x1e00   :  { %v22702_v50 = vmul.f32 %v28760_v14, %v33643_v45  ;;  %v22649_v54 = vpop.xlane.xlu1 %22648  ;;  %v22646_v45 = vpop.xlane.xlu0 %22645 }
0x1e01   :  { %28763 = vrcp.f32 %v22649_v54 }
0x1e02   :  { %27938 = vmatmul.mubr.msk.f32.vlgmr.msra.gmra.mrb[38].mxu0 %vm264_vm2, %v22702_v50 }
0x1e03   :  { %v28762_v5 = vpop.eup %28761  ;;  %27947 = vmatprep.mubr.msk.f32.mxu0 %vm28904_vm1, %v34655_v40 }
0x1e04   :  { %v22703_v51 = vmul.f32 %v28762_v5, %v33647_v7  ;;  %v22652_v9 = vpop.xlane.xlu0 %22651 }
0x1e06   :  { %27943 = vmatmul.mubr.msk.f32.vlgmr.msra.gmra.mrb[26].mxu1 %vm264_vm2, %v22703_v51 }
0x1e07   :  { %27952 = vmatprep.mubr.msk.f32.mxu1 %vm28904_vm1, %v34655_v40 }
0x1e08   :  { %v22655_v21 = vpop.xlane.xlu1 %22654 }
0x1e0b   :  { %v28764_v31 = vpop.eup %28763 }
0x1e0c   :  { %v22705_v26 = vmul.f32 %v28764_v31, %v33657_v62  ;;  %v22658_v7 = vpop.xlane.xlu0 %22657 }
0x1e10   :  { %v22661_v34 = vpop.xlane.xlu1 %22660 }
0x1e14   :  { %v22667_v17 = vpop.xlane.xlu1 %22666 }
0x1e18   :  { %v22673_v29 = vpop.xlane.xlu1 %22672 }
0x1e1f   :  { %v33758_v57 = vpop.xlane.xlu1 %22678 }
0x1e23   :  { %v22947_v22 = vpop.permute.xlu1 %22946 }
0x1e24   :  { %27951 = vmatpush3.msra.mxu1 %v22947_v22 }
0x1e25   :  { %27953 = vmatmul.mubr.msk.f32.vlgmr.msra.gmra.mrb[28].mxu1 %vm264_vm2, %v22705_v26  ;;  %27960 = vmatprep.subr.mxu1 %v34655_v40 }
0x1e26   :  { %27962 = vmatprep.mubr.msk.f32.mxu1 %vm28904_vm1, %v34655_v40 }
0x1e2a   :  { %v22568_v28 = vpop.xlane.xlu0 %22567 }
0x1e2b   :  { %v22598_v19 = vsub.f32 %v33706_v53, %v22568_v28 }
0x1e2d   :  { %v22622_v30 = vmul.f32 1.442695, %v22598_v19 }
0x1e2e   :  { %v22574_v16 = vpop.xlane.xlu0 %22573 }
0x1e2f   :  { %28765 = vpow2.f32 %v22622_v30  ;;  %v22600_v41 = vsub.f32 %v33710_v0, %v22574_v16  ;;  %v23023_v0 = vpop.permute.xlu1 %23022 }
0x1e30   :  { %28767 = vrcp.f32 %v22646_v45 }
0x1e31   :  { %v22626_v62 = vmul.f32 1.442695, %v22600_v41 }
0x1e32   :  { %v22580_v58 = vpop.xlane.xlu0 %22579 }
0x1e33   :  { %28769 = vpow2.f32 %v22626_v62  ;;  %v22602_v56 = vsub.f32 %v33714_v61, %v22580_v58  ;;  %v23175_v42 = vpop.permute.xlu1 %23174 }
0x1e34   :  { %28771 = vrcp.f32 %v22652_v9 }
0x1e35   :  { %28773 = vrcp.f32 %v22655_v21  ;;  %v22630_v48 = vmul.f32 1.442695, %v22602_v56 }
0x1e36   :  { %v22586_v10 = vpop.xlane.xlu0 %22585 }
0x1e37   :  { %28775 = vpow2.f32 %v22630_v48  ;;  %v22604_v38 = vsub.f32 %v33720_v59, %v22586_v10  ;;  %v23327_v54 = vpop.permute.xlu1 %23326 }
0x1e38   :  { %28777 = vrcp.f32 %v22658_v7 }
0x1e39   :  { %v33769_v24 = vpop.eup %28765  ;;  %v22634_v53 = vmul.f32 1.442695, %v22604_v38  ;;  %28779 = vrcp.f32 %v22661_v34 }
0x1e3a   :  { %v33771_v8 = vpop.xlane.xlu0 %22684  ;;  %v22662_v43 = vsel %vm264_vm2, %v33769_v24, 0.0  ;;  %v28768_v13 = vpop.eup %28767 }
0x1e3b   :  { %28781 = vpow2.f32 %v22634_v53  ;;  %22663 = vadd.xlane.f32.xlu0 %v22662_v43  ;;  %v22704_v4 = vmul.f32 %v28768_v13, %v33652_v33 }
0x1e3c   :  { %28783 = vrcp.f32 %v22667_v17 }
0x1e3d   :  { %v33775_v52 = vpop.eup %28769  ;;  %28785 = vrcp.f32 %v22673_v29 }
0x1e3e   :  { %v28772_v18 = vpop.eup %28771  ;;  %v22871_v61 = vpop.permute.xlu0 %22870  ;;  %v22668_v3 = vsel %vm264_vm2, %v33775_v52, 0.0  ;;  %28787 = vrcp.f32 %v33758_v57 }
0x1e3f   :  { %v28774_v47 = vpop.eup %28773  ;;  %22669 = vadd.xlane.f32.xlu0 %v22668_v3  ;;  %27946 = vmatpush3.msra.mxu0 %v22871_v61  ;;  %v22706_v33 = vmul.f32 %v28772_v18, %v33662_v39  ;;  %28789 = vrcp.f32 %v33771_v8  ;;  %v23479_v57 = vpop.permute.xlu1 %23478 }
0x1e40   :  { %27948 = vmatmul.mubr.msk.f32.vlgmr.msra.gmra.mrb[40].mxu0 %vm264_vm2, %v22704_v4  ;;  %27955 = vmatprep.subr.mxu0 %v34655_v40  ;;  %v22707_v59 = vmul.f32 %v28774_v47, %v33667_v32 }
0x1e41   :  { %v33782_v6 = vpop.eup %28775  ;;  %27956 = vmatpush3.msra.mxu0 %v23023_v0  ;;  %27957 = vmatprep.mubr.msk.f32.mxu0 %vm28904_vm1, %v34655_v40 }
0x1e42   :  { %v23099_v12 = vpop.permute.xlu0 %23098  ;;  %v22674_v2 = vsel %vm264_vm2, %v33782_v6, 0.0  ;;  %27965 = vmatprep.subr.mxu0 %v34655_v40  ;;  %v28778_v23 = vpop.eup %28777 }
0x1e43   :  { %22675 = vadd.xlane.f32.xlu0 %v22674_v2  ;;  %27961 = vmatpush3.msra.mxu1 %v23099_v12  ;;  %v28780_v11 = vpop.eup %28779  ;;  %v22708_v39 = vmul.f32 %v28778_v23, %v33672_v46  ;;  %v23631_v31 = vpop.permute.xlu1 %23630 }
0x1e44   :  { %27958 = vmatmul.mubr.msk.f32.vlgmr.msra.gmra.mrb[42].mxu0 %vm264_vm2, %v22706_v33  ;;  %27963 = vmatmul.mubr.msk.f32.vlgmr.msra.gmra.mrb[30].mxu1 %vm264_vm2, %v22707_v59  ;;  %v22709_v5 = vmul.f32 %v28780_v11, %v33676_v1 }
0x1e45   :  { %v33793_v14 = vpop.eup %28781  ;;  %27966 = vmatpush3.msra.mxu0 %v23175_v42  ;;  %27970 = vmatprep.subr.mxu1 %v34655_v40 }
0x1e46   :  { %v23251_v32 = vpop.permute.xlu0 %23250  ;;  %v22680_v50 = vsel %vm264_vm2, %v33793_v14, 0.0  ;;  %27967 = vmatprep.mubr.msk.f32.mxu0 %vm28904_vm1, %v34655_v40  ;;  %27972 = vmatprep.mubr.msk.f32.mxu1 %vm28904_vm1, %v34655_v40  ;;  %v28784_v51 = vpop.eup %28783 }
0x1e47   :  { %22681 = vadd.xlane.f32.xlu1 %v22680_v50  ;;  %27971 = vmatpush3.msra.mxu1 %v23251_v32  ;;  %v22711_v21 = vmul.f32 %v28784_v51, %v33681_v27  ;;  %v28786_v1 = vpop.eup %28785 }
0x1e48   :  { %27975 = vmatprep.subr.mxu0 %v34655_v40  ;;  %27968 = vmatmul.mubr.msk.f32.vlgmr.msra.gmra.mrb[44].mxu0 %vm264_vm2, %v22708_v39  ;;  %v22713_v17 = vmul.f32 %v28786_v1, %v33689_v49  ;;  %v28788_v29 = vpop.eup %28787  ;;  %v33874_v1 = vld [vmem:[%s34530_s16] ss:$0 sm:$0xff] }
0x1e49   :  { %27973 = vmatmul.mubr.msk.f32.vlgmr.msra.gmra.mrb[32].mxu1 %vm264_vm2, %v22709_v5  ;;  %27976 = vmatpush3.msra.mxu0 %v23327_v54  ;;  %v22715_v45 = vmul.f32 %v28788_v29, %v33697_v15  ;;  %v28790_v26 = vpop.eup %28789 }
0x1e4a   :  { %27980 = vmatprep.subr.mxu1 %v34655_v40  ;;  %v23403_v46 = vpop.permute.xlu0 %23402  ;;  %27982 = vmatprep.mubr.msk.f32.mxu1 %vm28904_vm1, %v34655_v40  ;;  %v22717_v7 = vmul.f32 %v28790_v26, %v33726_v35  ;;  %v12730_v35 = vld [vmem:[%s34529_s15 + $0x18] sm:$0xff] }
0x1e4b   :  { %27981 = vmatpush3.msra.mxu1 %v23403_v46  ;;  %27977 = vmatprep.mubr.msk.f32.mxu0 %vm28904_vm1, %v34655_v40 }
0x1e4c   :  { %27990 = vmatprep.subr.mxu1 %v34655_v40  ;;  %27985 = vmatprep.subr.mxu0 %v34655_v40 }
0x1e4d   :  { %27983 = vmatmul.mubr.msk.f32.vlgmr.msra.gmra.mrb[34].mxu1 %vm264_vm2, %v22711_v21 }
0x1e4e   :  { %v23555_v34 = vpop.permute.xlu0 %23554  ;;  %27992 = vmatprep.mubr.msk.f32.mxu1 %vm28904_vm1, %v34655_v40 }
0x1e4f   :  { %27991 = vmatpush3.msra.mxu1 %v23555_v34 }
0x1e50   :  { %28000 = vmatprep.subr.mxu1 %v34655_v40 }
0x1e51   :  { %27993 = vmatmul.mubr.msk.f32.vlgmr.msra.gmra.mrb[36].mxu1 %vm264_vm2, %v22713_v17 }
0x1e52   :  { %v23707_v27 = vpop.permute.xlu0 %23706  ;;  %28002 = vmatprep.mubr.msk.f32.mxu1 %vm28904_vm1, %v34655_v40 }
0x1e53   :  { %28001 = vmatpush3.msra.mxu1 %v23707_v27 }
0x1e54   :  { %28010 = vmatprep.subr.mxu1 %v34655_v40 }
0x1e55   :  { %28003 = vmatmul.mubr.msk.f32.vlgmr.msra.gmra.mrb[38].mxu1 %vm264_vm2, %v22715_v45  ;;  %v34766_v45 = vld [vmem:[#allocation8_spill] sm:$0xff] }
0x1e56   :  { %28012 = vmatprep.mubr.msk.f32.mxu1 %vm28904_vm1, %v34655_v40 }
0x1e58   :  { %23782 = vrot.lane.b32.xlu1 %v31978_v25, %s34760_s9 }
0x1e59   :  { %23858 = vrot.lane.b32.xlu0 %v31928_v37, %s34760_s9 }
0x1ec8   :  { %v22664_v49 = vpop.xlane.xlu0 %22663 }
0x1ec9   :  { %28791 = vrcp.f32 %v22664_v49 }
0x1ecc   :  { %v22670_v15 = vpop.xlane.xlu0 %22669 }
0x1ecd   :  { %28793 = vrcp.f32 %v22670_v15 }
0x1ed0   :  { %v22676_v9 = vpop.xlane.xlu0 %22675 }
0x1ed1   :  { %28795 = vrcp.f32 %v22676_v9 }
0x1ed3   :  { %v28792_v22 = vpop.eup %28791 }
0x1ed4   :  { %v22710_v28 = vmul.f32 %v28792_v22, %v33769_v24  ;;  %v22682_v25 = vpop.xlane.xlu1 %22681  ;;  %v23859_v19 = vpop.permute.xlu0 %23858 }
0x1ed5   :  { %28797 = vrcp.f32 %v22682_v25  ;;  %v22790_v37 = vpop.f32.mrb[38].mxu0  ;;  %28011 = vmatpush3.msra.mxu1 %v23859_v19  ;;  %v34768_v25 = vld [vmem:[#allocation15_spill] sm:$0xff] }
0x1ed6   :  { %v27939_v30 = vpop.f32.mrb[39].mxu0  ;;  %27978 = vmatmul.mubr.msk.f32.vlgmr.msra.gmra.mrb[46].mxu0 %vm264_vm2, %v22710_v28  ;;  %28013 = vmatmul.mubr.msk.f32.vlgmr.msra.gmra.mrb[40].mxu1 %vm264_vm2, %v22717_v7 }
0x1ed7   :  { %v28794_v16 = vpop.eup %28793  ;;  %27986 = vmatpush3.msra.mxu0 %v23479_v57  ;;  %27987 = vmatprep.mubr.msk.f32.mxu0 %vm28904_vm1, %v34655_v40  ;;  %v34767_v57 = vld [vmem:[#allocation6_spill] sm:$0xff] }
0x1ed8   :  { %v22712_v41 = vmul.f32 %v28794_v16, %v33775_v52  ;;  %27995 = vmatprep.subr.mxu0 %v34655_v40  ;;  %28093 = vmatprep.subr.mxu1 %v12730_v35  ;;  %v23783_v10 = vpop.permute.xlu1 %23782 }
0x1ed9   :  { %v22866_v62 = vpop.f32.mrb[26].mxu1  ;;  %28094 = vmatpush3.msra.mxu1 %v12730_v35 }
0x1eda   :  { %v27944_v58 = vpop.f32.mrb[27].mxu1  ;;  %27988 = vmatmul.mubr.msk.f32.vlgmr.msra.gmra.mrb[48].mxu0 %vm264_vm2, %v22712_v41 }
0x1edb   :  { %v28796_v56 = vpop.eup %28795  ;;  %27996 = vmatpush3.msra.mxu0 %v23631_v31  ;;  %27997 = vmatprep.mubr.msk.f32.mxu0 %vm28904_vm1, %v34655_v40 }
0x1edc   :  { %v22714_v48 = vmul.f32 %v28796_v56, %v33782_v6  ;;  %28005 = vmatprep.subr.mxu0 %v34655_v40 }
0x1ede   :  { %27998 = vmatmul.mubr.msk.f32.vlgmr.msra.gmra.mrb[50].mxu0 %vm264_vm2, %v22714_v48  ;;  %v34770_v48 = vld [vmem:[#allocation9_spill] sm:$0xff] }
0x1edf   :  { %v28798_v38 = vpop.eup %28797  ;;  %28006 = vmatpush3.msra.mxu0 %v23783_v10  ;;  %28007 = vmatprep.mubr.msk.f32.mxu0 %vm28904_vm1, %v34655_v40 }
0x1ee0   :  { %v22716_v24 = vmul.f32 %v28798_v38, %v33793_v14  ;;  %28015 = vmatprep.subr.mxu0 %v12730_v35  ;;  %v34771_v38 = vld [vmem:[#allocation14_spill] sm:$0xff] }
0x1ee2   :  { %28008 = vmatmul.mubr.msk.f32.vlgmr.msra.gmra.mrb[52].mxu0 %vm264_vm2, %v22716_v24 }
0x1ee3   :  { %28017 = vmatprep.mubr.msk.f32.mxu0 %vm264_vm2, %v22790_v37  ;;  %28016 = vmatpush3.msra.mxu0 %v12730_v35  ;;  %v34769_v37 = vld [vmem:[#allocation10_spill] sm:$0xff] }
0x1ee6   :  { %28018 = vmatmul.mubr.msk.f32.vlgmr.msra.gmra.mrb[254].mxu0 %vm264_vm2, %v22866_v62 }
0x1ef8   :  { %v23018_v53 = vpop.f32.mrb[28].mxu1 }
0x1ef9   :  { %v27954_v8 = vpop.f32.mrb[29].mxu1 }
0x1f13   :  { %v22942_v43 = vpop.f32.mrb[40].mxu0 }
0x1f14   :  { %v27949_v13 = vpop.f32.mrb[41].mxu0  ;;  %28020 = vmatprep.mubr.msk.f32.mxu0 %vm264_vm2, %v22942_v43 }
0x1f15   :  { %28021 = vmatmul.mubr.msk.f32.gmra.mrb[0].mxu0 %vm264_vm2, %v23018_v53 }
0x1f17   :  { %v23094_v0 = vpop.f32.mrb[42].mxu0  ;;  %v23170_v52 = vpop.f32.mrb[30].mxu1 }
0x1f18   :  { %v27959_v18 = vpop.f32.mrb[43].mxu0  ;;  %v27964_v4 = vpop.f32.mrb[31].mxu1  ;;  %28023 = vmatprep.mubr.msk.f32.mxu0 %vm264_vm2, %v23094_v0 }
0x1f19   :  { %28024 = vmatmul.mubr.msk.f32.gmra.mrb[2].mxu0 %vm264_vm2, %v23170_v52  ;;  %v34772_v18 = vld [vmem:[#allocation13_spill] sm:$0xff] }
0x1f1b   :  { %v23246_v61 = vpop.f32.mrb[44].mxu0 }
0x1f1c   :  { %v23322_v3 = vpop.f32.mrb[32].mxu1  ;;  %v27969_v47 = vpop.f32.mrb[45].mxu0  ;;  %28026 = vmatprep.mubr.msk.f32.mxu0 %vm264_vm2, %v23246_v61  ;;  %v34773_v61 = vld [vmem:[#allocation11_spill] sm:$0xff] }
0x1f1d   :  { %v27974_v6 = vpop.f32.mrb[33].mxu1  ;;  %28027 = vmatmul.mubr.msk.f32.gmra.mrb[4].mxu0 %vm264_vm2, %v23322_v3 }
0x1f20   :  { %v23474_v33 = vpop.f32.mrb[34].mxu1 }
0x1f21   :  { %v27984_v59 = vpop.f32.mrb[35].mxu1 }
0x1f24   :  { %v23626_v42 = vpop.f32.mrb[36].mxu1 }
0x1f25   :  { %v27994_v12 = vpop.f32.mrb[37].mxu1 }
0x1f28   :  { %v23778_v2 = vpop.f32.mrb[38].mxu1 }
0x1f29   :  { %v28004_v23 = vpop.f32.mrb[39].mxu1 }
0x1fa9   :  { %v23398_v11 = vpop.f32.mrb[46].mxu0  ;;  %v23930_v14 = vpop.f32.mrb[40].mxu1 }
0x1faa   :  { %v27979_v39 = vpop.f32.mrb[47].mxu0  ;;  %v28014_v32 = vpop.f32.mrb[41].mxu1  ;;  %28029 = vmatprep.mubr.msk.f32.mxu0 %vm264_vm2, %v23398_v11 }
0x1fab   :  { %28030 = vmatmul.mubr.msk.f32.gmra.mrb[6].mxu0 %vm264_vm2, %v23474_v33 }
0x1fad   :  { %v23550_v50 = vpop.f32.mrb[48].mxu0 }
0x1fae   :  { %v27989_v5 = vpop.f32.mrb[49].mxu0  ;;  %28032 = vmatprep.mubr.msk.f32.mxu1 %vm264_vm2, %v23550_v50 }
0x1faf   :  { %28033 = vmatmul.mubr.msk.f32.vlgmr.msra.gmra.mrb[42].mxu1 %vm264_vm2, %v23626_v42 }
0x1fb1   :  { %v23702_v51 = vpop.f32.mrb[50].mxu0 }
0x1fb2   :  { %v27999_v54 = vpop.f32.mrb[51].mxu0  ;;  %28035 = vmatprep.mubr.msk.f32.mxu1 %vm264_vm2, %v23702_v51 }
0x1fb3   :  { %28036 = vmatmul.mubr.msk.f32.gmra.mrb[44].mxu1 %vm264_vm2, %v23778_v2  ;;  %v34774_v2 = vld [vmem:[#allocation24_spill] sm:$0xff] }
0x1fb5   :  { %v23854_v46 = vpop.f32.mrb[52].mxu0 }
0x1fb6   :  { %v28009_v21 = vpop.f32.mrb[53].mxu0  ;;  %28038 = vmatprep.mubr.msk.f32.mxu1 %vm264_vm2, %v23854_v46 }
0x1fb7   :  { %28039 = vmatmul.mubr.msk.f32.gmra.mrb[46].mxu1 %vm264_vm2, %v23930_v14  ;;  %v34775_v14 = vld [vmem:[#allocation12_spill] sm:$0xff] }
0x1fb9   :  { %v28019_v34 = vpop.f32.mrb[254].mxu0 }
0x1fba   :  { %v24151_v17 = vadd.f32 %v28019_v34, %v33874_v1  ;;  %v24048_v29 = vpop.f32.mrb[255].mxu0 }
0x1fbb   :  { %v24150_v27 = vadd.f32 %v33874_v1, %v24048_v29 }
0x1fbc   :  { %v33879_v49 = vadd.f32 %v24151_v17, %v34766_v45 }
0x1fbd   :  { %v33882_v15 = vadd.f32 %v24150_v27, %v34767_v57 }
0x1fbe   :  { %v24187_v31 = vsel %vm135_vm0, %v33879_v49, 0.0 }
0x1fbf   :  { %24188 = vadd.xlane.f32.xlu0 %v24187_v31  ;;  %v24184_v9 = vsel %vm135_vm0, %v33882_v15, 0.0  ;;  %v34776_v31 = vld [vmem:[#allocation25_spill] sm:$0xff] }
0x1fc0   :  { %24185 = vadd.xlane.f32.xlu1 %v24184_v9 }
0x1fe8   :  { %v28022_v26 = vpop.f32.mrb[0].mxu0 }
0x1fe9   :  { %v24153_v22 = vadd.f32 %v28022_v26, %v33874_v1  ;;  %v24058_v7 = vpop.f32.mrb[1].mxu0  ;;  %v34777_v26 = vld [vmem:[#allocation16_spill] sm:$0xff] }
0x1fea   :  { %v24152_v28 = vadd.f32 %v33874_v1, %v24058_v7 }
0x1feb   :  { %v33891_v19 = vadd.f32 %v24153_v22, %v34768_v25 }
0x1fec   :  { %v33894_v30 = vadd.f32 %v24152_v28, %v34769_v37  ;;  %v28025_v16 = vpop.f32.mrb[2].mxu0 }
0x1fed   :  { %v24155_v35 = vadd.f32 %v28025_v16, %v33874_v1  ;;  %v24068_v41 = vpop.f32.mrb[3].mxu0  ;;  %v24193_v62 = vsel %vm135_vm0, %v33891_v19, 0.0 }
0x1fee   :  { %v24154_v58 = vadd.f32 %v33874_v1, %v24068_v41  ;;  %24194 = vadd.xlane.f32.xlu1 %v24193_v62  ;;  %v24190_v56 = vsel %vm135_vm0, %v33894_v30, 0.0  ;;  %v34778_v62 = vld [vmem:[#allocation26_spill] sm:$0xff] }
0x1fef   :  { %v33903_v10 = vadd.f32 %v24155_v35, %v34770_v48  ;;  %24191 = vadd.xlane.f32.xlu0 %v24190_v56 }
0x1ff0   :  { %v33906_v24 = vadd.f32 %v24154_v58, %v34771_v38  ;;  %v28028_v53 = vpop.f32.mrb[4].mxu0  ;;  %v34779_v38 = vld [vmem:[#allocation17_spill] sm:$0xff] }
0x1ff1   :  { %v24157_v8 = vadd.f32 %v28028_v53, %v33874_v1  ;;  %v24078_v43 = vpop.f32.mrb[5].mxu0  ;;  %v24199_v13 = vsel %vm135_vm0, %v33903_v10, 0.0 }
0x1ff2   :  { %v24156_v0 = vadd.f32 %v33874_v1, %v24078_v43  ;;  %24200 = vadd.xlane.f32.xlu1 %v24199_v13  ;;  %v24196_v52 = vsel %vm135_vm0, %v33906_v24, 0.0 }
0x1ff3   :  { %v33915_v4 = vadd.f32 %v24157_v8, %v34772_v18  ;;  %24197 = vadd.xlane.f32.xlu0 %v24196_v52 }
0x1ff4   :  { %v33918_v3 = vadd.f32 %v24156_v0, %v34773_v61 }
0x1ff5   :  { %v24205_v47 = vsel %vm135_vm0, %v33915_v4, 0.0 }
0x1ff6   :  { %24206 = vadd.xlane.f32.xlu1 %v24205_v47  ;;  %v24202_v6 = vsel %vm135_vm0, %v33918_v3, 0.0 }
0x1ff7   :  { %24203 = vadd.xlane.f32.xlu0 %v24202_v6  ;;  %v34781_v6 = vld [vmem:[#allocation18_spill] sm:$0xff] }
0x204c   :  { %v24189_v50 = vpop.xlane.xlu0 %24188 }
0x204d   :  { %v24186_v11 = vpop.xlane.xlu1 %24185  ;;  %v24233_v7 = vmul.f32 0.03125, %v24189_v50 }
0x204e   :  { %v24232_v37 = vmul.f32 0.03125, %v24186_v11 }
0x204f   :  { %v33963_v8 = vsub.f32 %v33879_v49, %v24233_v7  ;;  %v34780_v49 = vld [vmem:[#allocation27_spill] sm:$0xff]  ;;  %v28216_v7 = vld [vmem:[%s34533_s19 + $0x8] sm:$0xff]  }
0x2050   :  { %v33969_v52 = vsub.f32 %v33882_v15, %v24232_v37 }
0x207b   :  { %v24195_v17 = vpop.xlane.xlu1 %24194 }
0x207c   :  { %v24192_v45 = vpop.xlane.xlu0 %24191  ;;  %v24235_v43 = vmul.f32 0.03125, %v24195_v17 }
0x207d   :  { %v24234_v18 = vmul.f32 0.03125, %v24192_v45 }
0x207e   :  { %v28031_v33 = vpop.f32.mrb[6].mxu0 }
0x207f   :  { %v24159_v59 = vadd.f32 %v28031_v33, %v33874_v1  ;;  %v24088_v42 = vpop.f32.mrb[7].mxu0  ;;  %v24201_v56 = vpop.xlane.xlu1 %24200 }
0x2080   :  { %v24158_v12 = vadd.f32 %v33874_v1, %v24088_v42  ;;  %v24198_v13 = vpop.xlane.xlu0 %24197  ;;  %v24237_v42 = vmul.f32 0.03125, %v24201_v56 }
0x2081   :  { %v33927_v23 = vadd.f32 %v24159_v59, %v34774_v2  ;;  %v33981_v59 = vsub.f32 %v33891_v19, %v24235_v43  ;;  %v24236_v2 = vmul.f32 0.03125, %v24198_v13  ;;  %v24264_v19 = vmul.f32 %v33969_v52, %v33969_v52 }
0x2082   :  { %v33930_v39 = vadd.f32 %v24158_v12, %v34775_v14  ;;  %v28034_v32 = vpop.f32.mrb[42].mxu1  ;;  %v33988_v12 = vsub.f32 %v33894_v30, %v24234_v18  ;;  %v33995_v50 = vsub.f32 %v33903_v10, %v24237_v42 }
0x2083   :  { %v28095_v5 = vadd.f32 %v28034_v32, %v33683_v44  ;;  %v24098_v51 = vpop.f32.mrb[43].mxu1  ;;  %v24211_v54 = vsel %vm135_vm0, %v33927_v23, 0.0  ;;  %v24207_v11 = vpop.xlane.xlu1 %24206  ;;  %v24267_v30 = vmul.f32 %v33981_v59, %v33981_v59 }
0x2084   :  { %v28096_v46 = vadd.f32 %v24098_v51, %v33685_v60  ;;  %24212 = vadd.xlane.f32.xlu1 %v24211_v54  ;;  %v24208_v21 = vsel %vm135_vm0, %v33930_v39, 0.0  ;;  %v24204_v32 = vpop.xlane.xlu0 %24203  ;;  %v34001_v54 = vsub.f32 %v33906_v24, %v24236_v2 }
0x2085   :  { %v24161_v34 = vadd.f32 %v28095_v5, %v33874_v1  ;;  %24209 = vadd.xlane.f32.xlu0 %v24208_v21  ;;  %v24239_v5 = vmul.f32 0.03125, %v24207_v11  ;;  %v24280_v21 = vsel %vm135_vm0, %v24264_v19, 0.0  ;;  %v24289_v17 = vsel %vm135_vm0, %v24267_v30, 0.0 }
0x2086   :  { %v24160_v29 = vadd.f32 %v28096_v46, %v33874_v1  ;;  %v28037_v27 = vpop.f32.mrb[44].mxu1  ;;  %v24238_v46 = vmul.f32 0.03125, %v24204_v32  ;;  %v24268_v45 = vmul.f32 %v34001_v54, %v34001_v54 }
0x2087   :  { %v28097_v44 = vadd.f32 %v28037_v27, %v33693_v20  ;;  %v24108_v57 = vpop.f32.mrb[45].mxu1  ;;  %v33942_v9 = vadd.f32 %v24161_v34, %v34776_v31  ;;  %v24266_v34 = vmul.f32 %v33988_v12, %v33988_v12  ;;  %v34007_v10 = vsub.f32 %v33915_v4, %v24239_v5 }
0x2088   :  { %v28098_v60 = vadd.f32 %v24108_v57, %v33695_v63  ;;  %v33946_v22 = vadd.f32 %v24160_v29, %v34777_v26  ;;  %v24269_v29 = vmul.f32 %v33995_v50, %v33995_v50  ;;  %v34013_v27 = vsub.f32 %v33918_v3, %v24238_v46  ;;  %v28215_v26 = vld [vmem:[%s34533_s19] sm:$0xff]  }
0x2089   :  { %v24163_v28 = vadd.f32 %v28097_v44, %v33874_v1  ;;  %v24217_v25 = vsel %vm135_vm0, %v33942_v9, 0.0  ;;  %v24286_v24 = vsel %vm135_vm0, %v24266_v34, 0.0  ;;  %v24271_v4 = vmul.f32 %v34007_v10, %v34007_v10  ;;  %28041 = vmatprep.subr.bf16.mxu1 %v28215_v26 }
0x208a   :  { %v24162_v16 = vadd.f32 %v28098_v60, %v33874_v1  ;;  %24218 = vadd.xlane.f32.xlu1 %v24217_v25  ;;  %v28040_v20 = vpop.f32.mrb[46].mxu1  ;;  %v24214_v35 = vsel %vm135_vm0, %v33946_v22, 0.0  ;;  %v24295_v44 = vsel %vm135_vm0, %v24269_v29, 0.0  ;;  %v24292_v57 = vsel %vm135_vm0, %v24268_v45, 0.0  ;;  %28042 = vmatpush3.bf16.msra.mxu1 %v28215_v26 }
0x208b   :  { %v28099_v41 = vadd.f32 %v28040_v20, %v33701_v36  ;;  %24215 = vadd.xlane.f32.xlu0 %v24214_v35  ;;  %v24118_v63 = vpop.f32.mrb[47].mxu1  ;;  %v33956_v58 = vadd.f32 %v24163_v28, %v34778_v62  ;;  %v24270_v31 = vmul.f32 %v34013_v27, %v34013_v27  ;;  %v24301_v3 = vsel %vm135_vm0, %v24271_v4, 0.0  ;;  %28043 = vmatprep.subr.bf16.mxu1 %v28216_v7 }
0x208c   :  { %v28100_v48 = vadd.f32 %v24118_v63, %v33703_v55  ;;  %v33960_v53 = vadd.f32 %v24162_v16, %v34779_v38 }
0x208d   :  { %v24165_v0 = vadd.f32 %v28099_v41, %v33874_v1  ;;  %v24223_v36 = vsel %vm135_vm0, %v33956_v58, 0.0  ;;  %v24298_v60 = vsel %vm135_vm0, %v24270_v31, 0.0 }
0x208e   :  { %v24164_v61 = vadd.f32 %v28100_v48, %v33874_v1  ;;  %24224 = vadd.xlane.f32.xlu1 %v24223_v36  ;;  %v24220_v55 = vsel %vm135_vm0, %v33960_v53, 0.0  ;;  %v24265_v1 = vmul.f32 %v33963_v8, %v33963_v8  ;;  %28044 = vmatpush3.bf16.msra.mxu1 %v28216_v7 }
0x208f   :  { %24221 = vadd.xlane.f32.xlu0 %v24220_v55  ;;  %v33975_v47 = vadd.f32 %v24165_v0, %v34780_v49  ;;  %28085 = vmatprep.subr.bf16.mxu1 %v34655_v40 }
0x2090   :  { %v33978_v33 = vadd.f32 %v24164_v61, %v34781_v6  ;;  %v24283_v51 = vsel %vm135_vm0, %v24265_v1, 0.0 }
0x2091   :  { %v24229_v15 = vsel %vm135_vm0, %v33975_v47, 0.0 }
0x2092   :  { %24230 = vadd.xlane.f32.xlu1 %v24229_v15  ;;  %v24226_v14 = vsel %vm135_vm0, %v33978_v33, 0.0 }
0x2093   :  { %24227 = vadd.xlane.f32.xlu0 %v24226_v14 }
0x2096   :  { %24284 = vadd.xlane.f32.xlu1 %v24283_v51 }
0x2097   :  { %24281 = vadd.xlane.f32.xlu0 %v24280_v21 }
0x209a   :  { %24290 = vadd.xlane.f32.xlu1 %v24289_v17 }
0x209b   :  { %24287 = vadd.xlane.f32.xlu0 %v24286_v24 }
0x209e   :  { %24296 = vadd.xlane.f32.xlu1 %v24295_v44 }
0x209f   :  { %24293 = vadd.xlane.f32.xlu0 %v24292_v57 }
0x20a2   :  { %24302 = vadd.xlane.f32.xlu1 %v24301_v3 }
0x20a3   :  { %24299 = vadd.xlane.f32.xlu0 %v24298_v60 }
0x2111   :  { %v24213_v28 = vpop.xlane.xlu1 %24212 }
0x2112   :  { %v24241_v25 = vmul.f32 0.03125, %v24213_v28  ;;  %v24210_v37 = vpop.xlane.xlu0 %24209 }
0x2113   :  { %v24240_v16 = vmul.f32 0.03125, %v24210_v37 }
0x2114   :  { %v34034_v20 = vsub.f32 %v33927_v23, %v24241_v25 }
0x2115   :  { %v34037_v35 = vsub.f32 %v33930_v39, %v24240_v16 }
0x2116   :  { %v24273_v41 = vmul.f32 %v34034_v20, %v34034_v20 }
0x2117   :  { %v24219_v63 = vpop.xlane.xlu1 %24218  ;;  %v24272_v62 = vmul.f32 %v34037_v35, %v34037_v35 }
0x2118   :  { %v24243_v56 = vmul.f32 0.03125, %v24219_v63  ;;  %v24216_v48 = vpop.xlane.xlu0 %24215  ;;  %v24307_v38 = vsel %vm135_vm0, %v24273_v41, 0.0 }
0x2119   :  { %v24242_v43 = vmul.f32 0.03125, %v24216_v48  ;;  %24308 = vadd.xlane.f32.xlu1 %v24307_v38  ;;  %v24304_v13 = vsel %vm135_vm0, %v24272_v62, 0.0  ;;  %v34084_v48 = vld [vmem:[%s34531_s17] ss:$0 sm:$0xff] }
0x211a   :  { %v34046_v23 = vsub.f32 %v33942_v9, %v24243_v56  ;;  %24305 = vadd.xlane.f32.xlu0 %v24304_v13 }
0x211b   :  { %v34049_v39 = vsub.f32 %v33946_v22, %v24242_v43  ;;  %v24225_v0 = vpop.xlane.xlu1 %24224 }
0x211c   :  { %v24245_v36 = vmul.f32 0.03125, %v24225_v0  ;;  %v24222_v18 = vpop.xlane.xlu0 %24221  ;;  %v24275_v61 = vmul.f32 %v34046_v23, %v34046_v23 }
0x211d   :  { %v24244_v55 = vmul.f32 0.03125, %v24222_v18  ;;  %v24274_v49 = vmul.f32 %v34049_v39, %v34049_v39  ;;  %v34091_v18 = vld [vmem:[%s34532_s18] ss:$0 sm:$0xff] }
0x211e   :  { %v34056_v6 = vsub.f32 %v33956_v58, %v24245_v36  ;;  %v24313_v9 = vsel %vm135_vm0, %v24275_v61, 0.0 }
0x211f   :  { %v34060_v42 = vsub.f32 %v33960_v53, %v24244_v55  ;;  %v24231_v22 = vpop.xlane.xlu1 %24230  ;;  %24314 = vadd.xlane.f32.xlu1 %v24313_v9  ;;  %v24310_v15 = vsel %vm135_vm0, %v24274_v49, 0.0 }
0x2120   :  { %v24247_v1 = vmul.f32 0.03125, %v24231_v22  ;;  %24311 = vadd.xlane.f32.xlu0 %v24310_v15  ;;  %v24228_v2 = vpop.xlane.xlu0 %24227  ;;  %v24277_v11 = vmul.f32 %v34056_v6, %v34056_v6 }
0x2121   :  { %v24246_v14 = vmul.f32 0.03125, %v24228_v2  ;;  %v24276_v58 = vmul.f32 %v34060_v42, %v34060_v42 }
0x2122   :  { %v34068_v19 = vsub.f32 %v33975_v47, %v24247_v1  ;;  %v24319_v53 = vsel %vm135_vm0, %v24277_v11, 0.0 }
0x2123   :  { %v34072_v32 = vsub.f32 %v33978_v33, %v24246_v14  ;;  %24320 = vadd.xlane.f32.xlu1 %v24319_v53  ;;  %v24285_v5 = vpop.xlane.xlu1 %24284  ;;  %v24316_v51 = vsel %vm135_vm0, %v24276_v58, 0.0 }
0x2124   :  { %v24329_v30 = vmul.f32 0.03125, %v24285_v5  ;;  %24317 = vadd.xlane.f32.xlu0 %v24316_v51  ;;  %v24282_v46 = vpop.xlane.xlu0 %24281  ;;  %v24279_v21 = vmul.f32 %v34068_v19, %v34068_v19 }
0x2125   :  { %v24328_v34 = vmul.f32 0.03125, %v24282_v46  ;;  %v24278_v47 = vmul.f32 %v34072_v32, %v34072_v32 }
0x2126   :  { %v24345_v17 = vadd.f32 1e-05, %v24329_v30  ;;  %v24325_v29 = vsel %vm135_vm0, %v24279_v21, 0.0 }
0x2127   :  { %v24344_v24 = vadd.f32 1e-05, %v24328_v34  ;;  %24326 = vadd.xlane.f32.xlu1 %v24325_v29  ;;  %v24291_v33 = vpop.xlane.xlu1 %24290  ;;  %v24322_v45 = vsel %vm135_vm0, %v24278_v47, 0.0 }
0x2128   :  { %28799 = vrsqrt.f32 %v24345_v17  ;;  %v24331_v44 = vmul.f32 0.03125, %v24291_v33  ;;  %24323 = vadd.xlane.f32.xlu0 %v24322_v45  ;;  %v24288_v4 = vpop.xlane.xlu0 %24287 }
0x2129   :  { %28801 = vrsqrt.f32 %v24344_v24  ;;  %v24330_v57 = vmul.f32 0.03125, %v24288_v4  ;;  %v28218_v4 = vld [vmem:[%s34535_s21 + $0x8] sm:$0xff]  }
0x212a   :  { %v24347_v31 = vadd.f32 1e-05, %v24331_v44  ;;  %v28217_v44 = vld [vmem:[%s34535_s21] sm:$0xff]  }
0x212b   :  { %v24346_v3 = vadd.f32 1e-05, %v24330_v57  ;;  %v24297_v60 = vpop.xlane.xlu1 %24296  ;;  %28061 = vmatprep.subr.bf16.mxu0 %v28217_v44  ;;  %v28219_v57 = vld [vmem:[%s34535_s21 + $0x10] sm:$0xff]  }
0x212c   :  { %28803 = vrsqrt.f32 %v24347_v31  ;;  %v24333_v26 = vmul.f32 0.03125, %v24297_v60  ;;  %v24294_v7 = vpop.xlane.xlu0 %24293  ;;  %28062 = vmatpush3.bf16.msra.mxu0 %v28217_v44  ;;  %v28220_v31 = vld [vmem:[%s34535_s21 + $0x18] sm:$0xff]  }
0x212d   :  { %28805 = vrsqrt.f32 %v24346_v3  ;;  %v24332_v28 = vmul.f32 0.03125, %v24294_v7  ;;  %28063 = vmatprep.subr.bf16.mxu0 %v28218_v4 }
0x212e   :  { %v24349_v25 = vadd.f32 1e-05, %v24333_v26 }
0x212f   :  { %v24348_v37 = vadd.f32 1e-05, %v24332_v28  ;;  %v24303_v16 = vpop.xlane.xlu1 %24302 }
0x2130   :  { %28807 = vrsqrt.f32 %v24349_v25  ;;  %v24335_v41 = vmul.f32 0.03125, %v24303_v16  ;;  %v24300_v63 = vpop.xlane.xlu0 %24299  ;;  %28064 = vmatpush3.bf16.msra.mxu0 %v28218_v4 }
0x2131   :  { %28809 = vrsqrt.f32 %v24348_v37  ;;  %v24334_v62 = vmul.f32 0.03125, %v24300_v63  ;;  %28065 = vmatprep.subr.bf16.mxu0 %v28219_v57 }
0x2132   :  { %v28800_v56 = vpop.eup %28799  ;;  %v24351_v38 = vadd.f32 1e-05, %v24335_v41 }
0x2133   :  { %v28802_v43 = vpop.eup %28801  ;;  %v24377_v13 = vmul.f32 %v28800_v56, %v33963_v8  ;;  %v24350_v0 = vadd.f32 1e-05, %v24334_v62 }
0x2134   :  { %v24376_v36 = vmul.f32 %v28802_v43, %v33969_v52  ;;  %28811 = vrsqrt.f32 %v24351_v38  ;;  %28066 = vmatpush3.bf16.msra.mxu0 %v28219_v57 }
0x2135   :  { %28813 = vrsqrt.f32 %v24350_v0  ;;  %v24399_v61 = vmul.f32 %v34084_v48, %v24377_v13  ;;  %28067 = vmatprep.subr.bf16.mxu0 %v28220_v31 }
0x2136   :  { %v28804_v55 = vpop.eup %28803  ;;  %v24398_v49 = vmul.f32 %v34084_v48, %v24376_v36 }
0x2137   :  { %v28806_v9 = vpop.eup %28805  ;;  %v24379_v22 = vmul.f32 %v28804_v55, %v33981_v59  ;;  %v34097_v8 = vadd.f32 %v34091_v18, %v24399_v61 }
0x2138   :  { %v24378_v52 = vmul.f32 %v28806_v9, %v33988_v12  ;;  %v34101_v15 = vadd.f32 %v34091_v18, %v24398_v49  ;;  %28068 = vmatpush3.bf16.msra.mxu0 %v28220_v31 }
0x2139   :  { %v24401_v1 = vmul.f32 %v34084_v48, %v24379_v22 }
0x213a   :  { %v28808_v2 = vpop.eup %28807  ;;  %v24400_v11 = vmul.f32 %v34084_v48, %v24378_v52  ;;  %v24436_v14 = vpack.c.bf16 %v34097_v8, %v34101_v15 }
0x213b   :  { %v28810_v58 = vpop.eup %28809  ;;  %v34108_v53 = vadd.f32 %v34091_v18, %v24401_v1  ;;  %v24381_v59 = vmul.f32 %v28808_v2, %v33995_v50 }
0x213c   :  { %v34112_v5 = vadd.f32 %v34091_v18, %v24400_v11  ;;  %v24380_v12 = vmul.f32 %v28810_v58, %v34001_v54  ;;  %28045 = vmatprep.mubr.msk.bf16.mxu1 %vm135_vm0, %v24436_v14 }
0x213d   :  { %v24403_v51 = vmul.f32 %v34084_v48, %v24381_v59 }
0x213e   :  { %v28812_v30 = vpop.eup %28811  ;;  %v24437_v46 = vpack.c.bf16 %v34108_v53, %v34112_v5  ;;  %v24402_v21 = vmul.f32 %v34084_v48, %v24380_v12 }
0x213f   :  { %v28814_v34 = vpop.eup %28813  ;;  %v24383_v47 = vmul.f32 %v28812_v30, %v34007_v10  ;;  %v34122_v50 = vadd.f32 %v34091_v18, %v24403_v51 }
0x2140   :  { %v24382_v17 = vmul.f32 %v28814_v34, %v34013_v27  ;;  %28046 = vmatmul.mubr.msk.bf16.vlgmr.msra.gmra.mrb[48].mxu1 %vm135_vm0, %v24437_v46  ;;  %v34127_v54 = vadd.f32 %v34091_v18, %v24402_v21 }
0x2141   :  { %v24405_v29 = vmul.f32 %v34084_v48, %v24383_v47 }
0x2142   :  { %v24404_v24 = vmul.f32 %v34084_v48, %v24382_v17  ;;  %v24438_v33 = vpack.c.bf16 %v34122_v50, %v34127_v54 }
0x2143   :  { %v34134_v45 = vadd.f32 %v34091_v18, %v24405_v29 }
0x2144   :  { %v34137_v10 = vadd.f32 %v34091_v18, %v24404_v24  ;;  %28049 = vmatprep.mubr.msk.bf16.mxu1 %vm135_vm0, %v24438_v33 }
0x2146   :  { %v24439_v27 = vpack.c.bf16 %v34134_v45, %v34137_v10 }
0x2148   :  { %28050 = vmatmul.mubr.msk.bf16.gmra.mrb[52].mxu1 %vm135_vm0, %v24439_v27 }
0x21a6   :  { %v24309_v3 = vpop.xlane.xlu1 %24308 }
0x21a7   :  { %v24337_v60 = vmul.f32 0.03125, %v24309_v3  ;;  %v24306_v26 = vpop.xlane.xlu0 %24305 }
0x21a8   :  { %v24336_v7 = vmul.f32 0.03125, %v24306_v26 }
0x21a9   :  { %v24353_v28 = vadd.f32 1e-05, %v24337_v60 }
0x21aa   :  { %v24352_v25 = vadd.f32 1e-05, %v24336_v7 }
0x21ab   :  { %28815 = vrsqrt.f32 %v24353_v28 }
0x21ac   :  { %28817 = vrsqrt.f32 %v24352_v25  ;;  %v24315_v37 = vpop.xlane.xlu1 %24314 }
0x21ad   :  { %v24339_v16 = vmul.f32 0.03125, %v24315_v37  ;;  %v24312_v41 = vpop.xlane.xlu0 %24311 }
0x21ae   :  { %v24338_v63 = vmul.f32 0.03125, %v24312_v41 }
0x21af   :  { %v24355_v62 = vadd.f32 1e-05, %v24339_v16 }
0x21b0   :  { %v24354_v56 = vadd.f32 1e-05, %v24338_v63  ;;  %v24321_v38 = vpop.xlane.xlu1 %24320 }
0x21b1   :  { %28819 = vrsqrt.f32 %v24355_v62  ;;  %v24341_v43 = vmul.f32 0.03125, %v24321_v38  ;;  %v24318_v13 = vpop.xlane.xlu0 %24317 }
0x21b2   :  { %28821 = vrsqrt.f32 %v24354_v56  ;;  %v24340_v0 = vmul.f32 0.03125, %v24318_v13 }
0x21b3   :  { %v24357_v36 = vadd.f32 1e-05, %v24341_v43 }
0x21b4   :  { %v24356_v61 = vadd.f32 1e-05, %v24340_v0  ;;  %v24327_v55 = vpop.xlane.xlu1 %24326 }
0x21b5   :  { %v28816_v49 = vpop.eup %28815  ;;  %28823 = vrsqrt.f32 %v24357_v36  ;;  %v24343_v9 = vmul.f32 0.03125, %v24327_v55  ;;  %v24324_v22 = vpop.xlane.xlu0 %24323 }
0x21b6   :  { %v28818_v52 = vpop.eup %28817  ;;  %v24385_v1 = vmul.f32 %v28816_v49, %v34034_v20  ;;  %28825 = vrsqrt.f32 %v24356_v61  ;;  %v24342_v2 = vmul.f32 0.03125, %v24324_v22 }
0x21b7   :  { %v24384_v11 = vmul.f32 %v28818_v52, %v34037_v35  ;;  %v24359_v14 = vadd.f32 1e-05, %v24343_v9 }
0x21b8   :  { %v24358_v58 = vadd.f32 1e-05, %v24342_v2  ;;  %v24407_v59 = vmul.f32 %v34084_v48, %v24385_v1 }
0x21b9   :  { %28827 = vrsqrt.f32 %v24359_v14  ;;  %v24406_v12 = vmul.f32 %v34084_v48, %v24384_v11 }
0x21ba   :  { %28829 = vrsqrt.f32 %v24358_v58  ;;  %v34160_v51 = vadd.f32 %v34091_v18, %v24407_v59 }
0x21bb   :  { %v28820_v30 = vpop.eup %28819  ;;  %v34163_v46 = vadd.f32 %v34091_v18, %v24406_v12 }
0x21bc   :  { %v28822_v20 = vpop.eup %28821  ;;  %v24387_v21 = vmul.f32 %v28820_v30, %v34046_v23 }
0x21bd   :  { %v24386_v35 = vmul.f32 %v28822_v20, %v34049_v39  ;;  %v24440_v34 = vpack.c.bf16 %v34160_v51, %v34163_v46 }
0x21be   :  { %v24409_v47 = vmul.f32 %v34084_v48, %v24387_v21 }
0x21bf   :  { %v28824_v17 = vpop.eup %28823  ;;  %v24408_v29 = vmul.f32 %v34084_v48, %v24386_v35  ;;  %28053 = vmatprep.mubr.msk.bf16.mxu1 %vm135_vm0, %v24440_v34 }
0x21c0   :  { %v28826_v24 = vpop.eup %28825  ;;  %v34173_v33 = vadd.f32 %v34091_v18, %v24409_v47  ;;  %v24389_v27 = vmul.f32 %v28824_v17, %v34056_v6 }
0x21c1   :  { %v34177_v23 = vadd.f32 %v34091_v18, %v24408_v29  ;;  %v24388_v39 = vmul.f32 %v28826_v24, %v34060_v42 }
0x21c2   :  { %v24411_v44 = vmul.f32 %v34084_v48, %v24389_v27 }
0x21c3   :  { %v28828_v4 = vpop.eup %28827  ;;  %v24441_v57 = vpack.c.bf16 %v34173_v33, %v34177_v23  ;;  %v24410_v31 = vmul.f32 %v34084_v48, %v24388_v39 }
0x21c4   :  { %v28830_v3 = vpop.eup %28829  ;;  %v24391_v60 = vmul.f32 %v28828_v4, %v34068_v19  ;;  %v34186_v26 = vadd.f32 %v34091_v18, %v24411_v44 }
0x21c5   :  { %v24390_v6 = vmul.f32 %v28830_v3, %v34072_v32  ;;  %28054 = vmatmul.mubr.msk.bf16.gmra.mrb[56].mxu1 %vm135_vm0, %v24441_v57  ;;  %v34191_v42 = vadd.f32 %v34091_v18, %v24410_v31 }
0x21c6   :  { %v24413_v7 = vmul.f32 %v34084_v48, %v24391_v60 }
0x21c7   :  { %v24412_v28 = vmul.f32 %v34084_v48, %v24390_v6  ;;  %v24442_v25 = vpack.c.bf16 %v34186_v26, %v34191_v42  ;;  %v25724_v48 = vld [vmem:[%s34534_s20] ss:$0 sm:$0xff] }
0x21c8   :  { %v34198_v37 = vadd.f32 %v34091_v18, %v24413_v7 }
0x21c9   :  { %v34201_v19 = vadd.f32 %v34091_v18, %v24412_v28  ;;  %28057 = vmatprep.mubr.msk.bf16.mxu1 %vm135_vm0, %v24442_v25 }
0x21cb   :  { %v24443_v32 = vpack.c.bf16 %v34198_v37, %v34201_v19 }
0x21cd   :  { %28058 = vmatmul.mubr.msk.bf16.gmra.mrb[60].mxu1 %vm135_vm0, %v24443_v32 }
0x21ce   :  { %28089 = vmatprep.mubr.msk.bf16.mxu1 %vm28904_vm1, %v34655_v40 }
0x2213   :  { %v28047_v16 = vpop.f32.mrb[48].mxu1 }
0x2214   :  { %v24534_v41 = vadd.f32 %v28047_v16, %v25724_v48  ;;  %v24525_v63 = vpop.f32.mrb[49].mxu1 }
0x2215   :  { %v24526_v62 = vadd.f32 %v25724_v48, %v24525_v63  ;;  %v28048_v18 = vpop.f32.mrb[50].mxu1 }
0x2216   :  { %v24537_v56 = vadd.f32 %v28048_v18, %v25724_v48  ;;  %v24528_v38 = vpop.f32.mrb[51].mxu1  ;;  %v24590_v13 = vmax.f32 %v24534_v41, 0.0 }
0x2217   :  { %v24529_v43 = vadd.f32 %v25724_v48, %v24528_v38  ;;  %v24588_v36 = vmax.f32 %v24526_v62, 0.0 }
0x2218   :  { %v24591_v0 = vmax.f32 %v24537_v56, 0.0 }
0x2219   :  { %v24589_v61 = vmax.f32 %v24529_v43, 0.0 }
0x221a   :  { %v24605_v55 = vpack.c.bf16 %v24591_v0, %v24590_v13 }
0x221b   :  { %v24604_v49 = vpack.c.bf16 %v24589_v61, %v24588_v36  ;;  %v28051_v9 = vpop.f32.mrb[52].mxu1  ;;  %v34223_v36 = vld [vmem:[%s34536_s22] ss:$0 sm:$0xff] }
0x221c   :  { %v24550_v22 = vadd.f32 %v28051_v9, %v25724_v48  ;;  %v24541_v52 = vpop.f32.mrb[53].mxu1 }
0x221d   :  { %v24542_v1 = vadd.f32 %v25724_v48, %v24541_v52  ;;  %v28052_v2 = vpop.f32.mrb[54].mxu1  ;;  %28069 = vmatprep.mubr.msk.bf16.mxu0 %vm12183_vm3, %v24604_v49 }
0x221e   :  { %v24553_v11 = vadd.f32 %v28052_v2, %v25724_v48  ;;  %v24544_v14 = vpop.f32.mrb[55].mxu1  ;;  %28070 = vmatmul.mubr.msk.bf16.vlgmr.msra.gmra.mrb[56].mxu0 %vm12183_vm3, %v24605_v55  ;;  %v24594_v59 = vmax.f32 %v24550_v22, 0.0 }
0x221f   :  { %v24545_v58 = vadd.f32 %v25724_v48, %v24544_v14  ;;  %v24592_v30 = vmax.f32 %v24542_v1, 0.0 }
0x2220   :  { %v24595_v12 = vmax.f32 %v24553_v11, 0.0 }
0x2221   :  { %v24593_v20 = vmax.f32 %v24545_v58, 0.0 }
0x2222   :  { %v24607_v21 = vpack.c.bf16 %v24595_v12, %v24594_v59 }
0x2223   :  { %v24606_v35 = vpack.c.bf16 %v24593_v20, %v24592_v30 }
0x2225   :  { %28073 = vmatprep.mubr.msk.bf16.mxu0 %vm12183_vm3, %v24606_v35 }
0x2226   :  { %28074 = vmatmul.mubr.msk.bf16.gmra.mrb[60].mxu0 %vm12183_vm3, %v24607_v21 }
0x2298   :  { %v28055_v34 = vpop.f32.mrb[56].mxu1 }
0x2299   :  { %v24566_v47 = vadd.f32 %v28055_v34, %v25724_v48  ;;  %v24557_v17 = vpop.f32.mrb[57].mxu1 }
0x229a   :  { %v24558_v29 = vadd.f32 %v25724_v48, %v24557_v17  ;;  %v28056_v24 = vpop.f32.mrb[58].mxu1 }
0x229b   :  { %v24569_v27 = vadd.f32 %v28056_v24, %v25724_v48  ;;  %v24560_v39 = vpop.f32.mrb[59].mxu1  ;;  %v24598_v4 = vmax.f32 %v24566_v47, 0.0 }
0x229c   :  { %v24561_v44 = vadd.f32 %v25724_v48, %v24560_v39  ;;  %v24596_v31 = vmax.f32 %v24558_v29, 0.0 }
0x229d   :  { %v24599_v57 = vmax.f32 %v24569_v27, 0.0 }
0x229e   :  { %v24597_v3 = vmax.f32 %v24561_v44, 0.0 }
0x229f   :  { %v24609_v60 = vpack.c.bf16 %v24599_v57, %v24598_v4 }
0x22a0   :  { %v24608_v6 = vpack.c.bf16 %v24597_v3, %v24596_v31  ;;  %v28059_v7 = vpop.f32.mrb[60].mxu1 }
0x22a1   :  { %v24582_v28 = vadd.f32 %v28059_v7, %v25724_v48  ;;  %v24573_v25 = vpop.f32.mrb[61].mxu1 }
0x22a2   :  { %v24574_v32 = vadd.f32 %v25724_v48, %v24573_v25  ;;  %v28060_v16 = vpop.f32.mrb[62].mxu1  ;;  %28077 = vmatprep.mubr.msk.bf16.mxu0 %vm12183_vm3, %v24608_v6 }
0x22a3   :  { %v24585_v41 = vadd.f32 %v28060_v16, %v25724_v48  ;;  %v24576_v63 = vpop.f32.mrb[63].mxu1  ;;  %28078 = vmatmul.mubr.msk.bf16.gmra.mrb[64].mxu0 %vm12183_vm3, %v24609_v60  ;;  %v24602_v18 = vmax.f32 %v24582_v28, 0.0 }
0x22a4   :  { %v24577_v62 = vadd.f32 %v25724_v48, %v24576_v63  ;;  %v24600_v38 = vmax.f32 %v24574_v32, 0.0 }
0x22a5   :  { %v24603_v56 = vmax.f32 %v24585_v41, 0.0 }
0x22a6   :  { %v24601_v43 = vmax.f32 %v24577_v62, 0.0 }
0x22a7   :  { %v24611_v13 = vpack.c.bf16 %v24603_v56, %v24602_v18 }
0x22a8   :  { %v24610_v0 = vpack.c.bf16 %v24601_v43, %v24600_v38 }
0x22aa   :  { %28081 = vmatprep.mubr.msk.bf16.mxu0 %vm12183_vm3, %v24610_v0 }
0x22ab   :  { %28082 = vmatmul.mubr.msk.bf16.gmra.mrb[68].mxu0 %vm12183_vm3, %v24611_v13 }
0x22f1   :  { %v28071_v61 = vpop.f32.mrb[56].mxu0 }
0x22f2   :  { %v24709_v55 = vpop.f32.mrb[57].mxu0  ;;  %v24718_v49 = vadd.f32 %v28071_v61, %v34223_v36 }
0x22f3   :  { %v24710_v48 = vadd.f32 %v34223_v36, %v24709_v55  ;;  %v28072_v9 = vpop.f32.mrb[58].mxu0 }
0x22f4   :  { %v24712_v22 = vpop.f32.mrb[59].mxu0  ;;  %v24721_v1 = vadd.f32 %v28072_v9, %v34223_v36  ;;  %v34233_v11 = vadd.f32 %v24718_v49, %v34112_v5 }
0x22f5   :  { %v34228_v52 = vadd.f32 %v24710_v48, %v34101_v15  ;;  %v24713_v2 = vadd.f32 %v34223_v36, %v24712_v22 }
0x22f6   :  { %v34241_v59 = vadd.f32 %v24721_v1, %v34108_v53 }
0x22f7   :  { %v34236_v14 = vadd.f32 %v24713_v2, %v34097_v8  ;;  %v24790_v58 = vsel %vm135_vm0, %v34228_v52, 0.0  ;;  %v24796_v8 = vsel %vm135_vm0, %v34233_v11, 0.0 }
0x22f8   :  { %24791 = vadd.xlane.f32.xlu0 %v24790_v58  ;;  %v24799_v17 = vsel %vm135_vm0, %v34241_v59, 0.0 }
0x22f9   :  { %v28075_v12 = vpop.f32.mrb[60].mxu0  ;;  %v24793_v15 = vsel %vm135_vm0, %v34236_v14, 0.0 }
0x22fa   :  { %24794 = vadd.xlane.f32.xlu1 %v24793_v15  ;;  %v24725_v30 = vpop.f32.mrb[61].mxu0  ;;  %v24734_v20 = vadd.f32 %v28075_v12, %v34223_v36 }
0x22fb   :  { %v24726_v5 = vadd.f32 %v34223_v36, %v24725_v30  ;;  %v28076_v21 = vpop.f32.mrb[62].mxu0 }
0x22fc   :  { %24797 = vadd.xlane.f32.xlu0 %v24796_v8  ;;  %v24728_v35 = vpop.f32.mrb[63].mxu0  ;;  %v24737_v53 = vadd.f32 %v28076_v21, %v34223_v36  ;;  %v34257_v29 = vadd.f32 %v24734_v20, %v34137_v10 }
0x22fd   :  { %v34250_v34 = vadd.f32 %v24726_v5, %v34127_v54  ;;  %v24729_v47 = vadd.f32 %v34223_v36, %v24728_v35 }
0x22fe   :  { %24800 = vadd.xlane.f32.xlu1 %v24799_v17  ;;  %v34265_v54 = vadd.f32 %v24737_v53, %v34134_v45  ;;  %v24808_v44 = vsel %vm135_vm0, %v34257_v29, 0.0 }
0x22ff   :  { %v34260_v24 = vadd.f32 %v24729_v47, %v34122_v50  ;;  %v24802_v27 = vsel %vm135_vm0, %v34250_v34, 0.0 }
0x2300   :  { %24803 = vadd.xlane.f32.xlu0 %v24802_v27  ;;  %v24811_v10 = vsel %vm135_vm0, %v34265_v54, 0.0 }
0x2301   :  { %v24805_v39 = vsel %vm135_vm0, %v34260_v24, 0.0 }
0x2302   :  { %24806 = vadd.xlane.f32.xlu1 %v24805_v39 }
0x2304   :  { %24809 = vadd.xlane.f32.xlu0 %v24808_v44 }
0x2306   :  { %24812 = vadd.xlane.f32.xlu1 %v24811_v10 }
0x2376   :  { %v28079_v50 = vpop.f32.mrb[64].mxu0 }
0x2377   :  { %v24741_v4 = vpop.f32.mrb[65].mxu0  ;;  %v24750_v57 = vadd.f32 %v28079_v50, %v34223_v36 }
0x2378   :  { %v24742_v31 = vadd.f32 %v34223_v36, %v24741_v4  ;;  %v28080_v45 = vpop.f32.mrb[66].mxu0 }
0x2379   :  { %v24744_v3 = vpop.f32.mrb[67].mxu0  ;;  %v24753_v6 = vadd.f32 %v28080_v45, %v34223_v36  ;;  %v34281_v28 = vadd.f32 %v24750_v57, %v34177_v23 }
0x237a   :  { %v34276_v60 = vadd.f32 %v24742_v31, %v34163_v46  ;;  %v24745_v7 = vadd.f32 %v34223_v36, %v24744_v3 }
0x237b   :  { %v34289_v16 = vadd.f32 %v24753_v6, %v34173_v33 }
0x237c   :  { %v34284_v25 = vadd.f32 %v24745_v7, %v34160_v51  ;;  %v24814_v32 = vsel %vm135_vm0, %v34276_v60, 0.0  ;;  %v24820_v51 = vsel %vm135_vm0, %v34281_v28, 0.0 }
0x237d   :  { %24815 = vadd.xlane.f32.xlu0 %v24814_v32  ;;  %v24823_v13 = vsel %vm135_vm0, %v34289_v16, 0.0 }
0x237e   :  { %v28083_v41 = vpop.f32.mrb[68].mxu0  ;;  %v24817_v46 = vsel %vm135_vm0, %v34284_v25, 0.0 }
0x237f   :  { %24818 = vadd.xlane.f32.xlu1 %v24817_v46  ;;  %v24757_v63 = vpop.f32.mrb[69].mxu0  ;;  %v24766_v62 = vadd.f32 %v28083_v41, %v34223_v36 }
0x2380   :  { %v24758_v23 = vadd.f32 %v34223_v36, %v24757_v63  ;;  %v28084_v18 = vpop.f32.mrb[70].mxu0 }
0x2381   :  { %24821 = vadd.xlane.f32.xlu0 %v24820_v51  ;;  %v24760_v56 = vpop.f32.mrb[71].mxu0  ;;  %v24769_v33 = vadd.f32 %v28084_v18, %v34223_v36  ;;  %v34305_v0 = vadd.f32 %v24766_v62, %v34201_v19 }
0x2382   :  { %v34298_v38 = vadd.f32 %v24758_v23, %v34191_v42  ;;  %v24761_v43 = vadd.f32 %v34223_v36, %v24760_v56 }
0x2383   :  { %24824 = vadd.xlane.f32.xlu1 %v24823_v13  ;;  %v34313_v49 = vadd.f32 %v24769_v33, %v34198_v37 }
0x2384   :  { %v34308_v61 = vadd.f32 %v24761_v43, %v34186_v26  ;;  %v24826_v55 = vsel %vm135_vm0, %v34298_v38, 0.0  ;;  %v24832_v26 = vsel %vm135_vm0, %v34305_v0, 0.0 }
0x2385   :  { %24827 = vadd.xlane.f32.xlu0 %v24826_v55  ;;  %v24792_v42 = vpop.xlane.xlu0 %24791  ;;  %v24835_v58 = vsel %vm135_vm0, %v34313_v49, 0.0 }
0x2386   :  { %v24838_v48 = vmul.f32 0.03125, %v24792_v42  ;;  %v24829_v36 = vsel %vm135_vm0, %v34308_v61, 0.0 }
0x2387   :  { %v24795_v9 = vpop.xlane.xlu1 %24794  ;;  %24830 = vadd.xlane.f32.xlu1 %v24829_v36 }
0x2388   :  { %v34318_v19 = vsub.f32 %v34228_v52, %v24838_v48  ;;  %v24839_v22 = vmul.f32 0.03125, %v24795_v9 }
0x2389   :  { %24833 = vadd.xlane.f32.xlu0 %v24832_v26  ;;  %v24798_v1 = vpop.xlane.xlu0 %24797 }
0x238a   :  { %v34323_v2 = vsub.f32 %v34236_v14, %v24839_v22  ;;  %v24840_v37 = vmul.f32 0.03125, %v24798_v1  ;;  %v24870_v12 = vmul.f32 %v34318_v19, %v34318_v19 }
0x238b   :  { %v24801_v15 = vpop.xlane.xlu1 %24800  ;;  %24836 = vadd.xlane.f32.xlu1 %v24835_v58 }
0x238c   :  { %v34330_v52 = vsub.f32 %v34233_v11, %v24840_v37  ;;  %v24841_v30 = vmul.f32 0.03125, %v24801_v15  ;;  %v24886_v20 = vsel %vm135_vm0, %v24870_v12, 0.0  ;;  %v24871_v5 = vmul.f32 %v34323_v2, %v34323_v2 }
0x238d   :  { %24887 = vadd.xlane.f32.xlu0 %v24886_v20  ;;  %v24804_v14 = vpop.xlane.xlu0 %24803 }
0x238e   :  { %v34336_v21 = vsub.f32 %v34241_v59, %v24841_v30  ;;  %v24842_v8 = vmul.f32 0.03125, %v24804_v14  ;;  %v24889_v35 = vsel %vm135_vm0, %v24871_v5, 0.0  ;;  %v24872_v53 = vmul.f32 %v34330_v52, %v34330_v52 }
0x238f   :  { %v24807_v47 = vpop.xlane.xlu1 %24806  ;;  %24890 = vadd.xlane.f32.xlu1 %v24889_v35 }
0x2390   :  { %v34342_v11 = vsub.f32 %v34250_v34, %v24842_v8  ;;  %v24843_v17 = vmul.f32 0.03125, %v24807_v47  ;;  %v24892_v27 = vsel %vm135_vm0, %v24872_v53, 0.0  ;;  %v24873_v39 = vmul.f32 %v34336_v21, %v34336_v21 }
0x2391   :  { %24893 = vadd.xlane.f32.xlu0 %v24892_v27  ;;  %v24810_v59 = vpop.xlane.xlu0 %24809 }
0x2392   :  { %v34348_v44 = vsub.f32 %v34260_v24, %v24843_v17  ;;  %v24844_v10 = vmul.f32 0.03125, %v24810_v59  ;;  %v24895_v50 = vsel %vm135_vm0, %v24873_v39, 0.0  ;;  %v24874_v4 = vmul.f32 %v34342_v11, %v34342_v11  ;;  %v28222_v39 = vld [vmem:[%s34539_s25 + $0x8] sm:$0xff]  }
0x2393   :  { %v24813_v57 = vpop.xlane.xlu1 %24812  ;;  %24896 = vadd.xlane.f32.xlu1 %v24895_v50 }
0x2394   :  { %v34354_v34 = vsub.f32 %v34257_v29, %v24844_v10  ;;  %v24845_v31 = vmul.f32 0.03125, %v24813_v57  ;;  %v24898_v45 = vsel %vm135_vm0, %v24874_v4, 0.0  ;;  %v24875_v3 = vmul.f32 %v34348_v44, %v34348_v44 }
0x2395   :  { %24899 = vadd.xlane.f32.xlu0 %v24898_v45 }
0x2396   :  { %v34360_v24 = vsub.f32 %v34265_v54, %v24845_v31  ;;  %v24901_v6 = vsel %vm135_vm0, %v24875_v3, 0.0  ;;  %v24876_v7 = vmul.f32 %v34354_v34, %v34354_v34 }
0x2397   :  { %24902 = vadd.xlane.f32.xlu1 %v24901_v6 }
0x2398   :  { %v24904_v32 = vsel %vm135_vm0, %v24876_v7, 0.0  ;;  %v24877_v29 = vmul.f32 %v34360_v24, %v34360_v24 }
0x2399   :  { %24905 = vadd.xlane.f32.xlu0 %v24904_v32 }
0x239a   :  { %v24907_v41 = vsel %vm135_vm0, %v24877_v29, 0.0 }
0x239b   :  { %24908 = vadd.xlane.f32.xlu1 %v24907_v41 }
0x240a   :  { %v24816_v46 = vpop.xlane.xlu0 %24815 }
0x240b   :  { %v24846_v63 = vmul.f32 0.03125, %v24816_v46 }
0x240c   :  { %v24819_v62 = vpop.xlane.xlu1 %24818 }
0x240d   :  { %v34370_v54 = vsub.f32 %v34276_v60, %v24846_v63  ;;  %v24847_v23 = vmul.f32 0.03125, %v24819_v62 }
0x240e   :  { %v24822_v18 = vpop.xlane.xlu0 %24821 }
0x240f   :  { %v34373_v51 = vsub.f32 %v34284_v25, %v24847_v23  ;;  %v24848_v56 = vmul.f32 0.03125, %v24822_v18  ;;  %v24878_v33 = vmul.f32 %v34370_v54, %v34370_v54 }
0x2410   :  { %v24825_v43 = vpop.xlane.xlu1 %24824 }
0x2411   :  { %v34378_v13 = vsub.f32 %v34281_v28, %v24848_v56  ;;  %v24849_v55 = vmul.f32 0.03125, %v24825_v43  ;;  %v24910_v42 = vsel %vm135_vm0, %v24878_v33, 0.0  ;;  %v24879_v60 = vmul.f32 %v34373_v51, %v34373_v51 }
0x2412   :  { %24911 = vadd.xlane.f32.xlu0 %v24910_v42  ;;  %v24828_v48 = vpop.xlane.xlu0 %24827 }
0x2413   :  { %v34384_v36 = vsub.f32 %v34289_v16, %v24849_v55  ;;  %v24850_v25 = vmul.f32 0.03125, %v24828_v48  ;;  %v24913_v9 = vsel %vm135_vm0, %v24879_v60, 0.0  ;;  %v24880_v22 = vmul.f32 %v34378_v13, %v34378_v13 }
0x2414   :  { %24914 = vadd.xlane.f32.xlu1 %v24913_v9  ;;  %v24831_v28 = vpop.xlane.xlu1 %24830 }
0x2415   :  { %v34390_v26 = vsub.f32 %v34298_v38, %v24850_v25  ;;  %v24851_v1 = vmul.f32 0.03125, %v24831_v28  ;;  %v24916_v37 = vsel %vm135_vm0, %v24880_v22, 0.0  ;;  %v24881_v58 = vmul.f32 %v34384_v36, %v34384_v36  ;;  %v34429_v25 = vld [vmem:[%s34537_s23] ss:$0 sm:$0xff] }
0x2416   :  { %24917 = vadd.xlane.f32.xlu0 %v24916_v37  ;;  %v24834_v16 = vpop.xlane.xlu0 %24833 }
0x2417   :  { %v34396_v12 = vsub.f32 %v34308_v61, %v24851_v1  ;;  %v24852_v15 = vmul.f32 0.03125, %v24834_v16  ;;  %v24919_v30 = vsel %vm135_vm0, %v24881_v58, 0.0  ;;  %v24882_v20 = vmul.f32 %v34390_v26, %v34390_v26 }
0x2418   :  { %24920 = vadd.xlane.f32.xlu1 %v24919_v30  ;;  %v24837_v38 = vpop.xlane.xlu1 %24836 }
0x2419   :  { %v34402_v5 = vsub.f32 %v34305_v0, %v24852_v15  ;;  %v24853_v14 = vmul.f32 0.03125, %v24837_v38  ;;  %v24922_v8 = vsel %vm135_vm0, %v24882_v20, 0.0  ;;  %v24883_v35 = vmul.f32 %v34396_v12, %v34396_v12 }
0x241a   :  { %24923 = vadd.xlane.f32.xlu0 %v24922_v8  ;;  %v24888_v59 = vpop.xlane.xlu0 %24887 }
0x241b   :  { %v34408_v61 = vsub.f32 %v34313_v49, %v24853_v14  ;;  %v24925_v53 = vsel %vm135_vm0, %v24883_v35, 0.0  ;;  %v24884_v47 = vmul.f32 %v34402_v5, %v34402_v5  ;;  %v28221_v49 = vld [vmem:[%s34539_s25] sm:$0xff]   ;;  %v24934_v57 = vmul.f32 0.03125, %v24888_v59 }
0x241c   :  { %24926 = vadd.xlane.f32.xlu1 %v24925_v53  ;;  %28086 = vmatpush3.bf16.msra.mxu1 %v28221_v49  ;;  %v24891_v10 = vpop.xlane.xlu1 %24890 }
0x241d   :  { %v24928_v17 = vsel %vm135_vm0, %v24884_v47, 0.0  ;;  %v24885_v0 = vmul.f32 %v34408_v61, %v34408_v61  ;;  %28087 = vmatprep.subr.bf16.mxu1 %v34655_v40  ;;  %v24935_v50 = vmul.f32 0.03125, %v24891_v10  ;;  %v24950_v6 = vadd.f32 1e-05, %v24934_v57 }
0x241e   :  { %24929 = vadd.xlane.f32.xlu0 %v24928_v17  ;;  %v24894_v4 = vpop.xlane.xlu0 %24893 }
0x241f   :  { %v24931_v27 = vsel %vm135_vm0, %v24885_v0, 0.0  ;;  %v24951_v31 = vadd.f32 1e-05, %v24935_v50  ;;  %v24936_v45 = vmul.f32 0.03125, %v24894_v4 }
0x2420   :  { %24932 = vadd.xlane.f32.xlu1 %v24931_v27  ;;  %28088 = vmatpush3.bf16.msra.mxu1 %v28222_v39  ;;  %v24897_v3 = vpop.xlane.xlu1 %24896 }
0x2421   :  { %28831 = vrsqrt.f32 %v24951_v31  ;;  %v24952_v7 = vadd.f32 1e-05, %v24936_v45  ;;  %v24937_v32 = vmul.f32 0.03125, %v24897_v3 }
0x2422   :  { %v24900_v29 = vpop.xlane.xlu0 %24899  ;;  %28833 = vrsqrt.f32 %v24950_v6 }
0x2423   :  { %28835 = vrsqrt.f32 %v24952_v7  ;;  %v24953_v40 = vadd.f32 1e-05, %v24937_v32  ;;  %v24938_v41 = vmul.f32 0.03125, %v24900_v29 }
0x2424   :  { %v24903_v46 = vpop.xlane.xlu1 %24902 }
0x2425   :  { %28837 = vrsqrt.f32 %v24953_v40  ;;  %v24954_v63 = vadd.f32 1e-05, %v24938_v41  ;;  %v24939_v62 = vmul.f32 0.03125, %v24903_v46 }
0x2426   :  { %v24906_v23 = vpop.xlane.xlu0 %24905 }
0x2427   :  { %28839 = vrsqrt.f32 %v24954_v63  ;;  %v24955_v33 = vadd.f32 1e-05, %v24939_v62  ;;  %v24940_v43 = vmul.f32 0.03125, %v24906_v23 }
0x2428   :  { %v24909_v42 = vpop.xlane.xlu1 %24908 }
0x2429   :  { %28841 = vrsqrt.f32 %v24955_v33  ;;  %v24956_v9 = vadd.f32 1e-05, %v24940_v43  ;;  %v24941_v22 = vmul.f32 0.03125, %v24909_v42 }
0x242b   :  { %v28832_v18 = vpop.eup %28831  ;;  %28843 = vrsqrt.f32 %v24956_v9 }
0x242c   :  { %v28834_v56 = vpop.eup %28833  ;;  %v24983_v55 = vmul.f32 %v28832_v18, %v34323_v2  ;;  %v34437_v2 = vld [vmem:[%s34538_s24] ss:$0 sm:$0xff] }
0x242d   :  { %v28836_v60 = vpop.eup %28835  ;;  %v24982_v48 = vmul.f32 %v28834_v56, %v34318_v19  ;;  %v24957_v19 = vadd.f32 1e-05, %v24941_v22 }
0x242e   :  { %v25005_v28 = vmul.f32 %v34429_v25, %v24983_v55  ;;  %v24984_v1 = vmul.f32 %v28836_v60, %v34330_v52 }
0x242f   :  { %v28838_v37 = vpop.eup %28837  ;;  %v25004_v58 = vmul.f32 %v34429_v25, %v24982_v48  ;;  %28845 = vrsqrt.f32 %v24957_v19 }
0x2430   :  { %v25027_v16 = vadd.f32 %v34437_v2, %v25005_v28  ;;  %v25006_v15 = vmul.f32 %v34429_v25, %v24984_v1  ;;  %v24985_v30 = vmul.f32 %v28838_v37, %v34336_v21 }
0x2431   :  { %v28840_v20 = vpop.eup %28839  ;;  %v25026_v38 = vadd.f32 %v34437_v2, %v25004_v58 }
0x2432   :  { %v25043_v52 = vsel %vm135_vm0, %v25027_v16, 0.0  ;;  %v25028_v14 = vadd.f32 %v34437_v2, %v25006_v15  ;;  %v25007_v8 = vmul.f32 %v34429_v25, %v24985_v30  ;;  %v24986_v35 = vmul.f32 %v28840_v20, %v34342_v11 }
0x2433   :  { %v28842_v53 = vpop.eup %28841  ;;  %v25042_v47 = vsel %vm135_vm0, %v25026_v38, 0.0 }
0x2434   :  { %v25044_v17 = vadd.f32 %v25043_v52, %v25042_v47  ;;  %v25045_v0 = vsel %vm135_vm0, %v25028_v14, 0.0  ;;  %v25029_v21 = vadd.f32 %v34437_v2, %v25007_v8  ;;  %v25008_v27 = vmul.f32 %v34429_v25, %v24986_v35 }
0x2435   :  { %v24987_v49 = vmul.f32 %v28842_v53, %v34348_v44  ;;  %v28844_v39 = vpop.eup %28843 }
0x2436   :  { %v25046_v10 = vadd.f32 %v25045_v0, %v25044_v17  ;;  %v25047_v4 = vsel %vm135_vm0, %v25029_v21, 0.0  ;;  %v25030_v11 = vadd.f32 %v34437_v2, %v25008_v27  ;;  %v24988_v31 = vmul.f32 %v28844_v39, %v34354_v34 }
0x2437   :  { %v25009_v57 = vmul.f32 %v34429_v25, %v24987_v49 }
0x2438   :  { %v25048_v29 = vadd.f32 %v25047_v4, %v25046_v10  ;;  %v25049_v41 = vsel %vm135_vm0, %v25030_v11, 0.0  ;;  %v25010_v63 = vmul.f32 %v34429_v25, %v24988_v31 }
0x2439   :  { %v28846_v3 = vpop.eup %28845  ;;  %v25031_v46 = vadd.f32 %v34437_v2, %v25009_v57 }
0x243a   :  { %v24989_v62 = vmul.f32 %v28846_v3, %v34360_v24  ;;  %v25050_v33 = vadd.f32 %v25049_v41, %v25048_v29  ;;  %v25032_v60 = vadd.f32 %v34437_v2, %v25010_v63 }
0x243b   :  { %v25051_v42 = vsel %vm135_vm0, %v25031_v46, 0.0 }
0x243c   :  { %v25011_v48 = vmul.f32 %v34429_v25, %v24989_v62  ;;  %v25052_v1 = vadd.f32 %v25051_v42, %v25050_v33  ;;  %v25053_v19 = vsel %vm135_vm0, %v25032_v60, 0.0 }
0x243e   :  { %v25033_v16 = vadd.f32 %v34437_v2, %v25011_v48  ;;  %v25054_v8 = vadd.f32 %v25053_v19, %v25052_v1 }
0x2440   :  { %v25055_v53 = vsel %vm135_vm0, %v25033_v16, 0.0 }
0x249f   :  { %v24912_v59 = vpop.xlane.xlu0 %24911 }
0x24a0   :  { %v24942_v50 = vmul.f32 0.03125, %v24912_v59 }
0x24a1   :  { %v24915_v45 = vpop.xlane.xlu1 %24914 }
0x24a2   :  { %v24958_v6 = vadd.f32 1e-05, %v24942_v50  ;;  %v24943_v7 = vmul.f32 0.03125, %v24915_v45 }
0x24a3   :  { %v24918_v32 = vpop.xlane.xlu0 %24917 }
0x24a4   :  { %28847 = vrsqrt.f32 %v24958_v6  ;;  %v24959_v44 = vadd.f32 1e-05, %v24943_v7  ;;  %v24944_v40 = vmul.f32 0.03125, %v24918_v32 }
0x24a5   :  { %v24921_v23 = vpop.xlane.xlu1 %24920 }
0x24a6   :  { %28849 = vrsqrt.f32 %v24959_v44  ;;  %v24960_v34 = vadd.f32 1e-05, %v24944_v40  ;;  %v24945_v18 = vmul.f32 0.03125, %v24921_v23 }
0x24a7   :  { %v24924_v56 = vpop.xlane.xlu0 %24923 }
0x24a8   :  { %28851 = vrsqrt.f32 %v24960_v34  ;;  %v24961_v43 = vadd.f32 1e-05, %v24945_v18  ;;  %v24946_v55 = vmul.f32 0.03125, %v24924_v56 }
0x24a9   :  { %v24927_v9 = vpop.xlane.xlu1 %24926 }
0x24aa   :  { %28853 = vrsqrt.f32 %v24961_v43  ;;  %v24962_v22 = vadd.f32 1e-05, %v24946_v55  ;;  %v24947_v28 = vmul.f32 0.03125, %v24927_v9 }
0x24ab   :  { %v24930_v24 = vpop.xlane.xlu0 %24929 }
0x24ac   :  { %28855 = vrsqrt.f32 %v24962_v22  ;;  %v24963_v37 = vadd.f32 1e-05, %v24947_v28  ;;  %v24948_v58 = vmul.f32 0.03125, %v24930_v24 }
0x24ad   :  { %v24933_v15 = vpop.xlane.xlu1 %24932 }
0x24ae   :  { %v28848_v30 = vpop.eup %28847  ;;  %28857 = vrsqrt.f32 %v24963_v37  ;;  %v24964_v20 = vadd.f32 1e-05, %v24948_v58  ;;  %v24949_v38 = vmul.f32 0.03125, %v24933_v15 }
0x24af   :  { %v24990_v52 = vmul.f32 %v28848_v30, %v34370_v54  ;;  %v25056_v54 = vadd.f32 %v25055_v53, %v25054_v8 }
0x24b0   :  { %v28850_v14 = vpop.eup %28849  ;;  %28859 = vrsqrt.f32 %v24964_v20  ;;  %v24965_v35 = vadd.f32 1e-05, %v24949_v38 }
0x24b1   :  { %v25012_v47 = vmul.f32 %v34429_v25, %v24990_v52  ;;  %v24991_v17 = vmul.f32 %v28850_v14, %v34373_v51 }
0x24b2   :  { %v28852_v0 = vpop.eup %28851  ;;  %28861 = vrsqrt.f32 %v24965_v35 }
0x24b3   :  { %v25034_v21 = vadd.f32 %v34437_v2, %v25012_v47  ;;  %v25013_v27 = vmul.f32 %v34429_v25, %v24991_v17  ;;  %v24992_v49 = vmul.f32 %v28852_v0, %v34378_v13 }
0x24b4   :  { %v28854_v39 = vpop.eup %28853 }
0x24b5   :  { %v25057_v59 = vsel %vm135_vm0, %v25034_v21, 0.0  ;;  %v25035_v10 = vadd.f32 %v34437_v2, %v25013_v27  ;;  %v25014_v50 = vmul.f32 %v34429_v25, %v24992_v49  ;;  %v24993_v4 = vmul.f32 %v28854_v39, %v34384_v36 }
0x24b6   :  { %v28856_v11 = vpop.eup %28855  ;;  %v25058_v51 = vadd.f32 %v25057_v59, %v25056_v54 }
0x24b7   :  { %v25059_v57 = vsel %vm135_vm0, %v25035_v10, 0.0  ;;  %v25036_v31 = vadd.f32 %v34437_v2, %v25014_v50  ;;  %v25015_v45 = vmul.f32 %v34429_v25, %v24993_v4  ;;  %v24994_v13 = vmul.f32 %v28856_v11, %v34390_v26 }
0x24b8   :  { %v28858_v3 = vpop.eup %28857  ;;  %v25060_v6 = vadd.f32 %v25059_v57, %v25058_v51 }
0x24b9   :  { %v25061_v7 = vsel %vm135_vm0, %v25036_v31, 0.0  ;;  %v25037_v32 = vadd.f32 %v34437_v2, %v25015_v45  ;;  %v25016_v29 = vmul.f32 %v34429_v25, %v24994_v13  ;;  %v24995_v36 = vmul.f32 %v28858_v3, %v34396_v12 }
0x24ba   :  { %v28860_v44 = vpop.eup %28859  ;;  %v25062_v40 = vadd.f32 %v25061_v7, %v25060_v6 }
0x24bb   :  { %v25063_v41 = vsel %vm135_vm0, %v25037_v32, 0.0  ;;  %v25038_v46 = vadd.f32 %v34437_v2, %v25016_v29  ;;  %v25017_v63 = vmul.f32 %v34429_v25, %v24995_v36  ;;  %v24996_v26 = vmul.f32 %v28860_v44, %v34402_v5 }
0x24bc   :  { %v28862_v62 = vpop.eup %28861  ;;  %v25064_v23 = vadd.f32 %v25063_v41, %v25062_v40 }
0x24bd   :  { %v25065_v34 = vsel %vm135_vm0, %v25038_v46, 0.0  ;;  %v25039_v18 = vadd.f32 %v34437_v2, %v25017_v63  ;;  %v25018_v56 = vmul.f32 %v34429_v25, %v24996_v26  ;;  %v24997_v12 = vmul.f32 %v28862_v62, %v34408_v61  ;;  %v25750_v61 = vld [vmem:[%s34540_s26] ss:$0 sm:$0xff] }
0x24be   :  { %v25066_v33 = vadd.f32 %v25065_v34, %v25064_v23 }
0x24bf   :  { %v25067_v43 = vsel %vm135_vm0, %v25039_v18, 0.0  ;;  %v25040_v55 = vadd.f32 %v34437_v2, %v25018_v56  ;;  %v25019_v42 = vmul.f32 %v34429_v25, %v24997_v12 }
0x24c0   :  { %v25068_v60 = vadd.f32 %v25067_v43, %v25066_v33 }
0x24c1   :  { %v25069_v5 = vsel %vm135_vm0, %v25040_v55, 0.0  ;;  %v25041_v48 = vadd.f32 %v34437_v2, %v25019_v42 }
0x24c2   :  { %v25070_v9 = vadd.f32 %v25069_v5, %v25068_v60 }
0x24c3   :  { %v25071_v22 = vsel %vm135_vm0, %v25041_v48, 0.0 }
0x24c4   :  { %v25072_v28 = vadd.f32 %v25071_v22, %v25070_v9 }
0x24c6   :  { %v25074_v24 = vmul.f32 0.0625, %v25072_v28 }
0x24c8   :  { %v25075_v1 = vpack.c.bf16 %v25074_v24, %v25074_v24 }
0x24ca   :  { %28090 = vmatmul.mubr.msk.bf16.vlgmr.msra.gmra.mrb[64].mxu1 %vm135_vm0, %v25075_v1 }
0x259d   :  { %v25136_v25 = vpop.f32.mrb[64].mxu1 }
0x259e   :  { %v25137_v37 = vadd.f32 %v25750_v61, %v25136_v25  ;;  %v28091_v58 = vpop.f32.mrb[65].mxu1 }
0x259f   :  { %v25139_v2 = vpop.f32.mrb[66].mxu1 }
0x25a0   :  { %v28092_v19 = vpop.f32.mrb[67].mxu1  ;;  %25143 = vst.msk [vmem:[#allocation2] sm:$0xff] %vm25142_vm4, %v25137_v37 }
0x25a1   :  { %28890 = shalt.err (!%p28887_p4)
}
0x25a2   :  { %s28891_s26 = scalar_lea.hbm %s34541_s27, 128 }
0x25a3   :  { %p28892_p5 = scmp.ne.s32.totalorder %s34541_s27, %s28891_s26  ;;  %p28895_p6 = scmp.lt.u32.totalorder %s28891_s26, %s34541_s27 }
0x25a5   :  { %p28897_p7 = pnand %p28895_p6, %p28892_p5 }
0x25a7   :  { %28900 = shalt.err (!%p28897_p7)
}
0x25a8   :  { %25153 = dma.vmem_to_hbm [thread:$0]  %s25151_s0, 128, %s34541_s27, [#allocation3]  }
0x25a9   :  { %28901 = dma.done.wait [#allocation3], 128  }
0x25aa   :  { %28902 = vsyncadd [#allocation3], 4294967168 }
0x25ab   :  { %25157 = vsyncpa [#allocation3], 1 }

</bundles_post_ra>
